<compile_context>
chip_gen: v6e
topology: v6e:2x2x1
jax: 0.10.0
libtpu: 0.0.40
codegen_flags: <defaults>
</compile_context>

<pallas_src>
import functools

import numpy as np
import jax
import jax.numpy as jnp
from jax.experimental import pallas as pl
from jax.experimental.pallas import tpu as pltpu


# ----------------------------------------------------------------------------
# Pallas kernels: fused (matmul + bias [+ residual] [+ ReLU]) tile
# ----------------------------------------------------------------------------
def _mm_bias_kernel(x_ref, w_ref, b_ref, o_ref, *, apply_relu):
    # x_ref: (TM, K) bf16, w_ref: (K, Coutp) bf16, b_ref: (1, Coutp) f32
    acc = jnp.dot(x_ref[...], w_ref[...], preferred_element_type=jnp.float32)
    acc = acc + b_ref[...]
    if apply_relu:
        acc = jnp.maximum(acc, 0.0)
    o_ref[...] = acc.astype(o_ref.dtype)


def _mm_bias_res_kernel(x_ref, w_ref, b_ref, r_ref, o_ref, *, apply_relu):
    # Same as above with a fused additive residual r_ref: (TM, 1) f32.
    acc = jnp.dot(x_ref[...], w_ref[...], preferred_element_type=jnp.float32)
    acc = acc + b_ref[...] + r_ref[...]
    if apply_relu:
        acc = jnp.maximum(acc, 0.0)
    o_ref[...] = acc.astype(o_ref.dtype)


def _round_up(x, k):
    return ((x + k - 1) // k) * k


def _choose_tm(m):
    # Big sublane-dense tiles, but keep >= 2 grid steps whenever the problem
    # allows so both v7x TensorCores get work (no effect on v5e/v6e).
    tm = 1024
    while tm > 128 and m <= tm:
        tm //= 2
    return tm


def matmul_bias_act(x, w, b, *, relu, residual=None, out_dtype=jnp.bfloat16):
    """act(x @ w + b [+ residual]).  x:(M,K) bf16, w:(K,Cout) bf16, b:(Cout,) f32."""
    M, K = x.shape
    Cout = w.shape[1]
    Coutp = _round_up(max(Cout, 8), 8)
    if Coutp != Cout:
        w = jnp.pad(w, ((0, 0), (0, Coutp - Cout)))
        b = jnp.pad(b, (0, Coutp - Cout))

    TM = _choose_tm(M)
    Mp = _round_up(M, TM)
    if Mp != M:
        x = jnp.pad(x, ((0, Mp - M), (0, 0)))
        if residual is not None:
            residual = jnp.pad(residual, ((0, Mp - M), (0, 0)))

    in_specs = [
        pl.BlockSpec((TM, K), lambda i: (i, 0)),
        pl.BlockSpec((K, Coutp), lambda i: (0, 0)),
        pl.BlockSpec((1, Coutp), lambda i: (0, 0)),
    ]
    args = [x, w, b.reshape(1, Coutp).astype(jnp.float32)]
    if residual is None:
        kernel = functools.partial(_mm_bias_kernel, apply_relu=relu)
    else:
        in_specs.append(pl.BlockSpec((TM, residual.shape[1]), lambda i: (i, 0)))
        args.append(residual.astype(jnp.float32))
        kernel = functools.partial(_mm_bias_res_kernel, apply_relu=relu)

    out = pl.pallas_call(
        kernel,
        out_shape=jax.ShapeDtypeStruct((Mp, Coutp), out_dtype),
        grid_spec=pltpu.PrefetchScalarGridSpec(
            num_scalar_prefetch=0,
            grid=(Mp // TM,),
            in_specs=in_specs,
            out_specs=pl.BlockSpec((TM, Coutp), lambda i: (i, 0)),
        ),
        compiler_params=pltpu.CompilerParams(
            dimension_semantics=("parallel",),
            vmem_limit_bytes=32 * 1024 * 1024,
        ),
    )(*args)
    return out[:M, :Cout]


# ----------------------------------------------------------------------------
# Conv wrappers (NHWC, layout glue in JAX, contraction in Pallas)
# ----------------------------------------------------------------------------
def conv3x3_nhwc(x, w_folded, b, *, relu, residual=None, out_dtype=jnp.bfloat16):
    """3x3 stride-1 pad-1 conv.  x: (B,H,W,Cin) NHWC; w_folded: (9*Cin, Cout) bf16."""
    B, H, W, Cin = x.shape
    x = x.astype(jnp.bfloat16)
    xp = jnp.pad(x, ((0, 0), (1, 1), (1, 1), (0, 0)))
    # im2col with the 9 taps folded into the contraction dim (K = 9*Cin), bf16.
    cols = [xp[:, kh:kh + H, kw:kw + W, :] for kh in range(3) for kw in range(3)]
    xcol = jnp.concatenate(cols, axis=-1).reshape(B * H * W, 9 * Cin)
    out = matmul_bias_act(xcol, w_folded, b, relu=relu, residual=residual,
                          out_dtype=out_dtype)
    return out.reshape(B, H, W, out.shape[-1])


def conv_transpose2x_nhwc(x, w_folded4, b4, cout, *, relu, out_dtype=jnp.bfloat16):
    """ConvTranspose2d(k=4, s=2, p=1) via sub-pixel phases: a single 3x3-window
    matmul with a (9*Cin, 4*Cout) weight, then depth-to-space interleave."""
    B, H, W, _ = x.shape
    y = conv3x3_nhwc(x, w_folded4, b4, relu=relu, out_dtype=out_dtype)  # (B,H,W,4*cout)
    y = y.reshape(B, H, W, 2, 2, cout)
    y = jnp.transpose(y, (0, 1, 3, 2, 4, 5)).reshape(B, 2 * H, 2 * W, cout)
    return y


# ----------------------------------------------------------------------------
# Weight folding (done once, outside jit)
# ----------------------------------------------------------------------------
def fold_conv_weight(w):
    # PyTorch Conv2d weight (Cout, Cin, 3, 3) -> (9*Cin, Cout), tap-major / cin-minor.
    Cout, Cin, KH, KW = w.shape
    return jnp.transpose(w, (2, 3, 1, 0)).reshape(KH * KW * Cin, Cout).astype(jnp.bfloat16)


def fold_conv_transpose_weight(w, b):
    # PyTorch ConvTranspose2d(stride=2, padding=1) weight (Cin, Cout, 4, 4)
    # -> sub-pixel form (9*Cin, 4*Cout); output column = (py*2 + px)*Cout + co.
    # Phase (py, px) of output pixel (2m+py, 2n+px) uses window taps
    # (r, s) in {py, py+1} x {px, px+1} of the zero-padded low-res 3x3 window
    # with transpose-conv weight index kh = 3 + py - 2r, kw = 3 + px - 2s.
    Cin, Cout = w.shape[0], w.shape[1]
    wc = jnp.zeros((3, 3, Cin, 2, 2, Cout), jnp.float32)
    for py in range(2):
        for px in range(2):
            for r in range(py, py + 2):
                for s in range(px, px + 2):
                    kh = 3 + py - 2 * r
                    kw = 3 + px - 2 * s
                    wc = wc.at[r, s, :, py, px, :].set(w[:, :, kh, kw])
    wf = wc.reshape(9 * Cin, 4 * Cout).astype(jnp.bfloat16)
    bf = jnp.tile(b, 4).astype(jnp.float32)
    return wf, bf


# ----------------------------------------------------------------------------
# net2x forward (mirrors the PyTorch module, NHWC end-to-end)
# ----------------------------------------------------------------------------
def alt_filter_nhwc(x, p, an):
    # x: (N*an*an, h, w, 64) NHWC
    B, h, w, c = x.shape
    N = B // (an * an)
    out = conv3x3_nhwc(x, p["spa_w"], p["spa_b"], relu=True)
    # spatial views -> angular views (matches torch.transpose(1, 3) reshuffle)
    out = out.reshape(N, an, an, h, w, c)
    out = jnp.transpose(out, (0, 3, 4, 1, 2, 5)).reshape(N * h * w, an, an, c)
    out = conv3x3_nhwc(out, p["ang_w"], p["ang_b"], relu=True)
    # angular views -> spatial views
    out = out.reshape(N, h, w, an, an, c)
    out = jnp.transpose(out, (0, 3, 4, 1, 2, 5)).reshape(N * an * an, h, w, c)
    return out


def net2x_forward(lr, fp, *, an, layer):
    an2 = an * an
    N, _, h, w = lr.shape
    x0 = lr.reshape(N * an2, h, w, 1)               # each view, NHWC, 1 channel
    x = conv3x3_nhwc(x0, fp["conv0_w"], fp["conv0_b"], relu=True)
    f_1 = x
    for i in range(layer):
        f_1 = alt_filter_nhwc(f_1, fp["alt"][i], an)
    fup_1 = conv_transpose2x_nhwc(f_1, fp["fup1_w"], fp["fup1_b"], 64, relu=True)
    iup_1 = conv_transpose2x_nhwc(x0, fp["iup1_w"], fp["iup1_b"], 1, relu=False,
                                  out_dtype=jnp.float32)
    iup_flat = iup_1.reshape(N * an2 * 2 * h * 2 * w, 1)
    # res1 conv with the final residual add (res_1 + iup_1) fused in-kernel.
    sr = conv3x3_nhwc(fup_1, fp["res1_w"], fp["res1_b"], relu=False,
                      residual=iup_flat, out_dtype=jnp.float32)   # (B, 2h, 2w, 1)
    sr_2x = sr.reshape(N, an2, 2 * h, 2 * w)
    return [sr_2x]


# ----------------------------------------------------------------------------
# Deterministic parameter construction
# ----------------------------------------------------------------------------
def get_upsample_filter(size):
    factor = (size + 1) // 2
    center = factor - 1 if size % 2 == 1 else factor - 0.5
    og = np.ogrid[:size, :size]
    filt = (1 - abs(og[0] - center) / factor) * (1 - abs(og[1] - center) / factor)
    return jnp.asarray(filt, jnp.float32)


def init_params(key, an, layer):
    def conv_init(k, cout, cin, ksz):
        kw_, kb_ = jax.random.split(k)
        w = jax.random.normal(kw_, (cout, cin, ksz, ksz), jnp.float32) * 0.05
        b = jax.random.normal(kb_, (cout,), jnp.float32) * 0.01
        return w, b

    keys = jax.random.split(key, 2 + 2 * layer)
    params = {}
    params["conv0_w"], params["conv0_b"] = conv_init(keys[0], 64, 1, 3)
    alts = []
    for i in range(layer):
        sw, sb = conv_init(keys[1 + 2 * i], 64, 64, 3)
        aw, ab = conv_init(keys[2 + 2 * i], 64, 64, 3)
        alts.append({"spa_w": sw, "spa_b": sb, "ang_w": aw, "ang_b": ab})
    params["alt"] = alts
    params["res1_w"], params["res1_b"] = conv_init(keys[1 + 2 * layer], 1, 64, 3)

    # ConvTranspose2d layers: bilinear upsample filter init, zero bias
    # (matches the PyTorch module's constructor).
    filt4 = get_upsample_filter(4)
    params["fup1_w"] = jnp.tile(filt4[None, None], (64, 64, 1, 1))  # (Cin,Cout,4,4)
    params["fup1_b"] = jnp.zeros((64,), jnp.float32)
    params["iup1_w"] = jnp.tile(filt4[None, None], (1, 1, 1, 1))    # (1,1,4,4)
    params["iup1_b"] = jnp.zeros((1,), jnp.float32)
    return params


def prepare_params(params, layer):
    fp = {
        "conv0_w": fold_conv_weight(params["conv0_w"]),
        "conv0_b": params["conv0_b"],
        "res1_w": fold_conv_weight(params["res1_w"]),
        "res1_b": params["res1_b"],
        "alt": [],
    }
    for i in range(layer):
        a = params["alt"][i]
        fp["alt"].append({
            "spa_w": fold_conv_weight(a["spa_w"]), "spa_b": a["spa_b"],
            "ang_w": fold_conv_weight(a["ang_w"]), "ang_b": a["ang_b"],
        })
    fp["fup1_w"], fp["fup1_b"] = fold_conv_transpose_weight(params["fup1_w"],
                                                            params["fup1_b"])
    fp["iup1_w"], fp["iup1_b"] = fold_conv_transpose_weight(params["iup1_w"],
                                                            params["iup1_b"])
    return fp


if __name__ == "__main__":
    AN = 2       # angular resolution  -> an2 = 4 views
    LAYER = 2    # number of AltFilter blocks
    N, H, W = 2, 8, 8

    key = jax.random.PRNGKey(0)
    kp, kx = jax.random.split(key)
    params = init_params(kp, AN, LAYER)
    fparams = prepare_params(params, LAYER)      # fold weights once, outside jit
    lr = jax.random.normal(kx, (N, AN * AN, H, W), jnp.float32)

    fwd = jax.jit(functools.partial(net2x_forward, an=AN, layer=LAYER))
    out = fwd(lr, fparams)
    sr_2x = jax.block_until_ready(out[0])
    assert sr_2x.shape == (N, AN * AN, 2 * H, 2 * W), sr_2x.shape
    assert sr_2x.dtype == jnp.float32
    print("KERNEL_OK")
</pallas_src>

<mosaic_0001>
module attributes {stable_mosaic.version = 11 : i64} {
  func.func @_mm_bias_kernel(%arg0: i32, %arg1: memref<256x9xbf16, #tpu.memory_space<vmem>>, %arg2: memref<9x64xbf16, #tpu.memory_space<vmem>>, %arg3: memref<1x64xf32, #tpu.memory_space<vmem>>, %arg4: memref<256x64xbf16, #tpu.memory_space<vmem>>) attributes {dimension_semantics = [#tpu.dimension_semantics<parallel>], iteration_bounds = array<i64: 2>, scalar_prefetch = 0 : i64, scratch_operands = 0 : i64, tpu.core_type = #tpu.core_type<tc>, window_params = [{transform_indices = @transform_0, window_bounds = array<i64: 256, 9>}, {pipeline_mode = #tpu.pipeline_mode<synchronous>, transform_indices = @transform_1, window_bounds = array<i64: 9, 64>}, {pipeline_mode = #tpu.pipeline_mode<synchronous>, transform_indices = @transform_2, window_bounds = array<i64: 1, 64>}, {transform_indices = @transform_3, window_bounds = array<i64: 256, 64>}]} {
    %c0 = arith.constant 0 : index
    %c0_0 = arith.constant 0 : index
    %0 = vector.load %arg1[%c0, %c0_0] : memref<256x9xbf16, #tpu.memory_space<vmem>>, vector<256x9xbf16>
    %c0_1 = arith.constant 0 : index
    %c0_2 = arith.constant 0 : index
    %1 = vector.load %arg2[%c0_1, %c0_2] : memref<9x64xbf16, #tpu.memory_space<vmem>>, vector<9x64xbf16>
    %cst = arith.constant dense<0.000000e+00> : vector<256x64xf32>
    %2 = tpu.matmul %0, %1, %cst {dimension_numbers = #tpu.dot_dimension_numbers<[1], [0], [0], [1], [0, 0, 1, 1], [], []>} : vector<256x9xbf16>, vector<9x64xbf16>, vector<256x64xf32> -> vector<256x64xf32>
    %c0_3 = arith.constant 0 : index
    %c0_4 = arith.constant 0 : index
    %3 = vector.load %arg3[%c0_3, %c0_4] : memref<1x64xf32, #tpu.memory_space<vmem>>, vector<1x64xf32>
    %4 = vector.broadcast %3 : vector<1x64xf32> to vector<256x64xf32>
    %5 = arith.addf %2, %4 : vector<256x64xf32>
    %cst_5 = arith.constant 0.000000e+00 : f32
    %6 = vector.broadcast %cst_5 : f32 to vector<256x64xf32>
    %7 = arith.maximumf %5, %6 : vector<256x64xf32>
    %8 = arith.truncf %7 : vector<256x64xf32> to vector<256x64xbf16>
    %c0_6 = arith.constant 0 : index
    %c0_7 = arith.constant 0 : index
    %9 = vector.load %arg4[%c0_6, %c0_7] : memref<256x64xbf16, #tpu.memory_space<vmem>>, vector<256x64xbf16>
    tpu.vector_store %arg4[%c0_6, %c0_7], %8 {strides = array<i32>} : memref<256x64xbf16, #tpu.memory_space<vmem>>, vector<256x64xbf16>,
    return
  }
  func.func @transform_0(%arg0: i32) -> (i32, i32) {
    %c0_i32 = arith.constant 0 : i32
    %c0_i32_0 = arith.constant 0 : i32
    return %arg0, %c0_i32 : i32, i32
  }
  func.func @transform_1(%arg0: i32) -> (i32, i32) {
    %c0_i32 = arith.constant 0 : i32
    %c0_i32_0 = arith.constant 0 : i32
    %c0_i32_1 = arith.constant 0 : i32
    return %c0_i32, %c0_i32_0 : i32, i32
  }
  func.func @transform_2(%arg0: i32) -> (i32, i32) {
    %c0_i32 = arith.constant 0 : i32
    %c0_i32_0 = arith.constant 0 : i32
    %c0_i32_1 = arith.constant 0 : i32
    return %c0_i32, %c0_i32_0 : i32, i32
  }
  func.func @transform_3(%arg0: i32) -> (i32, i32) {
    %c0_i32 = arith.constant 0 : i32
    %c0_i32_0 = arith.constant 0 : i32
    return %arg0, %c0_i32 : i32, i32
  }
}

module attributes {stable_mosaic.version = 11 : i64} {
  func.func @_mm_bias_kernel(%arg0: i32, %arg1: memref<256x576xbf16, #tpu.memory_space<vmem>>, %arg2: memref<576x64xbf16, #tpu.memory_space<vmem>>, %arg3: memref<1x64xf32, #tpu.memory_space<vmem>>, %arg4: memref<256x64xbf16, #tpu.memory_space<vmem>>) attributes {dimension_semantics = [#tpu.dimension_semantics<parallel>], iteration_bounds = array<i64: 2>, scalar_prefetch = 0 : i64, scratch_operands = 0 : i64, tpu.core_type = #tpu.core_type<tc>, window_params = [{transform_indices = @transform_0, window_bounds = array<i64: 256, 576>}, {pipeline_mode = #tpu.pipeline_mode<synchronous>, transform_indices = @transform_1, window_bounds = array<i64: 576, 64>}, {pipeline_mode = #tpu.pipeline_mode<synchronous>, transform_indices = @transform_2, window_bounds = array<i64: 1, 64>}, {transform_indices = @transform_3, window_bounds = array<i64: 256, 64>}]} {
    %c0 = arith.constant 0 : index
    %c0_0 = arith.constant 0 : index
    %0 = vector.load %arg1[%c0, %c0_0] : memref<256x576xbf16, #tpu.memory_space<vmem>>, vector<256x576xbf16>
    %c0_1 = arith.constant 0 : index
    %c0_2 = arith.constant 0 : index
    %1 = vector.load %arg2[%c0_1, %c0_2] : memref<576x64xbf16, #tpu.memory_space<vmem>>, vector<576x64xbf16>
    %cst = arith.constant dense<0.000000e+00> : vector<256x64xf32>
    %2 = tpu.matmul %0, %1, %cst {dimension_numbers = #tpu.dot_dimension_numbers<[1], [0], [0], [1], [0, 0, 1, 1], [], []>} : vector<256x576xbf16>, vector<576x64xbf16>, vector<256x64xf32> -> vector<256x64xf32>
    %c0_3 = arith.constant 0 : index
    %c0_4 = arith.constant 0 : index
    %3 = vector.load %arg3[%c0_3, %c0_4] : memref<1x64xf32, #tpu.memory_space<vmem>>, vector<1x64xf32>
    %4 = vector.broadcast %3 : vector<1x64xf32> to vector<256x64xf32>
    %5 = arith.addf %2, %4 : vector<256x64xf32>
    %cst_5 = arith.constant 0.000000e+00 : f32
    %6 = vector.broadcast %cst_5 : f32 to vector<256x64xf32>
    %7 = arith.maximumf %5, %6 : vector<256x64xf32>
    %8 = arith.truncf %7 : vector<256x64xf32> to vector<256x64xbf16>
    %c0_6 = arith.constant 0 : index
    %c0_7 = arith.constant 0 : index
    %9 = vector.load %arg4[%c0_6, %c0_7] : memref<256x64xbf16, #tpu.memory_space<vmem>>, vector<256x64xbf16>
    tpu.vector_store %arg4[%c0_6, %c0_7], %8 {strides = array<i32>} : memref<256x64xbf16, #tpu.memory_space<vmem>>, vector<256x64xbf16>,
    return
  }
  func.func @transform_0(%arg0: i32) -> (i32, i32) {
    %c0_i32 = arith.constant 0 : i32
    %c0_i32_0 = arith.constant 0 : i32
    return %arg0, %c0_i32 : i32, i32
  }
  func.func @transform_1(%arg0: i32) -> (i32, i32) {
    %c0_i32 = arith.constant 0 : i32
    %c0_i32_0 = arith.constant 0 : i32
    %c0_i32_1 = arith.constant 0 : i32
    return %c0_i32, %c0_i32_0 : i32, i32
  }
  func.func @transform_2(%arg0: i32) -> (i32, i32) {
    %c0_i32 = arith.constant 0 : i32
    %c0_i32_0 = arith.constant 0 : i32
    %c0_i32_1 = arith.constant 0 : i32
    return %c0_i32, %c0_i32_0 : i32, i32
  }
  func.func @transform_3(%arg0: i32) -> (i32, i32) {
    %c0_i32 = arith.constant 0 : i32
    %c0_i32_0 = arith.constant 0 : i32
    return %arg0, %c0_i32 : i32, i32
  }
}

module attributes {stable_mosaic.version = 11 : i64} {
  func.func @_mm_bias_kernel(%arg0: i32, %arg1: memref<256x576xbf16, #tpu.memory_space<vmem>>, %arg2: memref<576x256xbf16, #tpu.memory_space<vmem>>, %arg3: memref<1x256xf32, #tpu.memory_space<vmem>>, %arg4: memref<256x256xbf16, #tpu.memory_space<vmem>>) attributes {dimension_semantics = [#tpu.dimension_semantics<parallel>], iteration_bounds = array<i64: 2>, scalar_prefetch = 0 : i64, scratch_operands = 0 : i64, tpu.core_type = #tpu.core_type<tc>, window_params = [{transform_indices = @transform_0, window_bounds = array<i64: 256, 576>}, {pipeline_mode = #tpu.pipeline_mode<synchronous>, transform_indices = @transform_1, window_bounds = array<i64: 576, 256>}, {pipeline_mode = #tpu.pipeline_mode<synchronous>, transform_indices = @transform_2, window_bounds = array<i64: 1, 256>}, {transform_indices = @transform_3, window_bounds = array<i64: 256, 256>}]} {
    %c0 = arith.constant 0 : index
    %c0_0 = arith.constant 0 : index
    %0 = vector.load %arg1[%c0, %c0_0] : memref<256x576xbf16, #tpu.memory_space<vmem>>, vector<256x576xbf16>
    %c0_1 = arith.constant 0 : index
    %c0_2 = arith.constant 0 : index
    %1 = vector.load %arg2[%c0_1, %c0_2] : memref<576x256xbf16, #tpu.memory_space<vmem>>, vector<576x256xbf16>
    %cst = arith.constant dense<0.000000e+00> : vector<256x256xf32>
    %2 = tpu.matmul %0, %1, %cst {dimension_numbers = #tpu.dot_dimension_numbers<[1], [0], [0], [1], [0, 0, 1, 1], [], []>} : vector<256x576xbf16>, vector<576x256xbf16>, vector<256x256xf32> -> vector<256x256xf32>
    %c0_3 = arith.constant 0 : index
    %c0_4 = arith.constant 0 : index
    %3 = vector.load %arg3[%c0_3, %c0_4] : memref<1x256xf32, #tpu.memory_space<vmem>>, vector<1x256xf32>
    %4 = vector.broadcast %3 : vector<1x256xf32> to vector<256x256xf32>
    %5 = arith.addf %2, %4 : vector<256x256xf32>
    %cst_5 = arith.constant 0.000000e+00 : f32
    %6 = vector.broadcast %cst_5 : f32 to vector<256x256xf32>
    %7 = arith.maximumf %5, %6 : vector<256x256xf32>
    %8 = arith.truncf %7 : vector<256x256xf32> to vector<256x256xbf16>
    %c0_6 = arith.constant 0 : index
    %c0_7 = arith.constant 0 : index
    %9 = vector.load %arg4[%c0_6, %c0_7] : memref<256x256xbf16, #tpu.memory_space<vmem>>, vector<256x256xbf16>
    tpu.vector_store %arg4[%c0_6, %c0_7], %8 {strides = array<i32>} : memref<256x256xbf16, #tpu.memory_space<vmem>>, vector<256x256xbf16>,
    return
  }
  func.func @transform_0(%arg0: i32) -> (i32, i32) {
    %c0_i32 = arith.constant 0 : i32
    %c0_i32_0 = arith.constant 0 : i32
    return %arg0, %c0_i32 : i32, i32
  }
  func.func @transform_1(%arg0: i32) -> (i32, i32) {
    %c0_i32 = arith.constant 0 : i32
    %c0_i32_0 = arith.constant 0 : i32
    %c0_i32_1 = arith.constant 0 : i32
    return %c0_i32, %c0_i32_0 : i32, i32
  }
  func.func @transform_2(%arg0: i32) -> (i32, i32) {
    %c0_i32 = arith.constant 0 : i32
    %c0_i32_0 = arith.constant 0 : i32
    %c0_i32_1 = arith.constant 0 : i32
    return %c0_i32, %c0_i32_0 : i32, i32
  }
  func.func @transform_3(%arg0: i32) -> (i32, i32) {
    %c0_i32 = arith.constant 0 : i32
    %c0_i32_0 = arith.constant 0 : i32
    return %arg0, %c0_i32 : i32, i32
  }
}

module attributes {stable_mosaic.version = 11 : i64} {
  func.func @_mm_bias_kernel(%arg0: i32, %arg1: memref<256x9xbf16, #tpu.memory_space<vmem>>, %arg2: memref<9x8xbf16, #tpu.memory_space<vmem>>, %arg3: memref<1x8xf32, #tpu.memory_space<vmem>>, %arg4: memref<256x8xf32, #tpu.memory_space<vmem>>) attributes {dimension_semantics = [#tpu.dimension_semantics<parallel>], iteration_bounds = array<i64: 2>, scalar_prefetch = 0 : i64, scratch_operands = 0 : i64, tpu.core_type = #tpu.core_type<tc>, window_params = [{transform_indices = @transform_0, window_bounds = array<i64: 256, 9>}, {pipeline_mode = #tpu.pipeline_mode<synchronous>, transform_indices = @transform_1, window_bounds = array<i64: 9, 8>}, {pipeline_mode = #tpu.pipeline_mode<synchronous>, transform_indices = @transform_2, window_bounds = array<i64: 1, 8>}, {transform_indices = @transform_3, window_bounds = array<i64: 256, 8>}]} {
    %c0 = arith.constant 0 : index
    %c0_0 = arith.constant 0 : index
    %0 = vector.load %arg1[%c0, %c0_0] : memref<256x9xbf16, #tpu.memory_space<vmem>>, vector<256x9xbf16>
    %c0_1 = arith.constant 0 : index
    %c0_2 = arith.constant 0 : index
    %1 = vector.load %arg2[%c0_1, %c0_2] : memref<9x8xbf16, #tpu.memory_space<vmem>>, vector<9x8xbf16>
    %cst = arith.constant dense<0.000000e+00> : vector<256x8xf32>
    %2 = tpu.matmul %0, %1, %cst {dimension_numbers = #tpu.dot_dimension_numbers<[1], [0], [0], [1], [0, 0, 1, 1], [], []>} : vector<256x9xbf16>, vector<9x8xbf16>, vector<256x8xf32> -> vector<256x8xf32>
    %c0_3 = arith.constant 0 : index
    %c0_4 = arith.constant 0 : index
    %3 = vector.load %arg3[%c0_3, %c0_4] : memref<1x8xf32, #tpu.memory_space<vmem>>, vector<1x8xf32>
    %4 = vector.broadcast %3 : vector<1x8xf32> to vector<256x8xf32>
    %5 = arith.addf %2, %4 : vector<256x8xf32>
    %c0_5 = arith.constant 0 : index
    %c0_6 = arith.constant 0 : index
    %6 = vector.load %arg4[%c0_5, %c0_6] : memref<256x8xf32, #tpu.memory_space<vmem>>, vector<256x8xf32>
    tpu.vector_store %arg4[%c0_5, %c0_6], %5 {strides = array<i32>} : memref<256x8xf32, #tpu.memory_space<vmem>>, vector<256x8xf32>,
    return
  }
  func.func @transform_0(%arg0: i32) -> (i32, i32) {
    %c0_i32 = arith.constant 0 : i32
    %c0_i32_0 = arith.constant 0 : i32
    return %arg0, %c0_i32 : i32, i32
  }
  func.func @transform_1(%arg0: i32) -> (i32, i32) {
    %c0_i32 = arith.constant 0 : i32
    %c0_i32_0 = arith.constant 0 : i32
    %c0_i32_1 = arith.constant 0 : i32
    return %c0_i32, %c0_i32_0 : i32, i32
  }
  func.func @transform_2(%arg0: i32) -> (i32, i32) {
    %c0_i32 = arith.constant 0 : i32
    %c0_i32_0 = arith.constant 0 : i32
    %c0_i32_1 = arith.constant 0 : i32
    return %c0_i32, %c0_i32_0 : i32, i32
  }
  func.func @transform_3(%arg0: i32) -> (i32, i32) {
    %c0_i32 = arith.constant 0 : i32
    %c0_i32_0 = arith.constant 0 : i32
    return %arg0, %c0_i32 : i32, i32
  }
}

module attributes {stable_mosaic.version = 11 : i64} {
  func.func @_mm_bias_res_kernel(%arg0: i32, %arg1: memref<1024x576xbf16, #tpu.memory_space<vmem>>, %arg2: memref<576x8xbf16, #tpu.memory_space<vmem>>, %arg3: memref<1x8xf32, #tpu.memory_space<vmem>>, %arg4: memref<1024x1xf32, #tpu.memory_space<vmem>>, %arg5: memref<1024x8xf32, #tpu.memory_space<vmem>>) attributes {dimension_semantics = [#tpu.dimension_semantics<parallel>], iteration_bounds = array<i64: 2>, scalar_prefetch = 0 : i64, scratch_operands = 0 : i64, tpu.core_type = #tpu.core_type<tc>, window_params = [{transform_indices = @transform_0, window_bounds = array<i64: 1024, 576>}, {pipeline_mode = #tpu.pipeline_mode<synchronous>, transform_indices = @transform_1, window_bounds = array<i64: 576, 8>}, {pipeline_mode = #tpu.pipeline_mode<synchronous>, transform_indices = @transform_2, window_bounds = array<i64: 1, 8>}, {transform_indices = @transform_3, window_bounds = array<i64: 1024, 1>}, {transform_indices = @transform_4, window_bounds = array<i64: 1024, 8>}]} {
    %c0 = arith.constant 0 : index
    %c0_0 = arith.constant 0 : index
    %0 = vector.load %arg1[%c0, %c0_0] : memref<1024x576xbf16, #tpu.memory_space<vmem>>, vector<1024x576xbf16>
    %c0_1 = arith.constant 0 : index
    %c0_2 = arith.constant 0 : index
    %1 = vector.load %arg2[%c0_1, %c0_2] : memref<576x8xbf16, #tpu.memory_space<vmem>>, vector<576x8xbf16>
    %cst = arith.constant dense<0.000000e+00> : vector<1024x8xf32>
    %2 = tpu.matmul %0, %1, %cst {dimension_numbers = #tpu.dot_dimension_numbers<[1], [0], [0], [1], [0, 0, 1, 1], [], []>} : vector<1024x576xbf16>, vector<576x8xbf16>, vector<1024x8xf32> -> vector<1024x8xf32>
    %c0_3 = arith.constant 0 : index
    %c0_4 = arith.constant 0 : index
    %3 = vector.load %arg3[%c0_3, %c0_4] : memref<1x8xf32, #tpu.memory_space<vmem>>, vector<1x8xf32>
    %4 = vector.broadcast %3 : vector<1x8xf32> to vector<1024x8xf32>
    %5 = arith.addf %2, %4 : vector<1024x8xf32>
    %c0_5 = arith.constant 0 : index
    %c0_6 = arith.constant 0 : index
    %6 = vector.load %arg4[%c0_5, %c0_6] : memref<1024x1xf32, #tpu.memory_space<vmem>>, vector<1024x1xf32>
    %7 = vector.broadcast %6 : vector<1024x1xf32> to vector<1024x8xf32>
    %8 = arith.addf %5, %7 : vector<1024x8xf32>
    %c0_7 = arith.constant 0 : index
    %c0_8 = arith.constant 0 : index
    %9 = vector.load %arg5[%c0_7, %c0_8] : memref<1024x8xf32, #tpu.memory_space<vmem>>, vector<1024x8xf32>
    tpu.vector_store %arg5[%c0_7, %c0_8], %8 {strides = array<i32>} : memref<1024x8xf32, #tpu.memory_space<vmem>>, vector<1024x8xf32>,
    return
  }
  func.func @transform_0(%arg0: i32) -> (i32, i32) {
    %c0_i32 = arith.constant 0 : i32
    %c0_i32_0 = arith.constant 0 : i32
    return %arg0, %c0_i32 : i32, i32
  }
  func.func @transform_1(%arg0: i32) -> (i32, i32) {
    %c0_i32 = arith.constant 0 : i32
    %c0_i32_0 = arith.constant 0 : i32
    %c0_i32_1 = arith.constant 0 : i32
    return %c0_i32, %c0_i32_0 : i32, i32
  }
  func.func @transform_2(%arg0: i32) -> (i32, i32) {
    %c0_i32 = arith.constant 0 : i32
    %c0_i32_0 = arith.constant 0 : i32
    %c0_i32_1 = arith.constant 0 : i32
    return %c0_i32, %c0_i32_0 : i32, i32
  }
  func.func @transform_3(%arg0: i32) -> (i32, i32) {
    %c0_i32 = arith.constant 0 : i32
    %c0_i32_0 = arith.constant 0 : i32
    return %arg0, %c0_i32 : i32, i32
  }
  func.func @transform_4(%arg0: i32) -> (i32, i32) {
    %c0_i32 = arith.constant 0 : i32
    %c0_i32_0 = arith.constant 0 : i32
    return %arg0, %c0_i32 : i32, i32
  }
}

</mosaic_0001>

<bundles_post_ra>
// kernel: net2x_forward.8
= control target key start
LH: loop header
LB: loop body
LE: loop exit
PB: predicated region body
PF: predicated region fallthrough
CT: control target
= control target key end

     0   :  { %8 = vsyncpa [#allocation3], 0  ;;  %s1331_s0 = inlined_call_operand.vmem [shape: bf16[512,9], index: 0, kind: input, shape index: {}]   ;;  %s1332_s1 = inlined_call_operand.hbm [shape: bf16[9,64], index: 1, kind: input, shape index: {}]   ;;  %s1333_s2 = inlined_call_operand.hbm [shape: f32[1,64], index: 2, kind: input, shape index: {}]   ;;  %s1334_s3 = inlined_call_operand.vmem [shape: bf16[512,64], index: 3, kind: output, shape index: {}]  }
   0x1   :  { %9 = vsyncpa [#allocation5], 0  ;;  %s1125_s12 = smov 0  }
   0x2 LB: > { %s817_s13 = sadd.s32 4294967295, %s1098_s12   ;;  %p819_p0 = scmp.ge.s32.totalorder %s1098_s12, 1  ;;  %s1098_s12 = sphi %s1125_s12, %s15_s12  }
   0x3   : > { %p114_p1 = scmp.lt.s32.totalorder %s1098_s12, 3  ;;  %s1100_s14 = smov [#allocation2]  }
   0x4   : > { %s126_s15 = sshll.u32 %s1100_s14, 4  ;;  %p1139_p3 = scmp.eq.s32.totalorder %s817_s13, 0  ;;  %s127_s15 = int_to_ptr.vmem [resolvable:$true] %s126_s15 }
   0x5   : > { %p1133_p2 = pnand %p819_p0, %p114_p1  ;;  %s1101_s18 = smov [#allocation4]  }
   0x6   : > { %s140_s19 = sshll.u32 %s1101_s18, 4  ;;  %s1043_s21 = scalar_lea.vmem %s127_s15, 128  ;;  %s141_s19 = int_to_ptr.vmem [resolvable:$true] %s140_s19 }
   0x7   : > { %p991_p4 = pneg %p1133_p2  ;;  %p1044_p7 = scmp.ne.s32.totalorder %s127_s15, %s1043_s21 }
   0x8   : > { %p1051_p10 = scmp.lt.s32.totalorder %s127_s15, %s127_s15  ;;  %p1052_p11 = scmp.lt.s32.totalorder %s1043_s21, %s1043_s21 }
   0x9   : > { %p1147_p5 = pnand %p1139_p3, %p991_p4 }
   0xa   : > { %p1053_p12 = por %p1052_p11, %p1051_p10 }
   0xb   : > { %p1034_p6 = pneg %p1147_p5 }
   0xd   : > { %p1046_p8 = pnand %p1044_p7, %p1034_p6 }
   0xf   : > { %p1047_p9 = pneg %p1046_p8 }
  0x11   : > { %p1054_p13 = pnand %p1053_p12, %p1047_p9 }
  0x13   : > { %1057 = shalt.err (!%p1054_p13)
}
  0x14   : > { %s1102_s22 = smov 64   ;;  %s1103_s23 = smov 4  }
  0x15   : > { %994 = dma.hbm_to_vmem [thread:$0]  (!%p1147_p5), %s1332_s1, 128, %s127_s15, [#allocation3], %s1102_s22, %s1102_s22, %s1103_s23  }
  0x16   : > { %s1069_s26 = scalar_lea.vmem %s141_s19, 16  ;;  %s1076_s27 = scalar_lea.vmem %s141_s19, 32 }
  0x17   : > { %p1070_p0 = scmp.ne.s32.totalorder %s141_s19, %s1069_s26  ;;  %p1077_p7 = scmp.lt.s32.totalorder %s141_s19, %s141_s19 }
  0x18   : > { %p1078_p8 = scmp.lt.s32.totalorder %s1076_s27, %s1069_s26 }
  0x19   : > { %p1072_p1 = pnand %p1070_p0, %p1034_p6 }
  0x1a   : > { %p1079_p9 = por %p1078_p8, %p1077_p7 }
  0x1b   : > { %p1073_p4 = pneg %p1072_p1 }
  0x1d   : > { %p1080_p10 = pnand %p1079_p9, %p1073_p4 }
  0x1f   : > { %1083 = shalt.err (!%p1080_p10)
}
  0x20   : > { %997 = dma.hbm_to_vmem [thread:$0]  (!%p1147_p5), %s1333_s2, 16, %s141_s19, [#allocation5]  }
  0x21   : > { %162 = sbr.rel (%p1133_p2) target bundleno = 281 (0x119), region = 32 }
  0x26   : > { %1089 = dma.done.wait (%p1139_p3), [#allocation3], 128  }
  0x27   : > { %1091 = vsyncadd (%p1139_p3), [#allocation3], 4294967168 }
  0x28   : > { %1093 = dma.done.wait (%p1139_p3), [#allocation5], 16  }
  0x29   : > { %1095 = vsyncadd (%p1139_p3), [#allocation5], 4294967280  ;;  %vm378_vm0 = vcmask 1043456   ;;  %s826_s30 = sshll.u32 %s817_s13, 5  ;;  %vm379_vm1 = vcmask 1044480   ;;  %v1104_v0 = vmov 65535  }
  0x2a   : > { %p191_p5 = scmp.lt.s32.totalorder %s826_s30, 63  ;;  %v380_v1 = vsel %vm378_vm0, 4294967295, %v1104_v0  ;;  %vm329_vm2 = vcmask 72704   ;;  %v1015_v3 = vld [vmem:[#allocation2] sm:$0x1f]   ;;  %vm706_vm3 = vcmask 519168  }
  0x2b   : > { %v381_v2 = vsel %vm379_vm1, %v380_v1, 0  ;;  %v1223_v21 = vld [vmem:[#allocation4] ss:$0 sm:$0xff] }
  0x2c   : > { %s1339_s30 = smov (!%p191_p5, %s826_s30), 63  ;;  %v383_v5 = vand.u32 %v1015_v3, %v381_v2 }
  0x2d   : > { %s827_s4 = sshll.u32 %s1339_s30, 2 }
  0x2e   : > { %s1189_s7 = scalar_lea.vmem %s1331_s0, %s827_s4  ;;  %947 = vmatprep.subr.bf16.mxu0 %v383_v5  ;;  %981 = vmatprep.subr.bf16.mxu1 %v383_v5  ;;  %s1234_s10 = scalar_lea.vmem %s1334_s3, %s827_s4 }
  0x2f   : > { %v1016_v4 = vld [vmem:[%s1189_s7] sm:$0xff]   ;;  %v1018_v7 = vld [vmem:[%s1189_s7 + $0x8] sm:$0xff]   ;;  %948 = vmatpush3.bf16.msra.mxu0 %v383_v5  ;;  %982 = vmatpush3.bf16.msra.mxu1 %v383_v5  ;;  %v1020_v9 = vld [vmem:[%s1189_s7 + $0x10] sm:$0xff]  }
  0x30   : > { %v1017_v6 = vld [vmem:[%s1189_s7 + $0x40] sm:$0xff]   ;;  %949 = vmatprep.mubr.msk.bf16.mxu0 %vm329_vm2, %v1016_v4  ;;  %v1019_v8 = vld [vmem:[%s1189_s7 + $0x48] sm:$0xff]   ;;  %v1021_v10 = vld [vmem:[%s1189_s7 + $0x50] sm:$0xff]  }
  0x31   : > { %965 = vmatprep.mubr.msk.bf16.mxu1 %vm329_vm2, %v1017_v6  ;;  %v1022_v11 = vld [vmem:[%s1189_s7 + $0x18] sm:$0xff]   ;;  %v1024_v13 = vld [vmem:[%s1189_s7 + $0x20] sm:$0xff]   ;;  %v1026_v15 = vld [vmem:[%s1189_s7 + $0x28] sm:$0xff]  }
  0x32   : > { %950 = vmatmul.mubr.msk.bf16.vlgmr.msra.gmra.mxu0 %vm329_vm2, %v1018_v7  ;;  %966 = vmatmul.mubr.msk.bf16.vlgmr.msra.gmra.mxu1 %vm329_vm2, %v1019_v8  ;;  %v1023_v12 = vld [vmem:[%s1189_s7 + $0x58] sm:$0xff]   ;;  %v1025_v14 = vld [vmem:[%s1189_s7 + $0x60] sm:$0xff]   ;;  %v1027_v16 = vld [vmem:[%s1189_s7 + $0x68] sm:$0xff]  }
  0x33   : > { %953 = vmatprep.mubr.msk.bf16.mxu0 %vm329_vm2, %v1020_v9  ;;  %969 = vmatprep.mubr.msk.bf16.mxu1 %vm329_vm2, %v1021_v10  ;;  %v1028_v17 = vld [vmem:[%s1189_s7 + $0x30] sm:$0xff]   ;;  %v1030_v19 = vld [vmem:[%s1189_s7 + $0x38] sm:$0xff]  }
  0x34   : > { %v1029_v18 = vld [vmem:[%s1189_s7 + $0x70] sm:$0xff]   ;;  %v1031_v20 = vld [vmem:[%s1189_s7 + $0x78] sm:$0xff]  }
  0x3a   : > { %954 = vmatmul.mubr.msk.bf16.gmra.mxu0 %vm329_vm2, %v1022_v11  ;;  %970 = vmatmul.mubr.msk.bf16.gmra.mxu1 %vm329_vm2, %v1023_v12 }
  0x3b   : > { %957 = vmatprep.mubr.msk.bf16.mxu0 %vm329_vm2, %v1024_v13  ;;  %973 = vmatprep.mubr.msk.bf16.mxu1 %vm329_vm2, %v1025_v14 }
  0x42   : > { %958 = vmatmul.mubr.msk.bf16.gmra.mxu0 %vm329_vm2, %v1026_v15  ;;  %974 = vmatmul.mubr.msk.bf16.gmra.mxu1 %vm329_vm2, %v1027_v16 }
  0x43   : > { %961 = vmatprep.mubr.msk.bf16.mxu0 %vm329_vm2, %v1028_v17  ;;  %977 = vmatprep.mubr.msk.bf16.mxu1 %vm329_vm2, %v1029_v18 }
  0x4a   : > { %962 = vmatmul.mubr.msk.bf16.gmra.mxu0 %vm329_vm2, %v1030_v19  ;;  %978 = vmatmul.mubr.msk.bf16.gmra.mxu1 %vm329_vm2, %v1031_v20 }
  0xf2   : > { %v951_v22 = vpop.f32.mrf.mxu0  ;;  %v967_v23 = vpop.f32.mrf.mxu1 }
  0xf3   : > { %v428_v24 = vadd.f32 %v951_v22, %v1223_v21  ;;  %v492_v25 = vadd.f32 %v967_v23, %v1223_v21 }
  0xf4   : > { %v419_v26 = vpop.f32.mrf.mxu0  ;;  %v483_v27 = vpop.f32.mrf.mxu1 }
  0xf5   : > { %v548_v28 = vmax.f32 %v428_v24, 0.0  ;;  %v564_v29 = vmax.f32 %v492_v25, 0.0  ;;  %v420_v30 = vadd.f32 %v1223_v21, %v419_v26  ;;  %v484_v31 = vadd.f32 %v1223_v21, %v483_v27 }
  0xf6   : > { %v952_v32 = vpop.f32.mrf.mxu0  ;;  %v968_v33 = vpop.f32.mrf.mxu1 }
  0xf7   : > { %v900_v34 = vpack.c.bf16 %v548_v28, %v548_v28  ;;  %v916_v35 = vpack.c.bf16 %v564_v29, %v564_v29  ;;  %v546_v36 = vmax.f32 %v420_v30, 0.0  ;;  %v562_v37 = vmax.f32 %v484_v31, 0.0 }
  0xf8   : > { %v431_v38 = vadd.f32 %v952_v32, %v1223_v21  ;;  %v495_v39 = vadd.f32 %v968_v33, %v1223_v21  ;;  %v422_v40 = vpop.f32.mrf.mxu0  ;;  %v486_v41 = vpop.f32.mrf.mxu1 }
  0xf9   : > { %709 = vst.msk [vmem:[%s1234_s10 + $0x8] sm:$0xf] %vm706_vm3, %v900_v34  ;;  %725 = vst.msk [vmem:[%s1234_s10 + $0x48] sm:$0xf] %vm706_vm3, %v916_v35  ;;  %v898_v42 = vpack.c.bf16 %v546_v36, %v546_v36  ;;  %v914_v43 = vpack.c.bf16 %v562_v37, %v562_v37  ;;  %v423_v44 = vadd.f32 %v1223_v21, %v422_v40 }
  0xfa   : > { %v487_v45 = vadd.f32 %v1223_v21, %v486_v41  ;;  %v549_v46 = vmax.f32 %v431_v38, 0.0  ;;  %v565_v47 = vmax.f32 %v495_v39, 0.0  ;;  %v955_v48 = vpop.f32.mrf.mxu0  ;;  %v971_v49 = vpop.f32.mrf.mxu1 }
  0xfb   : > { %707 = vst.msk [vmem:[%s1234_s10] sm:$0xf] %vm706_vm3, %v898_v42  ;;  %723 = vst.msk [vmem:[%s1234_s10 + $0x40] sm:$0xf] %vm706_vm3, %v914_v43  ;;  %v547_v50 = vmax.f32 %v423_v44, 0.0  ;;  %v444_v52 = vadd.f32 %v955_v48, %v1223_v21  ;;  %v508_v53 = vadd.f32 %v971_v49, %v1223_v21 }
  0xfc   : > { %v563_v51 = vmax.f32 %v487_v45, 0.0  ;;  %v901_v54 = vpack.c.bf16 %v549_v46, %v549_v46  ;;  %v917_v55 = vpack.c.bf16 %v565_v47, %v565_v47  ;;  %v435_v56 = vpop.f32.mrf.mxu0  ;;  %v499_v57 = vpop.f32.mrf.mxu1 }
  0xfd   : > { %v899_v58 = vpack.c.bf16 %v547_v50, %v547_v50  ;;  %v552_v60 = vmax.f32 %v444_v52, 0.0  ;;  %v568_v61 = vmax.f32 %v508_v53, 0.0  ;;  %v436_v62 = vadd.f32 %v1223_v21, %v435_v56 }
  0xfe   : > { %v915_v59 = vpack.c.bf16 %v563_v51, %v563_v51  ;;  %710 = vst.msk [vmem:[%s1234_s10 + $0xc] sm:$0xf] %vm706_vm3, %v901_v54  ;;  %726 = vst.msk [vmem:[%s1234_s10 + $0x4c] sm:$0xf] %vm706_vm3, %v917_v55  ;;  %v500_v63 = vadd.f32 %v1223_v21, %v499_v57  ;;  %v956_v0 = vpop.f32.mrf.mxu0  ;;  %v972_v1 = vpop.f32.mrf.mxu1 }
  0xff   : > { %708 = vst.msk [vmem:[%s1234_s10 + $0x4] sm:$0xf] %vm706_vm3, %v899_v58  ;;  %v904_v2 = vpack.c.bf16 %v552_v60, %v552_v60  ;;  %v920_v3 = vpack.c.bf16 %v568_v61, %v568_v61  ;;  %v447_v4 = vadd.f32 %v956_v0, %v1223_v21  ;;  %v511_v5 = vadd.f32 %v972_v1, %v1223_v21 }
 0x100   : > { %724 = vst.msk [vmem:[%s1234_s10 + $0x44] sm:$0xf] %vm706_vm3, %v915_v59  ;;  %v550_v6 = vmax.f32 %v436_v62, 0.0  ;;  %v566_v7 = vmax.f32 %v500_v63, 0.0  ;;  %v438_v8 = vpop.f32.mrf.mxu0  ;;  %v502_v9 = vpop.f32.mrf.mxu1 }
 0x101   : > { %713 = vst.msk [vmem:[%s1234_s10 + $0x18] sm:$0xf] %vm706_vm3, %v904_v2  ;;  %729 = vst.msk [vmem:[%s1234_s10 + $0x58] sm:$0xf] %vm706_vm3, %v920_v3  ;;  %v553_v10 = vmax.f32 %v447_v4, 0.0  ;;  %v569_v11 = vmax.f32 %v511_v5, 0.0  ;;  %v439_v12 = vadd.f32 %v1223_v21, %v438_v8  ;;  %v503_v13 = vadd.f32 %v1223_v21, %v502_v9 }
 0x102   : > { %v902_v14 = vpack.c.bf16 %v550_v6, %v550_v6  ;;  %v918_v15 = vpack.c.bf16 %v566_v7, %v566_v7  ;;  %v959_v16 = vpop.f32.mrf.mxu0  ;;  %v975_v17 = vpop.f32.mrf.mxu1 }
 0x103   : > { %v905_v18 = vpack.c.bf16 %v553_v10, %v553_v10  ;;  %v921_v19 = vpack.c.bf16 %v569_v11, %v569_v11  ;;  %v551_v20 = vmax.f32 %v439_v12, 0.0  ;;  %v567_v22 = vmax.f32 %v503_v13, 0.0 }
 0x104   : > { %711 = vst.msk [vmem:[%s1234_s10 + $0x10] sm:$0xf] %vm706_vm3, %v902_v14  ;;  %727 = vst.msk [vmem:[%s1234_s10 + $0x50] sm:$0xf] %vm706_vm3, %v918_v15  ;;  %v460_v23 = vadd.f32 %v959_v16, %v1223_v21  ;;  %v524_v24 = vadd.f32 %v975_v17, %v1223_v21  ;;  %v451_v25 = vpop.f32.mrf.mxu0  ;;  %v515_v26 = vpop.f32.mrf.mxu1 }
 0x105   : > { %714 = vst.msk [vmem:[%s1234_s10 + $0x1c] sm:$0xf] %vm706_vm3, %v905_v18  ;;  %730 = vst.msk [vmem:[%s1234_s10 + $0x5c] sm:$0xf] %vm706_vm3, %v921_v19  ;;  %v903_v27 = vpack.c.bf16 %v551_v20, %v551_v20  ;;  %v919_v28 = vpack.c.bf16 %v567_v22, %v567_v22  ;;  %v452_v29 = vadd.f32 %v1223_v21, %v451_v25 }
 0x106   : > { %v516_v30 = vadd.f32 %v1223_v21, %v515_v26  ;;  %v556_v31 = vmax.f32 %v460_v23, 0.0  ;;  %v572_v32 = vmax.f32 %v524_v24, 0.0  ;;  %v960_v33 = vpop.f32.mrf.mxu0  ;;  %v976_v34 = vpop.f32.mrf.mxu1 }
 0x107   : > { %712 = vst.msk [vmem:[%s1234_s10 + $0x14] sm:$0xf] %vm706_vm3, %v903_v27  ;;  %728 = vst.msk [vmem:[%s1234_s10 + $0x54] sm:$0xf] %vm706_vm3, %v919_v28  ;;  %v554_v35 = vmax.f32 %v452_v29, 0.0  ;;  %v463_v37 = vadd.f32 %v960_v33, %v1223_v21  ;;  %v527_v38 = vadd.f32 %v976_v34, %v1223_v21 }
 0x108   : > { %v570_v36 = vmax.f32 %v516_v30, 0.0  ;;  %v908_v39 = vpack.c.bf16 %v556_v31, %v556_v31  ;;  %v924_v40 = vpack.c.bf16 %v572_v32, %v572_v32  ;;  %v454_v41 = vpop.f32.mrf.mxu0  ;;  %v518_v42 = vpop.f32.mrf.mxu1 }
 0x109   : > { %v906_v43 = vpack.c.bf16 %v554_v35, %v554_v35  ;;  %v557_v45 = vmax.f32 %v463_v37, 0.0  ;;  %v573_v46 = vmax.f32 %v527_v38, 0.0  ;;  %v455_v47 = vadd.f32 %v1223_v21, %v454_v41 }
 0x10a   : > { %v922_v44 = vpack.c.bf16 %v570_v36, %v570_v36  ;;  %717 = vst.msk [vmem:[%s1234_s10 + $0x28] sm:$0xf] %vm706_vm3, %v908_v39  ;;  %733 = vst.msk [vmem:[%s1234_s10 + $0x68] sm:$0xf] %vm706_vm3, %v924_v40  ;;  %v519_v48 = vadd.f32 %v1223_v21, %v518_v42  ;;  %v963_v49 = vpop.f32.mrf.mxu0  ;;  %v979_v50 = vpop.f32.mrf.mxu1 }
 0x10b   : > { %715 = vst.msk [vmem:[%s1234_s10 + $0x20] sm:$0xf] %vm706_vm3, %v906_v43  ;;  %v909_v51 = vpack.c.bf16 %v557_v45, %v557_v45  ;;  %v925_v52 = vpack.c.bf16 %v573_v46, %v573_v46  ;;  %v476_v53 = vadd.f32 %v963_v49, %v1223_v21  ;;  %v540_v54 = vadd.f32 %v979_v50, %v1223_v21 }
 0x10c   : > { %731 = vst.msk [vmem:[%s1234_s10 + $0x60] sm:$0xf] %vm706_vm3, %v922_v44  ;;  %v555_v55 = vmax.f32 %v455_v47, 0.0  ;;  %v571_v56 = vmax.f32 %v519_v48, 0.0  ;;  %v467_v57 = vpop.f32.mrf.mxu0  ;;  %v531_v58 = vpop.f32.mrf.mxu1 }
 0x10d   : > { %718 = vst.msk [vmem:[%s1234_s10 + $0x2c] sm:$0xf] %vm706_vm3, %v909_v51  ;;  %734 = vst.msk [vmem:[%s1234_s10 + $0x6c] sm:$0xf] %vm706_vm3, %v925_v52  ;;  %v560_v59 = vmax.f32 %v476_v53, 0.0  ;;  %v576_v60 = vmax.f32 %v540_v54, 0.0  ;;  %v468_v61 = vadd.f32 %v1223_v21, %v467_v57  ;;  %v532_v62 = vadd.f32 %v1223_v21, %v531_v58 }
 0x10e   : > { %v907_v63 = vpack.c.bf16 %v555_v55, %v555_v55  ;;  %v923_v0 = vpack.c.bf16 %v571_v56, %v571_v56  ;;  %v964_v1 = vpop.f32.mrf.mxu0  ;;  %v980_v2 = vpop.f32.mrf.mxu1 }
 0x10f   : > { %v912_v3 = vpack.c.bf16 %v560_v59, %v560_v59  ;;  %v928_v4 = vpack.c.bf16 %v576_v60, %v576_v60  ;;  %v558_v5 = vmax.f32 %v468_v61, 0.0  ;;  %v574_v6 = vmax.f32 %v532_v62, 0.0 }
 0x110   : > { %716 = vst.msk [vmem:[%s1234_s10 + $0x24] sm:$0xf] %vm706_vm3, %v907_v63  ;;  %732 = vst.msk [vmem:[%s1234_s10 + $0x64] sm:$0xf] %vm706_vm3, %v923_v0  ;;  %v479_v7 = vadd.f32 %v964_v1, %v1223_v21  ;;  %v543_v8 = vadd.f32 %v980_v2, %v1223_v21  ;;  %v470_v9 = vpop.f32.mrf.mxu0  ;;  %v534_v10 = vpop.f32.mrf.mxu1 }
 0x111   : > { %721 = vst.msk [vmem:[%s1234_s10 + $0x38] sm:$0xf] %vm706_vm3, %v912_v3  ;;  %737 = vst.msk [vmem:[%s1234_s10 + $0x78] sm:$0xf] %vm706_vm3, %v928_v4  ;;  %v910_v11 = vpack.c.bf16 %v558_v5, %v558_v5  ;;  %v926_v12 = vpack.c.bf16 %v574_v6, %v574_v6  ;;  %v471_v13 = vadd.f32 %v1223_v21, %v470_v9 }
 0x112   : > { %v535_v14 = vadd.f32 %v1223_v21, %v534_v10  ;;  %v561_v15 = vmax.f32 %v479_v7, 0.0  ;;  %v577_v16 = vmax.f32 %v543_v8, 0.0 }
 0x113   : > { %719 = vst.msk [vmem:[%s1234_s10 + $0x30] sm:$0xf] %vm706_vm3, %v910_v11  ;;  %735 = vst.msk [vmem:[%s1234_s10 + $0x70] sm:$0xf] %vm706_vm3, %v926_v12  ;;  %v559_v17 = vmax.f32 %v471_v13, 0.0 }
 0x114   : > { %v575_v18 = vmax.f32 %v535_v14, 0.0  ;;  %v913_v19 = vpack.c.bf16 %v561_v15, %v561_v15  ;;  %v929_v20 = vpack.c.bf16 %v577_v16, %v577_v16 }
 0x115   : > { %v911_v22 = vpack.c.bf16 %v559_v17, %v559_v17 }
 0x116   : > { %v927_v23 = vpack.c.bf16 %v575_v18, %v575_v18  ;;  %722 = vst.msk [vmem:[%s1234_s10 + $0x3c] sm:$0xf] %vm706_vm3, %v913_v19  ;;  %738 = vst.msk [vmem:[%s1234_s10 + $0x7c] sm:$0xf] %vm706_vm3, %v929_v20 }
 0x117   : > { %720 = vst.msk [vmem:[%s1234_s10 + $0x34] sm:$0xf] %vm706_vm3, %v911_v22 }
 0x118   : > { %736 = vst.msk [vmem:[%s1234_s10 + $0x74] sm:$0xf] %vm706_vm3, %v927_v23 }
 0x119 PF: > { %s15_s12 = sadd.s32 1, %s1098_s12  }
 0x11a   : > { %p12_p2 = scmp.ge.s32.totalorder %s15_s12, 4  }
 0x11c   :  { %14 = sbr.rel (!%p12_p2) target bundleno = 2 (0x2), region = 71 }
 0x121   :  { %761 = vsyncpa [#allocation3], 1 }
 0x122   :  { %763 = vsyncpa [#allocation3 + $0x1], 1 }
 0x123   :  { %764 = vsyncpa [#allocation5], 1 }

// kernel: net2x_forward.9
= control target key start
LH: loop header
LB: loop body
LE: loop exit
PB: predicated region body
PF: predicated region fallthrough
CT: control target
= control target key end

     0   :  { %s2443_s12 = smov 0   ;;  %s3013_s0 = inlined_call_operand.vmem [shape: bf16[512,576], index: 0, kind: input, shape index: {}]   ;;  %s3014_s1 = inlined_call_operand.vmem [shape: bf16[576,64], index: 1, kind: input, shape index: {}]   ;;  %s3015_s2 = inlined_call_operand.vmem [shape: f32[1,64], index: 2, kind: input, shape index: {}]   ;;  %s3016_s3 = inlined_call_operand.vmem [shape: bf16[512,64], index: 3, kind: output, shape index: {}]  }
   0x1 LB: > { %s1750_s13 = sadd.s32 4294967295, %s2421_s12   ;;  %p1754_p0 = scmp.ge.s32.totalorder %s2421_s12, 1  ;;  %s2421_s12 = sphi %s2443_s12, %s13_s12  }
   0x2   : > { %p139_p1 = scmp.lt.s32.totalorder %s2421_s12, 3 }
   0x4   : > { %p140_p2 = pnand %p1754_p0, %p139_p1 }
   0x6   : > { %143 = sbr.rel (%p140_p2) target bundleno = 406 (0x196), region = 32 }
   0xb   : > { %v2267_v0 = vld [vmem:[%s3014_s1 + $0x78] sm:$0xff]   ;;  %s1755_s16 = sshll.u32 %s1750_s13, 5  ;;  %v2269_v2 = vld [vmem:[%s3014_s1 + $0x70] sm:$0xff]   ;;  %v2271_v4 = vld [vmem:[%s3014_s1 + $0x68] sm:$0xff]   ;;  %vm969_vm0 = vcmask 523264   ;;  %vm1661_vm1 = vcmask 519168  }
   0xc   : > { %v2268_v1 = vld [vmem:[%s3014_s1 + $0x38] sm:$0xff]   ;;  %1958 = vmatprep.subr.bf16.mxu0 %v2267_v0  ;;  %2242 = vmatprep.subr.bf16.mxu1 %v2267_v0  ;;  %p165_p3 = scmp.lt.s32.totalorder %s1755_s16, 63  ;;  %v2270_v3 = vld [vmem:[%s3014_s1 + $0x30] sm:$0xff]   ;;  %v2272_v5 = vld [vmem:[%s3014_s1 + $0x28] sm:$0xff]  }
   0xd   : > { %1959 = vmatpush3.bf16.msra.mxu0 %v2268_v1  ;;  %2250 = vmatpush3.bf16.msra.mxu1 %v2268_v1  ;;  %v2273_v6 = vld [vmem:[%s3014_s1 + $0x60] sm:$0xff]   ;;  %v2275_v8 = vld [vmem:[%s3014_s1 + $0x58] sm:$0xff]   ;;  %v2277_v10 = vld [vmem:[%s3014_s1 + $0x50] sm:$0xff]  }
   0xe   : > { %1960 = vmatprep.subr.bf16.mxu0 %v2269_v2  ;;  %2243 = vmatprep.subr.bf16.mxu1 %v2269_v2  ;;  %s3058_s16 = smov (!%p165_p3, %s1755_s16), 63  ;;  %v2274_v7 = vld [vmem:[%s3014_s1 + $0x20] sm:$0xff]   ;;  %v2276_v9 = vld [vmem:[%s3014_s1 + $0x18] sm:$0xff]   ;;  %v2278_v13 = vld [vmem:[%s3014_s1 + $0x10] sm:$0xff]  }
   0xf   : > { %s2258_s29 = smul.u32 20, %s3058_s16  ;;  %v2279_v14 = vld [vmem:[%s3014_s1 + $0x48] sm:$0xff]   ;;  %v2281_v16 = vld [vmem:[%s3014_s1 + $0x40] sm:$0xff]   ;;  %v2289_v18 = vld [vmem:[%s3014_s1 + $0xf8] sm:$0xff]   ;;  %s1758_s19 = sshll.u32 %s3058_s16, 2 }
  0x10   : > { %v2280_v15 = vld [vmem:[%s3014_s1 + $0x8] sm:$0xff]   ;;  %v2282_v17 = vld [vmem:[%s3014_s1] sm:$0xff]   ;;  %v2292_v19 = vld [vmem:[%s3014_s1 + $0x118] sm:$0xff]   ;;  %s2826_s22 = scalar_lea.vmem %s3016_s3, %s1758_s19 }
  0x11   : > { %1961 = vmatpush3.bf16.msra.mxu0 %v2270_v3  ;;  %2251 = vmatpush3.bf16.msra.mxu1 %v2270_v3  ;;  %s2484_s9 = scalar_lea.vmem %s3013_s0, %s2258_s29  ;;  %v2290_v22 = vld [vmem:[%s3014_s1 + $0xb8] sm:$0xff]   ;;  %v2291_v23 = vld [vmem:[%s3014_s1 + $0xf0] sm:$0xff]   ;;  %v2300_v28 = vld [vmem:[%s3014_s1 + $0xe8] sm:$0xff]  }
  0x12   : > { %1962 = vmatprep.subr.bf16.mxu0 %v2271_v4  ;;  %2244 = vmatprep.subr.bf16.mxu1 %v2271_v4  ;;  %v2285_v11 = vld [vmem:[%s2484_s9 + $0x4] ss:$20 sps:$4 sm:$0xff]   ;;  %v2283_v20 = vld [vmem:[%s2484_s9] ss:$20 sps:$4 sm:$0xff]   ;;  %v2298_v27 = vld [vmem:[%s2484_s9 + $0x28] ss:$20 sps:$4 sm:$0xff]  }
  0x13   : > { %v2288_v12 = vld [vmem:[%s2484_s9 + $0x1e4] ss:$20 sps:$4 sm:$0xff]   ;;  %1050 = vmatprep.mubr.bf16.mxu0 %v2285_v11  ;;  %v2286_v21 = vld [vmem:[%s2484_s9 + $0x1e0] ss:$20 sps:$4 sm:$0xff]   ;;  %v2299_v29 = vld [vmem:[%s2484_s9 + $0x208] ss:$20 sps:$4 sm:$0xff]  }
  0x14   : > { %1146 = vmatprep.mubr.bf16.mxu1 %v2288_v12  ;;  %v2294_v24 = vld [vmem:[%s2484_s9 + $0x2c] ss:$20 sps:$4 sm:$0xff]   ;;  %v2293_v26 = vld [vmem:[%s3014_s1 + $0xb0] sm:$0xff]   ;;  %v2310_v37 = vld [vmem:[%s3014_s1 + $0xd8] sm:$0xff]  }
  0x15   : > { %1963 = vmatpush3.bf16.msra.mxu0 %v2272_v5  ;;  %2252 = vmatpush3.bf16.msra.mxu1 %v2272_v5  ;;  %v2296_v25 = vld [vmem:[%s2484_s9 + $0x20c] ss:$20 sps:$4 sm:$0xff]   ;;  %v2304_v32 = vld [vmem:[%s2484_s9 + $0x54] ss:$20 sps:$4 sm:$0xff]   ;;  %v2308_v36 = vld [vmem:[%s2484_s9 + $0x50] ss:$20 sps:$4 sm:$0xff]  }
  0x16   : > { %1964 = vmatprep.subr.bf16.mxu0 %v2273_v6  ;;  %2245 = vmatprep.subr.bf16.mxu1 %v2273_v6  ;;  %v2301_v30 = vld [vmem:[%s3014_s1 + $0xa8] sm:$0xff]   ;;  %v2302_v31 = vld [vmem:[%s3014_s1 + $0xe0] sm:$0xff]   ;;  %v2323_v35 = vld [vmem:[%s3014_s1 + $0x110] sm:$0xff]  }
  0x17   : > { %v2306_v33 = vld [vmem:[%s2484_s9 + $0x234] ss:$20 sps:$4 sm:$0xff]   ;;  %v2303_v34 = vld [vmem:[%s3014_s1 + $0xa0] sm:$0xff]   ;;  %v2311_v39 = vld [vmem:[%s3014_s1 + $0x98] sm:$0xff]  }
  0x18   : > { %v2309_v38 = vld [vmem:[%s2484_s9 + $0x230] ss:$20 sps:$4 sm:$0xff]   ;;  %v2318_v44 = vld [vmem:[%s2484_s9 + $0x78] ss:$20 sps:$4 sm:$0xff]   ;;  %v2327_v53 = vld [vmem:[%s2484_s9 + $0x8] ss:$20 sps:$4 sm:$0xff]  }
  0x19   : > { %1965 = vmatpush3.bf16.msra.mxu0 %v2274_v7  ;;  %2253 = vmatpush3.bf16.msra.mxu1 %v2274_v7  ;;  %v2312_v40 = vld [vmem:[%s3014_s1 + $0xd0] sm:$0xff]   ;;  %v2319_v45 = vld [vmem:[%s2484_s9 + $0x258] ss:$20 sps:$4 sm:$0xff]   ;;  %v2322_v49 = vld [vmem:[%s3014_s1 + $0xc0] sm:$0xff]  }
  0x1a   : > { %1966 = vmatprep.subr.bf16.mxu0 %v2275_v8  ;;  %2246 = vmatprep.subr.bf16.mxu1 %v2275_v8  ;;  %v2314_v41 = vld [vmem:[%s2484_s9 + $0x7c] ss:$20 sps:$4 sm:$0xff]   ;;  %v2320_v46 = vld [vmem:[%s3014_s1 + $0xc8] sm:$0xff]   ;;  %v2325_v50 = vld [vmem:[%s2484_s9 + $0xa4] ss:$20 sps:$4 sm:$0xff]  }
  0x1b   : > { %v2316_v42 = vld [vmem:[%s2484_s9 + $0x25c] ss:$20 sps:$4 sm:$0xff]   ;;  %v2343_v47 = vld [vmem:[%s3014_s1 + $0x108] sm:$0xff]   ;;  %v2324_v52 = vld [vmem:[%s3014_s1 + $0x80] sm:$0xff]  }
  0x1c   : > { %v2313_v43 = vld [vmem:[%s3014_s1 + $0x90] sm:$0xff]   ;;  %v2321_v48 = vld [vmem:[%s3014_s1 + $0x88] sm:$0xff]   ;;  %v2362_v56 = vld [vmem:[%s3014_s1 + $0x100] sm:$0xff]  }
  0x1d   : > { %1967 = vmatpush3.bf16.msra.mxu0 %v2276_v9  ;;  %2254 = vmatpush3.bf16.msra.mxu1 %v2276_v9  ;;  %v2329_v51 = vld [vmem:[%s2484_s9 + $0xc] ss:$20 sps:$4 sm:$0xff]   ;;  %v2333_v57 = vld [vmem:[%s2484_s9 + $0x34] ss:$20 sps:$4 sm:$0xff]   ;;  %v2336_v59 = vld [vmem:[%s2484_s9 + $0x30] ss:$20 sps:$4 sm:$0xff]  }
  0x1e   : > { %1968 = vmatprep.subr.bf16.mxu0 %v2277_v10  ;;  %2247 = vmatprep.subr.bf16.mxu1 %v2277_v10  ;;  %v2330_v54 = vld [vmem:[%s2484_s9 + $0xa0] ss:$20 sps:$4 sm:$0xff]   ;;  %v2335_v58 = vld [vmem:[%s2484_s9 + $0xc8] ss:$20 sps:$4 sm:$0xff]   ;;  %v2341_v62 = vld [vmem:[%s2484_s9 + $0xf0] ss:$20 sps:$4 sm:$0xff]  }
  0x1f   : > { %v2331_v55 = vld [vmem:[%s2484_s9 + $0xcc] ss:$20 sps:$4 sm:$0xff]   ;;  %v2337_v60 = vld [vmem:[%s2484_s9 + $0xf4] ss:$20 sps:$4 sm:$0xff]   ;;  %v2339_v61 = vld [vmem:[%s2484_s9 + $0x5c] ss:$20 sps:$4 sm:$0xff]  }
  0x20   : > { %v2342_v63 = vld [vmem:[%s2484_s9 + $0x58] ss:$20 sps:$4 sm:$0xff]   ;;  %v2344_v0 = vld [vmem:[%s2484_s9 + $0x11c] ss:$20 sps:$4 sm:$0xff]   ;;  %v2349_v3 = vld [vmem:[%s2484_s9 + $0x80] ss:$20 sps:$4 sm:$0xff]  }
  0x21   : > { %1969 = vmatpush3.bf16.msra.mxu0 %v2278_v13  ;;  %2255 = vmatpush3.bf16.msra.mxu1 %v2278_v13  ;;  %v2346_v1 = vld [vmem:[%s2484_s9 + $0x84] ss:$20 sps:$4 sm:$0xff]   ;;  %v2352_v5 = vld [vmem:[%s2484_s9 + $0xac] ss:$20 sps:$4 sm:$0xff]   ;;  %v2355_v7 = vld [vmem:[%s2484_s9 + $0xa8] ss:$20 sps:$4 sm:$0xff]  }
  0x22   : > { %1970 = vmatprep.subr.bf16.mxu0 %v2279_v14  ;;  %2248 = vmatprep.subr.bf16.mxu1 %v2279_v14  ;;  %v2348_v2 = vld [vmem:[%s2484_s9 + $0x118] ss:$20 sps:$4 sm:$0xff]   ;;  %v2354_v6 = vld [vmem:[%s2484_s9 + $0x140] ss:$20 sps:$4 sm:$0xff]   ;;  %v2360_v10 = vld [vmem:[%s2484_s9 + $0x168] ss:$20 sps:$4 sm:$0xff]  }
  0x23   : > { %v2350_v4 = vld [vmem:[%s2484_s9 + $0x144] ss:$20 sps:$4 sm:$0xff]   ;;  %v2356_v8 = vld [vmem:[%s2484_s9 + $0x16c] ss:$20 sps:$4 sm:$0xff]   ;;  %v2358_v9 = vld [vmem:[%s2484_s9 + $0xd4] ss:$20 sps:$4 sm:$0xff]  }
  0x24   : > { %v2361_v11 = vld [vmem:[%s2484_s9 + $0xd0] ss:$20 sps:$4 sm:$0xff]   ;;  %v2363_v12 = vld [vmem:[%s2484_s9 + $0x194] ss:$20 sps:$4 sm:$0xff]  }
  0x25   : > { %1971 = vmatpush3.bf16.msra.mxu0 %v2280_v15  ;;  %2256 = vmatpush3.bf16.msra.mxu1 %v2280_v15  ;;  %v2365_v13 = vld [vmem:[%s2484_s9 + $0xfc] ss:$20 sps:$4 sm:$0xff]   ;;  %v2368_v15 = vld [vmem:[%s2484_s9 + $0xf8] ss:$20 sps:$4 sm:$0xff]  }
  0x26   : > { %1972 = vmatprep.subr.bf16.mxu0 %v2281_v16  ;;  %2249 = vmatprep.subr.bf16.mxu1 %v2281_v16  ;;  %v2367_v14 = vld [vmem:[%s2484_s9 + $0x190] ss:$20 sps:$4 sm:$0xff]  }
  0x27   : > { %v2369_v16 = vld [vmem:[%s2484_s9 + $0x1bc] ss:$20 sps:$4 sm:$0xff]  }
  0x29   : > { %1973 = vmatpush3.bf16.msra.mxu0 %v2282_v17  ;;  %2257 = vmatpush3.bf16.msra.mxu1 %v2282_v17  ;;  %v2371_v17 = vld [vmem:[%s2484_s9 + $0x124] ss:$20 sps:$4 sm:$0xff]  }
  0x2a   : > { %2070 = vmatprep.subr.bf16.mxu1 %v2289_v18  ;;  %2202 = vmatprep.subr.bf16.mxu0 %v2292_v19  ;;  %v2373_v18 = vld [vmem:[%s2484_s9 + $0x1b8] ss:$20 sps:$4 sm:$0xff]  }
  0x2c   : > { %1051 = vmatmul.mubr.bf16.vlgmr.msra.gmra.mxu0 %v2283_v20  ;;  %1147 = vmatmul.mubr.bf16.vlgmr.msra.gmra.mxu1 %v2286_v21  ;;  %v2375_v20 = vld [vmem:[%s2484_s9 + $0x14c] ss:$20 sps:$4 sm:$0xff]   ;;  %v2377_v21 = vld [vmem:[%s2484_s9 + $0x10] ss:$20 sps:$4 sm:$0xff]  }
  0x2d   : > { %2071 = vmatpush3.bf16.msra.mxu1 %v2290_v22  ;;  %2203 = vmatpush3.bf16.msra.mxu0 %v2292_v19  ;;  %v2374_v19 = vld [vmem:[%s2484_s9 + $0x120] ss:$20 sps:$4 sm:$0xff]   ;;  %v2378_v22 = vld [vmem:[%s2484_s9 + $0x148] ss:$20 sps:$4 sm:$0xff]  }
  0x2e   : > { %2072 = vmatprep.subr.bf16.mxu1 %v2291_v23  ;;  %1058 = vmatprep.mubr.bf16.mxu0 %v2294_v24  ;;  %v2379_v23 = vld [vmem:[%s2484_s9 + $0x38] ss:$20 sps:$4 sm:$0xff]   ;;  %v2380_v24 = vld [vmem:[%s2484_s9 + $0x174] ss:$20 sps:$4 sm:$0xff]  }
  0x2f   : > { %1154 = vmatprep.mubr.bf16.mxu1 %v2296_v25  ;;  %2204 = vmatprep.subr.bf16.mxu0 %v2323_v35  ;;  %v2382_v25 = vld [vmem:[%s2484_s9 + $0x60] ss:$20 sps:$4 sm:$0xff]  }
  0x31   : > { %2073 = vmatpush3.bf16.msra.mxu1 %v2293_v26  ;;  %2205 = vmatpush3.bf16.msra.mxu0 %v2323_v35  ;;  %v2383_v26 = vld [vmem:[%s2484_s9 + $0x170] ss:$20 sps:$4 sm:$0xff]   ;;  %v2394_v35 = vld [vmem:[%s2484_s9 + $0x128] ss:$20 sps:$4 sm:$0xff]  }
  0x32   : > { %2074 = vmatprep.subr.bf16.mxu1 %v2300_v28  ;;  %2206 = vmatprep.subr.bf16.mxu0 %v2343_v47  ;;  %v2385_v28 = vld [vmem:[%s2484_s9 + $0x19c] ss:$20 sps:$4 sm:$0xff]  }
  0x34   : > { %1059 = vmatmul.mubr.bf16.gmra.mxu0 %v2298_v27  ;;  %1155 = vmatmul.mubr.bf16.gmra.mxu1 %v2299_v29  ;;  %v2384_v27 = vld [vmem:[%s2484_s9 + $0x88] ss:$20 sps:$4 sm:$0xff]   ;;  %v2387_v29 = vld [vmem:[%s2484_s9 + $0xb0] ss:$20 sps:$4 sm:$0xff]  }
  0x35   : > { %2075 = vmatpush3.bf16.msra.mxu1 %v2301_v30  ;;  %1066 = vmatprep.mubr.bf16.mxu0 %v2304_v32  ;;  %v2388_v30 = vld [vmem:[%s2484_s9 + $0x198] ss:$20 sps:$4 sm:$0xff]  }
  0x36   : > { %2076 = vmatprep.subr.bf16.mxu1 %v2302_v31  ;;  %1162 = vmatprep.mubr.bf16.mxu1 %v2306_v33  ;;  %v2389_v31 = vld [vmem:[%s2484_s9 + $0xd8] ss:$20 sps:$4 sm:$0xff]   ;;  %v2392_v33 = vld [vmem:[%s2484_s9 + $0x100] ss:$20 sps:$4 sm:$0xff]  }
  0x37   : > { %2207 = vmatpush3.bf16.msra.mxu0 %v2343_v47  ;;  %v2390_v32 = vld [vmem:[%s2484_s9 + $0x1c4] ss:$20 sps:$4 sm:$0xff]  }
  0x38   : > { %2208 = vmatprep.subr.bf16.mxu0 %v2362_v56  ;;  %v2409_v47 = vld [vmem:[%s2484_s9 + $0x218] ss:$20 sps:$4 sm:$0xff]  }
  0x39   : > { %2077 = vmatpush3.bf16.msra.mxu1 %v2303_v34  ;;  %v2393_v34 = vld [vmem:[%s2484_s9 + $0x1c0] ss:$20 sps:$4 sm:$0xff]  }
  0x3a   : > { %2078 = vmatprep.subr.bf16.mxu1 %v2310_v37  ;;  %v2397_v37 = vld [vmem:[%s2484_s9 + $0x150] ss:$20 sps:$4 sm:$0xff]  }
  0x3b   : > { %2209 = vmatpush3.bf16.msra.mxu0 %v2362_v56 }
  0x3c   : > { %1067 = vmatmul.mubr.bf16.gmra.mxu0 %v2308_v36  ;;  %1163 = vmatmul.mubr.bf16.gmra.mxu1 %v2309_v38  ;;  %v2395_v36 = vld [vmem:[%s2484_s9 + $0x1ec] ss:$20 sps:$4 sm:$0xff]   ;;  %v2398_v38 = vld [vmem:[%s2484_s9 + $0x1e8] ss:$20 sps:$4 sm:$0xff]  }
  0x3d   : > { %2079 = vmatpush3.bf16.msra.mxu1 %v2311_v39  ;;  %1074 = vmatprep.mubr.bf16.mxu0 %v2314_v41  ;;  %v2399_v39 = vld [vmem:[%s2484_s9 + $0x178] ss:$20 sps:$4 sm:$0xff]   ;;  %v2402_v41 = vld [vmem:[%s2484_s9 + $0x1a0] ss:$20 sps:$4 sm:$0xff]  }
  0x3e   : > { %2080 = vmatprep.subr.bf16.mxu1 %v2312_v40  ;;  %1170 = vmatprep.mubr.bf16.mxu1 %v2316_v42  ;;  %v2400_v40 = vld [vmem:[%s2484_s9 + $0x214] ss:$20 sps:$4 sm:$0xff]   ;;  %v2403_v42 = vld [vmem:[%s2484_s9 + $0x210] ss:$20 sps:$4 sm:$0xff]  }
  0x41   : > { %2081 = vmatpush3.bf16.msra.mxu1 %v2313_v43  ;;  %v2404_v43 = vld [vmem:[%s2484_s9 + $0x1c8] ss:$20 sps:$4 sm:$0xff]  }
  0x42   : > { %2082 = vmatprep.subr.bf16.mxu1 %v2320_v46  ;;  %v2408_v46 = vld [vmem:[%s2484_s9 + $0x238] ss:$20 sps:$4 sm:$0xff]  }
  0x44   : > { %1075 = vmatmul.mubr.bf16.gmra.mxu0 %v2318_v44  ;;  %1171 = vmatmul.mubr.bf16.gmra.mxu1 %v2319_v45  ;;  %v2405_v44 = vld [vmem:[%s2484_s9 + $0x23c] ss:$20 sps:$4 sm:$0xff]  }
  0x45   : > { %2083 = vmatpush3.bf16.msra.mxu1 %v2321_v48  ;;  %1082 = vmatprep.mubr.bf16.mxu0 %v2325_v50  ;;  %v2407_v45 = vld [vmem:[%s2484_s9 + $0x1f0] ss:$20 sps:$4 sm:$0xff]   ;;  %v2413_v50 = vld [vmem:[%s2484_s9 + $0x260] ss:$20 sps:$4 sm:$0xff]  }
  0x46   : > { %2084 = vmatprep.subr.bf16.mxu1 %v2322_v49  ;;  %1211 = vmatprep.mubr.bf16.mxu1 %v2329_v51  ;;  %v2410_v48 = vld [vmem:[%s2484_s9 + $0x264] ss:$20 sps:$4 sm:$0xff]   ;;  %v2412_v49 = vld [vmem:[%s2484_s9 + $0x240] ss:$20 sps:$4 sm:$0xff]   ;;  %v2414_v51 = vld [vmem:[%s2484_s9 + $0x268] ss:$20 sps:$4 sm:$0xff]  }
  0x49   : > { %2085 = vmatpush3.bf16.msra.mxu1 %v2324_v52 }
  0x4c   : > { %1083 = vmatmul.mubr.bf16.gmra.mxu0 %v2330_v54  ;;  %1212 = vmatmul.mubr.bf16.vlgmr.msra.gmra.mxu1 %v2327_v53 }
  0x4d   : > { %1090 = vmatprep.mubr.bf16.mxu0 %v2331_v55  ;;  %1219 = vmatprep.mubr.bf16.mxu1 %v2333_v57 }
  0x54   : > { %1091 = vmatmul.mubr.bf16.gmra.mxu0 %v2335_v58  ;;  %1220 = vmatmul.mubr.bf16.gmra.mxu1 %v2336_v59 }
  0x55   : > { %1098 = vmatprep.mubr.bf16.mxu0 %v2337_v60  ;;  %1227 = vmatprep.mubr.bf16.mxu1 %v2339_v61 }
  0x5c   : > { %1099 = vmatmul.mubr.bf16.gmra.mxu0 %v2341_v62  ;;  %1228 = vmatmul.mubr.bf16.gmra.mxu1 %v2342_v63 }
  0x5d   : > { %1106 = vmatprep.mubr.bf16.mxu0 %v2344_v0  ;;  %1235 = vmatprep.mubr.bf16.mxu1 %v2346_v1 }
  0x64   : > { %1107 = vmatmul.mubr.bf16.gmra.mxu0 %v2348_v2  ;;  %1236 = vmatmul.mubr.bf16.gmra.mxu1 %v2349_v3 }
  0x65   : > { %1114 = vmatprep.mubr.bf16.mxu0 %v2350_v4  ;;  %1243 = vmatprep.mubr.bf16.mxu1 %v2352_v5 }
  0x6c   : > { %1115 = vmatmul.mubr.bf16.gmra.mxu0 %v2354_v6  ;;  %1244 = vmatmul.mubr.bf16.gmra.mxu1 %v2355_v7 }
  0x6d   : > { %1122 = vmatprep.mubr.bf16.mxu0 %v2356_v8  ;;  %1251 = vmatprep.mubr.bf16.mxu1 %v2358_v9 }
  0x74   : > { %1123 = vmatmul.mubr.bf16.gmra.mxu0 %v2360_v10  ;;  %1252 = vmatmul.mubr.bf16.gmra.mxu1 %v2361_v11 }
  0x75   : > { %1130 = vmatprep.mubr.bf16.mxu0 %v2363_v12  ;;  %1259 = vmatprep.mubr.bf16.mxu1 %v2365_v13 }
  0x7c   : > { %1131 = vmatmul.mubr.bf16.gmra.mxu0 %v2367_v14  ;;  %1260 = vmatmul.mubr.bf16.gmra.mxu1 %v2368_v15 }
  0x7d   : > { %1138 = vmatprep.mubr.bf16.mxu0 %v2369_v16  ;;  %1267 = vmatprep.mubr.bf16.mxu1 %v2371_v17 }
  0x84   : > { %1139 = vmatmul.mubr.bf16.gmra.mxu0 %v2373_v18  ;;  %1268 = vmatmul.mubr.bf16.gmra.mxu1 %v2374_v19 }
  0x85   : > { %1275 = vmatprep.mubr.bf16.mxu1 %v2375_v20  ;;  %2210 = vmatprep.mubr.msk.bf16.mxu0 %vm969_vm0, %v2377_v21 }
  0x8c   : > { %1276 = vmatmul.mubr.bf16.gmra.mxu1 %v2378_v22  ;;  %2211 = vmatmul.mubr.msk.bf16.vlgmr.msra.gmra.mxu0 %vm969_vm0, %v2379_v23 }
  0x8d   : > { %1283 = vmatprep.mubr.bf16.mxu1 %v2380_v24  ;;  %2214 = vmatprep.mubr.msk.bf16.mxu0 %vm969_vm0, %v2382_v25 }
  0x94   : > { %1284 = vmatmul.mubr.bf16.gmra.mxu1 %v2383_v26  ;;  %2215 = vmatmul.mubr.msk.bf16.gmra.mxu0 %vm969_vm0, %v2384_v27 }
  0x95   : > { %1291 = vmatprep.mubr.bf16.mxu1 %v2385_v28  ;;  %2218 = vmatprep.mubr.msk.bf16.mxu0 %vm969_vm0, %v2387_v29 }
  0x9c   : > { %1292 = vmatmul.mubr.bf16.gmra.mxu1 %v2388_v30  ;;  %2219 = vmatmul.mubr.msk.bf16.gmra.mxu0 %vm969_vm0, %v2389_v31 }
  0x9d   : > { %1299 = vmatprep.mubr.bf16.mxu1 %v2390_v32  ;;  %2222 = vmatprep.mubr.msk.bf16.mxu0 %vm969_vm0, %v2392_v33 }
  0xa4   : > { %1300 = vmatmul.mubr.bf16.gmra.mxu1 %v2393_v34  ;;  %2223 = vmatmul.mubr.msk.bf16.gmra.mxu0 %vm969_vm0, %v2394_v35 }
  0xa5   : > { %1307 = vmatprep.mubr.bf16.mxu1 %v2395_v36  ;;  %2226 = vmatprep.mubr.msk.bf16.mxu0 %vm969_vm0, %v2397_v37 }
  0xac   : > { %1308 = vmatmul.mubr.bf16.gmra.mxu1 %v2398_v38  ;;  %2227 = vmatmul.mubr.msk.bf16.gmra.mxu0 %vm969_vm0, %v2399_v39 }
  0xad   : > { %1315 = vmatprep.mubr.bf16.mxu1 %v2400_v40  ;;  %2230 = vmatprep.mubr.msk.bf16.mxu0 %vm969_vm0, %v2402_v41 }
  0xb4   : > { %1316 = vmatmul.mubr.bf16.gmra.mxu1 %v2403_v42  ;;  %2231 = vmatmul.mubr.msk.bf16.gmra.mxu0 %vm969_vm0, %v2404_v43 }
  0xb5   : > { %1323 = vmatprep.mubr.bf16.mxu1 %v2405_v44  ;;  %2234 = vmatprep.mubr.msk.bf16.mxu0 %vm969_vm0, %v2407_v45 }
  0xbc   : > { %1324 = vmatmul.mubr.bf16.gmra.mxu1 %v2408_v46  ;;  %2235 = vmatmul.mubr.msk.bf16.gmra.mxu0 %vm969_vm0, %v2409_v47 }
  0xbd   : > { %1331 = vmatprep.mubr.bf16.mxu1 %v2410_v48  ;;  %2238 = vmatprep.mubr.msk.bf16.mxu0 %vm969_vm0, %v2412_v49 }
  0xc4   : > { %1332 = vmatmul.mubr.bf16.gmra.mxu1 %v2413_v50  ;;  %2239 = vmatmul.mubr.msk.bf16.gmra.mxu0 %vm969_vm0, %v2414_v51 }
  0xec   : > { %v1974_v52 = vpop.f32.mrf.mxu0  ;;  %v2046_v53 = vpop.f32.mrf.mxu1 }
  0xee   : > { %v1975_v54 = vpop.f32.mrf.mxu0  ;;  %v2047_v55 = vpop.f32.mrf.mxu1 }
  0xef   : > { %v2663_v56 = vadd.f32 %v1975_v54, %v1974_v52  ;;  %v2665_v57 = vadd.f32 %v2047_v55, %v2046_v53 }
  0xf0   : > { %v1977_v58 = vpop.f32.mrf.mxu0  ;;  %v2049_v59 = vpop.f32.mrf.mxu1 }
  0xf1   : > { %3017 = vst [vmem:[#allocation2_spill] sm:$0xff] %v2665_v57 }
  0xf2   : > { %v1978_v60 = vpop.f32.mrf.mxu0  ;;  %v2050_v61 = vpop.f32.mrf.mxu1 }
  0xf3   : > { %v2667_v62 = vadd.f32 %v1978_v60, %v1977_v58  ;;  %v2669_v63 = vadd.f32 %v2050_v61, %v2049_v59 }
  0xf4   : > { %v1980_v0 = vpop.f32.mrf.mxu0  ;;  %v2052_v1 = vpop.f32.mrf.mxu1 }
  0xf5   : > { %3018 = vst [vmem:[#allocation3_spill] sm:$0xff] %v2669_v63 }
  0xf6   : > { %v1981_v2 = vpop.f32.mrf.mxu0  ;;  %v2053_v3 = vpop.f32.mrf.mxu1 }
  0xf7   : > { %v2671_v4 = vadd.f32 %v1981_v2, %v1980_v0  ;;  %v2673_v5 = vadd.f32 %v2053_v3, %v2052_v1 }
  0xf8   : > { %v1983_v6 = vpop.f32.mrf.mxu0  ;;  %v2055_v7 = vpop.f32.mrf.mxu1 }
  0xf9   : > { %3019 = vst [vmem:[#allocation4_spill] sm:$0xff] %v2673_v5  ;;  %v2794_v5 = vld [vmem:[%s3015_s2] ss:$0 sm:$0xff] }
  0xfa   : > { %v1984_v8 = vpop.f32.mrf.mxu0  ;;  %v2056_v9 = vpop.f32.mrf.mxu1 }
  0xfb   : > { %v2675_v10 = vadd.f32 %v1984_v8, %v1983_v6  ;;  %v2677_v11 = vadd.f32 %v2056_v9, %v2055_v7 }
  0xfc   : > { %v1986_v12 = vpop.f32.mrf.mxu0  ;;  %v2058_v13 = vpop.f32.mrf.mxu1 }
  0xfd   : > { %3020 = vst [vmem:[#allocation5_spill] sm:$0xff] %v2677_v11 }
  0xfe   : > { %v1987_v14 = vpop.f32.mrf.mxu0  ;;  %v2059_v15 = vpop.f32.mrf.mxu1 }
  0xff   : > { %v2679_v16 = vadd.f32 %v1987_v14, %v1986_v12  ;;  %v2681_v17 = vadd.f32 %v2059_v15, %v2058_v13 }
 0x100   : > { %v1989_v18 = vpop.f32.mrf.mxu0  ;;  %v2061_v19 = vpop.f32.mrf.mxu1 }
 0x101   : > { %3021 = vst [vmem:[#allocation6_spill] sm:$0xff] %v2681_v17 }
 0x102   : > { %v1990_v20 = vpop.f32.mrf.mxu0  ;;  %v2062_v21 = vpop.f32.mrf.mxu1 }
 0x103   : > { %v2683_v22 = vadd.f32 %v1990_v20, %v1989_v18  ;;  %v2685_v23 = vadd.f32 %v2062_v21, %v2061_v19 }
 0x104   : > { %v1992_v24 = vpop.f32.mrf.mxu0  ;;  %v2064_v25 = vpop.f32.mrf.mxu1 }
 0x105   : > { %3022 = vst [vmem:[#allocation7_spill] sm:$0xff] %v2685_v23 }
 0x106   : > { %v1993_v26 = vpop.f32.mrf.mxu0  ;;  %v2065_v27 = vpop.f32.mrf.mxu1 }
 0x107   : > { %v2687_v28 = vadd.f32 %v1993_v26, %v1992_v24  ;;  %v2689_v29 = vadd.f32 %v2065_v27, %v2064_v25 }
 0x108   : > { %v1995_v30 = vpop.f32.mrf.mxu0  ;;  %v2067_v31 = vpop.f32.mrf.mxu1 }
 0x109   : > { %3023 = vst [vmem:[#allocation8_spill] sm:$0xff] %v2689_v29 }
 0x10a   : > { %v1996_v32 = vpop.f32.mrf.mxu0  ;;  %v2068_v33 = vpop.f32.mrf.mxu1 }
 0x10b   : > { %v2691_v34 = vadd.f32 %v1996_v32, %v1995_v30  ;;  %v2693_v35 = vadd.f32 %v2068_v33, %v2067_v31 }
 0x10c   : > { %v1998_v36 = vpop.f32.mrf.mxu0  ;;  %v2695_v37 = vpop.f32.mrf.mxu1 }
 0x10d   : > { %3024 = vst [vmem:[#allocation9_spill] sm:$0xff] %v2693_v35 }
 0x10e   : > { %v1999_v38 = vpop.f32.mrf.mxu0  ;;  %v2697_v39 = vpop.f32.mrf.mxu1 }
 0x10f   : > { %v2699_v40 = vadd.f32 %v1999_v38, %v1998_v36 }
 0x110   : > { %v2001_v41 = vpop.f32.mrf.mxu0  ;;  %v2701_v42 = vpop.f32.mrf.mxu1 }
 0x112   : > { %v2002_v43 = vpop.f32.mrf.mxu0  ;;  %v2703_v44 = vpop.f32.mrf.mxu1 }
 0x113   : > { %v2705_v45 = vadd.f32 %v2002_v43, %v2001_v41 }
 0x114   : > { %v2004_v46 = vpop.f32.mrf.mxu0  ;;  %v2092_v47 = vpop.f32.mrf.mxu1 }
 0x116   : > { %v2005_v48 = vpop.f32.mrf.mxu0  ;;  %v2093_v49 = vpop.f32.mrf.mxu1 }
 0x117   : > { %v2707_v50 = vadd.f32 %v2005_v48, %v2004_v46  ;;  %v2094_v57 = vadd.f32 %v2093_v49, %v2092_v47  ;;  %v1053_v47 = vadd.f32 %v2663_v56, %v2794_v5 }
 0x118   : > { %v2007_v51 = vpop.f32.mrf.mxu0  ;;  %v2095_v52 = vpop.f32.mrf.mxu1 }
 0x11a   : > { %v2008_v53 = vpop.f32.mrf.mxu0  ;;  %v2096_v54 = vpop.f32.mrf.mxu1 }
 0x11b   : > { %v2709_v55 = vadd.f32 %v2008_v53, %v2007_v51  ;;  %v2097_v49 = vadd.f32 %v2096_v54, %v2095_v52 }
 0x11c   : > { %v2010_v58 = vpop.f32.mrf.mxu0  ;;  %v2711_v59 = vpop.f32.mrf.mxu1 }
 0x11e   : > { %v2011_v60 = vpop.f32.mrf.mxu0  ;;  %v2713_v61 = vpop.f32.mrf.mxu1 }
 0x11f   : > { %v2715_v0 = vadd.f32 %v2011_v60, %v2010_v58 }
 0x120   : > { %v2013_v1 = vpop.f32.mrf.mxu0  ;;  %v2717_v2 = vpop.f32.mrf.mxu1 }
 0x122   : > { %v2014_v3 = vpop.f32.mrf.mxu0  ;;  %v2719_v6 = vpop.f32.mrf.mxu1 }
 0x123   : > { %v2721_v7 = vadd.f32 %v2014_v3, %v2013_v1 }
 0x124   : > { %v2723_v8 = vpop.f32.mrf.mxu0  ;;  %v2104_v9 = vpop.f32.mrf.mxu1 }
 0x126   : > { %v2725_v12 = vpop.f32.mrf.mxu0  ;;  %v2105_v13 = vpop.f32.mrf.mxu1 }
 0x127   : > { %v2106_v52 = vadd.f32 %v2105_v13, %v2104_v9  ;;  %v2100_v9 = vadd.f32 %v2713_v61, %v2711_v59  ;;  %v1080_v61 = vadd.f32 %v2691_v34, %v2794_v5 }
 0x128   : > { %v2727_v14 = vpop.f32.mrf.mxu0  ;;  %v2729_v15 = vpop.f32.mrf.mxu1 }
 0x12a   : > { %v2731_v18 = vpop.f32.mrf.mxu0  ;;  %v2733_v19 = vpop.f32.mrf.mxu1 }
 0x12c   : > { %v2735_v20 = vpop.f32.mrf.mxu0  ;;  %v2737_v21 = vpop.f32.mrf.mxu1 }
 0x12e   : > { %v2739_v24 = vpop.f32.mrf.mxu0  ;;  %v2741_v25 = vpop.f32.mrf.mxu1 }
 0x130   : > { %v2743_v26 = vpop.f32.mrf.mxu0  ;;  %v2745_v27 = vpop.f32.mrf.mxu1 }
 0x131   : > { %3025 = vst [vmem:[#allocation10_spill] sm:$0xff] %v2743_v26 }
 0x132   : > { %v2747_v30 = vpop.f32.mrf.mxu0  ;;  %v2749_v31 = vpop.f32.mrf.mxu1 }
 0x133   : > { %3026 = vst [vmem:[#allocation11_spill] sm:$0xff] %v2747_v30 }
 0x134   : > { %v2751_v32 = vpop.f32.mrf.mxu0  ;;  %v2753_v33 = vpop.f32.mrf.mxu1 }
 0x136   : > { %v2755_v36 = vpop.f32.mrf.mxu0  ;;  %v2757_v38 = vpop.f32.mrf.mxu1 }
 0x138   : > { %v2759_v41 = vpop.f32.mrf.mxu0  ;;  %v2761_v43 = vpop.f32.mrf.mxu1 }
 0x139   : > { %3027 = vst [vmem:[#allocation12_spill] sm:$0xff] %v2759_v41 }
 0x13a   : > { %v2763_v46 = vpop.f32.mrf.mxu0  ;;  %v2765_v48 = vpop.f32.mrf.mxu1 }
 0x13b   : > { %3028 = vst [vmem:[#allocation13_spill] sm:$0xff] %v2763_v46 }
 0x13c   : > { %v2767_v51 = vpop.f32.mrf.mxu0  ;;  %v2769_v53 = vpop.f32.mrf.mxu1 }
 0x13d   : > { %3029 = vst [vmem:[#allocation14_spill] sm:$0xff] %v2767_v51  ;;  %v2088_v51 = vadd.f32 %v2697_v39, %v2695_v37 }
 0x13e   : > { %v2771_v58 = vpop.f32.mrf.mxu0  ;;  %v2773_v60 = vpop.f32.mrf.mxu1 }
 0x13f   : > { %3030 = vst [vmem:[#allocation15_spill] sm:$0xff] %v2771_v58  ;;  %v1061_v58 = vadd.f32 %v2671_v4, %v2794_v5  ;;  %v1064_v4 = vadd.f32 %v2675_v10, %v2794_v5  ;;  %v1214_v39 = vadd.f32 %v2088_v51, %v1053_v47  ;;  %v2109_v51 = vadd.f32 %v2733_v19, %v2729_v15 }
 0x140   : > { %v2775_v1 = vpop.f32.mrf.mxu0  ;;  %v2777_v3 = vpop.f32.mrf.mxu1 }
 0x141   : > { %3031 = vst [vmem:[#allocation16_spill] sm:$0xff] %v2775_v1  ;;  %v1222_v30 = vadd.f32 %v2094_v57, %v1061_v58  ;;  %v1225_v58 = vadd.f32 %v2097_v49, %v1064_v4  ;;  %v1241_v34 = vadd.f32 %v2109_v51, %v1080_v61  ;;  %v2121_v51 = vadd.f32 %v2765_v48, %v2761_v43 }
 0x142   : > { %v2779_v35 = vpop.f32.mrf.mxu0  ;;  %v2781_v29 = vpop.f32.mrf.mxu1 }
 0x143   : > { %3032 = vst [vmem:[#allocation17_spill] sm:$0xff] %v2779_v35 }
 0x144   : > { %v2783_v23 = vpop.f32.mrf.mxu0  ;;  %v2785_v17 = vpop.f32.mrf.mxu1 }
 0x145   : > { %3033 = vst [vmem:[#allocation18_spill] sm:$0xff] %v2783_v23 }
 0x146   : > { %v2787_v63 = vpop.f32.mrf.mxu0  ;;  %v2789_v11 = vpop.f32.mrf.mxu1 }
 0x147   : > { %3034 = vst [vmem:[#allocation19_spill] sm:$0xff] %v2787_v63 }
 0x148   : > { %v2796_v1 = vpop.f32.mrf.mxu0  ;;  %v2798_v35 = vpop.f32.mrf.mxu1 }
 0x149   : > { %3035 = vst [vmem:[#allocation20_spill] sm:$0xff] %v2796_v1  ;;  %v2091_v1 = vadd.f32 %v2703_v44, %v2701_v42  ;;  %v1077_v42 = vadd.f32 %v2687_v28, %v2794_v5  ;;  %v1069_v28 = vadd.f32 %v2679_v16, %v2794_v5 }
 0x14a   : > { %v2804_v63 = vpop.f32.mrf.mxu0  ;;  %v2806_v23 = vpop.f32.mrf.mxu1 }
 0x14b   : > { %3036 = vst [vmem:[#allocation21_spill] sm:$0xff] %v2804_v63  ;;  %v1056_v63 = vadd.f32 %v2667_v62, %v2794_v5  ;;  %v1238_v59 = vadd.f32 %v2106_v52, %v1077_v42 }
 0x14c   : > { %v2812_v26 = vpop.f32.mrf.mxu1  ;;  %v2212_v46 = vpop.f32.mrf.mxu0 }
 0x14d   : > { %v1383_v37 = vadd.f32 %v2212_v46, %v1222_v30  ;;  %v1217_v44 = vadd.f32 %v2091_v1, %v1056_v63 }
 0x14e   : > { %v2819_v41 = vpop.f32.mrf.mxu1  ;;  %v1374_v56 = vpop.f32.mrf.mxu0 }
 0x14f   : > { %v1503_v57 = vmax.f32 %v1383_v37, 0.0  ;;  %v1375_v54 = vadd.f32 %v1374_v56, %v1214_v39  ;;  %v2103_v37 = vadd.f32 %v2719_v6, %v2717_v2  ;;  %v2118_v2 = vadd.f32 %v2757_v38, %v2753_v33 }
 0x150   : > { %v2828_v10 = vpop.f32.mrf.mxu1  ;;  %v2213_v62 = vpop.f32.mrf.mxu0 }
 0x151   : > { %v1928_v13 = vpack.c.bf16 %v1503_v57, %v1503_v57  ;;  %v1501_v30 = vmax.f32 %v1375_v54, 0.0  ;;  %v1386_v46 = vadd.f32 %v2213_v62, %v1225_v58  ;;  %v1230_v57 = vadd.f32 %v2100_v9, %v1069_v28 }
 0x152   : > { %v2836_v47 = vpop.f32.mrf.mxu1  ;;  %v1377_v49 = vpop.f32.mrf.mxu0  ;;  %v1072_v54 = vadd.f32 %v2683_v22, %v2794_v5  ;;  %v1085_v28 = vadd.f32 %v2699_v40, %v2794_v5  ;;  %v2115_v40 = vadd.f32 %v2749_v31, %v2745_v27 }
 0x153   : > { %1664 = vst.msk [vmem:[%s2826_s22 + $0x8] sm:$0xf] %vm1661_vm1, %v1928_v13  ;;  %v1926_v4 = vpack.c.bf16 %v1501_v30, %v1501_v30  ;;  %v1504_v63 = vmax.f32 %v1386_v46, 0.0  ;;  %v1378_v1 = vadd.f32 %v1377_v49, %v1217_v44  ;;  %v1093_v44 = vadd.f32 %v2707_v50, %v2794_v5 }
 0x154   : > { %v2844_v16 = vpop.f32.mrf.mxu1  ;;  %v2216_v39 = vpop.f32.mrf.mxu0  ;;  %v1233_v22 = vadd.f32 %v2103_v37, %v1072_v54  ;;  %v2112_v30 = vadd.f32 %v2741_v25, %v2737_v21 }
 0x155   : > { %1662 = vst.msk [vmem:[%s2826_s22] sm:$0xf] %vm1661_vm1, %v1926_v4  ;;  %v1929_v15 = vpack.c.bf16 %v1504_v63, %v1504_v63  ;;  %v1502_v19 = vmax.f32 %v1378_v1, 0.0  ;;  %v1399_v56 = vadd.f32 %v2216_v39, %v1238_v59  ;;  %v1254_v25 = vadd.f32 %v2118_v2, %v1093_v44 }
 0x156   : > { %v2850_v52 = vpop.f32.mrf.mxu1  ;;  %v1390_v58 = vpop.f32.mrf.mxu0  ;;  %v1096_v1 = vadd.f32 %v2709_v55, %v2794_v5  ;;  %v2018_v59 = vadd.f32 %v2725_v12, %v2723_v8  ;;  %v2130_v12 = vadd.f32 %v2789_v11, %v2785_v17  ;;  %v2133_v44 = vadd.f32 %v2806_v23, %v2798_v35 }
 0x157   : > { %1665 = vst.msk [vmem:[%s2826_s22 + $0xc] sm:$0xf] %vm1661_vm1, %v1929_v15  ;;  %v1927_v6 = vpack.c.bf16 %v1502_v19, %v1502_v19  ;;  %v1507_v42 = vmax.f32 %v1399_v56, 0.0  ;;  %v1391_v62 = vadd.f32 %v1390_v58, %v1230_v57  ;;  %v1246_v15 = vadd.f32 %v2112_v30, %v1085_v28 }
 0x158   : > { %v2858_v9 = vpop.f32.mrf.mxu1  ;;  %v2217_v13 = vpop.f32.mrf.mxu0  ;;  %v1088_v19 = vadd.f32 %v2705_v45, %v2794_v5  ;;  %v1257_v8 = vadd.f32 %v2121_v51, %v1096_v1  ;;  %v1109_v54 = vadd.f32 %v2018_v59, %v2794_v5  ;;  %v2021_v58 = vadd.f32 %v2731_v18, %v2727_v14  ;;  %v3037_v59 = vld [vmem:[#allocation12_spill] sm:$0xff] }
 0x159   : > { %1663 = vst.msk [vmem:[%s2826_s22 + $0x4] sm:$0xf] %vm1661_vm1, %v1927_v6  ;;  %v1932_v46 = vpack.c.bf16 %v1507_v42, %v1507_v42  ;;  %v1505_v33 = vmax.f32 %v1391_v62, 0.0  ;;  %v1402_v38 = vadd.f32 %v2217_v13, %v1241_v34  ;;  %v2124_v6 = vadd.f32 %v2773_v60, %v2769_v53 }
 0x15a   : > { %v2868_v50 = vpop.f32.mrf.mxu1  ;;  %v1393_v49 = vpop.f32.mrf.mxu0  ;;  %v1249_v2 = vadd.f32 %v2115_v40, %v1088_v19  ;;  %v1101_v62 = vadd.f32 %v2715_v0, %v2794_v5  ;;  %v1270_v60 = vadd.f32 %v2130_v12, %v1109_v54  ;;  %v1112_v30 = vadd.f32 %v2021_v58, %v2794_v5  ;;  %v3040_v19 = vld [vmem:[#allocation11_spill] sm:$0xff]  ;;  %v3041_v58 = vld [vmem:[#allocation18_spill] sm:$0xff] }
 0x15b   : > { %1668 = vst.msk [vmem:[%s2826_s22 + $0x18] sm:$0xf] %vm1661_vm1, %v1932_v46  ;;  %v1930_v4 = vpack.c.bf16 %v1505_v33, %v1505_v33  ;;  %v1508_v63 = vmax.f32 %v1402_v38, 0.0  ;;  %v1394_v21 = vadd.f32 %v1393_v49, %v1233_v22  ;;  %v2030_v46 = vadd.f32 %v2755_v36, %v2751_v32 }
 0x15c   : > { %v2878_v43 = vpop.f32.mrf.mxu1  ;;  %v2220_v48 = vpop.f32.mrf.mxu0  ;;  %v2127_v0 = vadd.f32 %v2781_v29, %v2777_v3  ;;  %v1262_v51 = vadd.f32 %v2124_v6, %v1101_v62  ;;  %v1104_v49 = vadd.f32 %v2721_v7, %v2794_v5  ;;  %v1273_v36 = vadd.f32 %v2133_v44, %v1112_v30  ;;  %v3038_v7 = vld [vmem:[#allocation13_spill] sm:$0xff] }
 0x15d   : > { %1666 = vst.msk [vmem:[%s2826_s22 + $0x10] sm:$0xf] %vm1661_vm1, %v1930_v4  ;;  %v1933_v61 = vpack.c.bf16 %v1508_v63, %v1508_v63  ;;  %v1506_v37 = vmax.f32 %v1394_v21, 0.0  ;;  %v1415_v39 = vadd.f32 %v2220_v48, %v1254_v25  ;;  %v2024_v4 = vadd.f32 %v2739_v24, %v2735_v20 }
 0x15e   : > { %v2884_v55 = vpop.f32.mrf.mxu1  ;;  %v1406_v56 = vpop.f32.mrf.mxu0  ;;  %v2142_v29 = vadd.f32 %v2850_v52, %v2844_v16  ;;  %v1125_v1 = vadd.f32 %v2030_v46, %v2794_v5  ;;  %v2033_v40 = vadd.f32 %v3038_v7, %v3037_v59  ;;  %v1265_v20 = vadd.f32 %v2127_v0, %v1104_v49 }
 0x15f   : > { %1669 = vst.msk [vmem:[%s2826_s22 + $0x1c] sm:$0xf] %vm1661_vm1, %v1933_v61  ;;  %v1931_v27 = vpack.c.bf16 %v1506_v37, %v1506_v37  ;;  %v1511_v31 = vmax.f32 %v1415_v39, 0.0  ;;  %v1407_v57 = vadd.f32 %v1406_v56, %v1246_v15  ;;  %v2136_v24 = vadd.f32 %v2819_v41, %v2812_v26  ;;  %v3039_v15 = vld [vmem:[#allocation10_spill] sm:$0xff] }
 0x160   : > { %v2893_v34 = vpop.f32.mrf.mxu1  ;;  %v2221_v45 = vpop.f32.mrf.mxu0  ;;  %v1117_v39 = vadd.f32 %v2024_v4, %v2794_v5  ;;  %v2027_v56 = vadd.f32 %v3040_v19, %v3039_v15  ;;  %v1128_v54 = vadd.f32 %v2033_v40, %v2794_v5  ;;  %v2139_v6 = vadd.f32 %v2836_v47, %v2828_v10 }
 0x161   : > { %1667 = vst.msk [vmem:[%s2826_s22 + $0x14] sm:$0xf] %vm1661_vm1, %v1931_v27  ;;  %v1936_v11 = vpack.c.bf16 %v1511_v31, %v1511_v31  ;;  %v1509_v17 = vmax.f32 %v1407_v57, 0.0  ;;  %v1418_v42 = vadd.f32 %v2221_v45, %v1257_v8  ;;  %v2145_v8 = vadd.f32 %v2868_v50, %v2858_v9  ;;  %v3042_v45 = vld [vmem:[#allocation19_spill] sm:$0xff] }
 0x162   : > { %v2903_v14 = vpop.f32.mrf.mxu1  ;;  %v1409_v18 = vpop.f32.mrf.mxu0  ;;  %v1286_v57 = vadd.f32 %v2142_v29, %v1125_v1  ;;  %v1278_v62 = vadd.f32 %v2136_v24, %v1117_v39  ;;  %v1120_v44 = vadd.f32 %v2027_v56, %v2794_v5 }
 0x163   : > { %1672 = vst.msk [vmem:[%s2826_s22 + $0x28] sm:$0xf] %vm1661_vm1, %v1936_v11  ;;  %v1934_v13 = vpack.c.bf16 %v1509_v17, %v1509_v17  ;;  %v1512_v22 = vmax.f32 %v1418_v42, 0.0  ;;  %v1410_v53 = vadd.f32 %v1409_v18, %v1249_v2  ;;  %v2042_v2 = vadd.f32 %v3042_v45, %v3041_v58  ;;  %v3043_v18 = vld [vmem:[#allocation14_spill] sm:$0xff] }
 0x164   : > { %v2152_v33 = vpop.f32.mrf.mxu1  ;;  %v2224_v23 = vpop.f32.mrf.mxu0  ;;  %v1289_v30 = vadd.f32 %v2145_v8, %v1128_v54  ;;  %v1281_v4 = vadd.f32 %v2139_v6, %v1120_v44  ;;  %v2151_v24 = vadd.f32 %v2903_v14, %v2893_v34 }
 0x165   : > { %1670 = vst.msk [vmem:[%s2826_s22 + $0x20] sm:$0xf] %vm1661_vm1, %v1934_v13  ;;  %v1937_v35 = vpack.c.bf16 %v1512_v22, %v1512_v22  ;;  %v1510_v38 = vmax.f32 %v1410_v53, 0.0  ;;  %v1431_v28 = vadd.f32 %v2224_v23, %v1270_v60  ;;  %v3044_v13 = vld [vmem:[#allocation15_spill] sm:$0xff]  ;;  %v1141_v23 = vadd.f32 %v2042_v2, %v2794_v5 }
 0x166   : > { %v2153_v63 = vpop.f32.mrf.mxu1  ;;  %v1422_v32 = vpop.f32.mrf.mxu0  ;;  %v2036_v22 = vadd.f32 %v3044_v13, %v3043_v18 }
 0x167   : > { %1673 = vst.msk [vmem:[%s2826_s22 + $0x2c] sm:$0xf] %vm1661_vm1, %v1937_v35  ;;  %v1935_v3 = vpack.c.bf16 %v1510_v38, %v1510_v38  ;;  %v1515_v21 = vmax.f32 %v1431_v28, 0.0  ;;  %v1423_v25 = vadd.f32 %v1422_v32, %v1262_v51  ;;  %v2154_v46 = vadd.f32 %v2153_v63, %v2152_v33  ;;  %v3045_v35 = vld [vmem:[#allocation20_spill] sm:$0xff]  ;;  %v3046_v38 = vld [vmem:[#allocation21_spill] sm:$0xff] }
 0x168   : > { %v2155_v48 = vpop.f32.mrf.mxu1  ;;  %v2225_v61 = vpop.f32.mrf.mxu0  ;;  %v2045_v28 = vadd.f32 %v3046_v38, %v3045_v35  ;;  %v2148_v32 = vadd.f32 %v2884_v55, %v2878_v43  ;;  %v1133_v29 = vadd.f32 %v2036_v22, %v2794_v5  ;;  %v3052_v38 = vld [vmem:[#allocation3_spill] sm:$0xff] }
 0x169   : > { %1671 = vst.msk [vmem:[%s2826_s22 + $0x24] sm:$0xf] %vm1661_vm1, %v1935_v3  ;;  %v1940_v16 = vpack.c.bf16 %v1515_v21, %v1515_v21  ;;  %v1513_v52 = vmax.f32 %v1423_v25, 0.0  ;;  %v1434_v37 = vadd.f32 %v2225_v61, %v1273_v36  ;;  %v3047_v3 = vld [vmem:[#allocation16_spill] sm:$0xff]  ;;  %v3048_v21 = vld [vmem:[#allocation17_spill] sm:$0xff]  ;;  %v1302_v55 = vadd.f32 %v2154_v46, %v1141_v23 }
 0x16a   : > { %v2156_v12 = vpop.f32.mrf.mxu1  ;;  %v1425_v27 = vpop.f32.mrf.mxu0  ;;  %v2039_v25 = vadd.f32 %v3048_v21, %v3047_v3  ;;  %v1294_v15 = vadd.f32 %v2148_v32, %v1133_v29 }
 0x16b   : > { %1676 = vst.msk [vmem:[%s2826_s22 + $0x38] sm:$0xf] %vm1661_vm1, %v1940_v16  ;;  %v1938_v31 = vpack.c.bf16 %v1513_v52, %v1513_v52  ;;  %v1516_v26 = vmax.f32 %v1434_v37, 0.0  ;;  %v1426_v41 = vadd.f32 %v1425_v27, %v1265_v20  ;;  %v2157_v1 = vadd.f32 %v2156_v12, %v2155_v48 }
 0x16c   : > { %v2158_v11 = vpop.f32.mrf.mxu1  ;;  %v2228_v17 = vpop.f32.mrf.mxu0  ;;  %v1144_v20 = vadd.f32 %v2045_v28, %v2794_v5  ;;  %v1136_v19 = vadd.f32 %v2039_v25, %v2794_v5  ;;  %v1152_v28 = vadd.f32 %v3052_v38, %v2794_v5 }
 0x16d   : > { %1674 = vst.msk [vmem:[%s2826_s22 + $0x30] sm:$0xf] %vm1661_vm1, %v1938_v31  ;;  %v1941_v9 = vpack.c.bf16 %v1516_v26, %v1516_v26  ;;  %v1514_v50 = vmax.f32 %v1426_v41, 0.0  ;;  %v1447_v42 = vadd.f32 %v2228_v17, %v1286_v57  ;;  %v3049_v26 = vld [vmem:[#allocation4_spill] sm:$0xff] }
 0x16e   : > { %v2159_v53 = vpop.f32.mrf.mxu1  ;;  %v1438_v60 = vpop.f32.mrf.mxu0  ;;  %v1305_v12 = vadd.f32 %v2157_v1, %v1144_v20  ;;  %v1157_v41 = vadd.f32 %v3049_v26, %v2794_v5  ;;  %v1297_v58 = vadd.f32 %v2151_v24, %v1136_v19  ;;  %v3054_v19 = vld [vmem:[#allocation7_spill] sm:$0xff] }
 0x16f   : > { %1677 = vst.msk [vmem:[%s2826_s22 + $0x3c] sm:$0xf] %vm1661_vm1, %v1941_v9  ;;  %v1939_v10 = vpack.c.bf16 %v1514_v50, %v1514_v50  ;;  %v1519_v47 = vmax.f32 %v1447_v42, 0.0  ;;  %v1439_v0 = vadd.f32 %v1438_v60, %v1278_v62  ;;  %v2160_v45 = vadd.f32 %v2159_v53, %v2158_v11  ;;  %v3050_v9 = vld [vmem:[#allocation2_spill] sm:$0xff]  ;;  %v3051_v11 = vld [vmem:[#allocation5_spill] sm:$0xff] }
 0x170   : > { %v2161_v51 = vpop.f32.mrf.mxu1  ;;  %v2229_v49 = vpop.f32.mrf.mxu0  ;;  %v1149_v50 = vadd.f32 %v3050_v9, %v2794_v5  ;;  %v1160_v53 = vadd.f32 %v3051_v11, %v2794_v5 }
 0x171   : > { %1675 = vst.msk [vmem:[%s2826_s22 + $0x34] sm:$0xf] %vm1661_vm1, %v1939_v10  ;;  %v1944_v33 = vpack.c.bf16 %v1519_v47, %v1519_v47  ;;  %v1517_v63 = vmax.f32 %v1439_v0, 0.0  ;;  %v1450_v36 = vadd.f32 %v2229_v49, %v1289_v30 }
 0x172   : > { %v2162_v59 = vpop.f32.mrf.mxu1  ;;  %v1441_v7 = vpop.f32.mrf.mxu0  ;;  %v1310_v35 = vadd.f32 %v2160_v45, %v1149_v50 }
 0x173   : > { %1680 = vst.msk [vmem:[%s2826_s22 + $0x48] sm:$0xf] %vm1661_vm1, %v1944_v33  ;;  %v1942_v40 = vpack.c.bf16 %v1517_v63, %v1517_v63  ;;  %v1520_v61 = vmax.f32 %v1450_v36, 0.0  ;;  %v1442_v43 = vadd.f32 %v1441_v7, %v1281_v4  ;;  %v2163_v30 = vadd.f32 %v2162_v59, %v2161_v51 }
 0x174   : > { %v2164_v16 = vpop.f32.mrf.mxu1  ;;  %v2232_v52 = vpop.f32.mrf.mxu0 }
 0x175   : > { %1678 = vst.msk [vmem:[%s2826_s22 + $0x40] sm:$0xf] %vm1661_vm1, %v1942_v40  ;;  %v1945_v37 = vpack.c.bf16 %v1520_v61, %v1520_v61  ;;  %v1518_v48 = vmax.f32 %v1442_v43, 0.0  ;;  %v1463_v39 = vadd.f32 %v2232_v52, %v1302_v55  ;;  %v1313_v3 = vadd.f32 %v2163_v30, %v1152_v28  ;;  %v3053_v61 = vld [vmem:[#allocation6_spill] sm:$0xff] }
 0x176   : > { %v2165_v56 = vpop.f32.mrf.mxu1  ;;  %v1454_v8 = vpop.f32.mrf.mxu0  ;;  %v1165_v43 = vadd.f32 %v3053_v61, %v2794_v5 }
 0x177   : > { %1681 = vst.msk [vmem:[%s2826_s22 + $0x4c] sm:$0xf] %vm1661_vm1, %v1945_v37  ;;  %v1943_v27 = vpack.c.bf16 %v1518_v48, %v1518_v48  ;;  %v1523_v31 = vmax.f32 %v1463_v39, 0.0  ;;  %v2166_v34 = vadd.f32 %v2165_v56, %v2164_v16  ;;  %v1455_v14 = vadd.f32 %v1454_v8, %v1294_v15 }
 0x178   : > { %v2167_v57 = vpop.f32.mrf.mxu1  ;;  %v2233_v54 = vpop.f32.mrf.mxu0  ;;  %v1168_v56 = vadd.f32 %v3054_v19, %v2794_v5 }
 0x179   : > { %1679 = vst.msk [vmem:[%s2826_s22 + $0x44] sm:$0xf] %vm1661_vm1, %v1943_v27  ;;  %v1948_v2 = vpack.c.bf16 %v1523_v31, %v1523_v31  ;;  %v1521_v6 = vmax.f32 %v1455_v14, 0.0  ;;  %v1466_v17 = vadd.f32 %v2233_v54, %v1305_v12  ;;  %v1318_v44 = vadd.f32 %v2166_v34, %v1157_v41  ;;  %v3055_v27 = vld [vmem:[#allocation8_spill] sm:$0xff] }
 0x17a   : > { %v2168_v42 = vpop.f32.mrf.mxu1  ;;  %v1457_v62 = vpop.f32.mrf.mxu0  ;;  %v1173_v31 = vadd.f32 %v3055_v27, %v2794_v5 }
 0x17b   : > { %1684 = vst.msk [vmem:[%s2826_s22 + $0x58] sm:$0xf] %vm1661_vm1, %v1948_v2  ;;  %v1946_v18 = vpack.c.bf16 %v1521_v6, %v1521_v6  ;;  %v1524_v13 = vmax.f32 %v1466_v17, 0.0  ;;  %v2169_v22 = vadd.f32 %v2168_v42, %v2167_v57  ;;  %v1458_v60 = vadd.f32 %v1457_v62, %v1297_v58  ;;  %v3056_v2 = vld [vmem:[#allocation9_spill] sm:$0xff] }
 0x17c   : > { %v2170_v46 = vpop.f32.mrf.mxu1  ;;  %v2236_v10 = vpop.f32.mrf.mxu0  ;;  %v1176_v6 = vadd.f32 %v3056_v2, %v2794_v5 }
 0x17d   : > { %1682 = vst.msk [vmem:[%s2826_s22 + $0x50] sm:$0xf] %vm1661_vm1, %v1946_v18  ;;  %v1949_v47 = vpack.c.bf16 %v1524_v13, %v1524_v13  ;;  %v1522_v0 = vmax.f32 %v1458_v60, 0.0  ;;  %v1479_v23 = vadd.f32 %v2236_v10, %v1318_v44  ;;  %v1321_v63 = vadd.f32 %v2169_v22, %v1160_v53 }
 0x17e   : > { %v2171_v49 = vpop.f32.mrf.mxu1  ;;  %v1470_v4 = vpop.f32.mrf.mxu0 }
 0x17f   : > { %1685 = vst.msk [vmem:[%s2826_s22 + $0x5c] sm:$0xf] %vm1661_vm1, %v1949_v47  ;;  %v1947_v32 = vpack.c.bf16 %v1522_v0, %v1522_v0  ;;  %v1527_v33 = vmax.f32 %v1479_v23, 0.0  ;;  %v1471_v51 = vadd.f32 %v1470_v4, %v1310_v35  ;;  %v2172_v25 = vadd.f32 %v2171_v49, %v2170_v46 }
 0x180   : > { %v2173_v36 = vpop.f32.mrf.mxu1  ;;  %v2237_v29 = vpop.f32.mrf.mxu0 }
 0x181   : > { %1683 = vst.msk [vmem:[%s2826_s22 + $0x54] sm:$0xf] %vm1661_vm1, %v1947_v32  ;;  %v1952_v21 = vpack.c.bf16 %v1527_v33, %v1527_v33  ;;  %v1525_v1 = vmax.f32 %v1471_v51, 0.0  ;;  %v1482_v59 = vadd.f32 %v2237_v29, %v1321_v63  ;;  %v1326_v15 = vadd.f32 %v2172_v25, %v1165_v43 }
 0x182   : > { %v2174_v7 = vpop.f32.mrf.mxu1  ;;  %v1473_v40 = vpop.f32.mrf.mxu0 }
 0x183   : > { %1688 = vst.msk [vmem:[%s2826_s22 + $0x68] sm:$0xf] %vm1661_vm1, %v1952_v21  ;;  %v1950_v55 = vpack.c.bf16 %v1525_v1, %v1525_v1  ;;  %v1528_v20 = vmax.f32 %v1482_v59, 0.0  ;;  %v1474_v24 = vadd.f32 %v1473_v40, %v1313_v3  ;;  %v2175_v48 = vadd.f32 %v2174_v7, %v2173_v36 }
 0x184   : > { %v2176_v16 = vpop.f32.mrf.mxu1  ;;  %v2240_v52 = vpop.f32.mrf.mxu0 }
 0x185   : > { %1686 = vst.msk [vmem:[%s2826_s22 + $0x60] sm:$0xf] %vm1661_vm1, %v1950_v55  ;;  %v1953_v37 = vpack.c.bf16 %v1528_v20, %v1528_v20  ;;  %v1526_v39 = vmax.f32 %v1474_v24, 0.0  ;;  %v1329_v45 = vadd.f32 %v2175_v48, %v1168_v56 }
 0x186   : > { %v2177_v8 = vpop.f32.mrf.mxu1  ;;  %v1486_v12 = vpop.f32.mrf.mxu0 }
 0x187   : > { %1689 = vst.msk [vmem:[%s2826_s22 + $0x6c] sm:$0xf] %vm1661_vm1, %v1953_v37  ;;  %v1951_v34 = vpack.c.bf16 %v1526_v39, %v1526_v39  ;;  %v2178_v14 = vadd.f32 %v2177_v8, %v2176_v16  ;;  %v1487_v26 = vadd.f32 %v1486_v12, %v1326_v15 }
 0x188   : > { %v2179_v41 = vpop.f32.mrf.mxu1  ;;  %v2241_v57 = vpop.f32.mrf.mxu0 }
 0x189   : > { %1687 = vst.msk [vmem:[%s2826_s22 + $0x64] sm:$0xf] %vm1661_vm1, %v1951_v34  ;;  %v1334_v54 = vadd.f32 %v2178_v14, %v1173_v31  ;;  %v1529_v58 = vmax.f32 %v1487_v26, 0.0 }
 0x18a   : > { %v2180_v17 = vpop.f32.mrf.mxu1  ;;  %v1489_v9 = vpop.f32.mrf.mxu0 }
 0x18b   : > { %v1495_v50 = vadd.f32 %v2240_v52, %v1334_v54  ;;  %v1954_v42 = vpack.c.bf16 %v1529_v58, %v1529_v58  ;;  %v2181_v62 = vadd.f32 %v2180_v17, %v2179_v41  ;;  %v1490_v44 = vadd.f32 %v1489_v9, %v1329_v45 }
 0x18d   : > { %v1531_v18 = vmax.f32 %v1495_v50, 0.0  ;;  %1690 = vst.msk [vmem:[%s2826_s22 + $0x70] sm:$0xf] %vm1661_vm1, %v1954_v42  ;;  %v1337_v13 = vadd.f32 %v2181_v62, %v1176_v6  ;;  %v1530_v22 = vmax.f32 %v1490_v44, 0.0 }
 0x18f   : > { %v1956_v60 = vpack.c.bf16 %v1531_v18, %v1531_v18  ;;  %v1498_v11 = vadd.f32 %v2241_v57, %v1337_v13  ;;  %v1955_v53 = vpack.c.bf16 %v1530_v22, %v1530_v22 }
 0x191   : > { %1692 = vst.msk [vmem:[%s2826_s22 + $0x78] sm:$0xf] %vm1661_vm1, %v1956_v60  ;;  %v1532_v30 = vmax.f32 %v1498_v11, 0.0  ;;  %1691 = vst.msk [vmem:[%s2826_s22 + $0x74] sm:$0xf] %vm1661_vm1, %v1955_v53 }
 0x193   : > { %v1957_v5 = vpack.c.bf16 %v1532_v30, %v1532_v30 }
 0x195   : > { %1693 = vst.msk [vmem:[%s2826_s22 + $0x7c] sm:$0xf] %vm1661_vm1, %v1957_v5 }
 0x196 PF: > { %s13_s12 = sadd.s32 1, %s2421_s12  }
 0x197   : > { %p10_p4 = scmp.ge.s32.totalorder %s13_s12, 4  }
 0x199   :  { %12 = sbr.rel (!%p10_p4) target bundleno = 1 (0x1), region = 62 }

// kernel: net2x_forward.13
= control target key start
LH: loop header
LB: loop body
LE: loop exit
PB: predicated region body
PF: predicated region fallthrough
CT: control target
= control target key end

     0   :  { %s2630_s12 = smov 0   ;;  %s3278_s0 = inlined_call_operand.vmem [shape: bf16[512,576], index: 0, kind: input, shape index: {}]   ;;  %s3279_s1 = inlined_call_operand.vmem [shape: bf16[576,256], index: 1, kind: input, shape index: {}]   ;;  %s3280_s2 = inlined_call_operand.vmem [shape: f32[1,256], index: 2, kind: input, shape index: {}]   ;;  %s3281_s3 = inlined_call_operand.vmem [shape: bf16[512,256], index: 3, kind: output, shape index: {}]  }
   0x1 LB: > { %s2094_s13 = sadd.s32 4294967295, %s2607_s12   ;;  %p2098_p0 = scmp.ge.s32.totalorder %s2607_s12, 1  ;;  %s2607_s12 = sphi %s2630_s12, %s13_s12  }
   0x2   : > { %p139_p1 = scmp.lt.s32.totalorder %s2607_s12, 3 }
   0x4   : > { %p140_p2 = pnand %p2098_p0, %p139_p1 }
   0x6   : > { %143 = sbr.rel (%p140_p2) target bundleno = 468 (0x1d4), region = 32 }
   0xb   : > { %v2381_v0 = vld [vmem:[%s3279_s1 + $0x74] ss:$8 sps:$4 sm:$0xff]   ;;  %v2383_v1 = vld [vmem:[%s3279_s1 + $0x70] ss:$8 sps:$4 sm:$0xff]   ;;  %v2384_v2 = vld [vmem:[%s3279_s1 + $0x64] ss:$8 sps:$4 sm:$0xff]  }
   0xc   : > { %1169 = vmatprep.subr.bf16.mxu0 %v2381_v0  ;;  %2339 = vmatprep.subr.bf16.mxu1 %v2381_v0  ;;  %v2386_v3 = vld [vmem:[%s3279_s1 + $0x60] ss:$8 sps:$4 sm:$0xff]   ;;  %v2387_v4 = vld [vmem:[%s3279_s1 + $0x54] ss:$8 sps:$4 sm:$0xff]   ;;  %s2099_s24 = sshll.u32 %s2094_s13, 5  ;;  %vm1120_vm0 = vcmask 523264  }
   0xd   : > { %1170 = vmatpush1.bf16.msra.mxu0 %v2383_v1  ;;  %2355 = vmatpush1.bf16.msra.mxu1 %v2383_v1  ;;  %v2389_v5 = vld [vmem:[%s3279_s1 + $0x50] ss:$8 sps:$4 sm:$0xff]   ;;  %p166_p3 = scmp.lt.s32.totalorder %s2099_s24, 63  ;;  %v2390_v6 = vld [vmem:[%s3279_s1 + $0x44] ss:$8 sps:$4 sm:$0xff]  }
   0xe   : > { %1171 = vmatprep.subr.bf16.mxu0 %v2384_v2  ;;  %2340 = vmatprep.subr.bf16.mxu1 %v2384_v2  ;;  %v2392_v7 = vld [vmem:[%s3279_s1 + $0x40] ss:$8 sps:$4 sm:$0xff]   ;;  %v2393_v8 = vld [vmem:[%s3279_s1 + $0x34] ss:$8 sps:$4 sm:$0xff]   ;;  %v2395_v9 = vld [vmem:[%s3279_s1 + $0x30] ss:$8 sps:$4 sm:$0xff]  }
   0xf   : > { %s3323_s24 = smov (!%p166_p3, %s2099_s24), 63  ;;  %v2396_v10 = vld [vmem:[%s3279_s1 + $0x24] ss:$8 sps:$4 sm:$0xff]   ;;  %v2398_v11 = vld [vmem:[%s3279_s1 + $0x20] ss:$8 sps:$4 sm:$0xff]  }
  0x10   : > { %s2371_s8 = smul.u32 20, %s3323_s24  ;;  %v2399_v12 = vld [vmem:[%s3279_s1 + $0x14] ss:$8 sps:$4 sm:$0xff]   ;;  %v2401_v14 = vld [vmem:[%s3279_s1 + $0x10] ss:$8 sps:$4 sm:$0xff]  }
  0x11   : > { %1172 = vmatpush1.bf16.msra.mxu0 %v2386_v3  ;;  %2356 = vmatpush1.bf16.msra.mxu1 %v2386_v3  ;;  %v2402_v16 = vld [vmem:[%s3279_s1 + $0x4] ss:$8 sps:$4 sm:$0xff]   ;;  %v2404_v17 = vld [vmem:[%s3279_s1] ss:$8 sps:$4 sm:$0xff]   ;;  %v2405_v18 = vld [vmem:[%s3279_s1 + $0xf4] ss:$8 sps:$4 sm:$0xff]  }
  0x12   : > { %1173 = vmatprep.subr.bf16.mxu0 %v2387_v4  ;;  %2341 = vmatprep.subr.bf16.mxu1 %v2387_v4  ;;  %s2680_s16 = scalar_lea.vmem %s3278_s0, %s2371_s8  ;;  %v2407_v19 = vld [vmem:[%s3279_s1 + $0xf0] ss:$8 sps:$4 sm:$0xff]   ;;  %v2408_v20 = vld [vmem:[%s3279_s1 + $0xe4] ss:$8 sps:$4 sm:$0xff]   ;;  %v2410_v21 = vld [vmem:[%s3279_s1 + $0xe0] ss:$8 sps:$4 sm:$0xff]  }
  0x13   : > { %v2431_v13 = vld [vmem:[%s2680_s16 + $0x4] ss:$20 sps:$4 sm:$0xff]   ;;  %v2411_v22 = vld [vmem:[%s3279_s1 + $0xd4] ss:$8 sps:$4 sm:$0xff]   ;;  %v2416_v25 = vld [vmem:[%s3279_s1 + $0xc0] ss:$8 sps:$4 sm:$0xff]  }
  0x14   : > { %v2434_v15 = vld [vmem:[%s2680_s16 + $0x144] ss:$20 sps:$4 sm:$0xff]   ;;  %1201 = vmatprep.mubr.bf16.mxu0 %v2431_v13  ;;  %v2417_v26 = vld [vmem:[%s3279_s1 + $0xb4] ss:$8 sps:$4 sm:$0xff]   ;;  %v2422_v29 = vld [vmem:[%s3279_s1 + $0xa0] ss:$8 sps:$4 sm:$0xff]  }
  0x15   : > { %1174 = vmatpush1.bf16.msra.mxu0 %v2389_v5  ;;  %2357 = vmatpush1.bf16.msra.mxu1 %v2389_v5  ;;  %v2413_v23 = vld [vmem:[%s3279_s1 + $0xd0] ss:$8 sps:$4 sm:$0xff]   ;;  %v2414_v24 = vld [vmem:[%s3279_s1 + $0xc4] ss:$8 sps:$4 sm:$0xff]   ;;  %v2423_v30 = vld [vmem:[%s3279_s1 + $0x94] ss:$8 sps:$4 sm:$0xff]  }
  0x16   : > { %1175 = vmatprep.subr.bf16.mxu0 %v2390_v6  ;;  %2342 = vmatprep.subr.bf16.mxu1 %v2390_v6  ;;  %v2419_v27 = vld [vmem:[%s3279_s1 + $0xb0] ss:$8 sps:$4 sm:$0xff]   ;;  %v2420_v28 = vld [vmem:[%s3279_s1 + $0xa4] ss:$8 sps:$4 sm:$0xff]   ;;  %v2428_v33 = vld [vmem:[%s3279_s1 + $0x80] ss:$8 sps:$4 sm:$0xff]  }
  0x17   : > { %1281 = vmatprep.mubr.bf16.mxu1 %v2434_v15  ;;  %v2425_v31 = vld [vmem:[%s3279_s1 + $0x90] ss:$8 sps:$4 sm:$0xff]   ;;  %v2426_v32 = vld [vmem:[%s3279_s1 + $0x84] ss:$8 sps:$4 sm:$0xff]   ;;  %v2437_v34 = vld [vmem:[%s3279_s1 + $0x174] ss:$8 sps:$4 sm:$0xff]  }
  0x18   : > { %v2429_v35 = vld [vmem:[%s2680_s16] ss:$20 sps:$4 sm:$0xff]   ;;  %v2435_v38 = vld [vmem:[%s3279_s1 + $0x170] ss:$8 sps:$4 sm:$0xff]   ;;  %v2443_v40 = vld [vmem:[%s3279_s1 + $0x164] ss:$8 sps:$4 sm:$0xff]  }
  0x19   : > { %1176 = vmatpush1.bf16.msra.mxu0 %v2392_v7  ;;  %2358 = vmatpush1.bf16.msra.mxu1 %v2392_v7  ;;  %v2440_v36 = vld [vmem:[%s3279_s1 + $0x234] ss:$8 sps:$4 sm:$0xff]   ;;  %v2438_v39 = vld [vmem:[%s3279_s1 + $0x230] ss:$8 sps:$4 sm:$0xff]   ;;  %v2444_v41 = vld [vmem:[%s2680_s16 + $0x2c] ss:$20 sps:$4 sm:$0xff]  }
  0x1a   : > { %1177 = vmatprep.subr.bf16.mxu0 %v2393_v8  ;;  %2343 = vmatprep.subr.bf16.mxu1 %v2393_v8  ;;  %v2432_v37 = vld [vmem:[%s2680_s16 + $0x140] ss:$20 sps:$4 sm:$0xff]   ;;  %v2467_v43 = vld [vmem:[%s3279_s1 + $0x224] ss:$8 sps:$4 sm:$0xff]   ;;  %v2448_v48 = vld [vmem:[%s2680_s16 + $0x28] ss:$20 sps:$4 sm:$0xff]  }
  0x1b   : > { %v2446_v42 = vld [vmem:[%s2680_s16 + $0x16c] ss:$20 sps:$4 sm:$0xff]   ;;  %v2452_v45 = vld [vmem:[%s3279_s1 + $0x154] ss:$8 sps:$4 sm:$0xff]   ;;  %v2450_v50 = vld [vmem:[%s3279_s1 + $0x150] ss:$8 sps:$4 sm:$0xff]  }
  0x1c   : > { %v2441_v44 = vld [vmem:[%s3279_s1 + $0x160] ss:$8 sps:$4 sm:$0xff]   ;;  %v2494_v47 = vld [vmem:[%s3279_s1 + $0x214] ss:$8 sps:$4 sm:$0xff]   ;;  %v2455_v52 = vld [vmem:[%s3279_s1 + $0x144] ss:$8 sps:$4 sm:$0xff]  }
  0x1d   : > { %1178 = vmatpush1.bf16.msra.mxu0 %v2395_v9  ;;  %2359 = vmatpush1.bf16.msra.mxu1 %v2395_v9  ;;  %v2465_v46 = vld [vmem:[%s3279_s1 + $0x220] ss:$8 sps:$4 sm:$0xff]   ;;  %v2492_v54 = vld [vmem:[%s3279_s1 + $0x210] ss:$8 sps:$4 sm:$0xff]   ;;  %v2521_v55 = vld [vmem:[%s3279_s1 + $0x204] ss:$8 sps:$4 sm:$0xff]  }
  0x1e   : > { %1179 = vmatprep.subr.bf16.mxu0 %v2396_v10  ;;  %2344 = vmatprep.subr.bf16.mxu1 %v2396_v10  ;;  %v2449_v49 = vld [vmem:[%s2680_s16 + $0x168] ss:$20 sps:$4 sm:$0xff]   ;;  %v2460_v57 = vld [vmem:[%s2680_s16 + $0x50] ss:$20 sps:$4 sm:$0xff]   ;;  %v2475_v2 = vld [vmem:[%s2680_s16 + $0x78] ss:$20 sps:$4 sm:$0xff]  }
  0x1f   : > { %v2456_v51 = vld [vmem:[%s2680_s16 + $0x54] ss:$20 sps:$4 sm:$0xff]   ;;  %v2461_v59 = vld [vmem:[%s2680_s16 + $0x190] ss:$20 sps:$4 sm:$0xff]   ;;  %v2476_v4 = vld [vmem:[%s2680_s16 + $0x1b8] ss:$20 sps:$4 sm:$0xff]  }
  0x20   : > { %v2458_v53 = vld [vmem:[%s2680_s16 + $0x194] ss:$20 sps:$4 sm:$0xff]   ;;  %v2462_v61 = vld [vmem:[%s3279_s1 + $0x130] ss:$8 sps:$4 sm:$0xff]   ;;  %v2470_v62 = vld [vmem:[%s3279_s1 + $0x124] ss:$8 sps:$4 sm:$0xff]  }
  0x21   : > { %1180 = vmatpush1.bf16.msra.mxu0 %v2398_v11  ;;  %2360 = vmatpush1.bf16.msra.mxu1 %v2398_v11  ;;  %v2453_v56 = vld [vmem:[%s3279_s1 + $0x140] ss:$8 sps:$4 sm:$0xff]   ;;  %v2464_v58 = vld [vmem:[%s3279_s1 + $0x134] ss:$8 sps:$4 sm:$0xff]   ;;  %v2477_v5 = vld [vmem:[%s3279_s1 + $0x110] ss:$8 sps:$4 sm:$0xff]  }
  0x22   : > { %1181 = vmatprep.subr.bf16.mxu0 %v2399_v12  ;;  %2345 = vmatprep.subr.bf16.mxu1 %v2399_v12  ;;  %v2519_v60 = vld [vmem:[%s3279_s1 + $0x200] ss:$8 sps:$4 sm:$0xff]   ;;  %v2471_v63 = vld [vmem:[%s2680_s16 + $0x7c] ss:$20 sps:$4 sm:$0xff]   ;;  %v2482_v6 = vld [vmem:[%s3279_s1 + $0x104] ss:$8 sps:$4 sm:$0xff]  }
  0x23   : > { %v2473_v0 = vld [vmem:[%s2680_s16 + $0x1bc] ss:$20 sps:$4 sm:$0xff]   ;;  %v2468_v1 = vld [vmem:[%s3279_s1 + $0x120] ss:$8 sps:$4 sm:$0xff]   ;;  %v2483_v7 = vld [vmem:[%s2680_s16 + $0xa4] ss:$20 sps:$4 sm:$0xff]  }
  0x24   : > { %v2479_v3 = vld [vmem:[%s3279_s1 + $0x114] ss:$8 sps:$4 sm:$0xff]   ;;  %v2485_v8 = vld [vmem:[%s2680_s16 + $0x1e4] ss:$20 sps:$4 sm:$0xff]   ;;  %v2480_v9 = vld [vmem:[%s3279_s1 + $0x100] ss:$8 sps:$4 sm:$0xff]  }
  0x25   : > { %1182 = vmatpush1.bf16.msra.mxu0 %v2401_v14  ;;  %2361 = vmatpush1.bf16.msra.mxu1 %v2401_v14  ;;  %v2487_v10 = vld [vmem:[%s2680_s16 + $0xa0] ss:$20 sps:$4 sm:$0xff]   ;;  %v2489_v13 = vld [vmem:[%s3279_s1 + $0x1f0] ss:$8 sps:$4 sm:$0xff]   ;;  %v2497_v14 = vld [vmem:[%s3279_s1 + $0x1e4] ss:$8 sps:$4 sm:$0xff]  }
  0x26   : > { %1183 = vmatprep.subr.bf16.mxu0 %v2402_v16  ;;  %2346 = vmatprep.subr.bf16.mxu1 %v2402_v16  ;;  %v2491_v11 = vld [vmem:[%s3279_s1 + $0x1f4] ss:$8 sps:$4 sm:$0xff]   ;;  %v2498_v15 = vld [vmem:[%s2680_s16 + $0xcc] ss:$20 sps:$4 sm:$0xff]  }
  0x27   : > { %v2488_v12 = vld [vmem:[%s2680_s16 + $0x1e0] ss:$20 sps:$4 sm:$0xff]  }
  0x28   : > { %v2500_v16 = vld [vmem:[%s2680_s16 + $0x20c] ss:$20 sps:$4 sm:$0xff]  }
  0x29   : > { %1184 = vmatpush1.bf16.msra.mxu0 %v2404_v17  ;;  %2362 = vmatpush1.bf16.msra.mxu1 %v2404_v17  ;;  %v2495_v17 = vld [vmem:[%s3279_s1 + $0x1e0] ss:$8 sps:$4 sm:$0xff]  }
  0x2a   : > { %1185 = vmatprep.subr.bf16.mxu0 %v2405_v18  ;;  %2347 = vmatprep.subr.bf16.mxu1 %v2405_v18  ;;  %v2502_v18 = vld [vmem:[%s2680_s16 + $0xc8] ss:$20 sps:$4 sm:$0xff]  }
  0x2d   : > { %1186 = vmatpush2.bf16.msra.mxu0 %v2407_v19  ;;  %2363 = vmatpush2.bf16.msra.mxu1 %v2407_v19  ;;  %v2503_v19 = vld [vmem:[%s2680_s16 + $0x208] ss:$20 sps:$4 sm:$0xff]  }
  0x2e   : > { %1187 = vmatprep.subr.bf16.mxu0 %v2408_v20  ;;  %2348 = vmatprep.subr.bf16.mxu1 %v2408_v20  ;;  %v2506_v20 = vld [vmem:[%s3279_s1 + $0x1d4] ss:$8 sps:$4 sm:$0xff]  }
  0x31   : > { %1188 = vmatpush2.bf16.msra.mxu0 %v2410_v21  ;;  %2364 = vmatpush2.bf16.msra.mxu1 %v2410_v21  ;;  %v2504_v21 = vld [vmem:[%s3279_s1 + $0x1d0] ss:$8 sps:$4 sm:$0xff]  }
  0x32   : > { %1189 = vmatprep.subr.bf16.mxu0 %v2411_v22  ;;  %2349 = vmatprep.subr.bf16.mxu1 %v2411_v22  ;;  %v2510_v22 = vld [vmem:[%s2680_s16 + $0xf4] ss:$20 sps:$4 sm:$0xff]  }
  0x35   : > { %1190 = vmatpush2.bf16.msra.mxu0 %v2413_v23  ;;  %2365 = vmatpush2.bf16.msra.mxu1 %v2413_v23  ;;  %v2509_v23 = vld [vmem:[%s3279_s1 + $0x1c4] ss:$8 sps:$4 sm:$0xff]  }
  0x36   : > { %1191 = vmatprep.subr.bf16.mxu0 %v2414_v24  ;;  %2350 = vmatprep.subr.bf16.mxu1 %v2414_v24  ;;  %v2512_v24 = vld [vmem:[%s2680_s16 + $0x234] ss:$20 sps:$4 sm:$0xff]  }
  0x39   : > { %1192 = vmatpush2.bf16.msra.mxu0 %v2416_v25  ;;  %2366 = vmatpush2.bf16.msra.mxu1 %v2416_v25  ;;  %v2507_v25 = vld [vmem:[%s3279_s1 + $0x1c0] ss:$8 sps:$4 sm:$0xff]  }
  0x3a   : > { %1193 = vmatprep.subr.bf16.mxu0 %v2417_v26  ;;  %2351 = vmatprep.subr.bf16.mxu1 %v2417_v26  ;;  %v2518_v26 = vld [vmem:[%s3279_s1 + $0x1b4] ss:$8 sps:$4 sm:$0xff]  }
  0x3d   : > { %1194 = vmatpush2.bf16.msra.mxu0 %v2419_v27  ;;  %2367 = vmatpush2.bf16.msra.mxu1 %v2419_v27  ;;  %v2514_v27 = vld [vmem:[%s2680_s16 + $0xf0] ss:$20 sps:$4 sm:$0xff]  }
  0x3e   : > { %1195 = vmatprep.subr.bf16.mxu0 %v2420_v28  ;;  %2352 = vmatprep.subr.bf16.mxu1 %v2420_v28  ;;  %v2515_v28 = vld [vmem:[%s2680_s16 + $0x230] ss:$20 sps:$4 sm:$0xff]  }
  0x41   : > { %1196 = vmatpush2.bf16.msra.mxu0 %v2422_v29  ;;  %2368 = vmatpush2.bf16.msra.mxu1 %v2422_v29  ;;  %v2516_v29 = vld [vmem:[%s3279_s1 + $0x1b0] ss:$8 sps:$4 sm:$0xff]  }
  0x42   : > { %1197 = vmatprep.subr.bf16.mxu0 %v2423_v30  ;;  %2353 = vmatprep.subr.bf16.mxu1 %v2423_v30  ;;  %v2525_v30 = vld [vmem:[%s2680_s16 + $0x11c] ss:$20 sps:$4 sm:$0xff]  }
  0x45   : > { %1198 = vmatpush2.bf16.msra.mxu0 %v2425_v31  ;;  %2369 = vmatpush2.bf16.msra.mxu1 %v2425_v31  ;;  %v2524_v31 = vld [vmem:[%s3279_s1 + $0x1a4] ss:$8 sps:$4 sm:$0xff]  }
  0x46   : > { %1199 = vmatprep.subr.bf16.mxu0 %v2426_v32  ;;  %2354 = vmatprep.subr.bf16.mxu1 %v2426_v32  ;;  %v2527_v32 = vld [vmem:[%s2680_s16 + $0x25c] ss:$20 sps:$4 sm:$0xff]  }
  0x49   : > { %1200 = vmatpush2.bf16.msra.mxu0 %v2428_v33  ;;  %2370 = vmatpush2.bf16.msra.mxu1 %v2428_v33  ;;  %v2522_v33 = vld [vmem:[%s3279_s1 + $0x1a0] ss:$8 sps:$4 sm:$0xff]  }
  0x4a   : > { %1362 = vmatprep.subr.bf16.mxu1 %v2437_v34  ;;  %1563 = vmatprep.subr.bf16.mxu0 %v2440_v36  ;;  %v2533_v34 = vld [vmem:[%s3279_s1 + $0x194] ss:$8 sps:$4 sm:$0xff]   ;;  %v2530_v36 = vld [vmem:[%s2680_s16 + $0x258] ss:$20 sps:$4 sm:$0xff]  }
  0x4c   : > { %1202 = vmatmul.mubr.bf16.vlgmr.msra.gmra.mxu0 %v2429_v35  ;;  %1282 = vmatmul.mubr.bf16.vlgmr.msra.gmra.mxu1 %v2432_v37  ;;  %v2529_v35 = vld [vmem:[%s2680_s16 + $0x118] ss:$20 sps:$4 sm:$0xff]  }
  0x4d   : > { %1363 = vmatpush1.bf16.msra.mxu1 %v2435_v38  ;;  %1564 = vmatpush1.bf16.msra.mxu0 %v2438_v39  ;;  %v2531_v37 = vld [vmem:[%s3279_s1 + $0x190] ss:$8 sps:$4 sm:$0xff]   ;;  %v2539_v38 = vld [vmem:[%s2680_s16 + $0xc] ss:$20 sps:$4 sm:$0xff]  }
  0x4e   : > { %1364 = vmatprep.subr.bf16.mxu1 %v2443_v40  ;;  %1211 = vmatprep.mubr.bf16.mxu0 %v2444_v41  ;;  %v2536_v39 = vld [vmem:[%s3279_s1 + $0x184] ss:$8 sps:$4 sm:$0xff]   ;;  %v2534_v40 = vld [vmem:[%s3279_s1 + $0x180] ss:$8 sps:$4 sm:$0xff]   ;;  %v2609_v41 = vmov 0  }
  0x4f   : > { %1291 = vmatprep.mubr.bf16.mxu1 %v2446_v42  ;;  %1565 = vmatprep.subr.bf16.mxu0 %v2467_v43  ;;  %v2537_v42 = vld [vmem:[%s2680_s16 + $0x8] ss:$20 sps:$4 sm:$0xff]   ;;  %v2540_v43 = vld [vmem:[%s2680_s16 + $0x10] ss:$20 sps:$4 sm:$0xff]  }
  0x51   : > { %1365 = vmatpush1.bf16.msra.mxu1 %v2441_v44  ;;  %1566 = vmatpush1.bf16.msra.mxu0 %v2465_v46  ;;  %v2541_v44 = vld [vmem:[%s2680_s16 + $0x34] ss:$20 sps:$4 sm:$0xff]   ;;  %v2544_v46 = vld [vmem:[%s2680_s16 + $0x38] ss:$20 sps:$4 sm:$0xff]  }
  0x52   : > { %1366 = vmatprep.subr.bf16.mxu1 %v2452_v45  ;;  %1567 = vmatprep.subr.bf16.mxu0 %v2494_v47  ;;  %v2543_v45 = vld [vmem:[%s2680_s16 + $0x30] ss:$20 sps:$4 sm:$0xff]  }
  0x53   : > { %v2545_v47 = vld [vmem:[%s2680_s16 + $0x5c] ss:$20 sps:$4 sm:$0xff]  }
  0x54   : > { %1212 = vmatmul.mubr.bf16.gmra.mxu0 %v2448_v48  ;;  %1292 = vmatmul.mubr.bf16.gmra.mxu1 %v2449_v49  ;;  %v2547_v48 = vld [vmem:[%s2680_s16 + $0x58] ss:$20 sps:$4 sm:$0xff]   ;;  %v2548_v49 = vld [vmem:[%s2680_s16 + $0x60] ss:$20 sps:$4 sm:$0xff]  }
  0x55   : > { %1367 = vmatpush1.bf16.msra.mxu1 %v2450_v50  ;;  %1221 = vmatprep.mubr.bf16.mxu0 %v2456_v51  ;;  %v2549_v50 = vld [vmem:[%s2680_s16 + $0x84] ss:$20 sps:$4 sm:$0xff]   ;;  %v2551_v51 = vld [vmem:[%s2680_s16 + $0x80] ss:$20 sps:$4 sm:$0xff]  }
  0x56   : > { %1368 = vmatprep.subr.bf16.mxu1 %v2455_v52  ;;  %1301 = vmatprep.mubr.bf16.mxu1 %v2458_v53  ;;  %v2552_v52 = vld [vmem:[%s2680_s16 + $0x88] ss:$20 sps:$4 sm:$0xff]   ;;  %v2553_v53 = vld [vmem:[%s2680_s16 + $0xac] ss:$20 sps:$4 sm:$0xff]  }
  0x57   : > { %1568 = vmatpush1.bf16.msra.mxu0 %v2492_v54  ;;  %v2555_v54 = vld [vmem:[%s2680_s16 + $0xa8] ss:$20 sps:$4 sm:$0xff]  }
  0x58   : > { %1569 = vmatprep.subr.bf16.mxu0 %v2521_v55  ;;  %v2556_v55 = vld [vmem:[%s2680_s16 + $0xb0] ss:$20 sps:$4 sm:$0xff]  }
  0x59   : > { %1369 = vmatpush1.bf16.msra.mxu1 %v2453_v56  ;;  %v2557_v56 = vld [vmem:[%s2680_s16 + $0xd4] ss:$20 sps:$4 sm:$0xff]  }
  0x5a   : > { %1370 = vmatprep.subr.bf16.mxu1 %v2464_v58  ;;  %v2560_v58 = vld [vmem:[%s2680_s16 + $0xd8] ss:$20 sps:$4 sm:$0xff]  }
  0x5b   : > { %1570 = vmatpush1.bf16.msra.mxu0 %v2519_v60  ;;  %v2563_v60 = vld [vmem:[%s2680_s16 + $0xf8] ss:$20 sps:$4 sm:$0xff]  }
  0x5c   : > { %1222 = vmatmul.mubr.bf16.gmra.mxu0 %v2460_v57  ;;  %1302 = vmatmul.mubr.bf16.gmra.mxu1 %v2461_v59  ;;  %v2559_v57 = vld [vmem:[%s2680_s16 + $0xd0] ss:$20 sps:$4 sm:$0xff]  }
  0x5d   : > { %1371 = vmatpush1.bf16.msra.mxu1 %v2462_v61  ;;  %1231 = vmatprep.mubr.bf16.mxu0 %v2471_v63  ;;  %v2561_v59 = vld [vmem:[%s2680_s16 + $0xfc] ss:$20 sps:$4 sm:$0xff]   ;;  %v2564_v61 = vld [vmem:[%s2680_s16 + $0x100] ss:$20 sps:$4 sm:$0xff]  }
  0x5e   : > { %1372 = vmatprep.subr.bf16.mxu1 %v2470_v62  ;;  %1311 = vmatprep.mubr.bf16.mxu1 %v2473_v0  ;;  %v2565_v62 = vld [vmem:[%s2680_s16 + $0x124] ss:$20 sps:$4 sm:$0xff]   ;;  %v2567_v63 = vld [vmem:[%s2680_s16 + $0x120] ss:$20 sps:$4 sm:$0xff]   ;;  %v2568_v0 = vld [vmem:[%s2680_s16 + $0x128] ss:$20 sps:$4 sm:$0xff]  }
  0x61   : > { %1373 = vmatpush1.bf16.msra.mxu1 %v2468_v1  ;;  %v2569_v1 = vld [vmem:[%s2680_s16 + $0x14c] ss:$20 sps:$4 sm:$0xff]  }
  0x62   : > { %1374 = vmatprep.subr.bf16.mxu1 %v2479_v3  ;;  %v2572_v3 = vld [vmem:[%s2680_s16 + $0x150] ss:$20 sps:$4 sm:$0xff]  }
  0x64   : > { %1232 = vmatmul.mubr.bf16.gmra.mxu0 %v2475_v2  ;;  %1312 = vmatmul.mubr.bf16.gmra.mxu1 %v2476_v4  ;;  %v2571_v2 = vld [vmem:[%s2680_s16 + $0x148] ss:$20 sps:$4 sm:$0xff]  }
  0x65   : > { %1375 = vmatpush1.bf16.msra.mxu1 %v2477_v5  ;;  %1241 = vmatprep.mubr.bf16.mxu0 %v2483_v7  ;;  %v2573_v4 = vld [vmem:[%s2680_s16 + $0x174] ss:$20 sps:$4 sm:$0xff]   ;;  %v2575_v5 = vld [vmem:[%s2680_s16 + $0x170] ss:$20 sps:$4 sm:$0xff]  }
  0x66   : > { %1376 = vmatprep.subr.bf16.mxu1 %v2482_v6  ;;  %1321 = vmatprep.mubr.bf16.mxu1 %v2485_v8  ;;  %v2576_v6 = vld [vmem:[%s2680_s16 + $0x178] ss:$20 sps:$4 sm:$0xff]   ;;  %v2577_v7 = vld [vmem:[%s2680_s16 + $0x19c] ss:$20 sps:$4 sm:$0xff]  }
  0x67   : > { %v2579_v8 = vld [vmem:[%s2680_s16 + $0x198] ss:$20 sps:$4 sm:$0xff]  }
  0x69   : > { %1377 = vmatpush1.bf16.msra.mxu1 %v2480_v9  ;;  %v2580_v9 = vld [vmem:[%s2680_s16 + $0x1a0] ss:$20 sps:$4 sm:$0xff]  }
  0x6a   : > { %1378 = vmatprep.subr.bf16.mxu1 %v2491_v11  ;;  %v2583_v11 = vld [vmem:[%s2680_s16 + $0x1c0] ss:$20 sps:$4 sm:$0xff]  }
  0x6c   : > { %1242 = vmatmul.mubr.bf16.gmra.mxu0 %v2487_v10  ;;  %1322 = vmatmul.mubr.bf16.gmra.mxu1 %v2488_v12  ;;  %v2581_v10 = vld [vmem:[%s2680_s16 + $0x1c4] ss:$20 sps:$4 sm:$0xff]   ;;  %v2584_v12 = vld [vmem:[%s2680_s16 + $0x1c8] ss:$20 sps:$4 sm:$0xff]  }
  0x6d   : > { %1379 = vmatpush2.bf16.msra.mxu1 %v2489_v13  ;;  %1251 = vmatprep.mubr.bf16.mxu0 %v2498_v15  ;;  %v2585_v13 = vld [vmem:[%s2680_s16 + $0x1ec] ss:$20 sps:$4 sm:$0xff]   ;;  %v2588_v15 = vld [vmem:[%s2680_s16 + $0x1f0] ss:$20 sps:$4 sm:$0xff]  }
  0x6e   : > { %1380 = vmatprep.subr.bf16.mxu1 %v2497_v14  ;;  %1331 = vmatprep.mubr.bf16.mxu1 %v2500_v16  ;;  %v2587_v14 = vld [vmem:[%s2680_s16 + $0x1e8] ss:$20 sps:$4 sm:$0xff]  }
  0x6f   : > { %v2589_v16 = vld [vmem:[%s2680_s16 + $0x214] ss:$20 sps:$4 sm:$0xff]  }
  0x71   : > { %1381 = vmatpush2.bf16.msra.mxu1 %v2495_v17  ;;  %v2591_v17 = vld [vmem:[%s2680_s16 + $0x210] ss:$20 sps:$4 sm:$0xff]  }
  0x72   : > { %1382 = vmatprep.subr.bf16.mxu1 %v2506_v20  ;;  %v2595_v20 = vld [vmem:[%s2680_s16 + $0x238] ss:$20 sps:$4 sm:$0xff]  }
  0x74   : > { %1252 = vmatmul.mubr.bf16.gmra.mxu0 %v2502_v18  ;;  %1332 = vmatmul.mubr.bf16.gmra.mxu1 %v2503_v19  ;;  %v2592_v18 = vld [vmem:[%s2680_s16 + $0x218] ss:$20 sps:$4 sm:$0xff]   ;;  %v2593_v19 = vld [vmem:[%s2680_s16 + $0x23c] ss:$20 sps:$4 sm:$0xff]  }
  0x75   : > { %1383 = vmatpush2.bf16.msra.mxu1 %v2504_v21  ;;  %1261 = vmatprep.mubr.bf16.mxu0 %v2510_v22  ;;  %v2596_v21 = vld [vmem:[%s2680_s16 + $0x240] ss:$20 sps:$4 sm:$0xff]   ;;  %v2597_v22 = vld [vmem:[%s2680_s16 + $0x264] ss:$20 sps:$4 sm:$0xff]  }
  0x76   : > { %1384 = vmatprep.subr.bf16.mxu1 %v2509_v23  ;;  %1341 = vmatprep.mubr.bf16.mxu1 %v2512_v24  ;;  %v350_v23 = vlaneseq  ;;  %v2599_v24 = vld [vmem:[%s2680_s16 + $0x260] ss:$20 sps:$4 sm:$0xff]  }
  0x79   : > { %1385 = vmatpush2.bf16.msra.mxu1 %v2507_v25  ;;  %v2600_v25 = vld [vmem:[%s2680_s16 + $0x268] ss:$20 sps:$4 sm:$0xff]   ;;  %s2306_s16 = sshll.u32 %s3323_s24, 3 }
  0x7a   : > { %1386 = vmatprep.subr.bf16.mxu1 %v2518_v26  ;;  %v351_v26 = vshrl.u32 %v350_v23, 7  ;;  %s3155_s21 = scalar_lea.vmem %s3281_s3, %s2306_s16 }
  0x7c   : > { %1262 = vmatmul.mubr.bf16.gmra.mxu0 %v2514_v27  ;;  %1342 = vmatmul.mubr.bf16.gmra.mxu1 %v2515_v28  ;;  %v352_v27 = vsub.s32 0, %v351_v26  ;;  %v348_v28 = vld [vmem:[%s3280_s2] sm:$0x3] }
  0x7d   : > { %1387 = vmatpush2.bf16.msra.mxu1 %v2516_v29  ;;  %1271 = vmatprep.mubr.bf16.mxu0 %v2525_v30  ;;  %v356_v29 = vsub.s32 1, %v351_v26 }
  0x7e   : > { %1388 = vmatprep.subr.bf16.mxu1 %v2524_v31  ;;  %1351 = vmatprep.mubr.bf16.mxu1 %v2527_v32  ;;  %v2977_v30 = vrot.slane %v348_v28, %v352_v27 }
  0x7f   : > { %v2979_v31 = vrot.slane %v348_v28, %v356_v29 }
  0x81   : > { %1389 = vmatpush2.bf16.msra.mxu1 %v2522_v33 }
  0x82   : > { %1390 = vmatprep.subr.bf16.mxu1 %v2533_v34 }
  0x84   : > { %1272 = vmatmul.mubr.bf16.gmra.mxu0 %v2529_v35  ;;  %1352 = vmatmul.mubr.bf16.gmra.mxu1 %v2530_v36 }
  0x85   : > { %1391 = vmatpush2.bf16.msra.mxu1 %v2531_v37  ;;  %1394 = vmatprep.mubr.bf16.mxu1 %v2539_v38 }
  0x86   : > { %1392 = vmatprep.subr.bf16.mxu1 %v2536_v39  ;;  %1587 = vmatprep.mubr.bf16.mxu0 %v2609_v41 }
  0x89   : > { %1393 = vmatpush2.bf16.msra.mxu1 %v2534_v40 }
  0x8c   : > { %1395 = vmatmul.mubr.bf16.vlgmr.msra.gmra.mxu1 %v2537_v42  ;;  %2256 = vmatmul.mubr.msk.bf16.vlgmr.msra.gmra.mxu0 %vm1120_vm0, %v2540_v43 }
  0x8d   : > { %1404 = vmatprep.mubr.bf16.mxu1 %v2541_v44  ;;  %1597 = vmatprep.mubr.bf16.mxu0 %v2609_v41 }
  0x94   : > { %1405 = vmatmul.mubr.bf16.gmra.mxu1 %v2543_v45  ;;  %2257 = vmatmul.mubr.msk.bf16.gmra.mxu0 %vm1120_vm0, %v2544_v46 }
  0x95   : > { %1414 = vmatprep.mubr.bf16.mxu1 %v2545_v47  ;;  %1607 = vmatprep.mubr.bf16.mxu0 %v2609_v41 }
  0x9c   : > { %1415 = vmatmul.mubr.bf16.gmra.mxu1 %v2547_v48  ;;  %2258 = vmatmul.mubr.msk.bf16.gmra.mxu0 %vm1120_vm0, %v2548_v49 }
  0x9d   : > { %1424 = vmatprep.mubr.bf16.mxu1 %v2549_v50  ;;  %1617 = vmatprep.mubr.bf16.mxu0 %v2609_v41 }
  0xa4   : > { %1425 = vmatmul.mubr.bf16.gmra.mxu1 %v2551_v51  ;;  %2259 = vmatmul.mubr.msk.bf16.gmra.mxu0 %vm1120_vm0, %v2552_v52 }
  0xa5   : > { %1434 = vmatprep.mubr.bf16.mxu1 %v2553_v53  ;;  %1627 = vmatprep.mubr.bf16.mxu0 %v2609_v41 }
  0xac   : > { %1435 = vmatmul.mubr.bf16.gmra.mxu1 %v2555_v54  ;;  %2260 = vmatmul.mubr.msk.bf16.gmra.mxu0 %vm1120_vm0, %v2556_v55 }
  0xad   : > { %1444 = vmatprep.mubr.bf16.mxu1 %v2557_v56  ;;  %1637 = vmatprep.mubr.bf16.mxu0 %v2609_v41 }
  0xb4   : > { %1445 = vmatmul.mubr.bf16.gmra.mxu1 %v2559_v57  ;;  %2261 = vmatmul.mubr.msk.bf16.gmra.mxu0 %vm1120_vm0, %v2560_v58 }
  0xb5   : > { %1454 = vmatprep.mubr.bf16.mxu1 %v2561_v59  ;;  %1647 = vmatprep.mubr.bf16.mxu0 %v2609_v41 }
  0xbc   : > { %1455 = vmatmul.mubr.bf16.gmra.mxu1 %v2563_v60  ;;  %2262 = vmatmul.mubr.msk.bf16.gmra.mxu0 %vm1120_vm0, %v2564_v61 }
  0xbd   : > { %1464 = vmatprep.mubr.bf16.mxu1 %v2565_v62  ;;  %1657 = vmatprep.mubr.bf16.mxu0 %v2609_v41 }
  0xc4   : > { %1465 = vmatmul.mubr.bf16.gmra.mxu1 %v2567_v63  ;;  %2263 = vmatmul.mubr.msk.bf16.gmra.mxu0 %vm1120_vm0, %v2568_v0 }
  0xc5   : > { %1474 = vmatprep.mubr.bf16.mxu1 %v2569_v1  ;;  %1667 = vmatprep.mubr.bf16.mxu0 %v2609_v41 }
  0xcc   : > { %1475 = vmatmul.mubr.bf16.gmra.mxu1 %v2571_v2  ;;  %2264 = vmatmul.mubr.msk.bf16.gmra.mxu0 %vm1120_vm0, %v2572_v3 }
  0xcd   : > { %1484 = vmatprep.mubr.bf16.mxu1 %v2573_v4  ;;  %1677 = vmatprep.mubr.bf16.mxu0 %v2609_v41 }
  0xd4   : > { %1485 = vmatmul.mubr.bf16.gmra.mxu1 %v2575_v5  ;;  %2265 = vmatmul.mubr.msk.bf16.gmra.mxu0 %vm1120_vm0, %v2576_v6 }
  0xd5   : > { %1494 = vmatprep.mubr.bf16.mxu1 %v2577_v7  ;;  %1687 = vmatprep.mubr.bf16.mxu0 %v2609_v41 }
  0xdc   : > { %1495 = vmatmul.mubr.bf16.gmra.mxu1 %v2579_v8  ;;  %2266 = vmatmul.mubr.msk.bf16.gmra.mxu0 %vm1120_vm0, %v2580_v9 }
  0xdd   : > { %1504 = vmatprep.mubr.bf16.mxu1 %v2581_v10  ;;  %1697 = vmatprep.mubr.bf16.mxu0 %v2609_v41 }
  0xe4   : > { %1505 = vmatmul.mubr.bf16.gmra.mxu1 %v2583_v11  ;;  %2267 = vmatmul.mubr.msk.bf16.gmra.mxu0 %vm1120_vm0, %v2584_v12 }
  0xe5   : > { %1514 = vmatprep.mubr.bf16.mxu1 %v2585_v13  ;;  %1707 = vmatprep.mubr.bf16.mxu0 %v2609_v41 }
  0xec   : > { %1515 = vmatmul.mubr.bf16.gmra.mxu1 %v2587_v14  ;;  %2268 = vmatmul.mubr.msk.bf16.gmra.mxu0 %vm1120_vm0, %v2588_v15 }
  0xed   : > { %1524 = vmatprep.mubr.bf16.mxu1 %v2589_v16  ;;  %1717 = vmatprep.mubr.bf16.mxu0 %v2609_v41 }
  0xf4   : > { %1525 = vmatmul.mubr.bf16.gmra.mxu1 %v2591_v17  ;;  %2269 = vmatmul.mubr.msk.bf16.gmra.mxu0 %vm1120_vm0, %v2592_v18 }
  0xf5   : > { %1534 = vmatprep.mubr.bf16.mxu1 %v2593_v19  ;;  %1727 = vmatprep.mubr.bf16.mxu0 %v2609_v41 }
  0xfc   : > { %1535 = vmatmul.mubr.bf16.gmra.mxu1 %v2595_v20  ;;  %2270 = vmatmul.mubr.msk.bf16.gmra.mxu0 %vm1120_vm0, %v2596_v21 }
  0xfd   : > { %1544 = vmatprep.mubr.bf16.mxu1 %v2597_v22  ;;  %1737 = vmatprep.mubr.bf16.mxu0 %v2609_v41 }
 0x104   : > { %1545 = vmatmul.mubr.bf16.gmra.mxu1 %v2599_v24  ;;  %2271 = vmatmul.mubr.msk.bf16.gmra.mxu0 %vm1120_vm0, %v2600_v25 }
 0x10c   : > { %v2981_v32 = vpop.f32.mrf.mxu0  ;;  %v1283_v33 = vpop.f32.mrf.mxu1 }
 0x10d   : > { %v2984_v34 = vadd.f32 %v1283_v33, %v2977_v30 }
 0x10e   : > { %v2986_v35 = vpop.f32.mrf.mxu0  ;;  %v1285_v36 = vpop.f32.mrf.mxu1 }
 0x10f   : > { %v2989_v37 = vadd.f32 %v1285_v36, %v2979_v31 }
 0x110   : > { %v2991_v38 = vpop.f32.mrf.mxu0  ;;  %v1287_v39 = vpop.f32.mrf.mxu1 }
 0x111   : > { %v2994_v40 = vadd.f32 %v1287_v39, %v2977_v30 }
 0x112   : > { %v2996_v41 = vpop.f32.mrf.mxu0  ;;  %v1289_v42 = vpop.f32.mrf.mxu1 }
 0x113   : > { %v2999_v43 = vadd.f32 %v1289_v42, %v2979_v31 }
 0x114   : > { %v3001_v44 = vpop.f32.mrf.mxu0  ;;  %v1293_v45 = vpop.f32.mrf.mxu1 }
 0x115   : > { %v3004_v46 = vadd.f32 %v1293_v45, %v2977_v30 }
 0x116   : > { %v3006_v47 = vpop.f32.mrf.mxu0  ;;  %v1295_v48 = vpop.f32.mrf.mxu1 }
 0x117   : > { %v3009_v49 = vadd.f32 %v1295_v48, %v2979_v31 }
 0x118   : > { %v3011_v50 = vpop.f32.mrf.mxu0  ;;  %v1297_v51 = vpop.f32.mrf.mxu1 }
 0x119   : > { %v3014_v52 = vadd.f32 %v1297_v51, %v2977_v30 }
 0x11a   : > { %v3016_v53 = vpop.f32.mrf.mxu0  ;;  %v1299_v54 = vpop.f32.mrf.mxu1 }
 0x11b   : > { %v3019_v55 = vadd.f32 %v1299_v54, %v2979_v31 }
 0x11c   : > { %v3021_v56 = vpop.f32.mrf.mxu0  ;;  %v1303_v57 = vpop.f32.mrf.mxu1 }
 0x11d   : > { %v3024_v58 = vadd.f32 %v1303_v57, %v2977_v30 }
 0x11e   : > { %v3026_v59 = vpop.f32.mrf.mxu0  ;;  %v1305_v60 = vpop.f32.mrf.mxu1 }
 0x11f   : > { %v3029_v61 = vadd.f32 %v1305_v60, %v2979_v31 }
 0x120   : > { %v3031_v62 = vpop.f32.mrf.mxu0  ;;  %v1307_v63 = vpop.f32.mrf.mxu1 }
 0x121   : > { %v3034_v0 = vadd.f32 %v1307_v63, %v2977_v30 }
 0x122   : > { %v3036_v1 = vpop.f32.mrf.mxu0  ;;  %v1309_v2 = vpop.f32.mrf.mxu1 }
 0x123   : > { %v3039_v3 = vadd.f32 %v1309_v2, %v2979_v31 }
 0x124   : > { %v3041_v4 = vpop.f32.mrf.mxu0  ;;  %v1313_v5 = vpop.f32.mrf.mxu1 }
 0x125   : > { %v3044_v6 = vadd.f32 %v1313_v5, %v2977_v30 }
 0x126   : > { %v3046_v7 = vpop.f32.mrf.mxu0  ;;  %v1315_v8 = vpop.f32.mrf.mxu1 }
 0x127   : > { %3282 = vst [vmem:[#allocation2_spill] sm:$0xff] %v3044_v6  ;;  %v3049_v9 = vadd.f32 %v1315_v8, %v2979_v31 }
 0x128   : > { %v3051_v10 = vpop.f32.mrf.mxu0  ;;  %v1317_v11 = vpop.f32.mrf.mxu1 }
 0x129   : > { %3283 = vst [vmem:[#allocation3_spill] sm:$0xff] %v3049_v9  ;;  %v3054_v12 = vadd.f32 %v1317_v11, %v2977_v30 }
 0x12a   : > { %v3056_v13 = vpop.f32.mrf.mxu0  ;;  %v1319_v14 = vpop.f32.mrf.mxu1 }
 0x12b   : > { %3284 = vst [vmem:[#allocation4_spill] sm:$0xff] %v3054_v12  ;;  %v3059_v15 = vadd.f32 %v1319_v14, %v2979_v31 }
 0x12c   : > { %v3061_v16 = vpop.f32.mrf.mxu0  ;;  %v1323_v17 = vpop.f32.mrf.mxu1 }
 0x12d   : > { %3285 = vst [vmem:[#allocation5_spill] sm:$0xff] %v3059_v15  ;;  %v3064_v18 = vadd.f32 %v1323_v17, %v2977_v30  ;;  %v1214_v15 = vadd.f32 %v3001_v44, %v2977_v30 }
 0x12e   : > { %v3066_v19 = vpop.f32.mrf.mxu0  ;;  %v1325_v20 = vpop.f32.mrf.mxu1 }
 0x12f   : > { %3286 = vst [vmem:[#allocation6_spill] sm:$0xff] %v3064_v18  ;;  %v3069_v21 = vadd.f32 %v1325_v20, %v2979_v31 }
 0x130   : > { %v3071_v22 = vpop.f32.mrf.mxu0  ;;  %v1327_v23 = vpop.f32.mrf.mxu1 }
 0x131   : > { %3287 = vst [vmem:[#allocation7_spill] sm:$0xff] %v3069_v21  ;;  %v3074_v24 = vadd.f32 %v1327_v23, %v2977_v30 }
 0x132   : > { %v3076_v25 = vpop.f32.mrf.mxu0  ;;  %v1329_v26 = vpop.f32.mrf.mxu1 }
 0x133   : > { %3288 = vst [vmem:[#allocation8_spill] sm:$0xff] %v3074_v24  ;;  %v3079_v27 = vadd.f32 %v1329_v26, %v2979_v31 }
 0x134   : > { %v3081_v28 = vpop.f32.mrf.mxu0  ;;  %v1333_v29 = vpop.f32.mrf.mxu1 }
 0x135   : > { %3289 = vst [vmem:[#allocation9_spill] sm:$0xff] %v3079_v27  ;;  %v3084_v33 = vadd.f32 %v1333_v29, %v2977_v30 }
 0x136   : > { %v3086_v36 = vpop.f32.mrf.mxu0  ;;  %v1335_v39 = vpop.f32.mrf.mxu1 }
 0x137   : > { %3290 = vst [vmem:[#allocation10_spill] sm:$0xff] %v3084_v33  ;;  %v3089_v42 = vadd.f32 %v1335_v39, %v2979_v31 }
 0x138   : > { %v3091_v45 = vpop.f32.mrf.mxu0  ;;  %v1337_v48 = vpop.f32.mrf.mxu1 }
 0x139   : > { %3291 = vst [vmem:[#allocation11_spill] sm:$0xff] %v3089_v42  ;;  %v3094_v51 = vadd.f32 %v1337_v48, %v2977_v30 }
 0x13a   : > { %v3096_v54 = vpop.f32.mrf.mxu0  ;;  %v1339_v57 = vpop.f32.mrf.mxu1 }
 0x13b   : > { %3292 = vst [vmem:[#allocation12_spill] sm:$0xff] %v3094_v51  ;;  %v3099_v60 = vadd.f32 %v1339_v57, %v2979_v31 }
 0x13c   : > { %v3101_v63 = vpop.f32.mrf.mxu0  ;;  %v1343_v2 = vpop.f32.mrf.mxu1 }
 0x13d   : > { %3293 = vst [vmem:[#allocation13_spill] sm:$0xff] %v3099_v60  ;;  %v3104_v5 = vadd.f32 %v1343_v2, %v2977_v30 }
 0x13e   : > { %v3106_v8 = vpop.f32.mrf.mxu0  ;;  %v1345_v11 = vpop.f32.mrf.mxu1 }
 0x13f   : > { %3294 = vst [vmem:[#allocation14_spill] sm:$0xff] %v3104_v5  ;;  %v3109_v14 = vadd.f32 %v1345_v11, %v2979_v31 }
 0x140   : > { %v3111_v17 = vpop.f32.mrf.mxu0  ;;  %v1347_v20 = vpop.f32.mrf.mxu1 }
 0x141   : > { %3295 = vst [vmem:[#allocation15_spill] sm:$0xff] %v3109_v14  ;;  %v3114_v23 = vadd.f32 %v1347_v20, %v2977_v30 }
 0x142   : > { %v3116_v26 = vpop.f32.mrf.mxu0  ;;  %v1349_v29 = vpop.f32.mrf.mxu1 }
 0x143   : > { %3296 = vst [vmem:[#allocation16_spill] sm:$0xff] %v3114_v23  ;;  %v3119_v39 = vadd.f32 %v1349_v29, %v2979_v31 }
 0x144   : > { %v3121_v48 = vpop.f32.mrf.mxu0  ;;  %v1353_v57 = vpop.f32.mrf.mxu1 }
 0x145   : > { %3297 = vst [vmem:[#allocation17_spill] sm:$0xff] %v3119_v39  ;;  %v3124_v2 = vadd.f32 %v1353_v57, %v2977_v30  ;;  %v1204_v57 = vadd.f32 %v2981_v32, %v2977_v30  ;;  %v1210_v32 = vadd.f32 %v2996_v41, %v2979_v31 }
 0x146   : > { %v3126_v11 = vpop.f32.mrf.mxu0  ;;  %v1355_v14 = vpop.f32.mrf.mxu1 }
 0x147   : > { %3298 = vst [vmem:[#allocation18_spill] sm:$0xff] %v3124_v2  ;;  %v3129_v5 = vadd.f32 %v1355_v14, %v2979_v31  ;;  %v1206_v14 = vadd.f32 %v2986_v35, %v2979_v31 }
 0x148   : > { %v3131_v20 = vpop.f32.mrf.mxu0  ;;  %v1357_v23 = vpop.f32.mrf.mxu1 }
 0x149   : > { %3299 = vst [vmem:[#allocation19_spill] sm:$0xff] %v3129_v5  ;;  %v3134_v60 = vadd.f32 %v1357_v23, %v2977_v30  ;;  %v1208_v23 = vadd.f32 %v2991_v38, %v2977_v30 }
 0x14a   : > { %v3136_v29 = vpop.f32.mrf.mxu0  ;;  %v1359_v39 = vpop.f32.mrf.mxu1 }
 0x14b   : > { %3300 = vst [vmem:[#allocation20_spill] sm:$0xff] %v3134_v60  ;;  %v3141_v2 = vadd.f32 %v1359_v39, %v2979_v31 }
 0x14c   : > { %v1396_v51 = vpop.f32.mrf.mxu1  ;;  %v1589_v42 = vpop.f32.mrf.mxu0 }
 0x14d   : > { %3301 = vst [vmem:[#allocation21_spill] sm:$0xff] %v3141_v2  ;;  %v1397_v5 = vadd.f32 %v1396_v51, %v1204_v57 }
 0x14e   : > { %v1398_v33 = vpop.f32.mrf.mxu1  ;;  %v1591_v27 = vpop.f32.mrf.mxu0 }
 0x14f   : > { %v1590_v60 = vadd.f32 %v1589_v42, %v1397_v5  ;;  %v1399_v24 = vadd.f32 %v1398_v33, %v1206_v14  ;;  %v1218_v33 = vadd.f32 %v3011_v50, %v2977_v30 }
 0x150   : > { %v1400_v21 = vpop.f32.mrf.mxu1  ;;  %v1593_v18 = vpop.f32.mrf.mxu0 }
 0x151   : > { %v1592_v39 = vadd.f32 %v1591_v27, %v1399_v24  ;;  %v1401_v2 = vadd.f32 %v1400_v21, %v1208_v23  ;;  %v1748_v57 = vmax.f32 %v1590_v60, 0.0  ;;  %v1216_v21 = vadd.f32 %v3006_v47, %v2979_v31 }
 0x152   : > { %v1402_v35 = vpop.f32.mrf.mxu1  ;;  %v1595_v51 = vpop.f32.mrf.mxu0 }
 0x153   : > { %v1749_v12 = vmax.f32 %v1592_v39, 0.0  ;;  %v1594_v9 = vadd.f32 %v1593_v18, %v1401_v2  ;;  %v1403_v6 = vadd.f32 %v1402_v35, %v1210_v32  ;;  %v1220_v39 = vadd.f32 %v3016_v53, %v2979_v31 }
 0x154   : > { %v1406_v38 = vpop.f32.mrf.mxu1  ;;  %v1599_v41 = vpop.f32.mrf.mxu0 }
 0x155   : > { %v2307_v24 = vpack.c.bf16 %v1749_v12, %v1748_v57  ;;  %v1596_v27 = vadd.f32 %v1595_v51, %v1403_v6  ;;  %v1407_v44 = vadd.f32 %v1406_v38, %v1214_v15  ;;  %v1750_v60 = vmax.f32 %v1594_v9, 0.0 }
 0x156   : > { %v1408_v42 = vpop.f32.mrf.mxu1  ;;  %v1601_v18 = vpop.f32.mrf.mxu0  ;;  %v1224_v15 = vadd.f32 %v3021_v56, %v2977_v30 }
 0x157   : > { %2004 = vst [vmem:[%s3155_s21] sm:$0xff] %v2307_v24  ;;  %v1751_v5 = vmax.f32 %v1596_v27, 0.0  ;;  %v1600_v2 = vadd.f32 %v1599_v41, %v1407_v44  ;;  %v1409_v14 = vadd.f32 %v1408_v42, %v1216_v21  ;;  %v1226_v24 = vadd.f32 %v3026_v59, %v2979_v31 }
 0x158   : > { %v1410_v23 = vpop.f32.mrf.mxu1  ;;  %v1603_v32 = vpop.f32.mrf.mxu0 }
 0x159   : > { %v2308_v47 = vpack.c.bf16 %v1751_v5, %v1750_v60  ;;  %v1602_v12 = vadd.f32 %v1601_v18, %v1409_v14  ;;  %v1411_v6 = vadd.f32 %v1410_v23, %v1218_v33  ;;  %v1752_v51 = vmax.f32 %v1600_v2, 0.0 }
 0x15a   : > { %v1412_v50 = vpop.f32.mrf.mxu1  ;;  %v1605_v35 = vpop.f32.mrf.mxu0  ;;  %v1228_v33 = vadd.f32 %v3031_v62, %v2977_v30 }
 0x15b   : > { %2005 = vst [vmem:[%s3155_s21 + $0x8] sm:$0xff] %v2308_v47  ;;  %v1753_v9 = vmax.f32 %v1602_v12, 0.0  ;;  %v1604_v57 = vadd.f32 %v1603_v32, %v1411_v6  ;;  %v1413_v38 = vadd.f32 %v1412_v50, %v1220_v39  ;;  %v1230_v32 = vadd.f32 %v3036_v1, %v2979_v31 }
 0x15c   : > { %v1416_v41 = vpop.f32.mrf.mxu1  ;;  %v1609_v21 = vpop.f32.mrf.mxu0  ;;  %v1234_v12 = vadd.f32 %v3041_v4, %v2977_v30 }
 0x15d   : > { %v2309_v53 = vpack.c.bf16 %v1753_v9, %v1752_v51  ;;  %v1606_v27 = vadd.f32 %v1605_v35, %v1413_v38  ;;  %v1417_v44 = vadd.f32 %v1416_v41, %v1224_v15  ;;  %v1754_v18 = vmax.f32 %v1604_v57, 0.0 }
 0x15e   : > { %v1418_v56 = vpop.f32.mrf.mxu1  ;;  %v1611_v42 = vpop.f32.mrf.mxu0  ;;  %v1236_v38 = vadd.f32 %v3046_v7, %v2979_v31 }
 0x15f   : > { %2006 = vst [vmem:[%s3155_s21 + $0x10] sm:$0xff] %v2309_v53  ;;  %v1755_v60 = vmax.f32 %v1606_v27, 0.0  ;;  %v1610_v5 = vadd.f32 %v1609_v21, %v1417_v44  ;;  %v1419_v2 = vadd.f32 %v1418_v56, %v1226_v24  ;;  %v1238_v24 = vadd.f32 %v3051_v10, %v2977_v30 }
 0x160   : > { %v1420_v14 = vpop.f32.mrf.mxu1  ;;  %v1613_v23 = vpop.f32.mrf.mxu0 }
 0x161   : > { %v2310_v59 = vpack.c.bf16 %v1755_v60, %v1754_v18  ;;  %v1612_v39 = vadd.f32 %v1611_v42, %v1419_v2  ;;  %v1421_v47 = vadd.f32 %v1420_v14, %v1228_v33  ;;  %v1756_v15 = vmax.f32 %v1610_v5, 0.0 }
 0x162   : > { %v1422_v62 = vpop.f32.mrf.mxu1  ;;  %v1615_v6 = vpop.f32.mrf.mxu0  ;;  %v1240_v60 = vadd.f32 %v3056_v13, %v2979_v31  ;;  %v1244_v14 = vadd.f32 %v3061_v16, %v2977_v30 }
 0x163   : > { %2007 = vst [vmem:[%s3155_s21 + $0x18] sm:$0xff] %v2310_v59  ;;  %v1757_v50 = vmax.f32 %v1612_v39, 0.0  ;;  %v1614_v35 = vadd.f32 %v1613_v23, %v1421_v47  ;;  %v1423_v51 = vadd.f32 %v1422_v62, %v1230_v32 }
 0x164   : > { %v1426_v9 = vpop.f32.mrf.mxu1  ;;  %v1619_v57 = vpop.f32.mrf.mxu0 }
 0x165   : > { %v2311_v1 = vpack.c.bf16 %v1757_v50, %v1756_v15  ;;  %v1616_v41 = vadd.f32 %v1615_v6, %v1423_v51  ;;  %v1427_v21 = vadd.f32 %v1426_v9, %v1234_v12  ;;  %v1758_v27 = vmax.f32 %v1614_v35, 0.0 }
 0x166   : > { %v1428_v4 = vpop.f32.mrf.mxu1  ;;  %v1621_v53 = vpop.f32.mrf.mxu0  ;;  %v1246_v6 = vadd.f32 %v3066_v19, %v2979_v31  ;;  %v1248_v35 = vadd.f32 %v3071_v22, %v2977_v30 }
 0x167   : > { %2008 = vst [vmem:[%s3155_s21 + $0x20] sm:$0xff] %v2311_v1  ;;  %v1759_v44 = vmax.f32 %v1616_v41, 0.0  ;;  %v1620_v33 = vadd.f32 %v1619_v57, %v1427_v21  ;;  %v1429_v56 = vadd.f32 %v1428_v4, %v1236_v38 }
 0x168   : > { %v1430_v42 = vpop.f32.mrf.mxu1  ;;  %v1623_v18 = vpop.f32.mrf.mxu0 }
 0x169   : > { %v2312_v7 = vpack.c.bf16 %v1759_v44, %v1758_v27  ;;  %v1622_v5 = vadd.f32 %v1621_v53, %v1429_v56  ;;  %v1431_v2 = vadd.f32 %v1430_v42, %v1238_v24  ;;  %v1760_v32 = vmax.f32 %v1620_v33, 0.0 }
 0x16a   : > { %v1432_v10 = vpop.f32.mrf.mxu1  ;;  %v1625_v23 = vpop.f32.mrf.mxu0  ;;  %v1250_v24 = vadd.f32 %v3076_v25, %v2979_v31  ;;  %v1254_v27 = vadd.f32 %v3081_v28, %v2977_v30 }
 0x16b   : > { %2009 = vst [vmem:[%s3155_s21 + $0x28] sm:$0xff] %v2312_v7  ;;  %v1761_v59 = vmax.f32 %v1622_v5, 0.0  ;;  %v1624_v39 = vadd.f32 %v1623_v18, %v1431_v2  ;;  %v1433_v47 = vadd.f32 %v1432_v10, %v1240_v60  ;;  %v1256_v5 = vadd.f32 %v3086_v36, %v2979_v31 }
 0x16c   : > { %v1436_v12 = vpop.f32.mrf.mxu1  ;;  %v1629_v62 = vpop.f32.mrf.mxu0  ;;  %v1258_v10 = vadd.f32 %v3091_v45, %v2977_v30 }
 0x16d   : > { %v2313_v13 = vpack.c.bf16 %v1761_v59, %v1760_v32  ;;  %v1626_v15 = vadd.f32 %v1625_v23, %v1433_v47  ;;  %v1437_v50 = vadd.f32 %v1436_v12, %v1244_v14  ;;  %v1762_v9 = vmax.f32 %v1624_v39, 0.0 }
 0x16e   : > { %v1438_v16 = vpop.f32.mrf.mxu1  ;;  %v1631_v51 = vpop.f32.mrf.mxu0 }
 0x16f   : > { %2010 = vst [vmem:[%s3155_s21 + $0x30] sm:$0xff] %v2313_v13  ;;  %v1763_v57 = vmax.f32 %v1626_v15, 0.0  ;;  %v1630_v38 = vadd.f32 %v1629_v62, %v1437_v50  ;;  %v1439_v1 = vadd.f32 %v1438_v16, %v1246_v6  ;;  %v1260_v6 = vadd.f32 %v3096_v54, %v2979_v31 }
 0x170   : > { %v1440_v41 = vpop.f32.mrf.mxu1  ;;  %v1633_v21 = vpop.f32.mrf.mxu0  ;;  %v1264_v50 = vadd.f32 %v3101_v63, %v2977_v30 }
 0x171   : > { %v2314_v19 = vpack.c.bf16 %v1763_v57, %v1762_v9  ;;  %v1632_v4 = vadd.f32 %v1631_v51, %v1439_v1  ;;  %v1441_v53 = vadd.f32 %v1440_v41, %v1248_v35  ;;  %v1764_v33 = vmax.f32 %v1630_v38, 0.0 }
 0x172   : > { %v1442_v22 = vpop.f32.mrf.mxu1  ;;  %v1635_v44 = vpop.f32.mrf.mxu0  ;;  %v1266_v41 = vadd.f32 %v3106_v8, %v2979_v31 }
 0x173   : > { %2011 = vst [vmem:[%s3155_s21 + $0x38] sm:$0xff] %v2314_v19  ;;  %v1765_v56 = vmax.f32 %v1632_v4, 0.0  ;;  %v1634_v42 = vadd.f32 %v1633_v21, %v1441_v53  ;;  %v1443_v18 = vadd.f32 %v1442_v22, %v1250_v24  ;;  %v1268_v19 = vadd.f32 %v3111_v17, %v2977_v30 }
 0x174   : > { %v1446_v60 = vpop.f32.mrf.mxu1  ;;  %v1639_v7 = vpop.f32.mrf.mxu0 }
 0x175   : > { %v2315_v25 = vpack.c.bf16 %v1765_v56, %v1764_v33  ;;  %v1636_v2 = vadd.f32 %v1635_v44, %v1443_v18  ;;  %v1447_v14 = vadd.f32 %v1446_v60, %v1254_v27  ;;  %v1766_v32 = vmax.f32 %v1634_v42, 0.0 }
 0x176   : > { %v1448_v28 = vpop.f32.mrf.mxu1  ;;  %v1641_v23 = vpop.f32.mrf.mxu0  ;;  %v1270_v42 = vadd.f32 %v3116_v26, %v2979_v31 }
 0x177   : > { %2012 = vst [vmem:[%s3155_s21 + $0x40] sm:$0xff] %v2315_v25  ;;  %v1767_v59 = vmax.f32 %v1636_v2, 0.0  ;;  %v1640_v39 = vadd.f32 %v1639_v7, %v1447_v14  ;;  %v1449_v47 = vadd.f32 %v1448_v28, %v1256_v5  ;;  %v1274_v7 = vadd.f32 %v3121_v48, %v2977_v30 }
 0x178   : > { %v1450_v12 = vpop.f32.mrf.mxu1  ;;  %v1643_v62 = vpop.f32.mrf.mxu0 }
 0x179   : > { %v2316_v36 = vpack.c.bf16 %v1767_v59, %v1766_v32  ;;  %v1642_v13 = vadd.f32 %v1641_v23, %v1449_v47  ;;  %v1451_v15 = vadd.f32 %v1450_v12, %v1258_v10  ;;  %v1768_v16 = vmax.f32 %v1640_v39, 0.0 }
 0x17a   : > { %v1452_v45 = vpop.f32.mrf.mxu1  ;;  %v1645_v35 = vpop.f32.mrf.mxu0  ;;  %v1276_v32 = vadd.f32 %v3126_v11, %v2979_v31  ;;  %v1278_v47 = vadd.f32 %v3131_v20, %v2977_v30 }
 0x17b   : > { %2013 = vst [vmem:[%s3155_s21 + $0x48] sm:$0xff] %v2316_v36  ;;  %v1769_v51 = vmax.f32 %v1642_v13, 0.0  ;;  %v1644_v9 = vadd.f32 %v1643_v62, %v1451_v15  ;;  %v1453_v57 = vadd.f32 %v1452_v45, %v1260_v6  ;;  %v1280_v45 = vadd.f32 %v3136_v29, %v2979_v31 }
 0x17c   : > { %v1456_v38 = vpop.f32.mrf.mxu1  ;;  %v1649_v1 = vpop.f32.mrf.mxu0 }
 0x17d   : > { %v2317_v54 = vpack.c.bf16 %v1769_v51, %v1768_v16  ;;  %v1646_v21 = vadd.f32 %v1645_v35, %v1453_v57  ;;  %v1457_v24 = vadd.f32 %v1456_v38, %v1264_v50  ;;  %v1770_v53 = vmax.f32 %v1644_v9, 0.0 }
 0x17e   : > { %v1458_v63 = vpop.f32.mrf.mxu1  ;;  %v1651_v4 = vpop.f32.mrf.mxu0 }
 0x17f   : > { %2014 = vst [vmem:[%s3155_s21 + $0x50] sm:$0xff] %v2317_v54  ;;  %v1771_v27 = vmax.f32 %v1646_v21, 0.0  ;;  %v1650_v22 = vadd.f32 %v1649_v1, %v1457_v24  ;;  %v1459_v44 = vadd.f32 %v1458_v63, %v1266_v41 }
 0x180   : > { %v1460_v33 = vpop.f32.mrf.mxu1  ;;  %v1653_v56 = vpop.f32.mrf.mxu0 }
 0x181   : > { %v2318_v8 = vpack.c.bf16 %v1771_v27, %v1770_v53  ;;  %v1652_v18 = vadd.f32 %v1651_v4, %v1459_v44  ;;  %v1461_v60 = vadd.f32 %v1460_v33, %v1268_v19  ;;  %v1772_v25 = vmax.f32 %v1650_v22, 0.0 }
 0x182   : > { %v1462_v17 = vpop.f32.mrf.mxu1  ;;  %v1655_v5 = vpop.f32.mrf.mxu0 }
 0x183   : > { %2015 = vst [vmem:[%s3155_s21 + $0x58] sm:$0xff] %v2318_v8  ;;  %v1773_v2 = vmax.f32 %v1652_v18, 0.0  ;;  %v1654_v14 = vadd.f32 %v1653_v56, %v1461_v60  ;;  %v1463_v10 = vadd.f32 %v1462_v17, %v1270_v42 }
 0x184   : > { %v1466_v28 = vpop.f32.mrf.mxu1  ;;  %v1659_v23 = vpop.f32.mrf.mxu0 }
 0x185   : > { %v2319_v26 = vpack.c.bf16 %v1773_v2, %v1772_v25  ;;  %v1656_v59 = vadd.f32 %v1655_v5, %v1463_v10  ;;  %v1467_v39 = vadd.f32 %v1466_v28, %v1274_v7  ;;  %v1774_v62 = vmax.f32 %v1654_v14, 0.0 }
 0x186   : > { %v1468_v48 = vpop.f32.mrf.mxu1  ;;  %v1661_v12 = vpop.f32.mrf.mxu0 }
 0x187   : > { %2016 = vst [vmem:[%s3155_s21 + $0x60] sm:$0xff] %v2319_v26  ;;  %v1775_v6 = vmax.f32 %v1656_v59, 0.0  ;;  %v1660_v36 = vadd.f32 %v1659_v23, %v1467_v39  ;;  %v1469_v13 = vadd.f32 %v1468_v48, %v1276_v32 }
 0x188   : > { %v1470_v15 = vpop.f32.mrf.mxu1  ;;  %v1663_v50 = vpop.f32.mrf.mxu0 }
 0x189   : > { %v2320_v11 = vpack.c.bf16 %v1775_v6, %v1774_v62  ;;  %v1662_v35 = vadd.f32 %v1661_v12, %v1469_v13  ;;  %v1471_v16 = vadd.f32 %v1470_v15, %v1278_v47  ;;  %v1776_v30 = vmax.f32 %v1660_v36, 0.0 }
 0x18a   : > { %v1472_v51 = vpop.f32.mrf.mxu1  ;;  %v1665_v9 = vpop.f32.mrf.mxu0 }
 0x18b   : > { %2017 = vst [vmem:[%s3155_s21 + $0x68] sm:$0xff] %v2320_v11  ;;  %v1777_v20 = vmax.f32 %v1662_v35, 0.0  ;;  %v1664_v57 = vadd.f32 %v1663_v50, %v1471_v16  ;;  %v1473_v38 = vadd.f32 %v1472_v51, %v1280_v45 }
 0x18c   : > { %v1476_v1 = vpop.f32.mrf.mxu1  ;;  %v1669_v41 = vpop.f32.mrf.mxu0 }
 0x18d   : > { %v2321_v54 = vpack.c.bf16 %v1777_v20, %v1776_v30  ;;  %v1666_v21 = vadd.f32 %v1665_v9, %v1473_v38  ;;  %v1477_v24 = vadd.f32 %v1476_v1, %v2984_v34  ;;  %v1778_v29 = vmax.f32 %v1664_v57, 0.0 }
 0x18e   : > { %v1478_v19 = vpop.f32.mrf.mxu1  ;;  %v1671_v31 = vpop.f32.mrf.mxu0 }
 0x18f   : > { %2018 = vst [vmem:[%s3155_s21 + $0x70] sm:$0xff] %v2321_v54  ;;  %v1779_v63 = vmax.f32 %v1666_v21, 0.0  ;;  %v1670_v4 = vadd.f32 %v1669_v41, %v1477_v24  ;;  %v1479_v53 = vadd.f32 %v1478_v19, %v2989_v37 }
 0x190   : > { %v1480_v27 = vpop.f32.mrf.mxu1  ;;  %v1673_v22 = vpop.f32.mrf.mxu0 }
 0x191   : > { %v2322_v44 = vpack.c.bf16 %v1779_v63, %v1778_v29  ;;  %v1672_v33 = vadd.f32 %v1671_v31, %v1479_v53  ;;  %v1481_v56 = vadd.f32 %v1480_v27, %v2994_v40  ;;  %v1780_v18 = vmax.f32 %v1670_v4, 0.0 }
 0x192   : > { %v1482_v42 = vpop.f32.mrf.mxu1  ;;  %v1675_v8 = vpop.f32.mrf.mxu0 }
 0x193   : > { %2019 = vst [vmem:[%s3155_s21 + $0x78] sm:$0xff] %v2322_v44  ;;  %v1781_v34 = vmax.f32 %v1672_v33, 0.0  ;;  %v1674_v60 = vadd.f32 %v1673_v22, %v1481_v56  ;;  %v1483_v7 = vadd.f32 %v1482_v42, %v2999_v43  ;;  %v3303_v33 = vld [vmem:[#allocation3_spill] sm:$0xff] }
 0x194   : > { %v1486_v17 = vpop.f32.mrf.mxu1  ;;  %v1679_v5 = vpop.f32.mrf.mxu0 }
 0x195   : > { %v2323_v25 = vpack.c.bf16 %v1781_v34, %v1780_v18  ;;  %v1676_v2 = vadd.f32 %v1675_v8, %v1483_v7  ;;  %v1487_v37 = vadd.f32 %v1486_v17, %v3004_v46  ;;  %v1782_v28 = vmax.f32 %v1674_v60, 0.0 }
 0x196   : > { %v1488_v14 = vpop.f32.mrf.mxu1  ;;  %v1681_v10 = vpop.f32.mrf.mxu0 }
 0x197   : > { %2020 = vst [vmem:[%s3155_s21 + $0x80] sm:$0xff] %v2323_v25  ;;  %v1783_v40 = vmax.f32 %v1676_v2, 0.0  ;;  %v1680_v23 = vadd.f32 %v1679_v5, %v1487_v37  ;;  %v1489_v32 = vadd.f32 %v1488_v14, %v3009_v49  ;;  %v3305_v37 = vld [vmem:[#allocation5_spill] sm:$0xff] }
 0x198   : > { %v1490_v26 = vpop.f32.mrf.mxu1  ;;  %v1683_v59 = vpop.f32.mrf.mxu0 }
 0x199   : > { %v2324_v39 = vpack.c.bf16 %v1783_v40, %v1782_v28  ;;  %v1682_v47 = vadd.f32 %v1681_v10, %v1489_v32  ;;  %v1491_v43 = vadd.f32 %v1490_v26, %v3014_v52  ;;  %v1784_v62 = vmax.f32 %v1680_v23, 0.0  ;;  %v3306_v32 = vld [vmem:[#allocation6_spill] sm:$0xff] }
 0x19a   : > { %v1492_v48 = vpop.f32.mrf.mxu1  ;;  %v1685_v12 = vpop.f32.mrf.mxu0 }
 0x19b   : > { %2021 = vst [vmem:[%s3155_s21 + $0x88] sm:$0xff] %v2324_v39  ;;  %v1785_v46 = vmax.f32 %v1682_v47, 0.0  ;;  %v1684_v6 = vadd.f32 %v1683_v59, %v1491_v43  ;;  %v1493_v36 = vadd.f32 %v1492_v48, %v3019_v55 }
 0x19c   : > { %v1496_v13 = vpop.f32.mrf.mxu1  ;;  %v1689_v15 = vpop.f32.mrf.mxu0 }
 0x19d   : > { %v2325_v50 = vpack.c.bf16 %v1785_v46, %v1784_v62  ;;  %v1686_v45 = vadd.f32 %v1685_v12, %v1493_v36  ;;  %v1497_v49 = vadd.f32 %v1496_v13, %v3024_v58  ;;  %v1786_v16 = vmax.f32 %v1684_v6, 0.0  ;;  %v3307_v12 = vld [vmem:[#allocation7_spill] sm:$0xff] }
 0x19e   : > { %v1498_v11 = vpop.f32.mrf.mxu1  ;;  %v1691_v35 = vpop.f32.mrf.mxu0 }
 0x19f   : > { %2022 = vst [vmem:[%s3155_s21 + $0x90] sm:$0xff] %v2325_v50  ;;  %v1787_v52 = vmax.f32 %v1686_v45, 0.0  ;;  %v1690_v51 = vadd.f32 %v1689_v15, %v1497_v49  ;;  %v1499_v9 = vadd.f32 %v1498_v11, %v3029_v61  ;;  %v3302_v61 = vld [vmem:[#allocation2_spill] sm:$0xff]  ;;  %v3308_v15 = vld [vmem:[#allocation8_spill] sm:$0xff] }
 0x1a0   : > { %v1500_v30 = vpop.f32.mrf.mxu1  ;;  %v1693_v20 = vpop.f32.mrf.mxu0 }
 0x1a1   : > { %v2326_v57 = vpack.c.bf16 %v1787_v52, %v1786_v16  ;;  %v1692_v38 = vadd.f32 %v1691_v35, %v1499_v9  ;;  %v1501_v55 = vadd.f32 %v1500_v30, %v3034_v0  ;;  %v1788_v54 = vmax.f32 %v1690_v51, 0.0  ;;  %v3309_v52 = vld [vmem:[#allocation9_spill] sm:$0xff] }
 0x1a2   : > { %v1502_v1 = vpop.f32.mrf.mxu1  ;;  %v1695_v41 = vpop.f32.mrf.mxu0 }
 0x1a3   : > { %2023 = vst [vmem:[%s3155_s21 + $0x98] sm:$0xff] %v2326_v57  ;;  %v1789_v58 = vmax.f32 %v1692_v38, 0.0  ;;  %v1694_v21 = vadd.f32 %v1693_v20, %v1501_v55  ;;  %v1503_v24 = vadd.f32 %v1502_v1, %v3039_v3  ;;  %v3304_v3 = vld [vmem:[#allocation4_spill] sm:$0xff]  ;;  %v3310_v38 = vld [vmem:[#allocation10_spill] sm:$0xff] }
 0x1a4   : > { %v1506_v19 = vpop.f32.mrf.mxu1  ;;  %v1699_v31 = vpop.f32.mrf.mxu0 }
 0x1a5   : > { %v2327_v29 = vpack.c.bf16 %v1789_v58, %v1788_v54  ;;  %v1696_v63 = vadd.f32 %v1695_v41, %v1503_v24  ;;  %v1507_v4 = vadd.f32 %v1506_v19, %v3302_v61  ;;  %v1790_v22 = vmax.f32 %v1694_v21, 0.0  ;;  %v3311_v24 = vld [vmem:[#allocation11_spill] sm:$0xff] }
 0x1a6   : > { %v1508_v53 = vpop.f32.mrf.mxu1  ;;  %v1701_v27 = vpop.f32.mrf.mxu0 }
 0x1a7   : > { %2024 = vst [vmem:[%s3155_s21 + $0xa0] sm:$0xff] %v2327_v29  ;;  %v1791_v0 = vmax.f32 %v1696_v63, 0.0  ;;  %v1700_v44 = vadd.f32 %v1699_v31, %v1507_v4  ;;  %v1509_v56 = vadd.f32 %v1508_v53, %v3303_v33  ;;  %v3312_v4 = vld [vmem:[#allocation12_spill] sm:$0xff] }
 0x1a8   : > { %v1510_v42 = vpop.f32.mrf.mxu1  ;;  %v1703_v8 = vpop.f32.mrf.mxu0 }
 0x1a9   : > { %v2328_v18 = vpack.c.bf16 %v1791_v0, %v1790_v22  ;;  %v1702_v34 = vadd.f32 %v1701_v27, %v1509_v56  ;;  %v1511_v60 = vadd.f32 %v1510_v42, %v3304_v3  ;;  %v1792_v5 = vmax.f32 %v1700_v44, 0.0  ;;  %v3313_v56 = vld [vmem:[#allocation13_spill] sm:$0xff] }
 0x1aa   : > { %v1512_v7 = vpop.f32.mrf.mxu1  ;;  %v1705_v17 = vpop.f32.mrf.mxu0 }
 0x1ab   : > { %2025 = vst [vmem:[%s3155_s21 + $0xa8] sm:$0xff] %v2328_v18  ;;  %v1793_v25 = vmax.f32 %v1702_v34, 0.0  ;;  %v1704_v2 = vadd.f32 %v1703_v8, %v1511_v60  ;;  %v1513_v14 = vadd.f32 %v1512_v7, %v3305_v37  ;;  %v3314_v60 = vld [vmem:[#allocation14_spill] sm:$0xff] }
 0x1ac   : > { %v1516_v10 = vpop.f32.mrf.mxu1  ;;  %v1709_v28 = vpop.f32.mrf.mxu0 }
 0x1ad   : > { %v2329_v40 = vpack.c.bf16 %v1793_v25, %v1792_v5  ;;  %v1706_v23 = vadd.f32 %v1705_v17, %v1513_v14  ;;  %v1517_v26 = vadd.f32 %v1516_v10, %v3306_v32  ;;  %v1794_v47 = vmax.f32 %v1704_v2, 0.0  ;;  %v3315_v14 = vld [vmem:[#allocation15_spill] sm:$0xff] }
 0x1ae   : > { %v1518_v59 = vpop.f32.mrf.mxu1  ;;  %v1711_v39 = vpop.f32.mrf.mxu0 }
 0x1af   : > { %2026 = vst [vmem:[%s3155_s21 + $0xb0] sm:$0xff] %v2329_v40  ;;  %v1795_v43 = vmax.f32 %v1706_v23, 0.0  ;;  %v1710_v48 = vadd.f32 %v1709_v28, %v1517_v26  ;;  %v1519_v62 = vadd.f32 %v1518_v59, %v3307_v12  ;;  %v3316_v26 = vld [vmem:[#allocation16_spill] sm:$0xff] }
 0x1b0   : > { %v1520_v46 = vpop.f32.mrf.mxu1  ;;  %v1713_v6 = vpop.f32.mrf.mxu0 }
 0x1b1   : > { %v2330_v36 = vpack.c.bf16 %v1795_v43, %v1794_v47  ;;  %v1712_v13 = vadd.f32 %v1711_v39, %v1519_v62  ;;  %v1521_v50 = vadd.f32 %v1520_v46, %v3308_v15  ;;  %v1796_v11 = vmax.f32 %v1710_v48, 0.0  ;;  %v3317_v62 = vld [vmem:[#allocation17_spill] sm:$0xff] }
 0x1b2   : > { %v1522_v45 = vpop.f32.mrf.mxu1  ;;  %v1715_v49 = vpop.f32.mrf.mxu0 }
 0x1b3   : > { %2027 = vst [vmem:[%s3155_s21 + $0xb8] sm:$0xff] %v2330_v36  ;;  %v1797_v35 = vmax.f32 %v1712_v13, 0.0  ;;  %v1714_v16 = vadd.f32 %v1713_v6, %v1521_v50  ;;  %v1523_v51 = vadd.f32 %v1522_v45, %v3309_v52  ;;  %v3318_v50 = vld [vmem:[#allocation18_spill] sm:$0xff] }
 0x1b4   : > { %v1526_v9 = vpop.f32.mrf.mxu1  ;;  %v1719_v30 = vpop.f32.mrf.mxu0 }
 0x1b5   : > { %v2331_v20 = vpack.c.bf16 %v1797_v35, %v1796_v11  ;;  %v1716_v57 = vadd.f32 %v1715_v49, %v1523_v51  ;;  %v1527_v55 = vadd.f32 %v1526_v9, %v3310_v38  ;;  %v1798_v54 = vmax.f32 %v1714_v16, 0.0  ;;  %v3319_v51 = vld [vmem:[#allocation19_spill] sm:$0xff] }
 0x1b6   : > { %v1528_v1 = vpop.f32.mrf.mxu1  ;;  %v1721_v41 = vpop.f32.mrf.mxu0 }
 0x1b7   : > { %2028 = vst [vmem:[%s3155_s21 + $0xc0] sm:$0xff] %v2331_v20  ;;  %v1799_v58 = vmax.f32 %v1716_v57, 0.0  ;;  %v1720_v21 = vadd.f32 %v1719_v30, %v1527_v55  ;;  %v1529_v19 = vadd.f32 %v1528_v1, %v3311_v24  ;;  %v3320_v55 = vld [vmem:[#allocation20_spill] sm:$0xff]  ;;  %v3321_v24 = vld [vmem:[#allocation21_spill] sm:$0xff] }
 0x1b8   : > { %v1530_v31 = vpop.f32.mrf.mxu1  ;;  %v1723_v29 = vpop.f32.mrf.mxu0 }
 0x1b9   : > { %v2332_v63 = vpack.c.bf16 %v1799_v58, %v1798_v54  ;;  %v1722_v61 = vadd.f32 %v1721_v41, %v1529_v19  ;;  %v1531_v53 = vadd.f32 %v1530_v31, %v3312_v4  ;;  %v1800_v0 = vmax.f32 %v1720_v21, 0.0 }
 0x1ba   : > { %v1532_v27 = vpop.f32.mrf.mxu1  ;;  %v1725_v22 = vpop.f32.mrf.mxu0 }
 0x1bb   : > { %2029 = vst [vmem:[%s3155_s21 + $0xc8] sm:$0xff] %v2332_v63  ;;  %v1801_v44 = vmax.f32 %v1722_v61, 0.0  ;;  %v1724_v33 = vadd.f32 %v1723_v29, %v1531_v53  ;;  %v1533_v42 = vadd.f32 %v1532_v27, %v3313_v56 }
 0x1bc   : > { %v1536_v8 = vpop.f32.mrf.mxu1  ;;  %v1729_v18 = vpop.f32.mrf.mxu0 }
 0x1bd   : > { %v2333_v34 = vpack.c.bf16 %v1801_v44, %v1800_v0  ;;  %v1726_v3 = vadd.f32 %v1725_v22, %v1533_v42  ;;  %v1537_v7 = vadd.f32 %v1536_v8, %v3314_v60  ;;  %v1802_v25 = vmax.f32 %v1724_v33, 0.0 }
 0x1be   : > { %v1538_v17 = vpop.f32.mrf.mxu1  ;;  %v1731_v5 = vpop.f32.mrf.mxu0 }
 0x1bf   : > { %2030 = vst [vmem:[%s3155_s21 + $0xd0] sm:$0xff] %v2333_v34  ;;  %v1803_v2 = vmax.f32 %v1726_v3, 0.0  ;;  %v1730_v37 = vadd.f32 %v1729_v18, %v1537_v7  ;;  %v1539_v10 = vadd.f32 %v1538_v17, %v3315_v14 }
 0x1c0   : > { %v1540_v28 = vpop.f32.mrf.mxu1  ;;  %v1733_v40 = vpop.f32.mrf.mxu0 }
 0x1c1   : > { %v2334_v23 = vpack.c.bf16 %v1803_v2, %v1802_v25  ;;  %v1732_v32 = vadd.f32 %v1731_v5, %v1539_v10  ;;  %v1541_v59 = vadd.f32 %v1540_v28, %v3316_v26  ;;  %v1804_v43 = vmax.f32 %v1730_v37, 0.0 }
 0x1c2   : > { %v1542_v39 = vpop.f32.mrf.mxu1  ;;  %v1735_v47 = vpop.f32.mrf.mxu0 }
 0x1c3   : > { %2031 = vst [vmem:[%s3155_s21 + $0xd8] sm:$0xff] %v2334_v23  ;;  %v1805_v48 = vmax.f32 %v1732_v32, 0.0  ;;  %v1734_v12 = vadd.f32 %v1733_v40, %v1541_v59  ;;  %v1543_v46 = vadd.f32 %v1542_v39, %v3317_v62 }
 0x1c4   : > { %v1546_v6 = vpop.f32.mrf.mxu1  ;;  %v1739_v36 = vpop.f32.mrf.mxu0 }
 0x1c5   : > { %v2335_v13 = vpack.c.bf16 %v1805_v48, %v1804_v43  ;;  %v1736_v15 = vadd.f32 %v1735_v47, %v1543_v46  ;;  %v1547_v45 = vadd.f32 %v1546_v6, %v3318_v50  ;;  %v1806_v35 = vmax.f32 %v1734_v12, 0.0 }
 0x1c6   : > { %v1548_v49 = vpop.f32.mrf.mxu1  ;;  %v1741_v11 = vpop.f32.mrf.mxu0 }
 0x1c7   : > { %2032 = vst [vmem:[%s3155_s21 + $0xe0] sm:$0xff] %v2335_v13  ;;  %v1807_v16 = vmax.f32 %v1736_v15, 0.0  ;;  %v1740_v52 = vadd.f32 %v1739_v36, %v1547_v45  ;;  %v1549_v9 = vadd.f32 %v1548_v49, %v3319_v51 }
 0x1c8   : > { %v1550_v30 = vpop.f32.mrf.mxu1  ;;  %v1743_v20 = vpop.f32.mrf.mxu0 }
 0x1c9   : > { %v2336_v57 = vpack.c.bf16 %v1807_v16, %v1806_v35  ;;  %v1742_v38 = vadd.f32 %v1741_v11, %v1549_v9  ;;  %v1551_v1 = vadd.f32 %v1550_v30, %v3320_v55  ;;  %v1808_v54 = vmax.f32 %v1740_v52, 0.0 }
 0x1ca   : > { %v1552_v41 = vpop.f32.mrf.mxu1  ;;  %v1745_v31 = vpop.f32.mrf.mxu0 }
 0x1cb   : > { %2033 = vst [vmem:[%s3155_s21 + $0xe8] sm:$0xff] %v2336_v57  ;;  %v1809_v58 = vmax.f32 %v1742_v38, 0.0  ;;  %v1744_v21 = vadd.f32 %v1743_v20, %v1551_v1  ;;  %v1553_v19 = vadd.f32 %v1552_v41, %v3321_v24 }
 0x1cd   : > { %v2337_v29 = vpack.c.bf16 %v1809_v58, %v1808_v54  ;;  %v1746_v63 = vadd.f32 %v1745_v31, %v1553_v19  ;;  %v1810_v61 = vmax.f32 %v1744_v21, 0.0 }
 0x1cf   : > { %2034 = vst [vmem:[%s3155_s21 + $0xf0] sm:$0xff] %v2337_v29  ;;  %v1811_v4 = vmax.f32 %v1746_v63, 0.0 }
 0x1d1   : > { %v2338_v53 = vpack.c.bf16 %v1811_v4, %v1810_v61 }
 0x1d3   : > { %2035 = vst [vmem:[%s3155_s21 + $0xf8] sm:$0xff] %v2338_v53 }
 0x1d4 PF: > { %s13_s12 = sadd.s32 1, %s2607_s12  }
 0x1d5   : > { %p10_p4 = scmp.ge.s32.totalorder %s13_s12, 4  }
 0x1d7   :  { %12 = sbr.rel (!%p10_p4) target bundleno = 1 (0x1), region = 62 }

// kernel: net2x_forward.14
= control target key start
LH: loop header
LB: loop body
LE: loop exit
PB: predicated region body
PF: predicated region fallthrough
CT: control target
= control target key end

     0   :  { %s760_s12 = smov 0   ;;  %s921_s0 = inlined_call_operand.vmem [shape: bf16[512,9], index: 0, kind: input, shape index: {}]   ;;  %s922_s1 = inlined_call_operand.vmem [shape: bf16[9,8], index: 1, kind: input, shape index: {}]   ;;  %s923_s2 = inlined_call_operand.vmem [shape: f32[1,8], index: 2, kind: input, shape index: {}]   ;;  %s924_s3 = inlined_call_operand.vmem [shape: f32[512,8], index: 3, kind: output, shape index: {}]  }
   0x1 LB: > { %s607_s13 = sadd.s32 4294967295, %s737_s12   ;;  %p611_p0 = scmp.ge.s32.totalorder %s737_s12, 1  ;;  %s737_s12 = sphi %s760_s12, %s13_s12  }
   0x2   : > { %p138_p1 = scmp.lt.s32.totalorder %s737_s12, 3 }
   0x4   : > { %p139_p2 = pnand %p611_p0, %p138_p1 }
   0x5   : > { %s612_s16 = sshll.u32 (!%p139_p2), %s607_s13, 5 }
   0x6   : > { %142 = sbr.rel (%p139_p2) target bundleno = 246 (0xf6), region = 32  ;;  %p163_p3 = scmp.lt.s32.totalorder (!%p139_p2), %s612_s16, 63 }
   0xb   : > { %v714_v0 = vld [vmem:[%s922_s1] sm:$0x1f]   ;;  %vm350_vm0 = vcmask 1043456   ;;  %vm351_vm1 = vcmask 1044480   ;;  %v739_v1 = vmov 65535   ;;  %s926_s16 = smov (!%p163_p3, %s612_s16), 63 }
   0xc   : > { %v352_v2 = vsel %vm350_vm0, 4294967295, %v739_v1  ;;  %s613_s17 = sshll.u32 %s926_s16, 2  ;;  %vm301_vm2 = vcmask 72704   ;;  %s615_s21 = sshll.u32 %s926_s16, 3  ;;  %v815_v21 = vld [vmem:[%s923_s2] ss:$0 sm:$0xff] }
   0xd   : > { %v353_v3 = vsel %vm351_vm1, %v352_v2, 0  ;;  %s777_s20 = scalar_lea.vmem %s921_s0, %s613_s17  ;;  %s820_s26 = scalar_lea.vmem %s924_s3, %s615_s21  ;;  %vm518_vm3 = vcmask 64512  }
   0xe   : > { %v355_v4 = vand.u32 %v714_v0, %v353_v3  ;;  %v715_v5 = vld [vmem:[%s777_s20] sm:$0xff]   ;;  %v717_v7 = vld [vmem:[%s777_s20 + $0x8] sm:$0xff]   ;;  %v719_v9 = vld [vmem:[%s777_s20 + $0x10] sm:$0xff]  }
   0xf   : > { %v716_v6 = vld [vmem:[%s777_s20 + $0x40] sm:$0xff]   ;;  %671 = vmatprep.mubr.msk.bf16.mxu0 %vm301_vm2, %v715_v5  ;;  %v718_v8 = vld [vmem:[%s777_s20 + $0x48] sm:$0xff]   ;;  %v720_v10 = vld [vmem:[%s777_s20 + $0x50] sm:$0xff]  }
  0x10   : > { %669 = vmatprep.subr.bf16.mxu0 %v355_v4  ;;  %703 = vmatprep.subr.bf16.mxu1 %v355_v4  ;;  %v721_v11 = vld [vmem:[%s777_s20 + $0x18] sm:$0xff]   ;;  %v723_v13 = vld [vmem:[%s777_s20 + $0x20] sm:$0xff]   ;;  %v725_v15 = vld [vmem:[%s777_s20 + $0x28] sm:$0xff]  }
  0x11   : > { %670 = vmatpush3.bf16.msra.mxu0 %v355_v4  ;;  %704 = vmatpush3.bf16.msra.mxu1 %v355_v4  ;;  %v722_v12 = vld [vmem:[%s777_s20 + $0x58] sm:$0xff]   ;;  %v724_v14 = vld [vmem:[%s777_s20 + $0x60] sm:$0xff]   ;;  %v726_v16 = vld [vmem:[%s777_s20 + $0x68] sm:$0xff]  }
  0x12   : > { %687 = vmatprep.mubr.msk.bf16.mxu1 %vm301_vm2, %v716_v6  ;;  %v727_v17 = vld [vmem:[%s777_s20 + $0x30] sm:$0xff]   ;;  %v729_v19 = vld [vmem:[%s777_s20 + $0x38] sm:$0xff]  }
  0x13   : > { %v728_v18 = vld [vmem:[%s777_s20 + $0x70] sm:$0xff]   ;;  %v730_v20 = vld [vmem:[%s777_s20 + $0x78] sm:$0xff]  }
  0x14   : > { %672 = vmatmul.mubr.msk.bf16.vlgmr.msra.gmra.mxu0 %vm301_vm2, %v717_v7  ;;  %688 = vmatmul.mubr.msk.bf16.vlgmr.msra.gmra.mxu1 %vm301_vm2, %v718_v8 }
  0x15   : > { %675 = vmatprep.mubr.msk.bf16.mxu0 %vm301_vm2, %v719_v9  ;;  %691 = vmatprep.mubr.msk.bf16.mxu1 %vm301_vm2, %v720_v10 }
  0x1c   : > { %676 = vmatmul.mubr.msk.bf16.gmra.mxu0 %vm301_vm2, %v721_v11  ;;  %692 = vmatmul.mubr.msk.bf16.gmra.mxu1 %vm301_vm2, %v722_v12 }
  0x1d   : > { %679 = vmatprep.mubr.msk.bf16.mxu0 %vm301_vm2, %v723_v13  ;;  %695 = vmatprep.mubr.msk.bf16.mxu1 %vm301_vm2, %v724_v14 }
  0x24   : > { %680 = vmatmul.mubr.msk.bf16.gmra.mxu0 %vm301_vm2, %v725_v15  ;;  %696 = vmatmul.mubr.msk.bf16.gmra.mxu1 %vm301_vm2, %v726_v16 }
  0x25   : > { %683 = vmatprep.mubr.msk.bf16.mxu0 %vm301_vm2, %v727_v17  ;;  %699 = vmatprep.mubr.msk.bf16.mxu1 %vm301_vm2, %v728_v18 }
  0x2c   : > { %684 = vmatmul.mubr.msk.bf16.gmra.mxu0 %vm301_vm2, %v729_v19  ;;  %700 = vmatmul.mubr.msk.bf16.gmra.mxu1 %vm301_vm2, %v730_v20 }
  0xd4   : > { %v673_v22 = vpop.f32.mrf.mxu0  ;;  %v689_v24 = vpop.f32.mrf.mxu1 }
  0xd5   : > { %v400_v23 = vadd.f32 %v673_v22, %v815_v21  ;;  %v464_v25 = vadd.f32 %v689_v24, %v815_v21 }
  0xd6   : > { %v391_v26 = vpop.f32.mrf.mxu0  ;;  %v455_v28 = vpop.f32.mrf.mxu1 }
  0xd7   : > { %521 = vst.msk [vmem:[%s820_s26 + $0x10] sm:$0xff] %vm518_vm3, %v400_v23  ;;  %v392_v27 = vadd.f32 %v815_v21, %v391_v26  ;;  %537 = vst.msk [vmem:[%s820_s26 + $0x90] sm:$0xff] %vm518_vm3, %v464_v25  ;;  %v456_v29 = vadd.f32 %v815_v21, %v455_v28 }
  0xd8   : > { %v674_v30 = vpop.f32.mrf.mxu0  ;;  %v690_v32 = vpop.f32.mrf.mxu1 }
  0xd9   : > { %519 = vst.msk [vmem:[%s820_s26] sm:$0xff] %vm518_vm3, %v392_v27  ;;  %v403_v31 = vadd.f32 %v674_v30, %v815_v21  ;;  %535 = vst.msk [vmem:[%s820_s26 + $0x80] sm:$0xff] %vm518_vm3, %v456_v29  ;;  %v467_v33 = vadd.f32 %v690_v32, %v815_v21 }
  0xda   : > { %v394_v34 = vpop.f32.mrf.mxu0  ;;  %v458_v36 = vpop.f32.mrf.mxu1 }
  0xdb   : > { %522 = vst.msk [vmem:[%s820_s26 + $0x18] sm:$0xff] %vm518_vm3, %v403_v31  ;;  %v395_v35 = vadd.f32 %v815_v21, %v394_v34  ;;  %538 = vst.msk [vmem:[%s820_s26 + $0x98] sm:$0xff] %vm518_vm3, %v467_v33  ;;  %v459_v37 = vadd.f32 %v815_v21, %v458_v36 }
  0xdc   : > { %v677_v38 = vpop.f32.mrf.mxu0  ;;  %v693_v40 = vpop.f32.mrf.mxu1 }
  0xdd   : > { %520 = vst.msk [vmem:[%s820_s26 + $0x8] sm:$0xff] %vm518_vm3, %v395_v35  ;;  %v416_v39 = vadd.f32 %v677_v38, %v815_v21  ;;  %536 = vst.msk [vmem:[%s820_s26 + $0x88] sm:$0xff] %vm518_vm3, %v459_v37  ;;  %v480_v41 = vadd.f32 %v693_v40, %v815_v21 }
  0xde   : > { %v407_v42 = vpop.f32.mrf.mxu0  ;;  %v471_v44 = vpop.f32.mrf.mxu1 }
  0xdf   : > { %525 = vst.msk [vmem:[%s820_s26 + $0x30] sm:$0xff] %vm518_vm3, %v416_v39  ;;  %v408_v43 = vadd.f32 %v815_v21, %v407_v42  ;;  %541 = vst.msk [vmem:[%s820_s26 + $0xb0] sm:$0xff] %vm518_vm3, %v480_v41  ;;  %v472_v45 = vadd.f32 %v815_v21, %v471_v44 }
  0xe0   : > { %v678_v46 = vpop.f32.mrf.mxu0  ;;  %v694_v48 = vpop.f32.mrf.mxu1 }
  0xe1   : > { %523 = vst.msk [vmem:[%s820_s26 + $0x20] sm:$0xff] %vm518_vm3, %v408_v43  ;;  %v419_v47 = vadd.f32 %v678_v46, %v815_v21  ;;  %539 = vst.msk [vmem:[%s820_s26 + $0xa0] sm:$0xff] %vm518_vm3, %v472_v45  ;;  %v483_v49 = vadd.f32 %v694_v48, %v815_v21 }
  0xe2   : > { %v410_v50 = vpop.f32.mrf.mxu0  ;;  %v474_v52 = vpop.f32.mrf.mxu1 }
  0xe3   : > { %526 = vst.msk [vmem:[%s820_s26 + $0x38] sm:$0xff] %vm518_vm3, %v419_v47  ;;  %v411_v51 = vadd.f32 %v815_v21, %v410_v50  ;;  %542 = vst.msk [vmem:[%s820_s26 + $0xb8] sm:$0xff] %vm518_vm3, %v483_v49  ;;  %v475_v53 = vadd.f32 %v815_v21, %v474_v52 }
  0xe4   : > { %v681_v54 = vpop.f32.mrf.mxu0  ;;  %v697_v56 = vpop.f32.mrf.mxu1 }
  0xe5   : > { %524 = vst.msk [vmem:[%s820_s26 + $0x28] sm:$0xff] %vm518_vm3, %v411_v51  ;;  %v432_v55 = vadd.f32 %v681_v54, %v815_v21  ;;  %540 = vst.msk [vmem:[%s820_s26 + $0xa8] sm:$0xff] %vm518_vm3, %v475_v53  ;;  %v496_v57 = vadd.f32 %v697_v56, %v815_v21 }
  0xe6   : > { %v423_v58 = vpop.f32.mrf.mxu0  ;;  %v487_v60 = vpop.f32.mrf.mxu1 }
  0xe7   : > { %529 = vst.msk [vmem:[%s820_s26 + $0x50] sm:$0xff] %vm518_vm3, %v432_v55  ;;  %v424_v59 = vadd.f32 %v815_v21, %v423_v58  ;;  %545 = vst.msk [vmem:[%s820_s26 + $0xd0] sm:$0xff] %vm518_vm3, %v496_v57  ;;  %v488_v61 = vadd.f32 %v815_v21, %v487_v60 }
  0xe8   : > { %v682_v62 = vpop.f32.mrf.mxu0  ;;  %v698_v0 = vpop.f32.mrf.mxu1 }
  0xe9   : > { %527 = vst.msk [vmem:[%s820_s26 + $0x40] sm:$0xff] %vm518_vm3, %v424_v59  ;;  %v435_v63 = vadd.f32 %v682_v62, %v815_v21  ;;  %543 = vst.msk [vmem:[%s820_s26 + $0xc0] sm:$0xff] %vm518_vm3, %v488_v61  ;;  %v499_v1 = vadd.f32 %v698_v0, %v815_v21 }
  0xea   : > { %v426_v2 = vpop.f32.mrf.mxu0  ;;  %v490_v4 = vpop.f32.mrf.mxu1 }
  0xeb   : > { %530 = vst.msk [vmem:[%s820_s26 + $0x58] sm:$0xff] %vm518_vm3, %v435_v63  ;;  %v427_v3 = vadd.f32 %v815_v21, %v426_v2  ;;  %546 = vst.msk [vmem:[%s820_s26 + $0xd8] sm:$0xff] %vm518_vm3, %v499_v1  ;;  %v491_v5 = vadd.f32 %v815_v21, %v490_v4 }
  0xec   : > { %v685_v6 = vpop.f32.mrf.mxu0  ;;  %v701_v8 = vpop.f32.mrf.mxu1 }
  0xed   : > { %528 = vst.msk [vmem:[%s820_s26 + $0x48] sm:$0xff] %vm518_vm3, %v427_v3  ;;  %v448_v7 = vadd.f32 %v685_v6, %v815_v21  ;;  %544 = vst.msk [vmem:[%s820_s26 + $0xc8] sm:$0xff] %vm518_vm3, %v491_v5  ;;  %v512_v9 = vadd.f32 %v701_v8, %v815_v21 }
  0xee   : > { %v439_v10 = vpop.f32.mrf.mxu0  ;;  %v503_v12 = vpop.f32.mrf.mxu1 }
  0xef   : > { %533 = vst.msk [vmem:[%s820_s26 + $0x70] sm:$0xff] %vm518_vm3, %v448_v7  ;;  %v440_v11 = vadd.f32 %v815_v21, %v439_v10  ;;  %549 = vst.msk [vmem:[%s820_s26 + $0xf0] sm:$0xff] %vm518_vm3, %v512_v9  ;;  %v504_v13 = vadd.f32 %v815_v21, %v503_v12 }
  0xf0   : > { %v686_v14 = vpop.f32.mrf.mxu0  ;;  %v702_v16 = vpop.f32.mrf.mxu1 }
  0xf1   : > { %531 = vst.msk [vmem:[%s820_s26 + $0x60] sm:$0xff] %vm518_vm3, %v440_v11  ;;  %v451_v15 = vadd.f32 %v686_v14, %v815_v21  ;;  %547 = vst.msk [vmem:[%s820_s26 + $0xe0] sm:$0xff] %vm518_vm3, %v504_v13  ;;  %v515_v17 = vadd.f32 %v702_v16, %v815_v21 }
  0xf2   : > { %v442_v18 = vpop.f32.mrf.mxu0  ;;  %v506_v20 = vpop.f32.mrf.mxu1 }
  0xf3   : > { %534 = vst.msk [vmem:[%s820_s26 + $0x78] sm:$0xff] %vm518_vm3, %v451_v15  ;;  %v443_v19 = vadd.f32 %v815_v21, %v442_v18  ;;  %550 = vst.msk [vmem:[%s820_s26 + $0xf8] sm:$0xff] %vm518_vm3, %v515_v17  ;;  %v507_v22 = vadd.f32 %v815_v21, %v506_v20 }
  0xf5   : > { %532 = vst.msk [vmem:[%s820_s26 + $0x68] sm:$0xff] %vm518_vm3, %v443_v19  ;;  %548 = vst.msk [vmem:[%s820_s26 + $0xe8] sm:$0xff] %vm518_vm3, %v507_v22 }
  0xf6 PF: > { %s13_s12 = sadd.s32 1, %s737_s12  }
  0xf7   : > { %p10_p4 = scmp.ge.s32.totalorder %s13_s12, 4  }
  0xf9   :  { %12 = sbr.rel (!%p10_p4) target bundleno = 1 (0x1), region = 62 }

// kernel: net2x_forward.15
= control target key start
LH: loop header
LB: loop body
LE: loop exit
PB: predicated region body
PF: predicated region fallthrough
CT: control target
= control target key end

     0   :  { %s6630_s15 = smov 0   ;;  %s8823_s0 = inlined_call_operand.vmem [shape: bf16[2048,576], index: 0, kind: input, shape index: {}]   ;;  %s8824_s1 = inlined_call_operand.vmem [shape: bf16[576,8], index: 1, kind: input, shape index: {}]   ;;  %s8825_s2 = inlined_call_operand.vmem [shape: f32[1,8], index: 2, kind: input, shape index: {}]   ;;  %s8826_s3 = inlined_call_operand.vmem [shape: f32[2048,1], index: 3, kind: input, shape index: {}]   ;;  %s8827_s4 = inlined_call_operand.vmem [shape: f32[2048,8], index: 4, kind: output, shape index: {}]  }
   0x1 LB: > { %s5427_s16 = sadd.s32 4294967295, %s6602_s15   ;;  %p5431_p0 = scmp.ge.s32.totalorder %s6602_s15, 1  ;;  %s6602_s15 = sphi %s6630_s15, %s14_s15  }
   0x2   : > { %p175_p1 = scmp.lt.s32.totalorder %s6602_s15, 3 }
   0x4   : > { %p176_p2 = pnand %p5431_p0, %p175_p1 }
   0x6   : > { %179 = sbr.rel (%p176_p2) target bundleno = 912 (0x390), region = 36 }
   0xb   : > { %v6109_v0 = vld [vmem:[%s8824_s1 + $0x38] sm:$0xff]   ;;  %v6604_v1 = vmov 0   ;;  %s5432_s19 = sshll.u32 %s5427_s16, 7  ;;  %v6110_v2 = vld [vmem:[%s8824_s1 + $0x30] sm:$0xff]   ;;  %v6111_v3 = vld [vmem:[%s8824_s1 + $0x28] sm:$0xff]   ;;  %vm2506_vm0 = vcmask 523264  }
   0xc   : > { %2699 = vmatprep.subr.bf16.mxu0 %v6604_v1  ;;  %6065 = vmatprep.subr.bf16.mxu1 %v6604_v1  ;;  %p208_p3 = scmp.lt.s32.totalorder %s5432_s19, 255  ;;  %v6112_v4 = vld [vmem:[%s8824_s1 + $0x20] sm:$0xff]   ;;  %v6113_v5 = vld [vmem:[%s8824_s1 + $0x18] sm:$0xff]   ;;  %v6114_v7 = vld [vmem:[%s8824_s1 + $0x10] sm:$0xff]   ;;  %vm5230_vm1 = vcmask 64512  }
   0xd   : > { %2700 = vmatpush1.bf16.msra.mxu0 %v6109_v0  ;;  %6081 = vmatpush1.bf16.msra.mxu1 %v6109_v0  ;;  %v6115_v9 = vld [vmem:[%s8824_s1 + $0x8] sm:$0xff]   ;;  %v6116_v10 = vld [vmem:[%s8824_s1] sm:$0xff]   ;;  %v6117_v11 = vld [vmem:[%s8824_s1 + $0x78] sm:$0xff]  }
   0xe   : > { %2701 = vmatprep.subr.bf16.mxu0 %v6604_v1  ;;  %6066 = vmatprep.subr.bf16.mxu1 %v6604_v1  ;;  %s9089_s19 = smov (!%p208_p3, %s5432_s19), 255  ;;  %v6118_v12 = vld [vmem:[%s8824_s1 + $0x70] sm:$0xff]   ;;  %v6119_v13 = vld [vmem:[%s8824_s1 + $0x68] sm:$0xff]   ;;  %v6120_v14 = vld [vmem:[%s8824_s1 + $0x60] sm:$0xff]  }
   0xf   : > { %6108 = vset.pattern.permute.xlu1 %v6604_v1  ;;  %6107 = vset.pattern.permute.xlu0 %v6604_v1  ;;  %s6097_s26 = smul.u32 20, %s9089_s19  ;;  %v6121_v15 = vld [vmem:[%s8824_s1 + $0x58] sm:$0xff]   ;;  %v6122_v16 = vld [vmem:[%s8824_s1 + $0x50] sm:$0xff]   ;;  %v6123_v17 = vld [vmem:[%s8824_s1 + $0x48] sm:$0xff]   ;;  %s5435_s22 = sshll.u32 %s9089_s19, 3 }
  0x10   : > { %v6124_v18 = vld [vmem:[%s8824_s1 + $0x40] sm:$0xff]   ;;  %v6131_v19 = vld [vmem:[%s8824_s1 + $0x118] sm:$0xff]   ;;  %v6216_v25 = vld [vmem:[%s8824_s1 + $0x110] sm:$0xff]   ;;  %s6851_s25 = scalar_lea.vmem %s8826_s3, %s5435_s22  ;;  %s7903_s9 = scalar_lea.vmem %s8827_s4, %s5435_s22 }
  0x11   : > { %2702 = vmatpush1.bf16.msra.mxu0 %v6110_v2  ;;  %6082 = vmatpush1.bf16.msra.mxu1 %v6110_v2  ;;  %s6669_s5 = scalar_lea.vmem %s8823_s0, %s6097_s26  ;;  %v6132_v22 = vld [vmem:[%s8824_s1 + $0xb8] sm:$0xff]   ;;  %v6139_v26 = vld [vmem:[%s8824_s1 + $0xb0] sm:$0xff]   ;;  %v6146_v31 = vld [vmem:[%s8824_s1 + $0xa8] sm:$0xff]  }
  0x12   : > { %2703 = vmatprep.subr.bf16.mxu0 %v6604_v1  ;;  %6067 = vmatprep.subr.bf16.mxu1 %v6604_v1  ;;  %v6127_v6 = vld [vmem:[%s6669_s5 + $0x4] ss:$20 sps:$4 sm:$0xff]   ;;  %v6125_v20 = vld [vmem:[%s6669_s5] ss:$20 sps:$4 sm:$0xff]   ;;  %v6137_v27 = vld [vmem:[%s6669_s5 + $0x28] ss:$20 sps:$4 sm:$0xff]  }
  0x13   : > { %v6130_v8 = vld [vmem:[%s6669_s5 + $0x784] ss:$20 sps:$4 sm:$0xff]   ;;  %2731 = vmatprep.mubr.bf16.mxu0 %v6127_v6  ;;  %v6128_v21 = vld [vmem:[%s6669_s5 + $0x780] ss:$20 sps:$4 sm:$0xff]   ;;  %v6138_v28 = vld [vmem:[%s6669_s5 + $0x7a8] ss:$20 sps:$4 sm:$0xff]  }
  0x14   : > { %3115 = vmatprep.mubr.bf16.mxu1 %v6130_v8  ;;  %v6133_v23 = vld [vmem:[%s6669_s5 + $0x2c] ss:$20 sps:$4 sm:$0xff]   ;;  %v6140_v29 = vld [vmem:[%s6669_s5 + $0x54] ss:$20 sps:$4 sm:$0xff]   ;;  %v6144_v33 = vld [vmem:[%s6669_s5 + $0x50] ss:$20 sps:$4 sm:$0xff]  }
  0x15   : > { %2704 = vmatpush1.bf16.msra.mxu0 %v6111_v3  ;;  %6083 = vmatpush1.bf16.msra.mxu1 %v6111_v3  ;;  %v6135_v24 = vld [vmem:[%s6669_s5 + $0x7ac] ss:$20 sps:$4 sm:$0xff]   ;;  %v6142_v30 = vld [vmem:[%s6669_s5 + $0x7d4] ss:$20 sps:$4 sm:$0xff]   ;;  %v6145_v34 = vld [vmem:[%s6669_s5 + $0x7d0] ss:$20 sps:$4 sm:$0xff]  }
  0x16   : > { %2705 = vmatprep.subr.bf16.mxu0 %v6604_v1  ;;  %6068 = vmatprep.subr.bf16.mxu1 %v6604_v1  ;;  %v6153_v32 = vld [vmem:[%s8824_s1 + $0xa0] sm:$0xff]   ;;  %v6147_v35 = vld [vmem:[%s6669_s5 + $0x7c] ss:$20 sps:$4 sm:$0xff]   ;;  %v6151_v39 = vld [vmem:[%s6669_s5 + $0x78] ss:$20 sps:$4 sm:$0xff]  }
  0x17   : > { %v6149_v36 = vld [vmem:[%s6669_s5 + $0x7fc] ss:$20 sps:$4 sm:$0xff]   ;;  %v6152_v40 = vld [vmem:[%s6669_s5 + $0x7f8] ss:$20 sps:$4 sm:$0xff]   ;;  %v6181_v44 = vld [vmem:[%s8824_s1 + $0x80] sm:$0xff]  }
  0x18   : > { %v6160_v37 = vld [vmem:[%s8824_s1 + $0x98] sm:$0xff]   ;;  %v6167_v38 = vld [vmem:[%s8824_s1 + $0x90] sm:$0xff]   ;;  %v6174_v43 = vld [vmem:[%s8824_s1 + $0x88] sm:$0xff]  }
  0x19   : > { %2706 = vmatpush1.bf16.msra.mxu0 %v6112_v4  ;;  %6084 = vmatpush1.bf16.msra.mxu1 %v6112_v4  ;;  %v6154_v41 = vld [vmem:[%s6669_s5 + $0xa4] ss:$20 sps:$4 sm:$0xff]   ;;  %v6158_v45 = vld [vmem:[%s6669_s5 + $0xa0] ss:$20 sps:$4 sm:$0xff]   ;;  %v6165_v51 = vld [vmem:[%s6669_s5 + $0xc8] ss:$20 sps:$4 sm:$0xff]  }
  0x1a   : > { %2707 = vmatprep.subr.bf16.mxu0 %v6604_v1  ;;  %6069 = vmatprep.subr.bf16.mxu1 %v6604_v1  ;;  %v6156_v42 = vld [vmem:[%s6669_s5 + $0x824] ss:$20 sps:$4 sm:$0xff]   ;;  %v6159_v46 = vld [vmem:[%s6669_s5 + $0x820] ss:$20 sps:$4 sm:$0xff]   ;;  %v6166_v52 = vld [vmem:[%s6669_s5 + $0x848] ss:$20 sps:$4 sm:$0xff]  }
  0x1b   : > { %v6161_v47 = vld [vmem:[%s6669_s5 + $0xcc] ss:$20 sps:$4 sm:$0xff]   ;;  %v6188_v49 = vld [vmem:[%s8824_s1 + $0xf8] sm:$0xff]   ;;  %v6195_v50 = vld [vmem:[%s8824_s1 + $0xf0] sm:$0xff]  }
  0x1c   : > { %v6163_v48 = vld [vmem:[%s6669_s5 + $0x84c] ss:$20 sps:$4 sm:$0xff]   ;;  %v6168_v53 = vld [vmem:[%s6669_s5 + $0xf4] ss:$20 sps:$4 sm:$0xff]   ;;  %v6172_v57 = vld [vmem:[%s6669_s5 + $0xf0] ss:$20 sps:$4 sm:$0xff]  }
  0x1d   : > { %2708 = vmatpush1.bf16.msra.mxu0 %v6113_v5  ;;  %6085 = vmatpush1.bf16.msra.mxu1 %v6113_v5  ;;  %v6170_v54 = vld [vmem:[%s6669_s5 + $0x874] ss:$20 sps:$4 sm:$0xff]   ;;  %v6209_v56 = vld [vmem:[%s8824_s1 + $0xe0] sm:$0xff]   ;;  %v6175_v59 = vld [vmem:[%s6669_s5 + $0x11c] ss:$20 sps:$4 sm:$0xff]  }
  0x1e   : > { %2709 = vmatprep.subr.bf16.mxu0 %v6604_v1  ;;  %6070 = vmatprep.subr.bf16.mxu1 %v6604_v1  ;;  %v6202_v55 = vld [vmem:[%s8824_s1 + $0xe8] sm:$0xff]   ;;  %v6173_v58 = vld [vmem:[%s6669_s5 + $0x870] ss:$20 sps:$4 sm:$0xff]   ;;  %v6217_v61 = vld [vmem:[%s8824_s1 + $0xd8] sm:$0xff]  }
  0x1f   : > { %v6177_v60 = vld [vmem:[%s6669_s5 + $0x89c] ss:$20 sps:$4 sm:$0xff]   ;;  %v6179_v63 = vld [vmem:[%s6669_s5 + $0x118] ss:$20 sps:$4 sm:$0xff]   ;;  %v6238_v5 = vld [vmem:[%s8824_s1 + $0xc0] sm:$0xff]  }
  0x20   : > { %v6224_v62 = vld [vmem:[%s8824_s1 + $0xd0] sm:$0xff]   ;;  %v6180_v0 = vld [vmem:[%s6669_s5 + $0x898] ss:$20 sps:$4 sm:$0xff]  }
  0x21   : > { %2710 = vmatpush1.bf16.msra.mxu0 %v6114_v7  ;;  %6086 = vmatpush1.bf16.msra.mxu1 %v6114_v7  ;;  %v6182_v2 = vld [vmem:[%s6669_s5 + $0x144] ss:$20 sps:$4 sm:$0xff]   ;;  %v6231_v4 = vld [vmem:[%s8824_s1 + $0xc8] sm:$0xff]   ;;  %v6186_v6 = vld [vmem:[%s6669_s5 + $0x140] ss:$20 sps:$4 sm:$0xff]  }
  0x22   : > { %2711 = vmatprep.subr.bf16.mxu0 %v6604_v1  ;;  %6071 = vmatprep.subr.bf16.mxu1 %v6604_v1  ;;  %v6184_v3 = vld [vmem:[%s6669_s5 + $0x8c4] ss:$20 sps:$4 sm:$0xff]   ;;  %v6187_v7 = vld [vmem:[%s6669_s5 + $0x8c0] ss:$20 sps:$4 sm:$0xff]  }
  0x23   : > { %v6189_v8 = vld [vmem:[%s6669_s5 + $0x16c] ss:$20 sps:$4 sm:$0xff]  }
  0x25   : > { %2712 = vmatpush1.bf16.msra.mxu0 %v6115_v9  ;;  %6087 = vmatpush1.bf16.msra.mxu1 %v6115_v9  ;;  %v6191_v9 = vld [vmem:[%s6669_s5 + $0x8ec] ss:$20 sps:$4 sm:$0xff]  }
  0x26   : > { %2713 = vmatprep.subr.bf16.mxu0 %v6604_v1  ;;  %6072 = vmatprep.subr.bf16.mxu1 %v6604_v1 }
  0x29   : > { %2714 = vmatpush1.bf16.msra.mxu0 %v6116_v10  ;;  %6088 = vmatpush1.bf16.msra.mxu1 %v6116_v10  ;;  %v6293_v10 = vld [vmem:[%s8824_s1 + $0x108] sm:$0xff]  }
  0x2a   : > { %2715 = vmatprep.subr.bf16.mxu0 %v6604_v1  ;;  %6073 = vmatprep.subr.bf16.mxu1 %v6604_v1 }
  0x2d   : > { %2716 = vmatpush2.bf16.msra.mxu0 %v6117_v11  ;;  %6089 = vmatpush2.bf16.msra.mxu1 %v6117_v11  ;;  %v6193_v11 = vld [vmem:[%s6669_s5 + $0x168] ss:$20 sps:$4 sm:$0xff]  }
  0x2e   : > { %2717 = vmatprep.subr.bf16.mxu0 %v6604_v1  ;;  %6074 = vmatprep.subr.bf16.mxu1 %v6604_v1 }
  0x31   : > { %2718 = vmatpush2.bf16.msra.mxu0 %v6118_v12  ;;  %6090 = vmatpush2.bf16.msra.mxu1 %v6118_v12  ;;  %v6194_v12 = vld [vmem:[%s6669_s5 + $0x8e8] ss:$20 sps:$4 sm:$0xff]  }
  0x32   : > { %2719 = vmatprep.subr.bf16.mxu0 %v6604_v1  ;;  %6075 = vmatprep.subr.bf16.mxu1 %v6604_v1 }
  0x35   : > { %2720 = vmatpush2.bf16.msra.mxu0 %v6119_v13  ;;  %6091 = vmatpush2.bf16.msra.mxu1 %v6119_v13  ;;  %v6198_v13 = vld [vmem:[%s6669_s5 + $0x914] ss:$20 sps:$4 sm:$0xff]  }
  0x36   : > { %2721 = vmatprep.subr.bf16.mxu0 %v6604_v1  ;;  %6076 = vmatprep.subr.bf16.mxu1 %v6604_v1 }
  0x39   : > { %2722 = vmatpush2.bf16.msra.mxu0 %v6120_v14  ;;  %6092 = vmatpush2.bf16.msra.mxu1 %v6120_v14  ;;  %v6200_v14 = vld [vmem:[%s6669_s5 + $0x190] ss:$20 sps:$4 sm:$0xff]  }
  0x3a   : > { %2723 = vmatprep.subr.bf16.mxu0 %v6604_v1  ;;  %6077 = vmatprep.subr.bf16.mxu1 %v6604_v1 }
  0x3d   : > { %2724 = vmatpush2.bf16.msra.mxu0 %v6121_v15  ;;  %6093 = vmatpush2.bf16.msra.mxu1 %v6121_v15  ;;  %v6201_v15 = vld [vmem:[%s6669_s5 + $0x910] ss:$20 sps:$4 sm:$0xff]  }
  0x3e   : > { %2725 = vmatprep.subr.bf16.mxu0 %v6604_v1  ;;  %6078 = vmatprep.subr.bf16.mxu1 %v6604_v1 }
  0x41   : > { %2726 = vmatpush2.bf16.msra.mxu0 %v6122_v16  ;;  %6094 = vmatpush2.bf16.msra.mxu1 %v6122_v16  ;;  %v4336_v16 = vld [vmem:[%s6851_s25 + $0x10] sm:$0xff] }
  0x42   : > { %2727 = vmatprep.subr.bf16.mxu0 %v6604_v1  ;;  %6079 = vmatprep.subr.bf16.mxu1 %v6604_v1 }
  0x43   : > { %4474 = vperm.xlu1 %6108, %v4336_v16   ;;  %v4367_v16 = vld [vmem:[%s6851_s25 + $0x108] sm:$0xff] }
  0x45   : > { %2728 = vmatpush2.bf16.msra.mxu0 %v6123_v17  ;;  %6095 = vmatpush2.bf16.msra.mxu1 %v6123_v17  ;;  %v4334_v17 = vld [vmem:[%s6851_s25] sm:$0xff] }
  0x46   : > { %2729 = vmatprep.subr.bf16.mxu0 %v6604_v1  ;;  %6080 = vmatprep.subr.bf16.mxu1 %v6604_v1 }
  0x47   : > { %4464 = vperm.xlu0 %6107, %v4334_v17   ;;  %v4366_v17 = vld [vmem:[%s6851_s25 + $0x100] sm:$0xff] }
  0x49   : > { %2730 = vmatpush2.bf16.msra.mxu0 %v6124_v18  ;;  %6096 = vmatpush2.bf16.msra.mxu1 %v6124_v18  ;;  %v6203_v18 = vld [vmem:[%s6669_s5 + $0x1bc] ss:$20 sps:$4 sm:$0xff]  }
  0x4a   : > { %3244 = vmatprep.subr.bf16.mxu1 %v6604_v1  ;;  %5929 = vmatprep.subr.bf16.mxu0 %v6131_v19 }
  0x4c   : > { %2732 = vmatmul.mubr.bf16.vlgmr.msra.gmra.mxu0 %v6125_v20  ;;  %3116 = vmatmul.mubr.bf16.vlgmr.msra.gmra.mxu1 %v6128_v21  ;;  %v4337_v20 = vld [vmem:[%s6851_s25 + $0x18] sm:$0xff]  ;;  %v4335_v21 = vld [vmem:[%s6851_s25 + $0x8] sm:$0xff] }
  0x4d   : > { %3245 = vmatpush1.bf16.msra.mxu1 %v6132_v22  ;;  %5930 = vmatpush3.bf16.msra.mxu0 %v6131_v19  ;;  %v6205_v19 = vld [vmem:[%s6669_s5 + $0x93c] ss:$20 sps:$4 sm:$0xff]   ;;  %v6207_v22 = vld [vmem:[%s6669_s5 + $0x1b8] ss:$20 sps:$4 sm:$0xff]  }
  0x4e   : > { %2739 = vmatprep.mubr.bf16.mxu0 %v6133_v23  ;;  %3123 = vmatprep.mubr.bf16.mxu1 %v6135_v24  ;;  %v6208_v23 = vld [vmem:[%s6669_s5 + $0x938] ss:$20 sps:$4 sm:$0xff]  }
  0x4f   : > { %3246 = vmatprep.subr.bf16.mxu1 %v6604_v1  ;;  %5931 = vmatprep.subr.bf16.mxu0 %v6216_v25  ;;  %v4339_v24 = vld [vmem:[%s6851_s25 + $0x28] sm:$0xff] }
  0x50   : > { %4479 = vperm.xlu1 %6108, %v4337_v20   ;;  %4469 = vperm.xlu0 %6107, %v4335_v21   ;;  %v4369_v20 = vld [vmem:[%s6851_s25 + $0x118] sm:$0xff]  ;;  %v4368_v21 = vld [vmem:[%s6851_s25 + $0x110] sm:$0xff] }
  0x51   : > { %3247 = vmatpush1.bf16.msra.mxu1 %v6139_v26  ;;  %5932 = vmatpush3.bf16.msra.mxu0 %v6216_v25  ;;  %v4338_v25 = vld [vmem:[%s6851_s25 + $0x20] sm:$0xff] }
  0x52   : > { %3248 = vmatprep.subr.bf16.mxu1 %v6604_v1  ;;  %5933 = vmatprep.subr.bf16.mxu0 %v6293_v10  ;;  %v6210_v26 = vld [vmem:[%s6669_s5 + $0x1e4] ss:$20 sps:$4 sm:$0xff]  }
  0x54   : > { %2740 = vmatmul.mubr.bf16.gmra.mxu0 %v6137_v27  ;;  %3124 = vmatmul.mubr.bf16.gmra.mxu1 %v6138_v28  ;;  %v6212_v27 = vld [vmem:[%s6669_s5 + $0x964] ss:$20 sps:$4 sm:$0xff]  }
  0x55   : > { %2747 = vmatprep.mubr.bf16.mxu0 %v6140_v29  ;;  %3131 = vmatprep.mubr.bf16.mxu1 %v6142_v30  ;;  %v4341_v28 = vld [vmem:[%s6851_s25 + $0x38] sm:$0xff]  ;;  %v4340_v29 = vld [vmem:[%s6851_s25 + $0x30] sm:$0xff] }
  0x56   : > { %3249 = vmatpush1.bf16.msra.mxu1 %v6146_v31  ;;  %5934 = vmatpush3.bf16.msra.mxu0 %v6293_v10  ;;  %v6214_v30 = vld [vmem:[%s6669_s5 + $0x1e0] ss:$20 sps:$4 sm:$0xff]  }
  0x57   : > { %3250 = vmatprep.subr.bf16.mxu1 %v6604_v1  ;;  %4489 = vperm.xlu1 %6108, %v4339_v24   ;;  %v6215_v31 = vld [vmem:[%s6669_s5 + $0x960] ss:$20 sps:$4 sm:$0xff]   ;;  %v4371_v24 = vld [vmem:[%s6851_s25 + $0x128] sm:$0xff] }
  0x58   : > { %4484 = vperm.xlu0 %6107, %v4338_v25   ;;  %v4362_v10 = vld [vmem:[%s6851_s25 + $0xe0] sm:$0xff] }
  0x59   : > { %v4370_v25 = vld [vmem:[%s6851_s25 + $0x120] sm:$0xff] }
  0x5a   : > { %3251 = vmatpush1.bf16.msra.mxu1 %v6153_v32  ;;  %v4343_v32 = vld [vmem:[%s6851_s25 + $0x48] sm:$0xff] }
  0x5b   : > { %3252 = vmatprep.subr.bf16.mxu1 %v6604_v1  ;;  %4499 = vperm.xlu1 %6108, %v4341_v28   ;;  %v4373_v28 = vld [vmem:[%s6851_s25 + $0x138] sm:$0xff] }
  0x5c   : > { %2748 = vmatmul.mubr.bf16.gmra.mxu0 %v6144_v33  ;;  %3132 = vmatmul.mubr.bf16.gmra.mxu1 %v6145_v34  ;;  %v4342_v33 = vld [vmem:[%s6851_s25 + $0x40] sm:$0xff] }
  0x5d   : > { %2755 = vmatprep.mubr.bf16.mxu0 %v6147_v35  ;;  %3139 = vmatprep.mubr.bf16.mxu1 %v6149_v36  ;;  %v6218_v34 = vld [vmem:[%s6669_s5 + $0x20c] ss:$20 sps:$4 sm:$0xff]   ;;  %v4345_v36 = vld [vmem:[%s6851_s25 + $0x58] sm:$0xff] }
  0x5e   : > { %3253 = vmatpush1.bf16.msra.mxu1 %v6160_v37  ;;  %4494 = vperm.xlu0 %6107, %v4340_v29   ;;  %v6220_v35 = vld [vmem:[%s6669_s5 + $0x98c] ss:$20 sps:$4 sm:$0xff]   ;;  %v4344_v37 = vld [vmem:[%s6851_s25 + $0x50] sm:$0xff] }
  0x5f   : > { %3254 = vmatprep.subr.bf16.mxu1 %v6604_v1  ;;  %4509 = vperm.xlu1 %6108, %v4343_v32   ;;  %v4372_v29 = vld [vmem:[%s6851_s25 + $0x130] sm:$0xff]  ;;  %v4375_v32 = vld [vmem:[%s6851_s25 + $0x148] sm:$0xff] }
  0x62   : > { %3255 = vmatpush1.bf16.msra.mxu1 %v6167_v38  ;;  %4504 = vperm.xlu0 %6107, %v4342_v33   ;;  %v6222_v38 = vld [vmem:[%s6669_s5 + $0x208] ss:$20 sps:$4 sm:$0xff]   ;;  %v4374_v33 = vld [vmem:[%s6851_s25 + $0x140] sm:$0xff] }
  0x63   : > { %3256 = vmatprep.subr.bf16.mxu1 %v6604_v1  ;;  %4519 = vperm.xlu1 %6108, %v4345_v36   ;;  %v4377_v36 = vld [vmem:[%s6851_s25 + $0x158] sm:$0xff] }
  0x64   : > { %2756 = vmatmul.mubr.bf16.gmra.mxu0 %v6151_v39  ;;  %3140 = vmatmul.mubr.bf16.gmra.mxu1 %v6152_v40  ;;  %v6223_v39 = vld [vmem:[%s6669_s5 + $0x988] ss:$20 sps:$4 sm:$0xff]  }
  0x65   : > { %2763 = vmatprep.mubr.bf16.mxu0 %v6154_v41  ;;  %3147 = vmatprep.mubr.bf16.mxu1 %v6156_v42  ;;  %v4347_v40 = vld [vmem:[%s6851_s25 + $0x68] sm:$0xff]  ;;  %v4346_v41 = vld [vmem:[%s6851_s25 + $0x60] sm:$0xff] }
  0x66   : > { %3257 = vmatpush1.bf16.msra.mxu1 %v6174_v43  ;;  %4514 = vperm.xlu0 %6107, %v4344_v37   ;;  %v6225_v42 = vld [vmem:[%s6669_s5 + $0x234] ss:$20 sps:$4 sm:$0xff]  }
  0x67   : > { %3258 = vmatprep.subr.bf16.mxu1 %v6604_v1  ;;  %v6227_v43 = vld [vmem:[%s6669_s5 + $0x9b4] ss:$20 sps:$4 sm:$0xff]   ;;  %4529 = vperm.xlu1 %6108, %v4347_v40   ;;  %v6274_v40 = vld [vmem:[%s6669_s5 + $0xd0] ss:$20 sps:$4 sm:$0xff]  }
  0x68   : > { %v4376_v37 = vld [vmem:[%s6851_s25 + $0x150] sm:$0xff] }
  0x6a   : > { %3259 = vmatpush1.bf16.msra.mxu1 %v6181_v44  ;;  %4524 = vperm.xlu0 %6107, %v4346_v41   ;;  %v4349_v44 = vld [vmem:[%s6851_s25 + $0x78] sm:$0xff]  ;;  %v4379_v41 = vld [vmem:[%s6851_s25 + $0x168] sm:$0xff] }
  0x6b   : > { %3260 = vmatprep.subr.bf16.mxu1 %v6604_v1  ;;  %4539 = vperm.xlu1 %6108, %v4349_v44   ;;  %v6277_v44 = vld [vmem:[%s6669_s5 + $0xfc] ss:$20 sps:$4 sm:$0xff]  }
  0x6c   : > { %2764 = vmatmul.mubr.bf16.gmra.mxu0 %v6158_v45  ;;  %3148 = vmatmul.mubr.bf16.gmra.mxu1 %v6159_v46  ;;  %v4348_v45 = vld [vmem:[%s6851_s25 + $0x70] sm:$0xff] }
  0x6d   : > { %2771 = vmatprep.mubr.bf16.mxu0 %v6161_v47  ;;  %3155 = vmatprep.mubr.bf16.mxu1 %v6163_v48  ;;  %v6229_v46 = vld [vmem:[%s6669_s5 + $0x230] ss:$20 sps:$4 sm:$0xff]   ;;  %v4351_v48 = vld [vmem:[%s6851_s25 + $0x88] sm:$0xff] }
  0x6e   : > { %3261 = vmatpush2.bf16.msra.mxu1 %v6188_v49  ;;  %v6230_v47 = vld [vmem:[%s6669_s5 + $0x9b0] ss:$20 sps:$4 sm:$0xff]   ;;  %4534 = vperm.xlu0 %6107, %v4348_v45   ;;  %v4381_v45 = vld [vmem:[%s6851_s25 + $0x178] sm:$0xff] }
  0x6f   : > { %3262 = vmatprep.subr.bf16.mxu1 %v6604_v1  ;;  %v4350_v49 = vld [vmem:[%s6851_s25 + $0x80] sm:$0xff]  ;;  %4549 = vperm.xlu1 %6108, %v4351_v48   ;;  %v6280_v48 = vld [vmem:[%s6669_s5 + $0xf8] ss:$20 sps:$4 sm:$0xff]  }
  0x72   : > { %3263 = vmatpush2.bf16.msra.mxu1 %v6195_v50  ;;  %v6232_v50 = vld [vmem:[%s6669_s5 + $0x25c] ss:$20 sps:$4 sm:$0xff]   ;;  %4544 = vperm.xlu0 %6107, %v4350_v49   ;;  %v4383_v49 = vld [vmem:[%s6851_s25 + $0x188] sm:$0xff] }
  0x73   : > { %3264 = vmatprep.subr.bf16.mxu1 %v6604_v1 }
  0x74   : > { %2772 = vmatmul.mubr.bf16.gmra.mxu0 %v6165_v51  ;;  %3156 = vmatmul.mubr.bf16.gmra.mxu1 %v6166_v52  ;;  %v6234_v51 = vld [vmem:[%s6669_s5 + $0x9dc] ss:$20 sps:$4 sm:$0xff]  }
  0x75   : > { %2779 = vmatprep.mubr.bf16.mxu0 %v6168_v53  ;;  %3163 = vmatprep.mubr.bf16.mxu1 %v6170_v54  ;;  %v4353_v52 = vld [vmem:[%s6851_s25 + $0x98] sm:$0xff]  ;;  %v4352_v53 = vld [vmem:[%s6851_s25 + $0x90] sm:$0xff] }
  0x76   : > { %3265 = vmatpush2.bf16.msra.mxu1 %v6202_v55  ;;  %v6236_v54 = vld [vmem:[%s6669_s5 + $0x258] ss:$20 sps:$4 sm:$0xff]   ;;  %4559 = vperm.xlu1 %6108, %v4353_v52  }
  0x77   : > { %3266 = vmatprep.subr.bf16.mxu1 %v6604_v1  ;;  %v6237_v55 = vld [vmem:[%s6669_s5 + $0x9d8] ss:$20 sps:$4 sm:$0xff]   ;;  %4554 = vperm.xlu0 %6107, %v4352_v53  }
  0x78   : > { %v6283_v52 = vld [vmem:[%s6669_s5 + $0x124] ss:$20 sps:$4 sm:$0xff]  }
  0x79   : > { %v4385_v53 = vld [vmem:[%s6851_s25 + $0x198] sm:$0xff] }
  0x7a   : > { %3267 = vmatpush2.bf16.msra.mxu1 %v6209_v56  ;;  %v4355_v56 = vld [vmem:[%s6851_s25 + $0xa8] sm:$0xff] }
  0x7b   : > { %3268 = vmatprep.subr.bf16.mxu1 %v6604_v1  ;;  %4569 = vperm.xlu1 %6108, %v4355_v56   ;;  %v6286_v56 = vld [vmem:[%s6669_s5 + $0x120] ss:$20 sps:$4 sm:$0xff]  }
  0x7c   : > { %2780 = vmatmul.mubr.bf16.gmra.mxu0 %v6172_v57  ;;  %3164 = vmatmul.mubr.bf16.gmra.mxu1 %v6173_v58  ;;  %v4354_v57 = vld [vmem:[%s6851_s25 + $0xa0] sm:$0xff] }
  0x7d   : > { %2787 = vmatprep.mubr.bf16.mxu0 %v6175_v59  ;;  %3171 = vmatprep.mubr.bf16.mxu1 %v6177_v60  ;;  %v6239_v58 = vld [vmem:[%s6669_s5 + $0x284] ss:$20 sps:$4 sm:$0xff]   ;;  %v6243_v59 = vld [vmem:[%s6669_s5 + $0xc] ss:$20 sps:$4 sm:$0xff]  }
  0x7e   : > { %3269 = vmatpush2.bf16.msra.mxu1 %v6217_v61  ;;  %4564 = vperm.xlu0 %6107, %v4354_v57   ;;  %v4357_v60 = vld [vmem:[%s6851_s25 + $0xb8] sm:$0xff]  ;;  %v4356_v61 = vld [vmem:[%s6851_s25 + $0xb0] sm:$0xff]  ;;  %v4387_v57 = vld [vmem:[%s6851_s25 + $0x1a8] sm:$0xff] }
  0x7f   : > { %3270 = vmatprep.subr.bf16.mxu1 %v6604_v1  ;;  %4579 = vperm.xlu1 %6108, %v4357_v60   ;;  %v6289_v60 = vld [vmem:[%s6669_s5 + $0x14c] ss:$20 sps:$4 sm:$0xff]  }
  0x82   : > { %3271 = vmatpush2.bf16.msra.mxu1 %v6224_v62  ;;  %v6241_v62 = vld [vmem:[%s6669_s5 + $0x8] ss:$20 sps:$4 sm:$0xff]   ;;  %4574 = vperm.xlu0 %6107, %v4356_v61  }
  0x83   : > { %3272 = vmatprep.subr.bf16.mxu1 %v6604_v1  ;;  %v4389_v61 = vld [vmem:[%s6851_s25 + $0x1b8] sm:$0xff] }
  0x84   : > { %2788 = vmatmul.mubr.bf16.gmra.mxu0 %v6179_v63  ;;  %3172 = vmatmul.mubr.bf16.gmra.mxu1 %v6180_v0  ;;  %v6244_v63 = vld [vmem:[%s6669_s5 + $0x280] ss:$20 sps:$4 sm:$0xff]   ;;  %v4359_v0 = vld [vmem:[%s6851_s25 + $0xc8] sm:$0xff] }
  0x85   : > { %2795 = vmatprep.mubr.bf16.mxu0 %v6182_v2  ;;  %3179 = vmatprep.mubr.bf16.mxu1 %v6184_v3  ;;  %v4358_v2 = vld [vmem:[%s6851_s25 + $0xc0] sm:$0xff] }
  0x86   : > { %3273 = vmatpush2.bf16.msra.mxu1 %v6231_v4  ;;  %v6245_v3 = vld [vmem:[%s6669_s5 + $0x2ac] ss:$20 sps:$4 sm:$0xff]   ;;  %v6247_v4 = vld [vmem:[%s6669_s5 + $0x34] ss:$20 sps:$4 sm:$0xff]   ;;  %4589 = vperm.xlu1 %6108, %v4359_v0  }
  0x87   : > { %3274 = vmatprep.subr.bf16.mxu1 %v6604_v1  ;;  %v6196_v1 = vld [vmem:[%s6669_s5 + $0x194] ss:$20 sps:$4 sm:$0xff]   ;;  %4584 = vperm.xlu0 %6107, %v4358_v2  }
  0x88   : > { %v6292_v0 = vld [vmem:[%s6669_s5 + $0x148] ss:$20 sps:$4 sm:$0xff]  }
  0x89   : > { %v4391_v2 = vld [vmem:[%s6851_s25 + $0x1c8] sm:$0xff] }
  0x8a   : > { %3275 = vmatpush2.bf16.msra.mxu1 %v6238_v5  ;;  %v4361_v5 = vld [vmem:[%s6851_s25 + $0xd8] sm:$0xff] }
  0x8b   : > { %4599 = vperm.xlu1 %6108, %v4361_v5   ;;  %v6296_v5 = vld [vmem:[%s6669_s5 + $0x174] ss:$20 sps:$4 sm:$0xff]  }
  0x8c   : > { %2796 = vmatmul.mubr.bf16.gmra.mxu0 %v6186_v6  ;;  %3180 = vmatmul.mubr.bf16.gmra.mxu1 %v6187_v7  ;;  %v4360_v6 = vld [vmem:[%s6851_s25 + $0xd0] sm:$0xff]  ;;  %v6249_v7 = vld [vmem:[%s6669_s5 + $0x2a8] ss:$20 sps:$4 sm:$0xff]  }
  0x8d   : > { %2803 = vmatprep.mubr.bf16.mxu0 %v6189_v8  ;;  %3187 = vmatprep.mubr.bf16.mxu1 %v6191_v9  ;;  %v6250_v8 = vld [vmem:[%s6669_s5 + $0x30] ss:$20 sps:$4 sm:$0xff]   ;;  %v4363_v9 = vld [vmem:[%s6851_s25 + $0xe8] sm:$0xff] }
  0x8e   : > { %4594 = vperm.xlu0 %6107, %v4360_v6  }
  0x8f   : > { %4609 = vperm.xlu1 %6108, %v4363_v9   ;;  %v4392_v9 = vld [vmem:[%s6851_s25 + $0x1d0] sm:$0xff] }
  0x92   : > { %4604 = vperm.xlu0 %6107, %v4362_v10  }
  0x94   : > { %2804 = vmatmul.mubr.bf16.gmra.mxu0 %v6193_v11  ;;  %3188 = vmatmul.mubr.bf16.gmra.mxu1 %v6194_v12  ;;  %v6251_v11 = vld [vmem:[%s6669_s5 + $0x2d4] ss:$20 sps:$4 sm:$0xff]   ;;  %v6253_v12 = vld [vmem:[%s6669_s5 + $0x5c] ss:$20 sps:$4 sm:$0xff]  }
  0x95   : > { %2811 = vmatprep.mubr.bf16.mxu0 %v6196_v1  ;;  %3195 = vmatprep.mubr.bf16.mxu1 %v6198_v13  ;;  %v4365_v1 = vld [vmem:[%s6851_s25 + $0xf8] sm:$0xff]  ;;  %v4364_v13 = vld [vmem:[%s6851_s25 + $0xf0] sm:$0xff] }
  0x96   : > { %4619 = vperm.xlu1 %6108, %v4365_v1   ;;  %4614 = vperm.xlu0 %6107, %v4364_v13  }
  0x9a   : > { %4629 = vperm.xlu1 %6108, %v4367_v16   ;;  %4624 = vperm.xlu0 %6107, %v4366_v17   ;;  %v4394_v16 = vld [vmem:[%s6851_s25 + $0x1e0] sm:$0xff]  ;;  %v6300_v17 = vld [vmem:[%s6669_s5 + $0x414] ss:$20 sps:$4 sm:$0xff]  }
  0x9c   : > { %2812 = vmatmul.mubr.bf16.gmra.mxu0 %v6200_v14  ;;  %3196 = vmatmul.mubr.bf16.gmra.mxu1 %v6201_v15  ;;  %v6255_v14 = vld [vmem:[%s6669_s5 + $0x2d0] ss:$20 sps:$4 sm:$0xff]   ;;  %v6256_v15 = vld [vmem:[%s6669_s5 + $0x58] ss:$20 sps:$4 sm:$0xff]  }
  0x9d   : > { %2819 = vmatprep.mubr.bf16.mxu0 %v6203_v18  ;;  %3203 = vmatprep.mubr.bf16.mxu1 %v6205_v19  ;;  %v6257_v18 = vld [vmem:[%s6669_s5 + $0x2fc] ss:$20 sps:$4 sm:$0xff]   ;;  %v6259_v19 = vld [vmem:[%s6669_s5 + $0x84] ss:$20 sps:$4 sm:$0xff]  }
  0x9e   : > { %4639 = vperm.xlu1 %6108, %v4369_v20   ;;  %4634 = vperm.xlu0 %6107, %v4368_v21  }
  0xa2   : > { %4649 = vperm.xlu1 %6108, %v4371_v24   ;;  %4644 = vperm.xlu0 %6107, %v4370_v25   ;;  %v4396_v24 = vld [vmem:[%s6851_s25 + $0x1f0] sm:$0xff] }
  0xa4   : > { %2820 = vmatmul.mubr.bf16.gmra.mxu0 %v6207_v22  ;;  %3204 = vmatmul.mubr.bf16.gmra.mxu1 %v6208_v23  ;;  %v6261_v22 = vld [vmem:[%s6669_s5 + $0x2f8] ss:$20 sps:$4 sm:$0xff]   ;;  %v6262_v23 = vld [vmem:[%s6669_s5 + $0x80] ss:$20 sps:$4 sm:$0xff]  }
  0xa5   : > { %2827 = vmatprep.mubr.bf16.mxu0 %v6210_v26  ;;  %3211 = vmatprep.mubr.bf16.mxu1 %v6212_v27  ;;  %v6263_v26 = vld [vmem:[%s6669_s5 + $0x324] ss:$20 sps:$4 sm:$0xff]   ;;  %v6265_v27 = vld [vmem:[%s6669_s5 + $0xac] ss:$20 sps:$4 sm:$0xff]  }
  0xa6   : > { %4659 = vperm.xlu1 %6108, %v4373_v28   ;;  %4654 = vperm.xlu0 %6107, %v4372_v29  }
  0xaa   : > { %4669 = vperm.xlu1 %6108, %v4375_v32   ;;  %4664 = vperm.xlu0 %6107, %v4374_v33   ;;  %v4398_v32 = vld [vmem:[%s6851_s25 + $0x200] sm:$0xff]  ;;  %v6306_v33 = vld [vmem:[%s6669_s5 + $0x43c] ss:$20 sps:$4 sm:$0xff]  }
  0xac   : > { %2828 = vmatmul.mubr.bf16.gmra.mxu0 %v6214_v30  ;;  %3212 = vmatmul.mubr.bf16.gmra.mxu1 %v6215_v31  ;;  %v6267_v30 = vld [vmem:[%s6669_s5 + $0x320] ss:$20 sps:$4 sm:$0xff]   ;;  %v6268_v31 = vld [vmem:[%s6669_s5 + $0xa8] ss:$20 sps:$4 sm:$0xff]  }
  0xad   : > { %2835 = vmatprep.mubr.bf16.mxu0 %v6218_v34  ;;  %3219 = vmatprep.mubr.bf16.mxu1 %v6220_v35  ;;  %v6269_v34 = vld [vmem:[%s6669_s5 + $0x34c] ss:$20 sps:$4 sm:$0xff]   ;;  %v6271_v35 = vld [vmem:[%s6669_s5 + $0xd4] ss:$20 sps:$4 sm:$0xff]  }
  0xae   : > { %4679 = vperm.xlu1 %6108, %v4377_v36   ;;  %4674 = vperm.xlu0 %6107, %v4376_v37  }
  0xb2   : > { %4689 = vperm.xlu1 %6108, %v4379_v41  }
  0xb4   : > { %2836 = vmatmul.mubr.bf16.gmra.mxu0 %v6222_v38  ;;  %3220 = vmatmul.mubr.bf16.gmra.mxu1 %v6223_v39  ;;  %v6366_v38 = vld [vmem:[%s8824_s1 + $0x100] sm:$0xff]   ;;  %v6273_v39 = vld [vmem:[%s6669_s5 + $0x348] ss:$20 sps:$4 sm:$0xff]  }
  0xb5   : > { %2843 = vmatprep.mubr.bf16.mxu0 %v6225_v42  ;;  %3227 = vmatprep.mubr.bf16.mxu1 %v6227_v43  ;;  %v4378_v42 = vld [vmem:[%s6851_s25 + $0x160] sm:$0xff]  ;;  %v6275_v43 = vld [vmem:[%s6669_s5 + $0x374] ss:$20 sps:$4 sm:$0xff]  }
  0xb6   : > { %5935 = vmatprep.subr.bf16.mxu0 %v6366_v38  ;;  %4684 = vperm.xlu0 %6107, %v4378_v42  }
  0xb7   : > { %5936 = vmatpush3.bf16.msra.mxu0 %v6366_v38  ;;  %4699 = vperm.xlu1 %6108, %v4381_v45  }
  0xbb   : > { %4709 = vperm.xlu1 %6108, %v4383_v49   ;;  %v6314_v49 = vld [vmem:[%s6669_s5 + $0x464] ss:$20 sps:$4 sm:$0xff]  }
  0xbc   : > { %2844 = vmatmul.mubr.bf16.gmra.mxu0 %v6229_v46  ;;  %3228 = vmatmul.mubr.bf16.gmra.mxu1 %v6230_v47  ;;  %v4380_v46 = vld [vmem:[%s6851_s25 + $0x170] sm:$0xff] }
  0xbd   : > { %2851 = vmatprep.mubr.bf16.mxu0 %v6232_v50  ;;  %3235 = vmatprep.mubr.bf16.mxu1 %v6234_v51  ;;  %v6279_v47 = vld [vmem:[%s6669_s5 + $0x370] ss:$20 sps:$4 sm:$0xff]  }
  0xbe   : > { %4694 = vperm.xlu0 %6107, %v4380_v46   ;;  %v4382_v50 = vld [vmem:[%s6851_s25 + $0x180] sm:$0xff]  ;;  %v6281_v51 = vld [vmem:[%s6669_s5 + $0x39c] ss:$20 sps:$4 sm:$0xff]  }
  0xbf   : > { %4719 = vperm.xlu1 %6108, %v4385_v53   ;;  %v6311_v46 = vld [vmem:[%s6669_s5 + $0x1c0] ss:$20 sps:$4 sm:$0xff]  }
  0xc2   : > { %4704 = vperm.xlu0 %6107, %v4382_v50   ;;  %v6317_v50 = vld [vmem:[%s6669_s5 + $0x1ec] ss:$20 sps:$4 sm:$0xff]  }
  0xc3   : > { %4729 = vperm.xlu1 %6108, %v4387_v57  }
  0xc4   : > { %2852 = vmatmul.mubr.bf16.gmra.mxu0 %v6236_v54  ;;  %3236 = vmatmul.mubr.bf16.gmra.mxu1 %v6237_v55  ;;  %v4384_v54 = vld [vmem:[%s6851_s25 + $0x190] sm:$0xff]  ;;  %v6285_v55 = vld [vmem:[%s6669_s5 + $0x398] ss:$20 sps:$4 sm:$0xff]  }
  0xc5   : > { %2859 = vmatprep.mubr.bf16.mxu0 %v6239_v58  ;;  %3276 = vmatprep.mubr.bf16.mxu1 %v6243_v59  ;;  %v4386_v58 = vld [vmem:[%s6851_s25 + $0x1a0] sm:$0xff] }
  0xc6   : > { %4714 = vperm.xlu0 %6107, %v4384_v54   ;;  %v6287_v59 = vld [vmem:[%s6669_s5 + $0x3c4] ss:$20 sps:$4 sm:$0xff]  }
  0xc7   : > { %4739 = vperm.xlu1 %6108, %v4389_v61  }
  0xca   : > { %4724 = vperm.xlu0 %6107, %v4386_v58  }
  0xcb   : > { %4749 = vperm.xlu1 %6108, %v4391_v2   ;;  %v6320_v2 = vld [vmem:[%s6669_s5 + $0x48c] ss:$20 sps:$4 sm:$0xff]  }
  0xcc   : > { %2860 = vmatmul.mubr.bf16.gmra.mxu0 %v6244_v63  ;;  %3277 = vmatmul.mubr.bf16.vlgmr.msra.gmra.mxu1 %v6241_v62  ;;  %v4388_v62 = vld [vmem:[%s6851_s25 + $0x1b0] sm:$0xff] }
  0xcd   : > { %2867 = vmatprep.mubr.bf16.mxu0 %v6245_v3  ;;  %3284 = vmatprep.mubr.bf16.mxu1 %v6247_v4  ;;  %v6291_v63 = vld [vmem:[%s6669_s5 + $0x3c0] ss:$20 sps:$4 sm:$0xff]  }
  0xce   : > { %4734 = vperm.xlu0 %6107, %v4388_v62   ;;  %v4390_v3 = vld [vmem:[%s6851_s25 + $0x1c0] sm:$0xff]  ;;  %v6315_v62 = vld [vmem:[%s6669_s5 + $0x1e8] ss:$20 sps:$4 sm:$0xff]  }
  0xcf   : > { %v6294_v4 = vld [vmem:[%s6669_s5 + $0x3ec] ss:$20 sps:$4 sm:$0xff]  }
  0xd2   : > { %4744 = vperm.xlu0 %6107, %v4390_v3   ;;  %v6323_v3 = vld [vmem:[%s6669_s5 + $0x214] ss:$20 sps:$4 sm:$0xff]  }
  0xd4   : > { %2868 = vmatmul.mubr.bf16.gmra.mxu0 %v6249_v7  ;;  %3285 = vmatmul.mubr.bf16.gmra.mxu1 %v6250_v8  ;;  %v4393_v8 = vld [vmem:[%s6851_s25 + $0x1d8] sm:$0xff] }
  0xd5   : > { %2875 = vmatprep.mubr.bf16.mxu0 %v6251_v11  ;;  %3292 = vmatprep.mubr.bf16.mxu1 %v6253_v12  ;;  %v6298_v12 = vld [vmem:[%s6669_s5 + $0x3e8] ss:$20 sps:$4 sm:$0xff]  }
  0xd6   : > { %4759 = vperm.xlu1 %6108, %v4393_v8   ;;  %4754 = vperm.xlu0 %6107, %v4392_v9  }
  0xda   : > { %4764 = vperm.xlu0 %6107, %v4394_v16  }
  0xdc   : > { %2876 = vmatmul.mubr.bf16.gmra.mxu0 %v6255_v14  ;;  %3293 = vmatmul.mubr.bf16.gmra.mxu1 %v6256_v15  ;;  %v6299_v14 = vld [vmem:[%s6669_s5 + $0x170] ss:$20 sps:$4 sm:$0xff]   ;;  %v4395_v15 = vld [vmem:[%s6851_s25 + $0x1e8] sm:$0xff] }
  0xdd   : > { %2883 = vmatprep.mubr.bf16.mxu0 %v6257_v18  ;;  %3300 = vmatprep.mubr.bf16.mxu1 %v6259_v19  ;;  %v6302_v18 = vld [vmem:[%s6669_s5 + $0x19c] ss:$20 sps:$4 sm:$0xff]  }
  0xde   : > { %4769 = vperm.xlu1 %6108, %v4395_v15   ;;  %4774 = vperm.xlu0 %6107, %v4396_v24   ;;  %v6318_v15 = vld [vmem:[%s6669_s5 + $0x488] ss:$20 sps:$4 sm:$0xff]  }
  0xdf   : > { %v6329_v24 = vld [vmem:[%s6669_s5 + $0x23c] ss:$20 sps:$4 sm:$0xff]  }
  0xe2   : > { %4784 = vperm.xlu0 %6107, %v4398_v32   ;;  %v4412_v32 = vld [vmem:[%s6851_s25 + $0x270] sm:$0xff] }
  0xe4   : > { %2884 = vmatmul.mubr.bf16.gmra.mxu0 %v6261_v22  ;;  %3301 = vmatmul.mubr.bf16.gmra.mxu1 %v6262_v23  ;;  %v4397_v23 = vld [vmem:[%s6851_s25 + $0x1f8] sm:$0xff] }
  0xe5   : > { %2891 = vmatprep.mubr.bf16.mxu0 %v6263_v26  ;;  %3308 = vmatprep.mubr.bf16.mxu1 %v6265_v27  ;;  %v6304_v27 = vld [vmem:[%s6669_s5 + $0x410] ss:$20 sps:$4 sm:$0xff]  }
  0xe6   : > { %4779 = vperm.xlu1 %6108, %v4397_v23   ;;  %v6326_v23 = vld [vmem:[%s6669_s5 + $0x4b4] ss:$20 sps:$4 sm:$0xff]  }
  0xec   : > { %2892 = vmatmul.mubr.bf16.gmra.mxu0 %v6267_v30  ;;  %3309 = vmatmul.mubr.bf16.gmra.mxu1 %v6268_v31  ;;  %v6305_v30 = vld [vmem:[%s6669_s5 + $0x198] ss:$20 sps:$4 sm:$0xff]  }
  0xed   : > { %2899 = vmatprep.mubr.bf16.mxu0 %v6269_v34  ;;  %3316 = vmatprep.mubr.bf16.mxu1 %v6271_v35  ;;  %v4399_v31 = vld [vmem:[%s6851_s25 + $0x208] sm:$0xff]  ;;  %v6308_v34 = vld [vmem:[%s6669_s5 + $0x1c4] ss:$20 sps:$4 sm:$0xff]  }
  0xee   : > { %4789 = vperm.xlu1 %6108, %v4399_v31   ;;  %v4413_v31 = vld [vmem:[%s6851_s25 + $0x278] sm:$0xff] }
  0xf4   : > { %2900 = vmatmul.mubr.bf16.gmra.mxu0 %v6273_v39  ;;  %3317 = vmatmul.mubr.bf16.gmra.mxu1 %v6274_v40  ;;  %v4401_v39 = vld [vmem:[%s6851_s25 + $0x218] sm:$0xff]  ;;  %v4400_v40 = vld [vmem:[%s6851_s25 + $0x210] sm:$0xff] }
  0xf5   : > { %2907 = vmatprep.mubr.bf16.mxu0 %v6275_v43  ;;  %3324 = vmatprep.mubr.bf16.mxu1 %v6277_v44  ;;  %v6310_v43 = vld [vmem:[%s6669_s5 + $0x438] ss:$20 sps:$4 sm:$0xff]  }
  0xf6   : > { %4799 = vperm.xlu1 %6108, %v4401_v39   ;;  %4794 = vperm.xlu0 %6107, %v4400_v40   ;;  %v6327_v40 = vld [vmem:[%s6669_s5 + $0x238] ss:$20 sps:$4 sm:$0xff]  }
  0xfc   : > { %2908 = vmatmul.mubr.bf16.gmra.mxu0 %v6279_v47  ;;  %3325 = vmatmul.mubr.bf16.gmra.mxu1 %v6280_v48  ;;  %v4403_v47 = vld [vmem:[%s6851_s25 + $0x228] sm:$0xff]  ;;  %v4402_v48 = vld [vmem:[%s6851_s25 + $0x220] sm:$0xff] }
  0xfd   : > { %2915 = vmatprep.mubr.bf16.mxu0 %v6281_v51  ;;  %3332 = vmatprep.mubr.bf16.mxu1 %v6283_v52 }
  0xfe   : > { %4809 = vperm.xlu1 %6108, %v4403_v47   ;;  %4804 = vperm.xlu0 %6107, %v4402_v48  }
 0x104   : > { %2916 = vmatmul.mubr.bf16.gmra.mxu0 %v6285_v55  ;;  %3333 = vmatmul.mubr.bf16.gmra.mxu1 %v6286_v56  ;;  %v4405_v55 = vld [vmem:[%s6851_s25 + $0x238] sm:$0xff]  ;;  %v4404_v56 = vld [vmem:[%s6851_s25 + $0x230] sm:$0xff] }
 0x105   : > { %2923 = vmatprep.mubr.bf16.mxu0 %v6287_v59  ;;  %3340 = vmatprep.mubr.bf16.mxu1 %v6289_v60  ;;  %v6312_v59 = vld [vmem:[%s6669_s5 + $0x460] ss:$20 sps:$4 sm:$0xff]  }
 0x106   : > { %4819 = vperm.xlu1 %6108, %v4405_v55   ;;  %4814 = vperm.xlu0 %6107, %v4404_v56  }
 0x10c   : > { %v6972_v6 = vpop.f32.mrf.mxu0  ;;  %2924 = vmatmul.mubr.bf16.gmra.mxu0 %v6291_v63  ;;  %v6974_v7 = vpop.f32.mrf.mxu1  ;;  %3341 = vmatmul.mubr.bf16.gmra.mxu1 %v6292_v0  ;;  %v4407_v63 = vld [vmem:[%s6851_s25 + $0x248] sm:$0xff]  ;;  %v4406_v0 = vld [vmem:[%s6851_s25 + $0x240] sm:$0xff] }
 0x10d   : > { %8828 = vst [vmem:[#allocation2_spill] sm:$0xff] %v6974_v7  ;;  %2931 = vmatprep.mubr.bf16.mxu0 %v6294_v4  ;;  %3348 = vmatprep.mubr.bf16.mxu1 %v6296_v5 }
 0x10e   : > { %v2735_v10 = vpop.f32.mrf.mxu0  ;;  %v3119_v11 = vpop.f32.mrf.mxu1  ;;  %4829 = vperm.xlu1 %6108, %v4407_v63   ;;  %4824 = vperm.xlu0 %6107, %v4406_v0   ;;  %v4419_v63 = vld [vmem:[%s6851_s25 + $0x2a8] sm:$0xff]  ;;  %v4418_v0 = vld [vmem:[%s6851_s25 + $0x2a0] sm:$0xff] }
 0x10f   : > { %v4409_v10 = vld [vmem:[%s6851_s25 + $0x258] sm:$0xff]  ;;  %v4408_v11 = vld [vmem:[%s6851_s25 + $0x250] sm:$0xff] }
 0x110   : > { %v6979_v1 = vpop.f32.mrf.mxu0  ;;  %v6981_v13 = vpop.f32.mrf.mxu1 }
 0x111   : > { %8829 = vst [vmem:[#allocation3_spill] sm:$0xff] %v6981_v13  ;;  %v4450_v13 = vld [vmem:[%s6851_s25 + $0x3a0] sm:$0xff] }
 0x112   : > { %v2738_v19 = vpop.f32.mrf.mxu0  ;;  %v3122_v20 = vpop.f32.mrf.mxu1  ;;  %4839 = vperm.xlu1 %6108, %v4409_v10   ;;  %4834 = vperm.xlu0 %6107, %v4408_v11  }
 0x113   : > { %v4411_v19 = vld [vmem:[%s6851_s25 + $0x268] sm:$0xff]  ;;  %v4410_v20 = vld [vmem:[%s6851_s25 + $0x260] sm:$0xff] }
 0x114   : > { %v6988_v21 = vpop.f32.mrf.mxu0  ;;  %2932 = vmatmul.mubr.bf16.gmra.mxu0 %v6298_v12  ;;  %v6990_v22 = vpop.f32.mrf.mxu1  ;;  %3349 = vmatmul.mubr.bf16.gmra.mxu1 %v6299_v14 }
 0x115   : > { %8830 = vst [vmem:[#allocation4_spill] sm:$0xff] %v6990_v22  ;;  %2939 = vmatprep.mubr.bf16.mxu0 %v6300_v17  ;;  %3356 = vmatprep.mubr.bf16.mxu1 %v6302_v18  ;;  %v6321_v18 = vld [vmem:[%s6669_s5 + $0x210] ss:$20 sps:$4 sm:$0xff]   ;;  %v4451_v22 = vld [vmem:[%s6851_s25 + $0x3a8] sm:$0xff] }
 0x116   : > { %v2743_v25 = vpop.f32.mrf.mxu0  ;;  %v3127_v26 = vpop.f32.mrf.mxu1  ;;  %4849 = vperm.xlu1 %6108, %v4411_v19   ;;  %4844 = vperm.xlu0 %6107, %v4410_v20  }
 0x118   : > { %v6995_v28 = vpop.f32.mrf.mxu0  ;;  %v6997_v29 = vpop.f32.mrf.mxu1 }
 0x119   : > { %8831 = vst [vmem:[#allocation5_spill] sm:$0xff] %v6997_v29 }
 0x11a   : > { %v2746_v35 = vpop.f32.mrf.mxu0  ;;  %v3130_v36 = vpop.f32.mrf.mxu1  ;;  %4859 = vperm.xlu1 %6108, %v4413_v31   ;;  %4854 = vperm.xlu0 %6107, %v4412_v32   ;;  %v6339_v32 = vld [vmem:[%s6669_s5 + $0x288] ss:$20 sps:$4 sm:$0xff]  }
 0x11b   : > { %v6324_v35 = vld [vmem:[%s6669_s5 + $0x4b0] ss:$20 sps:$4 sm:$0xff]  }
 0x11c   : > { %v7004_v37 = vpop.f32.mrf.mxu0  ;;  %2940 = vmatmul.mubr.bf16.gmra.mxu0 %v6304_v27  ;;  %v7006_v38 = vpop.f32.mrf.mxu1  ;;  %3357 = vmatmul.mubr.bf16.gmra.mxu1 %v6305_v30 }
 0x11d   : > { %8832 = vst [vmem:[#allocation6_spill] sm:$0xff] %v7006_v38  ;;  %2947 = vmatprep.mubr.bf16.mxu0 %v6306_v33  ;;  %3364 = vmatprep.mubr.bf16.mxu1 %v6308_v34  ;;  %v4446_v38 = vld [vmem:[%s6851_s25 + $0x380] sm:$0xff] }
 0x11e   : > { %v2751_v41 = vpop.f32.mrf.mxu0  ;;  %v3135_v42 = vpop.f32.mrf.mxu1 }
 0x11f   : > { %v4415_v41 = vld [vmem:[%s6851_s25 + $0x288] sm:$0xff]  ;;  %v4414_v42 = vld [vmem:[%s6851_s25 + $0x280] sm:$0xff] }
 0x120   : > { %v7011_v44 = vpop.f32.mrf.mxu0  ;;  %v7013_v45 = vpop.f32.mrf.mxu1  ;;  %4869 = vperm.xlu1 %6108, %v4415_v41   ;;  %4864 = vperm.xlu0 %6107, %v4414_v42  }
 0x121   : > { %8833 = vst [vmem:[#allocation7_spill] sm:$0xff] %v7013_v45 }
 0x122   : > { %v2754_v51 = vpop.f32.mrf.mxu0  ;;  %v3138_v52 = vpop.f32.mrf.mxu1 }
 0x123   : > { %v4417_v51 = vld [vmem:[%s6851_s25 + $0x298] sm:$0xff]  ;;  %v4416_v52 = vld [vmem:[%s6851_s25 + $0x290] sm:$0xff] }
 0x124   : > { %v7020_v53 = vpop.f32.mrf.mxu0  ;;  %2948 = vmatmul.mubr.bf16.gmra.mxu0 %v6310_v43  ;;  %v7022_v54 = vpop.f32.mrf.mxu1  ;;  %3365 = vmatmul.mubr.bf16.gmra.mxu1 %v6311_v46  ;;  %v6332_v43 = vld [vmem:[%s6669_s5 + $0x4dc] ss:$20 sps:$4 sm:$0xff]   ;;  %v6335_v46 = vld [vmem:[%s6669_s5 + $0x264] ss:$20 sps:$4 sm:$0xff]  }
 0x125   : > { %8834 = vst [vmem:[#allocation8_spill] sm:$0xff] %v7022_v54  ;;  %2955 = vmatprep.mubr.bf16.mxu0 %v6314_v49  ;;  %3372 = vmatprep.mubr.bf16.mxu1 %v6317_v50  ;;  %v4448_v54 = vld [vmem:[%s6851_s25 + $0x390] sm:$0xff] }
 0x126   : > { %v2759_v57 = vpop.f32.mrf.mxu0  ;;  %v3143_v58 = vpop.f32.mrf.mxu1  ;;  %4879 = vperm.xlu1 %6108, %v4417_v51   ;;  %4874 = vperm.xlu0 %6107, %v4416_v52  }
 0x127   : > { %v6330_v57 = vld [vmem:[%s6669_s5 + $0x4d8] ss:$20 sps:$4 sm:$0xff]  }
 0x128   : > { %v7027_v60 = vpop.f32.mrf.mxu0  ;;  %v7029_v61 = vpop.f32.mrf.mxu1 }
 0x129   : > { %8835 = vst [vmem:[#allocation9_spill] sm:$0xff] %v7029_v61  ;;  %v4447_v61 = vld [vmem:[%s6851_s25 + $0x388] sm:$0xff] }
 0x12a   : > { %v2762_v4 = vpop.f32.mrf.mxu0  ;;  %v3146_v5 = vpop.f32.mrf.mxu1  ;;  %4889 = vperm.xlu1 %6108, %v4419_v63   ;;  %4884 = vperm.xlu0 %6107, %v4418_v0   ;;  %v6345_v0 = vld [vmem:[%s6669_s5 + $0x2b0] ss:$20 sps:$4 sm:$0xff]  }
 0x12b   : > { %v7084_v4 = vpop.permute.xlu1 %4474  ;;  %v7086_v5 = vpop.permute.xlu0 %4464 }
 0x12c   : > { %v7036_v8 = vpop.f32.mrf.mxu0  ;;  %2956 = vmatmul.mubr.bf16.gmra.mxu0 %v6312_v59  ;;  %v7038_v9 = vpop.f32.mrf.mxu1  ;;  %3373 = vmatmul.mubr.bf16.gmra.mxu1 %v6315_v62  ;;  %v6333_v62 = vld [vmem:[%s6669_s5 + $0x260] ss:$20 sps:$4 sm:$0xff]  }
 0x12d   : > { %8836 = vst [vmem:[#allocation10_spill] sm:$0xff] %v7038_v9  ;;  %2963 = vmatprep.mubr.bf16.mxu0 %v6320_v2  ;;  %3380 = vmatprep.mubr.bf16.mxu1 %v6323_v3  ;;  %v6338_v2 = vld [vmem:[%s6669_s5 + $0x504] ss:$20 sps:$4 sm:$0xff]   ;;  %v6341_v3 = vld [vmem:[%s6669_s5 + $0x28c] ss:$20 sps:$4 sm:$0xff]  }
 0x12e   : > { %v2767_v12 = vpop.f32.mrf.mxu0  ;;  %v3151_v14 = vpop.f32.mrf.mxu1  ;;  %v6378_v9 = vld [vmem:[%s6669_s5 + $0x37c] ss:$20 sps:$4 sm:$0xff]  }
 0x130   : > { %v7043_v16 = vpop.f32.mrf.mxu0  ;;  %v7045_v17 = vpop.f32.mrf.mxu1 }
 0x131   : > { %8837 = vst [vmem:[#allocation11_spill] sm:$0xff] %v7045_v17 }
 0x132   : > { %v2770_v25 = vpop.f32.mrf.mxu0  ;;  %v3154_v26 = vpop.f32.mrf.mxu1 }
 0x133   : > { %v7097_v25 = vpop.permute.xlu0 %4469 }
 0x134   : > { %v7052_v27 = vpop.f32.mrf.mxu0  ;;  %2964 = vmatmul.mubr.bf16.gmra.mxu0 %v6318_v15  ;;  %v7054_v30 = vpop.f32.mrf.mxu1  ;;  %3381 = vmatmul.mubr.bf16.gmra.mxu1 %v6321_v18  ;;  %v4421_v15 = vld [vmem:[%s6851_s25 + $0x2b8] sm:$0xff]  ;;  %v4420_v18 = vld [vmem:[%s6851_s25 + $0x2b0] sm:$0xff] }
 0x135   : > { %8838 = vst [vmem:[#allocation12_spill] sm:$0xff] %v7054_v30  ;;  %2971 = vmatprep.mubr.bf16.mxu0 %v6326_v23  ;;  %3388 = vmatprep.mubr.bf16.mxu1 %v6329_v24  ;;  %v6336_v23 = vld [vmem:[%s6669_s5 + $0x500] ss:$20 sps:$4 sm:$0xff]   ;;  %v7095_v24 = vpop.permute.xlu1 %4479 }
 0x136   : > { %v2775_v33 = vpop.f32.mrf.mxu0  ;;  %v3159_v34 = vpop.f32.mrf.mxu1  ;;  %4899 = vperm.xlu1 %6108, %v4421_v15   ;;  %4894 = vperm.xlu0 %6107, %v4420_v18  }
 0x137   : > { %v4423_v33 = vld [vmem:[%s6851_s25 + $0x2c8] sm:$0xff]  ;;  %v4422_v34 = vld [vmem:[%s6851_s25 + $0x2c0] sm:$0xff]  ;;  %v7116_v52 = vpop.permute.xlu0 %4484 }
 0x138   : > { %v7059_v36 = vpop.f32.mrf.mxu0  ;;  %v7061_v39 = vpop.f32.mrf.mxu1 }
 0x139   : > { %8839 = vst [vmem:[#allocation13_spill] sm:$0xff] %v7061_v39  ;;  %v7114_v51 = vpop.permute.xlu1 %4489  ;;  %v4442_v39 = vld [vmem:[%s6851_s25 + $0x360] sm:$0xff] }
 0x13a   : > { %v2778_v47 = vpop.f32.mrf.mxu0  ;;  %v3162_v48 = vpop.f32.mrf.mxu1  ;;  %4909 = vperm.xlu1 %6108, %v4423_v33   ;;  %4904 = vperm.xlu0 %6107, %v4422_v34   ;;  %8845 = vst [vmem:[#allocation19_spill] sm:$0xff] %v7114_v51  ;;  %v4429_v33 = vld [vmem:[%s6851_s25 + $0x2f8] sm:$0xff]  ;;  %v4428_v34 = vld [vmem:[%s6851_s25 + $0x2f0] sm:$0xff] }
 0x13b   : > { %v4425_v47 = vld [vmem:[%s6851_s25 + $0x2d8] sm:$0xff]  ;;  %v4424_v48 = vld [vmem:[%s6851_s25 + $0x2d0] sm:$0xff] }
 0x13c   : > { %v7068_v49 = vpop.f32.mrf.mxu0  ;;  %2972 = vmatmul.mubr.bf16.gmra.mxu0 %v6324_v35  ;;  %v7070_v50 = vpop.f32.mrf.mxu1  ;;  %3389 = vmatmul.mubr.bf16.gmra.mxu1 %v6327_v40  ;;  %v6344_v35 = vld [vmem:[%s6669_s5 + $0x52c] ss:$20 sps:$4 sm:$0xff]   ;;  %v6347_v40 = vld [vmem:[%s6669_s5 + $0x2b4] ss:$20 sps:$4 sm:$0xff]  }
 0x13d   : > { %8840 = vst [vmem:[#allocation14_spill] sm:$0xff] %v7070_v50  ;;  %2979 = vmatprep.mubr.bf16.mxu0 %v6332_v43  ;;  %3396 = vmatprep.mubr.bf16.mxu1 %v6335_v46  ;;  %v6423_v51 = vld [vmem:[%s6669_s5 + $0x734] ss:$20 sps:$4 sm:$0xff]  }
 0x13e   : > { %v2783_v55 = vpop.f32.mrf.mxu0  ;;  %v3167_v56 = vpop.f32.mrf.mxu1  ;;  %4919 = vperm.xlu1 %6108, %v4425_v47   ;;  %4914 = vperm.xlu0 %6107, %v4424_v48   ;;  %v6351_v48 = vld [vmem:[%s6669_s5 + $0x2d8] ss:$20 sps:$4 sm:$0xff]  }
 0x140   : > { %v7075_v58 = vpop.f32.mrf.mxu0  ;;  %v7077_v59 = vpop.f32.mrf.mxu1 }
 0x141   : > { %8841 = vst [vmem:[#allocation15_spill] sm:$0xff] %v7077_v59  ;;  %v4438_v59 = vld [vmem:[%s6851_s25 + $0x340] sm:$0xff] }
 0x142   : > { %v2786_v10 = vpop.f32.mrf.mxu0  ;;  %v3170_v11 = vpop.f32.mrf.mxu1 }
 0x143   : > { %v6350_v10 = vld [vmem:[%s6669_s5 + $0x554] ss:$20 sps:$4 sm:$0xff]   ;;  %v6353_v11 = vld [vmem:[%s6669_s5 + $0x2dc] ss:$20 sps:$4 sm:$0xff]  }
 0x144   : > { %v7088_v12 = vpop.f32.mrf.mxu0  ;;  %2980 = vmatmul.mubr.bf16.gmra.mxu0 %v6330_v57  ;;  %v7090_v14 = vpop.f32.mrf.mxu1  ;;  %3397 = vmatmul.mubr.bf16.gmra.mxu1 %v6333_v62  ;;  %v6342_v57 = vld [vmem:[%s6669_s5 + $0x528] ss:$20 sps:$4 sm:$0xff]  }
 0x145   : > { %8842 = vst [vmem:[#allocation16_spill] sm:$0xff] %v7090_v14  ;;  %2987 = vmatprep.mubr.bf16.mxu0 %v6338_v2  ;;  %3404 = vmatprep.mubr.bf16.mxu1 %v6341_v3  ;;  %v4427_v2 = vld [vmem:[%s6851_s25 + $0x2e8] sm:$0xff]  ;;  %v4426_v3 = vld [vmem:[%s6851_s25 + $0x2e0] sm:$0xff] }
 0x146   : > { %v2791_v19 = vpop.f32.mrf.mxu0  ;;  %v3175_v20 = vpop.f32.mrf.mxu1  ;;  %4929 = vperm.xlu1 %6108, %v4427_v2   ;;  %4924 = vperm.xlu0 %6107, %v4426_v3  }
 0x147   : > { %v7128_v19 = vpop.permute.xlu1 %4499  ;;  %v7130_v20 = vpop.permute.xlu0 %4494 }
 0x148   : > { %v7099_v26 = vpop.f32.mrf.mxu0  ;;  %v7101_v31 = vpop.f32.mrf.mxu1 }
 0x149   : > { %8843 = vst [vmem:[#allocation17_spill] sm:$0xff] %v7101_v31 }
 0x14a   : > { %v2794_v41 = vpop.f32.mrf.mxu0  ;;  %v3178_v42 = vpop.f32.mrf.mxu1  ;;  %4939 = vperm.xlu1 %6108, %v4429_v33   ;;  %4934 = vperm.xlu0 %6107, %v4428_v34   ;;  %v4433_v33 = vld [vmem:[%s6851_s25 + $0x318] sm:$0xff]  ;;  %v4432_v34 = vld [vmem:[%s6851_s25 + $0x310] sm:$0xff] }
 0x14b   : > { %v6348_v41 = vld [vmem:[%s6669_s5 + $0x550] ss:$20 sps:$4 sm:$0xff]   ;;  %v7148_v2 = vpop.permute.xlu1 %4509  ;;  %v7150_v3 = vpop.permute.xlu0 %4504 }
 0x14c   : > { %v7108_v43 = vpop.f32.mrf.mxu0  ;;  %2988 = vmatmul.mubr.bf16.gmra.mxu0 %v6336_v23  ;;  %v7110_v46 = vpop.f32.mrf.mxu1  ;;  %3405 = vmatmul.mubr.bf16.gmra.mxu1 %v6339_v32  ;;  %8849 = vst [vmem:[#allocation23_spill] sm:$0xff] %v7148_v2  ;;  %8850 = vst [vmem:[#allocation24_spill] sm:$0xff] %v7150_v3  ;;  %v6411_v2 = vld [vmem:[%s6669_s5 + $0x6e4] ss:$20 sps:$4 sm:$0xff]   ;;  %v6417_v3 = vld [vmem:[%s6669_s5 + $0x70c] ss:$20 sps:$4 sm:$0xff]  }
 0x14d   : > { %8844 = vst [vmem:[#allocation18_spill] sm:$0xff] %v7110_v46  ;;  %2995 = vmatprep.mubr.bf16.mxu0 %v6344_v35  ;;  %3412 = vmatprep.mubr.bf16.mxu1 %v6347_v40 }
 0x14e   : > { %v2799_v55 = vpop.f32.mrf.mxu0  ;;  %v3183_v56 = vpop.f32.mrf.mxu1 }
 0x14f   : > { %v4431_v55 = vld [vmem:[%s6851_s25 + $0x308] sm:$0xff]  ;;  %v4430_v56 = vld [vmem:[%s6851_s25 + $0x300] sm:$0xff] }
 0x150   : > { %v7119_v62 = vpop.f32.mrf.mxu0  ;;  %v7121_v63 = vpop.f32.mrf.mxu1  ;;  %4949 = vperm.xlu1 %6108, %v4431_v55   ;;  %4944 = vperm.xlu0 %6107, %v4430_v56   ;;  %v6354_v55 = vld [vmem:[%s6669_s5 + $0x578] ss:$20 sps:$4 sm:$0xff]  }
 0x151   : > { %8846 = vst [vmem:[#allocation20_spill] sm:$0xff] %v7121_v63  ;;  %v7159_v56 = vpop.permute.xlu1 %4519  ;;  %v4434_v63 = vld [vmem:[%s6851_s25 + $0x320] sm:$0xff] }
 0x152   : > { %v2802_v15 = vpop.f32.mrf.mxu0  ;;  %v3186_v18 = vpop.f32.mrf.mxu1  ;;  %8852 = vst [vmem:[#allocation26_spill] sm:$0xff] %v7159_v56 }
 0x154   : > { %v7132_v23 = vpop.f32.mrf.mxu0  ;;  %2996 = vmatmul.mubr.bf16.gmra.mxu0 %v6342_v57  ;;  %v7134_v32 = vpop.f32.mrf.mxu1  ;;  %3413 = vmatmul.mubr.bf16.gmra.mxu1 %v6345_v0  ;;  %v6356_v57 = vld [vmem:[%s6669_s5 + $0x57c] ss:$20 sps:$4 sm:$0xff]   ;;  %v6359_v0 = vld [vmem:[%s6669_s5 + $0x304] ss:$20 sps:$4 sm:$0xff]  }
 0x155   : > { %8847 = vst [vmem:[#allocation21_spill] sm:$0xff] %v7134_v32  ;;  %3003 = vmatprep.mubr.bf16.mxu0 %v6350_v10  ;;  %3420 = vmatprep.mubr.bf16.mxu1 %v6353_v11  ;;  %v4439_v32 = vld [vmem:[%s6851_s25 + $0x348] sm:$0xff] }
 0x156   : > { %v2807_v35 = vpop.f32.mrf.mxu0  ;;  %v3191_v40 = vpop.f32.mrf.mxu1  ;;  %4959 = vperm.xlu1 %6108, %v4433_v33   ;;  %4954 = vperm.xlu0 %6107, %v4432_v34  }
 0x158   : > { %v7139_v42 = vpop.f32.mrf.mxu0  ;;  %v7141_v47 = vpop.f32.mrf.mxu1 }
 0x159   : > { %8848 = vst [vmem:[#allocation22_spill] sm:$0xff] %v7141_v47  ;;  %v4436_v47 = vld [vmem:[%s6851_s25 + $0x330] sm:$0xff] }
 0x15a   : > { %v2810_v10 = vpop.f32.mrf.mxu0  ;;  %v3194_v11 = vpop.f32.mrf.mxu1  ;;  %4964 = vperm.xlu0 %6107, %v4434_v63  }
 0x15b   : > { %v6357_v11 = vld [vmem:[%s6669_s5 + $0x300] ss:$20 sps:$4 sm:$0xff]  }
 0x15c   : > { %v7152_v15 = vpop.f32.mrf.mxu0  ;;  %3004 = vmatmul.mubr.bf16.gmra.mxu0 %v6348_v41  ;;  %v7154_v18 = vpop.f32.mrf.mxu1  ;;  %3421 = vmatmul.mubr.bf16.gmra.mxu1 %v6351_v48 }
 0x15d   : > { %8851 = vst [vmem:[#allocation25_spill] sm:$0xff] %v7154_v18  ;;  %3011 = vmatprep.mubr.bf16.mxu0 %v6356_v57  ;;  %3428 = vmatprep.mubr.bf16.mxu1 %v6359_v0  ;;  %v7161_v41 = vpop.permute.xlu0 %4514  ;;  %v4435_v18 = vld [vmem:[%s6851_s25 + $0x328] sm:$0xff]  ;;  %v6362_v57 = vld [vmem:[%s6669_s5 + $0x5a4] ss:$20 sps:$4 sm:$0xff]  }
 0x15e   : > { %v2815_v35 = vpop.f32.mrf.mxu0  ;;  %v3199_v40 = vpop.f32.mrf.mxu1  ;;  %8853 = vst [vmem:[#allocation27_spill] sm:$0xff] %v7161_v41  ;;  %v6365_v0 = vld [vmem:[%s6669_s5 + $0x32c] ss:$20 sps:$4 sm:$0xff]   ;;  %4969 = vperm.xlu1 %6108, %v4435_v18   ;;  %4974 = vperm.xlu0 %6107, %v4436_v47  }
 0x160   : > { %v7163_v10 = vpop.f32.mrf.mxu0  ;;  %v7165_v48 = vpop.f32.mrf.mxu1 }
 0x161   : > { %8854 = vst [vmem:[#allocation28_spill] sm:$0xff] %v7165_v48  ;;  %v4437_v48 = vld [vmem:[%s6851_s25 + $0x338] sm:$0xff]  ;;  %v7180_v18 = vpop.permute.xlu0 %4524 }
 0x162   : > { %v2818_v35 = vpop.f32.mrf.mxu0  ;;  %v3202_v40 = vpop.f32.mrf.mxu1  ;;  %8857 = vst [vmem:[#allocation31_spill] sm:$0xff] %v7180_v18  ;;  %4979 = vperm.xlu1 %6108, %v4437_v48   ;;  %4984 = vperm.xlu0 %6107, %v4438_v59   ;;  %v6406_v18 = vld [vmem:[%s6669_s5 + $0x440] ss:$20 sps:$4 sm:$0xff]  }
 0x163   : > { %v7178_v35 = vpop.permute.xlu1 %4529 }
 0x164   : > { %v7172_v33 = vpop.f32.mrf.mxu0  ;;  %3012 = vmatmul.mubr.bf16.gmra.mxu0 %v6354_v55  ;;  %v7174_v34 = vpop.f32.mrf.mxu1  ;;  %3429 = vmatmul.mubr.bf16.gmra.mxu1 %v6357_v11  ;;  %8856 = vst [vmem:[#allocation30_spill] sm:$0xff] %v7178_v35  ;;  %v6360_v55 = vld [vmem:[%s6669_s5 + $0x5a0] ss:$20 sps:$4 sm:$0xff]   ;;  %v6363_v11 = vld [vmem:[%s6669_s5 + $0x328] ss:$20 sps:$4 sm:$0xff]  }
 0x165   : > { %8855 = vst [vmem:[#allocation29_spill] sm:$0xff] %v7174_v34  ;;  %3019 = vmatprep.mubr.bf16.mxu0 %v6362_v57  ;;  %3436 = vmatprep.mubr.bf16.mxu1 %v6365_v0  ;;  %v6369_v57 = vld [vmem:[%s6669_s5 + $0x5cc] ss:$20 sps:$4 sm:$0xff]   ;;  %v6372_v0 = vld [vmem:[%s6669_s5 + $0x354] ss:$20 sps:$4 sm:$0xff]   ;;  %v7194_v47 = vpop.permute.xlu0 %4534  ;;  %v4461_v35 = vld [vmem:[%s6851_s25 + $0x3f8] sm:$0xff] }
 0x166   : > { %v2823_v63 = vpop.f32.mrf.mxu0  ;;  %v3207_v40 = vpop.f32.mrf.mxu1  ;;  %4989 = vperm.xlu1 %6108, %v4439_v32   ;;  %8860 = vst [vmem:[#allocation34_spill] sm:$0xff] %v7194_v47 }
 0x167   : > { %v7192_v63 = vpop.permute.xlu1 %4539 }
 0x168   : > { %v7183_v46 = vpop.f32.mrf.mxu0  ;;  %v7185_v34 = vpop.f32.mrf.mxu1  ;;  %8859 = vst [vmem:[#allocation33_spill] sm:$0xff] %v7192_v63  ;;  %v4460_v63 = vld [vmem:[%s6851_s25 + $0x3f0] sm:$0xff] }
 0x169   : > { %8858 = vst [vmem:[#allocation32_spill] sm:$0xff] %v7185_v34  ;;  %v6367_v34 = vld [vmem:[%s6669_s5 + $0x5c8] ss:$20 sps:$4 sm:$0xff]  }
 0x16a   : > { %v2826_v31 = vpop.f32.mrf.mxu0  ;;  %v3210_v50 = vpop.f32.mrf.mxu1 }
 0x16b   : > { %v4441_v31 = vld [vmem:[%s6851_s25 + $0x358] sm:$0xff]  ;;  %v4440_v50 = vld [vmem:[%s6851_s25 + $0x350] sm:$0xff]  ;;  %v7212_v30 = vpop.permute.xlu1 %4549 }
 0x16c   : > { %v7196_v48 = vpop.f32.mrf.mxu0  ;;  %3020 = vmatmul.mubr.bf16.gmra.mxu0 %v6360_v55  ;;  %v7198_v40 = vpop.f32.mrf.mxu1  ;;  %3437 = vmatmul.mubr.bf16.gmra.mxu1 %v6363_v11  ;;  %v6370_v55 = vld [vmem:[%s6669_s5 + $0x350] ss:$20 sps:$4 sm:$0xff]   ;;  %v6375_v11 = vld [vmem:[%s6669_s5 + $0x5f4] ss:$20 sps:$4 sm:$0xff]   ;;  %8863 = vst [vmem:[#allocation37_spill] sm:$0xff] %v7212_v30 }
 0x16d   : > { %8861 = vst [vmem:[#allocation35_spill] sm:$0xff] %v7198_v40  ;;  %3027 = vmatprep.mubr.bf16.mxu0 %v6369_v57  ;;  %3444 = vmatprep.mubr.bf16.mxu1 %v6372_v0  ;;  %v4443_v40 = vld [vmem:[%s6851_s25 + $0x368] sm:$0xff]  ;;  %v7214_v57 = vpop.permute.xlu0 %4544 }
 0x16e   : > { %v2831_v59 = vpop.f32.mrf.mxu0  ;;  %v3215_v32 = vpop.f32.mrf.mxu1  ;;  %4999 = vperm.xlu1 %6108, %v4441_v31   ;;  %4994 = vperm.xlu0 %6107, %v4440_v50   ;;  %8864 = vst [vmem:[#allocation38_spill] sm:$0xff] %v7214_v57  ;;  %v4457_v57 = vld [vmem:[%s6851_s25 + $0x3d8] sm:$0xff] }
 0x16f   : > { %v4445_v32 = vld [vmem:[%s6851_s25 + $0x378] sm:$0xff] }
 0x170   : > { %v7203_v14 = vpop.f32.mrf.mxu0  ;;  %v7205_v17 = vpop.f32.mrf.mxu1 }
 0x171   : > { %8862 = vst [vmem:[#allocation36_spill] sm:$0xff] %v7205_v17  ;;  %v4444_v17 = vld [vmem:[%s6851_s25 + $0x370] sm:$0xff] }
 0x172   : > { %v2834_v0 = vpop.f32.mrf.mxu0  ;;  %v3218_v31 = vpop.f32.mrf.mxu1  ;;  %5009 = vperm.xlu1 %6108, %v4443_v40   ;;  %5004 = vperm.xlu0 %6107, %v4442_v39   ;;  %v6373_v39 = vld [vmem:[%s6669_s5 + $0x5f0] ss:$20 sps:$4 sm:$0xff]  }
 0x173   : > { %v7223_v40 = vpop.permute.xlu1 %4559 }
 0x174   : > { %v7216_v50 = vpop.f32.mrf.mxu0  ;;  %3028 = vmatmul.mubr.bf16.gmra.mxu0 %v6367_v34  ;;  %v7218_v59 = vpop.f32.mrf.mxu1  ;;  %3445 = vmatmul.mubr.bf16.gmra.mxu1 %v6370_v55  ;;  %8866 = vst [vmem:[#allocation40_spill] sm:$0xff] %v7223_v40 }
 0x175   : > { %8865 = vst [vmem:[#allocation39_spill] sm:$0xff] %v7218_v59  ;;  %3035 = vmatprep.mubr.bf16.mxu0 %v6375_v11  ;;  %3452 = vmatprep.mubr.bf16.mxu1 %v6378_v9  ;;  %v7225_v34 = vpop.permute.xlu0 %4554  ;;  %v6376_v59 = vld [vmem:[%s6669_s5 + $0x378] ss:$20 sps:$4 sm:$0xff]   ;;  %v6381_v11 = vld [vmem:[%s6669_s5 + $0x61c] ss:$20 sps:$4 sm:$0xff]  }
 0x176   : > { %v2839_v0 = vpop.f32.mrf.mxu0  ;;  %v3223_v45 = vpop.f32.mrf.mxu1  ;;  %5019 = vperm.xlu1 %6108, %v4445_v32   ;;  %5014 = vperm.xlu0 %6107, %v4444_v17   ;;  %8867 = vst [vmem:[#allocation41_spill] sm:$0xff] %v7225_v34  ;;  %v6384_v9 = vld [vmem:[%s6669_s5 + $0x3a4] ss:$20 sps:$4 sm:$0xff]   ;;  %v4456_v34 = vld [vmem:[%s6851_s25 + $0x3d0] sm:$0xff] }
 0x178   : > { %v7227_v31 = vpop.f32.mrf.mxu0  ;;  %v7229_v55 = vpop.f32.mrf.mxu1 }
 0x179   : > { %8868 = vst [vmem:[#allocation42_spill] sm:$0xff] %v7229_v55  ;;  %v4449_v55 = vld [vmem:[%s6851_s25 + $0x398] sm:$0xff] }
 0x17a   : > { %v2842_v0 = vpop.f32.mrf.mxu0  ;;  %v3226_v45 = vpop.f32.mrf.mxu1  ;;  %5029 = vperm.xlu1 %6108, %v4447_v61   ;;  %5024 = vperm.xlu0 %6107, %v4446_v38  }
 0x17b   : > { %v7242_v0 = vpop.permute.xlu1 %4569  ;;  %v7244_v61 = vpop.permute.xlu0 %4564 }
 0x17c   : > { %v7236_v17 = vpop.f32.mrf.mxu0  ;;  %3036 = vmatmul.mubr.bf16.gmra.mxu0 %v6373_v39  ;;  %v7238_v32 = vpop.f32.mrf.mxu1  ;;  %3453 = vmatmul.mubr.bf16.gmra.mxu1 %v6376_v59  ;;  %8870 = vst [vmem:[#allocation44_spill] sm:$0xff] %v7242_v0  ;;  %8871 = vst [vmem:[#allocation45_spill] sm:$0xff] %v7244_v61  ;;  %v6379_v39 = vld [vmem:[%s6669_s5 + $0x618] ss:$20 sps:$4 sm:$0xff]   ;;  %v6382_v59 = vld [vmem:[%s6669_s5 + $0x3a0] ss:$20 sps:$4 sm:$0xff]  }
 0x17d   : > { %8869 = vst [vmem:[#allocation43_spill] sm:$0xff] %v7238_v32  ;;  %3043 = vmatprep.mubr.bf16.mxu0 %v6381_v11  ;;  %3460 = vmatprep.mubr.bf16.mxu1 %v6384_v9  ;;  %v6387_v11 = vld [vmem:[%s6669_s5 + $0x644] ss:$20 sps:$4 sm:$0xff]   ;;  %v6390_v9 = vld [vmem:[%s6669_s5 + $0x3cc] ss:$20 sps:$4 sm:$0xff]  }
 0x17e   : > { %v2847_v38 = vpop.f32.mrf.mxu0  ;;  %v3231_v45 = vpop.f32.mrf.mxu1  ;;  %5039 = vperm.xlu1 %6108, %v4449_v55   ;;  %5034 = vperm.xlu0 %6107, %v4448_v54   ;;  %v4455_v61 = vld [vmem:[%s6851_s25 + $0x3c8] sm:$0xff] }
 0x17f   : > { %v7256_v38 = vpop.permute.xlu1 %4579  ;;  %v7258_v54 = vpop.permute.xlu0 %4574 }
 0x180   : > { %v7247_v29 = vpop.f32.mrf.mxu0  ;;  %v7249_v32 = vpop.f32.mrf.mxu1  ;;  %8873 = vst [vmem:[#allocation47_spill] sm:$0xff] %v7256_v38  ;;  %8874 = vst [vmem:[#allocation48_spill] sm:$0xff] %v7258_v54 }
 0x181   : > { %8872 = vst [vmem:[#allocation46_spill] sm:$0xff] %v7249_v32  ;;  %v4453_v32 = vld [vmem:[%s6851_s25 + $0x3b8] sm:$0xff] }
 0x182   : > { %v2850_v7 = vpop.f32.mrf.mxu0  ;;  %v3234_v0 = vpop.f32.mrf.mxu1  ;;  %5049 = vperm.xlu1 %6108, %v4451_v22   ;;  %5044 = vperm.xlu0 %6107, %v4450_v13  }
 0x183   : > { %v4452_v7 = vld [vmem:[%s6851_s25 + $0x3b0] sm:$0xff]  ;;  %v7269_v0 = vld [vmem:[%s8825_s2] ss:$0 sm:$0xff] }
 0x184   : > { %v7260_v55 = vpop.f32.mrf.mxu0  ;;  %3044 = vmatmul.mubr.bf16.gmra.mxu0 %v6379_v39  ;;  %v7262_v45 = vpop.f32.mrf.mxu1  ;;  %3461 = vmatmul.mubr.bf16.gmra.mxu1 %v6382_v59  ;;  %v6385_v39 = vld [vmem:[%s6669_s5 + $0x640] ss:$20 sps:$4 sm:$0xff]   ;;  %v6388_v59 = vld [vmem:[%s6669_s5 + $0x3c8] ss:$20 sps:$4 sm:$0xff]   ;;  %v2734_v30 = vadd.f32 %v7269_v0, %v6972_v6  ;;  %v2737_v6 = vadd.f32 %v7269_v0, %v6979_v1  ;;  %v2742_v1 = vadd.f32 %v7269_v0, %v6988_v21 }
 0x185   : > { %8875 = vst [vmem:[#allocation49_spill] sm:$0xff] %v7262_v45  ;;  %3051 = vmatprep.mubr.bf16.mxu0 %v6387_v11  ;;  %3468 = vmatprep.mubr.bf16.mxu1 %v6390_v9  ;;  %v4454_v11 = vld [vmem:[%s6851_s25 + $0x3c0] sm:$0xff] }
 0x186   : > { %v2855_v13 = vpop.f32.mrf.mxu0  ;;  %v3239_v22 = vpop.f32.mrf.mxu1  ;;  %5059 = vperm.xlu1 %6108, %v4453_v32   ;;  %5054 = vperm.xlu0 %6107, %v4452_v7   ;;  %v6393_v9 = vld [vmem:[%s6669_s5 + $0x66c] ss:$20 sps:$4 sm:$0xff]  }
 0x187   : > { %v6396_v13 = vld [vmem:[%s6669_s5 + $0x3f4] ss:$20 sps:$4 sm:$0xff]   ;;  %v7281_v22 = vpop.permute.xlu1 %4589  ;;  %v7283_v32 = vpop.permute.xlu0 %4584 }
 0x188   : > { %v7272_v38 = vpop.f32.mrf.mxu0  ;;  %v7274_v45 = vpop.f32.mrf.mxu1  ;;  %8877 = vst [vmem:[#allocation51_spill] sm:$0xff] %v7281_v22  ;;  %8878 = vst [vmem:[#allocation52_spill] sm:$0xff] %v7283_v32 }
 0x189   : > { %8876 = vst [vmem:[#allocation50_spill] sm:$0xff] %v7274_v45 }
 0x18a   : > { %v2858_v7 = vpop.f32.mrf.mxu0  ;;  %v3242_v54 = vpop.f32.mrf.mxu1  ;;  %5069 = vperm.xlu1 %6108, %v4455_v61   ;;  %5064 = vperm.xlu0 %6107, %v4454_v11  }
 0x18b   : > { %v7298_v11 = vpop.permute.xlu0 %4594 }
 0x18c   : > { %v7287_v45 = vpop.f32.mrf.mxu0  ;;  %3052 = vmatmul.mubr.bf16.gmra.mxu0 %v6385_v39  ;;  %v3278_v40 = vpop.f32.mrf.mxu1  ;;  %3469 = vmatmul.mubr.bf16.gmra.mxu1 %v6388_v59  ;;  %v6391_v39 = vld [vmem:[%s6669_s5 + $0x668] ss:$20 sps:$4 sm:$0xff]   ;;  %8880 = vst [vmem:[#allocation54_spill] sm:$0xff] %v7298_v11 }
 0x18d   : > { %v7291_v22 = vadd.f32 %v3278_v40, %v2734_v30  ;;  %3059 = vmatprep.mubr.bf16.mxu0 %v6393_v9  ;;  %3476 = vmatprep.mubr.bf16.mxu1 %v6396_v13  ;;  %v7296_v59 = vpop.permute.xlu1 %4599  ;;  %v6394_v40 = vld [vmem:[%s6669_s5 + $0x3f0] ss:$20 sps:$4 sm:$0xff]   ;;  %v4459_v9 = vld [vmem:[%s6851_s25 + $0x3e8] sm:$0xff] }
 0x18e   : > { %v2863_v61 = vpop.f32.mrf.mxu0  ;;  %v3280_v54 = vpop.f32.mrf.mxu1  ;;  %5079 = vperm.xlu1 %6108, %v4457_v57   ;;  %5074 = vperm.xlu0 %6107, %v4456_v34   ;;  %8879 = vst [vmem:[#allocation53_spill] sm:$0xff] %v7296_v59  ;;  %v4458_v13 = vld [vmem:[%s6851_s25 + $0x3e0] sm:$0xff]  ;;  %v6399_v57 = vld [vmem:[%s6669_s5 + $0x694] ss:$20 sps:$4 sm:$0xff]   ;;  %v6402_v34 = vld [vmem:[%s6669_s5 + $0x41c] ss:$20 sps:$4 sm:$0xff]  }
 0x190   : > { %v7300_v7 = vpop.f32.mrf.mxu0  ;;  %v3281_v30 = vpop.f32.mrf.mxu1 }
 0x191   : > { %v7305_v61 = vadd.f32 %v3281_v30, %v2737_v6  ;;  %v7319_v30 = vpop.permute.xlu0 %4604 }
 0x192   : > { %v2866_v54 = vpop.f32.mrf.mxu0  ;;  %v3283_v32 = vpop.f32.mrf.mxu1  ;;  %5089 = vperm.xlu1 %6108, %v4459_v9   ;;  %5084 = vperm.xlu0 %6107, %v4458_v13   ;;  %8882 = vst [vmem:[#allocation56_spill] sm:$0xff] %v7319_v30 }
 0x193   : > { %v7317_v32 = vpop.permute.xlu1 %4609  ;;  %v6397_v54 = vld [vmem:[%s6669_s5 + $0x690] ss:$20 sps:$4 sm:$0xff]  }
 0x194   : > { %v7311_v59 = vpop.f32.mrf.mxu0  ;;  %3060 = vmatmul.mubr.bf16.gmra.mxu0 %v6391_v39  ;;  %v3286_v11 = vpop.f32.mrf.mxu1  ;;  %3477 = vmatmul.mubr.bf16.gmra.mxu1 %v6394_v40  ;;  %8881 = vst [vmem:[#allocation55_spill] sm:$0xff] %v7317_v32  ;;  %v2745_v39 = vadd.f32 %v7269_v0, %v6995_v28 }
 0x195   : > { %v7315_v6 = vadd.f32 %v3286_v11, %v2742_v1  ;;  %3067 = vmatprep.mubr.bf16.mxu0 %v6399_v57  ;;  %3484 = vmatprep.mubr.bf16.mxu1 %v6402_v34  ;;  %v6400_v11 = vld [vmem:[%s6669_s5 + $0x418] ss:$20 sps:$4 sm:$0xff]   ;;  %v6405_v57 = vld [vmem:[%s6669_s5 + $0x6bc] ss:$20 sps:$4 sm:$0xff]  }
 0x196   : > { %v2871_v21 = vpop.f32.mrf.mxu0  ;;  %v3288_v9 = vpop.f32.mrf.mxu1  ;;  %5099 = vperm.xlu1 %6108, %v4461_v35   ;;  %5094 = vperm.xlu0 %6107, %v4460_v63   ;;  %v6408_v34 = vld [vmem:[%s6669_s5 + $0x444] ss:$20 sps:$4 sm:$0xff]   ;;  %v2750_v35 = vadd.f32 %v7269_v0, %v7004_v37 }
 0x197   : > { %v6403_v37 = vld [vmem:[%s6669_s5 + $0x6b8] ss:$20 sps:$4 sm:$0xff]  }
 0x198   : > { %v7323_v40 = vpop.f32.mrf.mxu0  ;;  %v3289_v13 = vpop.f32.mrf.mxu1 }
 0x199   : > { %v7327_v1 = vadd.f32 %v3289_v13, %v2745_v39 }
 0x19a   : > { %v2874_v32 = vpop.f32.mrf.mxu0  ;;  %v3291_v30 = vpop.f32.mrf.mxu1 }
 0x19b   : > { %v2753_v32 = vadd.f32 %v7269_v0, %v7011_v44 }
 0x19c   : > { %v7333_v63 = vpop.f32.mrf.mxu0  ;;  %3068 = vmatmul.mubr.bf16.gmra.mxu0 %v6397_v54  ;;  %v3294_v28 = vpop.f32.mrf.mxu1  ;;  %3485 = vmatmul.mubr.bf16.gmra.mxu1 %v6400_v11  ;;  %v6414_v54 = vld [vmem:[%s6669_s5 + $0x46c] ss:$20 sps:$4 sm:$0xff]  }
 0x19d   : > { %v7335_v21 = vadd.f32 %v3294_v28, %v2750_v35  ;;  %3075 = vmatprep.mubr.bf16.mxu0 %v6405_v57  ;;  %3492 = vmatprep.mubr.bf16.mxu1 %v6408_v34  ;;  %v2758_v57 = vadd.f32 %v7269_v0, %v7020_v53  ;;  %v6409_v53 = vld [vmem:[%s6669_s5 + $0x6e0] ss:$20 sps:$4 sm:$0xff]  }
 0x19e   : > { %v2879_v9 = vpop.f32.mrf.mxu0  ;;  %v3296_v39 = vpop.f32.mrf.mxu1 }
 0x1a0   : > { %v7339_v30 = vpop.f32.mrf.mxu0  ;;  %v3297_v13 = vpop.f32.mrf.mxu1 }
 0x1a1   : > { %v7343_v47 = vadd.f32 %v3297_v13, %v2753_v32  ;;  %v2761_v32 = vadd.f32 %v7269_v0, %v7027_v60 }
 0x1a2   : > { %v2882_v11 = vpop.f32.mrf.mxu0  ;;  %v3299_v35 = vpop.f32.mrf.mxu1 }
 0x1a3   : > { %8883 = vst [vmem:[#allocation57_spill] sm:$0xff] %v7343_v47  ;;  %v6412_v35 = vld [vmem:[%s6669_s5 + $0x468] ss:$20 sps:$4 sm:$0xff]  }
 0x1a4   : > { %v7349_v34 = vpop.f32.mrf.mxu0  ;;  %3076 = vmatmul.mubr.bf16.gmra.mxu0 %v6403_v37  ;;  %v3302_v44 = vpop.f32.mrf.mxu1  ;;  %3493 = vmatmul.mubr.bf16.gmra.mxu1 %v6406_v18  ;;  %v6420_v37 = vld [vmem:[%s6669_s5 + $0x494] ss:$20 sps:$4 sm:$0xff]  }
 0x1a5   : > { %v7351_v28 = vadd.f32 %v3302_v44, %v2758_v57  ;;  %3083 = vmatprep.mubr.bf16.mxu0 %v6411_v2  ;;  %3500 = vmatprep.mubr.bf16.mxu1 %v6414_v54  ;;  %v2766_v2 = vadd.f32 %v7269_v0, %v7036_v8  ;;  %v6415_v8 = vld [vmem:[%s6669_s5 + $0x708] ss:$20 sps:$4 sm:$0xff]  }
 0x1a6   : > { %v2887_v9 = vpop.f32.mrf.mxu0  ;;  %v3304_v39 = vpop.f32.mrf.mxu1 }
 0x1a8   : > { %v7355_v13 = vpop.f32.mrf.mxu0  ;;  %v3305_v11 = vpop.f32.mrf.mxu1 }
 0x1a9   : > { %v7359_v56 = vadd.f32 %v3305_v11, %v2761_v32  ;;  %v2769_v32 = vadd.f32 %v7269_v0, %v7043_v16 }
 0x1aa   : > { %v2890_v18 = vpop.f32.mrf.mxu0  ;;  %v3307_v57 = vpop.f32.mrf.mxu1 }
 0x1ab   : > { %v6418_v57 = vld [vmem:[%s6669_s5 + $0x490] ss:$20 sps:$4 sm:$0xff]  }
 0x1ac   : > { %v7365_v54 = vpop.f32.mrf.mxu0  ;;  %3084 = vmatmul.mubr.bf16.gmra.mxu0 %v6409_v53  ;;  %v3310_v60 = vpop.f32.mrf.mxu1  ;;  %3501 = vmatmul.mubr.bf16.gmra.mxu1 %v6412_v35  ;;  %v6426_v53 = vld [vmem:[%s6669_s5 + $0x4bc] ss:$20 sps:$4 sm:$0xff]  }
 0x1ad   : > { %v7367_v44 = vadd.f32 %v3310_v60, %v2766_v2  ;;  %3091 = vmatprep.mubr.bf16.mxu0 %v6417_v3  ;;  %3508 = vmatprep.mubr.bf16.mxu1 %v6420_v37  ;;  %v2774_v3 = vadd.f32 %v7269_v0, %v7052_v27  ;;  %v6421_v27 = vld [vmem:[%s6669_s5 + $0x730] ss:$20 sps:$4 sm:$0xff]  }
 0x1ae   : > { %v2895_v9 = vpop.f32.mrf.mxu0  ;;  %v3312_v39 = vpop.f32.mrf.mxu1 }
 0x1af   : > { %8884 = vst [vmem:[#allocation58_spill] sm:$0xff] %v7367_v44  ;;  %v6429_v44 = vld [vmem:[%s6669_s5 + $0x75c] ss:$20 sps:$4 sm:$0xff]  }
 0x1b0   : > { %v7371_v11 = vpop.f32.mrf.mxu0  ;;  %v3313_v18 = vpop.f32.mrf.mxu1 }
 0x1b1   : > { %v7375_v41 = vadd.f32 %v3313_v18, %v2769_v32  ;;  %v2777_v32 = vadd.f32 %v7269_v0, %v7059_v36 }
 0x1b2   : > { %v2898_v35 = vpop.f32.mrf.mxu0  ;;  %v3315_v2 = vpop.f32.mrf.mxu1 }
 0x1b3   : > { %8885 = vst [vmem:[#allocation59_spill] sm:$0xff] %v7375_v41  ;;  %v6424_v2 = vld [vmem:[%s6669_s5 + $0x4b8] ss:$20 sps:$4 sm:$0xff]  }
 0x1b4   : > { %v7381_v37 = vpop.f32.mrf.mxu0  ;;  %3092 = vmatmul.mubr.bf16.gmra.mxu0 %v6415_v8  ;;  %v3318_v16 = vpop.f32.mrf.mxu1  ;;  %3509 = vmatmul.mubr.bf16.gmra.mxu1 %v6418_v57  ;;  %v6432_v8 = vld [vmem:[%s6669_s5 + $0x4e4] ss:$20 sps:$4 sm:$0xff]  }
 0x1b5   : > { %v7383_v60 = vadd.f32 %v3318_v16, %v2774_v3  ;;  %3099 = vmatprep.mubr.bf16.mxu0 %v6423_v51  ;;  %3516 = vmatprep.mubr.bf16.mxu1 %v6426_v53  ;;  %v2782_v51 = vadd.f32 %v7269_v0, %v7068_v49  ;;  %v6427_v49 = vld [vmem:[%s6669_s5 + $0x758] ss:$20 sps:$4 sm:$0xff]  }
 0x1b6   : > { %v2903_v9 = vpop.f32.mrf.mxu0  ;;  %v3320_v39 = vpop.f32.mrf.mxu1 }
 0x1b7   : > { %8886 = vst [vmem:[#allocation60_spill] sm:$0xff] %v7383_v60  ;;  %v6435_v60 = vld [vmem:[%s6669_s5 + $0x50c] ss:$20 sps:$4 sm:$0xff]  }
 0x1b8   : > { %v7387_v18 = vpop.f32.mrf.mxu0  ;;  %v3321_v35 = vpop.f32.mrf.mxu1 }
 0x1b9   : > { %v7391_v41 = vadd.f32 %v3321_v35, %v2777_v32  ;;  %v2785_v32 = vadd.f32 %v7269_v0, %v7075_v58 }
 0x1ba   : > { %v2906_v57 = vpop.f32.mrf.mxu0  ;;  %v3323_v3 = vpop.f32.mrf.mxu1 }
 0x1bb   : > { %8887 = vst [vmem:[#allocation61_spill] sm:$0xff] %v7391_v41  ;;  %v6430_v3 = vld [vmem:[%s6669_s5 + $0x4e0] ss:$20 sps:$4 sm:$0xff]  }
 0x1bc   : > { %v7397_v53 = vpop.f32.mrf.mxu0  ;;  %3100 = vmatmul.mubr.bf16.gmra.mxu0 %v6421_v27  ;;  %v3326_v36 = vpop.f32.mrf.mxu1  ;;  %3517 = vmatmul.mubr.bf16.gmra.mxu1 %v6424_v2  ;;  %v6436_v27 = vld [vmem:[%s6669_s5 + $0x10] ss:$20 sps:$4 sm:$0xff]  }
 0x1bd   : > { %v7399_v16 = vadd.f32 %v3326_v36, %v2782_v51  ;;  %3107 = vmatprep.mubr.bf16.mxu0 %v6429_v44  ;;  %3524 = vmatprep.mubr.bf16.mxu1 %v6432_v8  ;;  %v2790_v44 = vadd.f32 %v7269_v0, %v7088_v12 }
 0x1be   : > { %v2911_v9 = vpop.f32.mrf.mxu0  ;;  %v3328_v39 = vpop.f32.mrf.mxu1 }
 0x1bf   : > { %8888 = vst [vmem:[#allocation62_spill] sm:$0xff] %v7399_v16  ;;  %v2793_v9 = vadd.f32 %v7269_v0, %v7099_v26  ;;  %v6446_v16 = vld [vmem:[%s6669_s5 + $0xb0] ss:$20 sps:$4 sm:$0xff]  }
 0x1c0   : > { %v7403_v35 = vpop.f32.mrf.mxu0  ;;  %v3329_v57 = vpop.f32.mrf.mxu1 }
 0x1c1   : > { %v7407_v41 = vadd.f32 %v3329_v57, %v2785_v32  ;;  %v6433_v32 = vld [vmem:[%s6669_s5 + $0x508] ss:$20 sps:$4 sm:$0xff]   ;;  %v6437_v57 = vld [vmem:[%s6669_s5 + $0x38] ss:$20 sps:$4 sm:$0xff]  }
 0x1c2   : > { %v2914_v47 = vpop.f32.mrf.mxu0  ;;  %v3331_v2 = vpop.f32.mrf.mxu1 }
 0x1c3   : > { %8889 = vst [vmem:[#allocation63_spill] sm:$0xff] %v7407_v41  ;;  %v6441_v41 = vld [vmem:[%s6669_s5 + $0x60] ss:$20 sps:$4 sm:$0xff]  }
 0x1c4   : > { %v7413_v8 = vpop.f32.mrf.mxu0  ;;  %3108 = vmatmul.mubr.bf16.gmra.mxu0 %v6427_v49  ;;  %v3334_v58 = vpop.f32.mrf.mxu1  ;;  %3525 = vmatmul.mubr.bf16.gmra.mxu1 %v6430_v3  ;;  %v6440_v49 = vld [vmem:[%s6669_s5 + $0x534] ss:$20 sps:$4 sm:$0xff]  }
 0x1c5   : > { %v7415_v51 = vadd.f32 %v3334_v58, %v2790_v44  ;;  %3532 = vmatprep.mubr.bf16.mxu1 %v6435_v60  ;;  %5937 = vmatprep.mubr.msk.bf16.mxu0 %vm2506_vm0, %v6436_v27  ;;  %v2798_v27 = vadd.f32 %v7269_v0, %v7108_v43 }
 0x1c6   : > { %v2919_v47 = vpop.f32.mrf.mxu0  ;;  %v3336_v36 = vpop.f32.mrf.mxu1 }
 0x1c8   : > { %v7420_v39 = vpop.f32.mrf.mxu0  ;;  %v3337_v12 = vpop.f32.mrf.mxu1 }
 0x1c9   : > { %v7424_v2 = vadd.f32 %v3337_v12, %v2793_v9  ;;  %v2801_v9 = vadd.f32 %v7269_v0, %v7119_v62 }
 0x1ca   : > { %v2922_v3 = vpop.f32.mrf.mxu0  ;;  %v3339_v60 = vpop.f32.mrf.mxu1 }
 0x1cb   : > { %8890 = vst [vmem:[#allocation64_spill] sm:$0xff] %v7424_v2  ;;  %v6438_v3 = vld [vmem:[%s6669_s5 + $0x530] ss:$20 sps:$4 sm:$0xff]   ;;  %v6442_v60 = vld [vmem:[%s6669_s5 + $0x88] ss:$20 sps:$4 sm:$0xff]  }
 0x1cc   : > { %v7430_v44 = vpop.f32.mrf.mxu0  ;;  %v3342_v26 = vpop.f32.mrf.mxu1  ;;  %3533 = vmatmul.mubr.bf16.gmra.mxu1 %v6433_v32  ;;  %5938 = vmatmul.mubr.msk.bf16.vlgmr.msra.gmra.mxu0 %vm2506_vm0, %v6437_v57  ;;  %v6445_v32 = vld [vmem:[%s6669_s5 + $0x55c] ss:$20 sps:$4 sm:$0xff]  }
 0x1cd   : > { %v7433_v58 = vadd.f32 %v3342_v26, %v2798_v27  ;;  %3540 = vmatprep.mubr.bf16.mxu1 %v6440_v49  ;;  %5941 = vmatprep.mubr.msk.bf16.mxu0 %vm2506_vm0, %v6441_v41  ;;  %v2806_v41 = vadd.f32 %v7269_v0, %v7132_v23 }
 0x1ce   : > { %v2927_v47 = vpop.f32.mrf.mxu0  ;;  %v3344_v36 = vpop.f32.mrf.mxu1 }
 0x1cf   : > { %8891 = vst [vmem:[#allocation65_spill] sm:$0xff] %v7433_v58  ;;  %v6451_v58 = vld [vmem:[%s6669_s5 + $0x100] ss:$20 sps:$4 sm:$0xff]  }
 0x1d0   : > { %v7438_v12 = vpop.f32.mrf.mxu0  ;;  %v3345_v43 = vpop.f32.mrf.mxu1 }
 0x1d1   : > { %v7442_v2 = vadd.f32 %v3345_v43, %v2801_v9  ;;  %v2809_v9 = vadd.f32 %v7269_v0, %v7139_v42 }
 0x1d2   : > { %v2930_v57 = vpop.f32.mrf.mxu0  ;;  %v3347_v49 = vpop.f32.mrf.mxu1 }
 0x1d3   : > { %8892 = vst [vmem:[#allocation66_spill] sm:$0xff] %v7442_v2  ;;  %v6443_v57 = vld [vmem:[%s6669_s5 + $0x558] ss:$20 sps:$4 sm:$0xff]  }
 0x1d4   : > { %v7448_v27 = vpop.f32.mrf.mxu0  ;;  %v3350_v62 = vpop.f32.mrf.mxu1  ;;  %3541 = vmatmul.mubr.bf16.gmra.mxu1 %v6438_v3  ;;  %5942 = vmatmul.mubr.msk.bf16.gmra.mxu0 %vm2506_vm0, %v6442_v60  ;;  %v6447_v49 = vld [vmem:[%s6669_s5 + $0xd8] ss:$20 sps:$4 sm:$0xff]  }
 0x1d5   : > { %v7451_v26 = vadd.f32 %v3350_v62, %v2806_v41  ;;  %3548 = vmatprep.mubr.bf16.mxu1 %v6445_v32  ;;  %5945 = vmatprep.mubr.msk.bf16.mxu0 %vm2506_vm0, %v6446_v16  ;;  %v6450_v3 = vld [vmem:[%s6669_s5 + $0x584] ss:$20 sps:$4 sm:$0xff]   ;;  %v2814_v16 = vadd.f32 %v7269_v0, %v7152_v15 }
 0x1d6   : > { %v2935_v47 = vpop.f32.mrf.mxu0  ;;  %v3352_v36 = vpop.f32.mrf.mxu1 }
 0x1d7   : > { %8893 = vst [vmem:[#allocation67_spill] sm:$0xff] %v7451_v26  ;;  %v6456_v26 = vld [vmem:[%s6669_s5 + $0x150] ss:$20 sps:$4 sm:$0xff]  }
 0x1d8   : > { %v7456_v43 = vpop.f32.mrf.mxu0  ;;  %v3353_v23 = vpop.f32.mrf.mxu1 }
 0x1d9   : > { %v7460_v2 = vadd.f32 %v3353_v23, %v2809_v9  ;;  %v2817_v9 = vadd.f32 %v7269_v0, %v7163_v10 }
 0x1da   : > { %v2938_v60 = vpop.f32.mrf.mxu0  ;;  %v3355_v32 = vpop.f32.mrf.mxu1 }
 0x1db   : > { %8894 = vst [vmem:[#allocation68_spill] sm:$0xff] %v7460_v2  ;;  %v6448_v60 = vld [vmem:[%s6669_s5 + $0x580] ss:$20 sps:$4 sm:$0xff]   ;;  %v6452_v32 = vld [vmem:[%s6669_s5 + $0x128] ss:$20 sps:$4 sm:$0xff]  }
 0x1dc   : > { %v7466_v41 = vpop.f32.mrf.mxu0  ;;  %v3358_v42 = vpop.f32.mrf.mxu1  ;;  %3549 = vmatmul.mubr.bf16.gmra.mxu1 %v6443_v57  ;;  %5946 = vmatmul.mubr.msk.bf16.gmra.mxu0 %vm2506_vm0, %v6447_v49  ;;  %v6455_v57 = vld [vmem:[%s6669_s5 + $0x5ac] ss:$20 sps:$4 sm:$0xff]  }
 0x1dd   : > { %v7469_v62 = vadd.f32 %v3358_v42, %v2814_v16  ;;  %3556 = vmatprep.mubr.bf16.mxu1 %v6450_v3  ;;  %5949 = vmatprep.mubr.msk.bf16.mxu0 %vm2506_vm0, %v6451_v58  ;;  %v2822_v58 = vadd.f32 %v7269_v0, %v7172_v33 }
 0x1de   : > { %v2943_v47 = vpop.f32.mrf.mxu0  ;;  %v3360_v36 = vpop.f32.mrf.mxu1 }
 0x1df   : > { %8895 = vst [vmem:[#allocation69_spill] sm:$0xff] %v7469_v62  ;;  %v6461_v62 = vld [vmem:[%s6669_s5 + $0x1a0] ss:$20 sps:$4 sm:$0xff]  }
 0x1e0   : > { %v7474_v23 = vpop.f32.mrf.mxu0  ;;  %v3361_v15 = vpop.f32.mrf.mxu1 }
 0x1e1   : > { %v7478_v2 = vadd.f32 %v3361_v15, %v2817_v9  ;;  %v2825_v9 = vadd.f32 %v7269_v0, %v7183_v46 }
 0x1e2   : > { %v2946_v49 = vpop.f32.mrf.mxu0  ;;  %v3363_v3 = vpop.f32.mrf.mxu1 }
 0x1e3   : > { %8896 = vst [vmem:[#allocation70_spill] sm:$0xff] %v7478_v2  ;;  %v6453_v49 = vld [vmem:[%s6669_s5 + $0x5a8] ss:$20 sps:$4 sm:$0xff]   ;;  %v6457_v3 = vld [vmem:[%s6669_s5 + $0x178] ss:$20 sps:$4 sm:$0xff]  }
 0x1e4   : > { %v7484_v16 = vpop.f32.mrf.mxu0  ;;  %v3366_v10 = vpop.f32.mrf.mxu1  ;;  %3557 = vmatmul.mubr.bf16.gmra.mxu1 %v6448_v60  ;;  %5950 = vmatmul.mubr.msk.bf16.gmra.mxu0 %vm2506_vm0, %v6452_v32  ;;  %v6460_v60 = vld [vmem:[%s6669_s5 + $0x5d4] ss:$20 sps:$4 sm:$0xff]  }
 0x1e5   : > { %v7487_v42 = vadd.f32 %v3366_v10, %v2822_v58  ;;  %3564 = vmatprep.mubr.bf16.mxu1 %v6455_v57  ;;  %5953 = vmatprep.mubr.msk.bf16.mxu0 %vm2506_vm0, %v6456_v26  ;;  %v2830_v26 = vadd.f32 %v7269_v0, %v7196_v48 }
 0x1e6   : > { %v2951_v47 = vpop.f32.mrf.mxu0  ;;  %v3368_v36 = vpop.f32.mrf.mxu1 }
 0x1e7   : > { %8897 = vst [vmem:[#allocation71_spill] sm:$0xff] %v7487_v42  ;;  %v6466_v42 = vld [vmem:[%s6669_s5 + $0x1f0] ss:$20 sps:$4 sm:$0xff]  }
 0x1e8   : > { %v7492_v15 = vpop.f32.mrf.mxu0  ;;  %v3369_v33 = vpop.f32.mrf.mxu1 }
 0x1e9   : > { %v7496_v2 = vadd.f32 %v3369_v33, %v2825_v9  ;;  %v2833_v9 = vadd.f32 %v7269_v0, %v7203_v14 }
 0x1ea   : > { %v2954_v32 = vpop.f32.mrf.mxu0  ;;  %v3371_v57 = vpop.f32.mrf.mxu1 }
 0x1eb   : > { %8898 = vst [vmem:[#allocation72_spill] sm:$0xff] %v7496_v2  ;;  %v6458_v32 = vld [vmem:[%s6669_s5 + $0x5d0] ss:$20 sps:$4 sm:$0xff]   ;;  %v6462_v57 = vld [vmem:[%s6669_s5 + $0x1c8] ss:$20 sps:$4 sm:$0xff]  }
 0x1ec   : > { %v7502_v58 = vpop.f32.mrf.mxu0  ;;  %v3374_v46 = vpop.f32.mrf.mxu1  ;;  %3565 = vmatmul.mubr.bf16.gmra.mxu1 %v6453_v49  ;;  %5954 = vmatmul.mubr.msk.bf16.gmra.mxu0 %vm2506_vm0, %v6457_v3  ;;  %v6465_v49 = vld [vmem:[%s6669_s5 + $0x5fc] ss:$20 sps:$4 sm:$0xff]  }
 0x1ed   : > { %v7505_v10 = vadd.f32 %v3374_v46, %v2830_v26  ;;  %3572 = vmatprep.mubr.bf16.mxu1 %v6460_v60  ;;  %5957 = vmatprep.mubr.msk.bf16.mxu0 %vm2506_vm0, %v6461_v62  ;;  %v2838_v62 = vadd.f32 %v7269_v0, %v7216_v50 }
 0x1ee   : > { %v2959_v47 = vpop.f32.mrf.mxu0  ;;  %v3376_v36 = vpop.f32.mrf.mxu1 }
 0x1ef   : > { %8899 = vst [vmem:[#allocation73_spill] sm:$0xff] %v7505_v10  ;;  %v6471_v10 = vld [vmem:[%s6669_s5 + $0x240] ss:$20 sps:$4 sm:$0xff]  }
 0x1f0   : > { %v7510_v33 = vpop.f32.mrf.mxu0  ;;  %v3377_v48 = vpop.f32.mrf.mxu1 }
 0x1f1   : > { %v7514_v2 = vadd.f32 %v3377_v48, %v2833_v9  ;;  %v2841_v9 = vadd.f32 %v7269_v0, %v7227_v31 }
 0x1f2   : > { %v2962_v3 = vpop.f32.mrf.mxu0  ;;  %v3379_v60 = vpop.f32.mrf.mxu1 }
 0x1f3   : > { %8900 = vst [vmem:[#allocation74_spill] sm:$0xff] %v7514_v2  ;;  %v6463_v3 = vld [vmem:[%s6669_s5 + $0x5f8] ss:$20 sps:$4 sm:$0xff]  }
 0x1f4   : > { %v7520_v26 = vpop.f32.mrf.mxu0  ;;  %v3382_v14 = vpop.f32.mrf.mxu1  ;;  %3573 = vmatmul.mubr.bf16.gmra.mxu1 %v6458_v32  ;;  %5958 = vmatmul.mubr.msk.bf16.gmra.mxu0 %vm2506_vm0, %v6462_v57  ;;  %v6467_v60 = vld [vmem:[%s6669_s5 + $0x218] ss:$20 sps:$4 sm:$0xff]  }
 0x1f5   : > { %v7523_v46 = vadd.f32 %v3382_v14, %v2838_v62  ;;  %3580 = vmatprep.mubr.bf16.mxu1 %v6465_v49  ;;  %5961 = vmatprep.mubr.msk.bf16.mxu0 %vm2506_vm0, %v6466_v42  ;;  %v6470_v32 = vld [vmem:[%s6669_s5 + $0x624] ss:$20 sps:$4 sm:$0xff]   ;;  %v2846_v42 = vadd.f32 %v7269_v0, %v7236_v17 }
 0x1f6   : > { %v2967_v47 = vpop.f32.mrf.mxu0  ;;  %v3384_v36 = vpop.f32.mrf.mxu1 }
 0x1f7   : > { %8901 = vst [vmem:[#allocation75_spill] sm:$0xff] %v7523_v46  ;;  %v6476_v46 = vld [vmem:[%s6669_s5 + $0x290] ss:$20 sps:$4 sm:$0xff]  }
 0x1f8   : > { %v7528_v48 = vpop.f32.mrf.mxu0  ;;  %v3385_v50 = vpop.f32.mrf.mxu1 }
 0x1f9   : > { %v7532_v2 = vadd.f32 %v3385_v50, %v2841_v9  ;;  %v2849_v9 = vadd.f32 %v7269_v0, %v7247_v29 }
 0x1fa   : > { %v2970_v57 = vpop.f32.mrf.mxu0  ;;  %v3387_v49 = vpop.f32.mrf.mxu1 }
 0x1fb   : > { %8902 = vst [vmem:[#allocation76_spill] sm:$0xff] %v7532_v2  ;;  %v6468_v57 = vld [vmem:[%s6669_s5 + $0x620] ss:$20 sps:$4 sm:$0xff]   ;;  %v6472_v49 = vld [vmem:[%s6669_s5 + $0x268] ss:$20 sps:$4 sm:$0xff]  }
 0x1fc   : > { %v7538_v62 = vpop.f32.mrf.mxu0  ;;  %v3390_v31 = vpop.f32.mrf.mxu1  ;;  %3581 = vmatmul.mubr.bf16.gmra.mxu1 %v6463_v3  ;;  %5962 = vmatmul.mubr.msk.bf16.gmra.mxu0 %vm2506_vm0, %v6467_v60  ;;  %v6475_v3 = vld [vmem:[%s6669_s5 + $0x64c] ss:$20 sps:$4 sm:$0xff]  }
 0x1fd   : > { %v7541_v14 = vadd.f32 %v3390_v31, %v2846_v42  ;;  %3588 = vmatprep.mubr.bf16.mxu1 %v6470_v32  ;;  %5965 = vmatprep.mubr.msk.bf16.mxu0 %vm2506_vm0, %v6471_v10  ;;  %v2854_v10 = vadd.f32 %v7269_v0, %v7260_v55 }
 0x1fe   : > { %v2975_v47 = vpop.f32.mrf.mxu0  ;;  %v3392_v36 = vpop.f32.mrf.mxu1 }
 0x1ff   : > { %8903 = vst [vmem:[#allocation77_spill] sm:$0xff] %v7541_v14  ;;  %v6481_v14 = vld [vmem:[%s6669_s5 + $0x2e0] ss:$20 sps:$4 sm:$0xff]  }
 0x200   : > { %v7546_v50 = vpop.f32.mrf.mxu0  ;;  %v3393_v17 = vpop.f32.mrf.mxu1 }
 0x201   : > { %v7550_v2 = vadd.f32 %v3393_v17, %v2849_v9  ;;  %v2857_v9 = vadd.f32 %v7269_v0, %v7272_v38 }
 0x202   : > { %v2978_v60 = vpop.f32.mrf.mxu0  ;;  %v3395_v32 = vpop.f32.mrf.mxu1 }
 0x203   : > { %8904 = vst [vmem:[#allocation78_spill] sm:$0xff] %v7550_v2  ;;  %v6473_v60 = vld [vmem:[%s6669_s5 + $0x648] ss:$20 sps:$4 sm:$0xff]   ;;  %v6477_v32 = vld [vmem:[%s6669_s5 + $0x2b8] ss:$20 sps:$4 sm:$0xff]  }
 0x204   : > { %v7556_v42 = vpop.f32.mrf.mxu0  ;;  %v3398_v29 = vpop.f32.mrf.mxu1  ;;  %3589 = vmatmul.mubr.bf16.gmra.mxu1 %v6468_v57  ;;  %5966 = vmatmul.mubr.msk.bf16.gmra.mxu0 %vm2506_vm0, %v6472_v49  ;;  %v6480_v57 = vld [vmem:[%s6669_s5 + $0x674] ss:$20 sps:$4 sm:$0xff]  }
 0x205   : > { %v7559_v31 = vadd.f32 %v3398_v29, %v2854_v10  ;;  %3596 = vmatprep.mubr.bf16.mxu1 %v6475_v3  ;;  %5969 = vmatprep.mubr.msk.bf16.mxu0 %vm2506_vm0, %v6476_v46  ;;  %v2862_v46 = vadd.f32 %v7269_v0, %v7287_v45 }
 0x206   : > { %v2983_v47 = vpop.f32.mrf.mxu0  ;;  %v3400_v36 = vpop.f32.mrf.mxu1 }
 0x207   : > { %8905 = vst [vmem:[#allocation79_spill] sm:$0xff] %v7559_v31  ;;  %v6486_v31 = vld [vmem:[%s6669_s5 + $0x330] ss:$20 sps:$4 sm:$0xff]  }
 0x208   : > { %v7564_v17 = vpop.f32.mrf.mxu0  ;;  %v3401_v55 = vpop.f32.mrf.mxu1 }
 0x209   : > { %v7568_v2 = vadd.f32 %v3401_v55, %v2857_v9  ;;  %v2865_v9 = vadd.f32 %v7269_v0, %v7300_v7 }
 0x20a   : > { %v2986_v49 = vpop.f32.mrf.mxu0  ;;  %v3403_v3 = vpop.f32.mrf.mxu1 }
 0x20b   : > { %8906 = vst [vmem:[#allocation80_spill] sm:$0xff] %v7568_v2  ;;  %v6478_v49 = vld [vmem:[%s6669_s5 + $0x670] ss:$20 sps:$4 sm:$0xff]   ;;  %v6482_v3 = vld [vmem:[%s6669_s5 + $0x308] ss:$20 sps:$4 sm:$0xff]  }
 0x20c   : > { %v7574_v10 = vpop.f32.mrf.mxu0  ;;  %v3406_v38 = vpop.f32.mrf.mxu1  ;;  %3597 = vmatmul.mubr.bf16.gmra.mxu1 %v6473_v60  ;;  %5970 = vmatmul.mubr.msk.bf16.gmra.mxu0 %vm2506_vm0, %v6477_v32  ;;  %v6485_v60 = vld [vmem:[%s6669_s5 + $0x69c] ss:$20 sps:$4 sm:$0xff]  }
 0x20d   : > { %v7577_v29 = vadd.f32 %v3406_v38, %v2862_v46  ;;  %3604 = vmatprep.mubr.bf16.mxu1 %v6480_v57  ;;  %5973 = vmatprep.mubr.msk.bf16.mxu0 %vm2506_vm0, %v6481_v14  ;;  %v2870_v14 = vadd.f32 %v7269_v0, %v7311_v59 }
 0x20e   : > { %v2991_v47 = vpop.f32.mrf.mxu0  ;;  %v3408_v36 = vpop.f32.mrf.mxu1 }
 0x20f   : > { %8907 = vst [vmem:[#allocation81_spill] sm:$0xff] %v7577_v29  ;;  %v6491_v29 = vld [vmem:[%s6669_s5 + $0x380] ss:$20 sps:$4 sm:$0xff]  }
 0x210   : > { %v7582_v55 = vpop.f32.mrf.mxu0  ;;  %v3409_v45 = vpop.f32.mrf.mxu1 }
 0x211   : > { %v7586_v2 = vadd.f32 %v3409_v45, %v2865_v9  ;;  %v2873_v9 = vadd.f32 %v7269_v0, %v7323_v40 }
 0x212   : > { %v2994_v32 = vpop.f32.mrf.mxu0  ;;  %v3411_v57 = vpop.f32.mrf.mxu1 }
 0x213   : > { %8908 = vst [vmem:[#allocation82_spill] sm:$0xff] %v7586_v2  ;;  %v6483_v32 = vld [vmem:[%s6669_s5 + $0x698] ss:$20 sps:$4 sm:$0xff]  }
 0x214   : > { %v7592_v46 = vpop.f32.mrf.mxu0  ;;  %v3414_v7 = vpop.f32.mrf.mxu1  ;;  %3605 = vmatmul.mubr.bf16.gmra.mxu1 %v6478_v49  ;;  %5974 = vmatmul.mubr.msk.bf16.gmra.mxu0 %vm2506_vm0, %v6482_v3  ;;  %v6487_v57 = vld [vmem:[%s6669_s5 + $0x358] ss:$20 sps:$4 sm:$0xff]  }
 0x215   : > { %v7595_v38 = vadd.f32 %v3414_v7, %v2870_v14  ;;  %3612 = vmatprep.mubr.bf16.mxu1 %v6485_v60  ;;  %5977 = vmatprep.mubr.msk.bf16.mxu0 %vm2506_vm0, %v6486_v31  ;;  %v6490_v49 = vld [vmem:[%s6669_s5 + $0x6c4] ss:$20 sps:$4 sm:$0xff]   ;;  %v2878_v31 = vadd.f32 %v7269_v0, %v7333_v63 }
 0x216   : > { %v2999_v47 = vpop.f32.mrf.mxu0  ;;  %v3416_v36 = vpop.f32.mrf.mxu1 }
 0x217   : > { %8909 = vst [vmem:[#allocation83_spill] sm:$0xff] %v7595_v38  ;;  %v6496_v38 = vld [vmem:[%s6669_s5 + $0x3d0] ss:$20 sps:$4 sm:$0xff]  }
 0x218   : > { %v7600_v45 = vpop.f32.mrf.mxu0  ;;  %v3417_v59 = vpop.f32.mrf.mxu1 }
 0x219   : > { %v7604_v2 = vadd.f32 %v3417_v59, %v2873_v9  ;;  %v2881_v9 = vadd.f32 %v7269_v0, %v7339_v30 }
 0x21a   : > { %v3002_v3 = vpop.f32.mrf.mxu0  ;;  %v3419_v60 = vpop.f32.mrf.mxu1 }
 0x21b   : > { %8910 = vst [vmem:[#allocation84_spill] sm:$0xff] %v7604_v2  ;;  %v6488_v3 = vld [vmem:[%s6669_s5 + $0x6c0] ss:$20 sps:$4 sm:$0xff]   ;;  %v6492_v60 = vld [vmem:[%s6669_s5 + $0x3a8] ss:$20 sps:$4 sm:$0xff]  }
 0x21c   : > { %v7610_v14 = vpop.f32.mrf.mxu0  ;;  %v3422_v40 = vpop.f32.mrf.mxu1  ;;  %3613 = vmatmul.mubr.bf16.gmra.mxu1 %v6483_v32  ;;  %5978 = vmatmul.mubr.msk.bf16.gmra.mxu0 %vm2506_vm0, %v6487_v57  ;;  %v6495_v32 = vld [vmem:[%s6669_s5 + $0x6ec] ss:$20 sps:$4 sm:$0xff]  }
 0x21d   : > { %v7613_v7 = vadd.f32 %v3422_v40, %v2878_v31  ;;  %3620 = vmatprep.mubr.bf16.mxu1 %v6490_v49  ;;  %5981 = vmatprep.mubr.msk.bf16.mxu0 %vm2506_vm0, %v6491_v29  ;;  %v2886_v29 = vadd.f32 %v7269_v0, %v7349_v34 }
 0x21e   : > { %v3007_v47 = vpop.f32.mrf.mxu0  ;;  %v3424_v36 = vpop.f32.mrf.mxu1 }
 0x21f   : > { %8911 = vst [vmem:[#allocation85_spill] sm:$0xff] %v7613_v7  ;;  %v6501_v7 = vld [vmem:[%s6669_s5 + $0x420] ss:$20 sps:$4 sm:$0xff]  }
 0x220   : > { %v7618_v59 = vpop.f32.mrf.mxu0  ;;  %v3425_v63 = vpop.f32.mrf.mxu1 }
 0x221   : > { %v7622_v2 = vadd.f32 %v3425_v63, %v2881_v9  ;;  %v2889_v9 = vadd.f32 %v7269_v0, %v7355_v13 }
 0x222   : > { %v3010_v57 = vpop.f32.mrf.mxu0  ;;  %v3427_v49 = vpop.f32.mrf.mxu1 }
 0x223   : > { %8912 = vst [vmem:[#allocation86_spill] sm:$0xff] %v7622_v2  ;;  %v6493_v57 = vld [vmem:[%s6669_s5 + $0x6e8] ss:$20 sps:$4 sm:$0xff]   ;;  %v6497_v49 = vld [vmem:[%s6669_s5 + $0x3f8] ss:$20 sps:$4 sm:$0xff]  }
 0x224   : > { %v7628_v31 = vpop.f32.mrf.mxu0  ;;  %v3430_v30 = vpop.f32.mrf.mxu1  ;;  %3621 = vmatmul.mubr.bf16.gmra.mxu1 %v6488_v3  ;;  %5982 = vmatmul.mubr.msk.bf16.gmra.mxu0 %vm2506_vm0, %v6492_v60  ;;  %v6500_v3 = vld [vmem:[%s6669_s5 + $0x714] ss:$20 sps:$4 sm:$0xff]  }
 0x225   : > { %v7631_v40 = vadd.f32 %v3430_v30, %v2886_v29  ;;  %3628 = vmatprep.mubr.bf16.mxu1 %v6495_v32  ;;  %5985 = vmatprep.mubr.msk.bf16.mxu0 %vm2506_vm0, %v6496_v38  ;;  %v2894_v38 = vadd.f32 %v7269_v0, %v7365_v54 }
 0x226   : > { %v3015_v47 = vpop.f32.mrf.mxu0  ;;  %v3432_v36 = vpop.f32.mrf.mxu1 }
 0x227   : > { %8913 = vst [vmem:[#allocation87_spill] sm:$0xff] %v7631_v40  ;;  %v6506_v40 = vld [vmem:[%s6669_s5 + $0x470] ss:$20 sps:$4 sm:$0xff]  }
 0x228   : > { %v7636_v63 = vpop.f32.mrf.mxu0  ;;  %v3433_v34 = vpop.f32.mrf.mxu1 }
 0x229   : > { %v7640_v2 = vadd.f32 %v3433_v34, %v2889_v9  ;;  %v2897_v9 = vadd.f32 %v7269_v0, %v7371_v11 }
 0x22a   : > { %v3018_v60 = vpop.f32.mrf.mxu0  ;;  %v3435_v32 = vpop.f32.mrf.mxu1 }
 0x22b   : > { %8914 = vst [vmem:[#allocation88_spill] sm:$0xff] %v7640_v2  ;;  %v6498_v60 = vld [vmem:[%s6669_s5 + $0x710] ss:$20 sps:$4 sm:$0xff]   ;;  %v6502_v32 = vld [vmem:[%s6669_s5 + $0x448] ss:$20 sps:$4 sm:$0xff]  }
 0x22c   : > { %v7646_v29 = vpop.f32.mrf.mxu0  ;;  %v3438_v13 = vpop.f32.mrf.mxu1  ;;  %3629 = vmatmul.mubr.bf16.gmra.mxu1 %v6493_v57  ;;  %5986 = vmatmul.mubr.msk.bf16.gmra.mxu0 %vm2506_vm0, %v6497_v49  ;;  %v6505_v57 = vld [vmem:[%s6669_s5 + $0x73c] ss:$20 sps:$4 sm:$0xff]  }
 0x22d   : > { %v7649_v30 = vadd.f32 %v3438_v13, %v2894_v38  ;;  %3636 = vmatprep.mubr.bf16.mxu1 %v6500_v3  ;;  %5989 = vmatprep.mubr.msk.bf16.mxu0 %vm2506_vm0, %v6501_v7  ;;  %v2902_v7 = vadd.f32 %v7269_v0, %v7381_v37 }
 0x22e   : > { %v3023_v47 = vpop.f32.mrf.mxu0  ;;  %v3440_v36 = vpop.f32.mrf.mxu1 }
 0x22f   : > { %8915 = vst [vmem:[#allocation89_spill] sm:$0xff] %v7649_v30  ;;  %v6511_v30 = vld [vmem:[%s6669_s5 + $0x4c0] ss:$20 sps:$4 sm:$0xff]  }
 0x230   : > { %v7654_v34 = vpop.f32.mrf.mxu0  ;;  %v3441_v54 = vpop.f32.mrf.mxu1 }
 0x231   : > { %v7658_v2 = vadd.f32 %v3441_v54, %v2897_v9  ;;  %v2905_v9 = vadd.f32 %v7269_v0, %v7387_v18 }
 0x232   : > { %v3026_v49 = vpop.f32.mrf.mxu0  ;;  %v3443_v3 = vpop.f32.mrf.mxu1 }
 0x233   : > { %8916 = vst [vmem:[#allocation90_spill] sm:$0xff] %v7658_v2  ;;  %v6503_v49 = vld [vmem:[%s6669_s5 + $0x738] ss:$20 sps:$4 sm:$0xff]  }
 0x234   : > { %v7664_v38 = vpop.f32.mrf.mxu0  ;;  %v3446_v11 = vpop.f32.mrf.mxu1  ;;  %3637 = vmatmul.mubr.bf16.gmra.mxu1 %v6498_v60  ;;  %5990 = vmatmul.mubr.msk.bf16.gmra.mxu0 %vm2506_vm0, %v6502_v32  ;;  %v6507_v3 = vld [vmem:[%s6669_s5 + $0x498] ss:$20 sps:$4 sm:$0xff]  }
 0x235   : > { %v7667_v13 = vadd.f32 %v3446_v11, %v2902_v7  ;;  %3644 = vmatprep.mubr.bf16.mxu1 %v6505_v57  ;;  %5993 = vmatprep.mubr.msk.bf16.mxu0 %vm2506_vm0, %v6506_v40  ;;  %v6510_v60 = vld [vmem:[%s6669_s5 + $0x764] ss:$20 sps:$4 sm:$0xff]   ;;  %v2910_v40 = vadd.f32 %v7269_v0, %v7397_v53 }
 0x236   : > { %v3031_v47 = vpop.f32.mrf.mxu0  ;;  %v3448_v36 = vpop.f32.mrf.mxu1 }
 0x237   : > { %8917 = vst [vmem:[#allocation91_spill] sm:$0xff] %v7667_v13  ;;  %v6516_v13 = vld [vmem:[%s6669_s5 + $0x510] ss:$20 sps:$4 sm:$0xff]  }
 0x238   : > { %v7672_v54 = vpop.f32.mrf.mxu0  ;;  %v3449_v37 = vpop.f32.mrf.mxu1 }
 0x239   : > { %v7676_v2 = vadd.f32 %v3449_v37, %v2905_v9  ;;  %v2913_v9 = vadd.f32 %v7269_v0, %v7403_v35 }
 0x23a   : > { %v3034_v32 = vpop.f32.mrf.mxu0  ;;  %v3451_v57 = vpop.f32.mrf.mxu1 }
 0x23b   : > { %8918 = vst [vmem:[#allocation92_spill] sm:$0xff] %v7676_v2  ;;  %v6508_v32 = vld [vmem:[%s6669_s5 + $0x760] ss:$20 sps:$4 sm:$0xff]   ;;  %v6512_v57 = vld [vmem:[%s6669_s5 + $0x4e8] ss:$20 sps:$4 sm:$0xff]  }
 0x23c   : > { %v7682_v7 = vpop.f32.mrf.mxu0  ;;  %v3454_v18 = vpop.f32.mrf.mxu1  ;;  %3645 = vmatmul.mubr.bf16.gmra.mxu1 %v6503_v49  ;;  %5994 = vmatmul.mubr.msk.bf16.gmra.mxu0 %vm2506_vm0, %v6507_v3  ;;  %v6515_v49 = vld [vmem:[%s6669_s5 + $0x78c] ss:$20 sps:$4 sm:$0xff]  }
 0x23d   : > { %v7685_v11 = vadd.f32 %v3454_v18, %v2910_v40  ;;  %3652 = vmatprep.mubr.bf16.mxu1 %v6510_v60  ;;  %5997 = vmatprep.mubr.msk.bf16.mxu0 %vm2506_vm0, %v6511_v30  ;;  %v2918_v30 = vadd.f32 %v7269_v0, %v7413_v8 }
 0x23e   : > { %v3039_v47 = vpop.f32.mrf.mxu0  ;;  %v3456_v36 = vpop.f32.mrf.mxu1 }
 0x23f   : > { %8919 = vst [vmem:[#allocation93_spill] sm:$0xff] %v7685_v11  ;;  %v6521_v11 = vld [vmem:[%s6669_s5 + $0x560] ss:$20 sps:$4 sm:$0xff]  }
 0x240   : > { %v7690_v37 = vpop.f32.mrf.mxu0  ;;  %v3457_v53 = vpop.f32.mrf.mxu1 }
 0x241   : > { %v7694_v2 = vadd.f32 %v3457_v53, %v2913_v9  ;;  %v2921_v9 = vadd.f32 %v7269_v0, %v7420_v39 }
 0x242   : > { %v3042_v3 = vpop.f32.mrf.mxu0  ;;  %v3459_v60 = vpop.f32.mrf.mxu1 }
 0x243   : > { %8920 = vst [vmem:[#allocation94_spill] sm:$0xff] %v7694_v2  ;;  %v6513_v3 = vld [vmem:[%s6669_s5 + $0x788] ss:$20 sps:$4 sm:$0xff]   ;;  %v6517_v60 = vld [vmem:[%s6669_s5 + $0x538] ss:$20 sps:$4 sm:$0xff]  }
 0x244   : > { %v7700_v40 = vpop.f32.mrf.mxu0  ;;  %v3462_v35 = vpop.f32.mrf.mxu1  ;;  %3653 = vmatmul.mubr.bf16.gmra.mxu1 %v6508_v32  ;;  %5998 = vmatmul.mubr.msk.bf16.gmra.mxu0 %vm2506_vm0, %v6512_v57  ;;  %v6520_v32 = vld [vmem:[%s6669_s5 + $0x7b4] ss:$20 sps:$4 sm:$0xff]  }
 0x245   : > { %v7703_v18 = vadd.f32 %v3462_v35, %v2918_v30  ;;  %3660 = vmatprep.mubr.bf16.mxu1 %v6515_v49  ;;  %6001 = vmatprep.mubr.msk.bf16.mxu0 %vm2506_vm0, %v6516_v13  ;;  %v7719_v13 = vld [vmem:[%s8825_s2] ss:$0 sm:$0xff] }
 0x246   : > { %v3047_v47 = vpop.f32.mrf.mxu0  ;;  %v3464_v36 = vpop.f32.mrf.mxu1  ;;  %v2926_v0 = vadd.f32 %v7719_v13, %v7430_v44 }
 0x247   : > { %8921 = vst [vmem:[#allocation95_spill] sm:$0xff] %v7703_v18  ;;  %v6526_v18 = vld [vmem:[%s6669_s5 + $0x5b0] ss:$20 sps:$4 sm:$0xff]  }
 0x248   : > { %v7708_v53 = vpop.f32.mrf.mxu0  ;;  %v3465_v8 = vpop.f32.mrf.mxu1 }
 0x249   : > { %v7712_v2 = vadd.f32 %v3465_v8, %v2921_v9  ;;  %v2929_v9 = vadd.f32 %v7719_v13, %v7438_v12 }
 0x24a   : > { %v3050_v57 = vpop.f32.mrf.mxu0  ;;  %v3467_v30 = vpop.f32.mrf.mxu1 }
 0x24b   : > { %8922 = vst [vmem:[#allocation96_spill] sm:$0xff] %v7712_v2  ;;  %v6518_v57 = vld [vmem:[%s6669_s5 + $0x7b0] ss:$20 sps:$4 sm:$0xff]   ;;  %v6522_v30 = vld [vmem:[%s6669_s5 + $0x588] ss:$20 sps:$4 sm:$0xff]  }
 0x24c   : > { %v7723_v39 = vpop.f32.mrf.mxu0  ;;  %v3470_v49 = vpop.f32.mrf.mxu1  ;;  %3661 = vmatmul.mubr.bf16.gmra.mxu1 %v6513_v3  ;;  %6002 = vmatmul.mubr.msk.bf16.gmra.mxu0 %vm2506_vm0, %v6517_v60  ;;  %v6525_v3 = vld [vmem:[%s6669_s5 + $0x7dc] ss:$20 sps:$4 sm:$0xff]  }
 0x24d   : > { %v7726_v35 = vadd.f32 %v3470_v49, %v2926_v0  ;;  %3668 = vmatprep.mubr.bf16.mxu1 %v6520_v32  ;;  %6005 = vmatprep.mubr.msk.bf16.mxu0 %vm2506_vm0, %v6521_v11  ;;  %v2934_v11 = vadd.f32 %v7719_v13, %v7448_v27 }
 0x24e   : > { %v3055_v47 = vpop.f32.mrf.mxu0  ;;  %v3472_v36 = vpop.f32.mrf.mxu1 }
 0x24f   : > { %8923 = vst [vmem:[#allocation97_spill] sm:$0xff] %v7726_v35  ;;  %v6531_v35 = vld [vmem:[%s6669_s5 + $0x600] ss:$20 sps:$4 sm:$0xff]  }
 0x250   : > { %v7731_v8 = vpop.f32.mrf.mxu0  ;;  %v3473_v44 = vpop.f32.mrf.mxu1 }
 0x251   : > { %v7735_v2 = vadd.f32 %v3473_v44, %v2929_v9  ;;  %v2937_v9 = vadd.f32 %v7719_v13, %v7456_v43 }
 0x252   : > { %v3058_v60 = vpop.f32.mrf.mxu0  ;;  %v3475_v32 = vpop.f32.mrf.mxu1 }
 0x253   : > { %8924 = vst [vmem:[#allocation98_spill] sm:$0xff] %v7735_v2  ;;  %v6523_v60 = vld [vmem:[%s6669_s5 + $0x7d8] ss:$20 sps:$4 sm:$0xff]  }
 0x254   : > { %v7741_v0 = vpop.f32.mrf.mxu0  ;;  %v3478_v12 = vpop.f32.mrf.mxu1  ;;  %3669 = vmatmul.mubr.bf16.gmra.mxu1 %v6518_v57  ;;  %6006 = vmatmul.mubr.msk.bf16.gmra.mxu0 %vm2506_vm0, %v6522_v30  ;;  %v6527_v32 = vld [vmem:[%s6669_s5 + $0x5d8] ss:$20 sps:$4 sm:$0xff]  }
 0x255   : > { %v7744_v49 = vadd.f32 %v3478_v12, %v2934_v11  ;;  %3676 = vmatprep.mubr.bf16.mxu1 %v6525_v3  ;;  %6009 = vmatprep.mubr.msk.bf16.mxu0 %vm2506_vm0, %v6526_v18  ;;  %v6530_v57 = vld [vmem:[%s6669_s5 + $0x804] ss:$20 sps:$4 sm:$0xff]   ;;  %v2942_v18 = vadd.f32 %v7719_v13, %v7466_v41 }
 0x256   : > { %v3063_v47 = vpop.f32.mrf.mxu0  ;;  %v3480_v36 = vpop.f32.mrf.mxu1 }
 0x257   : > { %8925 = vst [vmem:[#allocation99_spill] sm:$0xff] %v7744_v49  ;;  %v6536_v49 = vld [vmem:[%s6669_s5 + $0x650] ss:$20 sps:$4 sm:$0xff]  }
 0x258   : > { %v7749_v44 = vpop.f32.mrf.mxu0  ;;  %v3481_v27 = vpop.f32.mrf.mxu1 }
 0x259   : > { %v7753_v2 = vadd.f32 %v3481_v27, %v2937_v9  ;;  %v2945_v9 = vadd.f32 %v7719_v13, %v7474_v23 }
 0x25a   : > { %v3066_v30 = vpop.f32.mrf.mxu0  ;;  %v3483_v3 = vpop.f32.mrf.mxu1 }
 0x25b   : > { %8926 = vst [vmem:[#allocation100_spill] sm:$0xff] %v7753_v2  ;;  %v6528_v30 = vld [vmem:[%s6669_s5 + $0x800] ss:$20 sps:$4 sm:$0xff]   ;;  %v6532_v3 = vld [vmem:[%s6669_s5 + $0x628] ss:$20 sps:$4 sm:$0xff]  }
 0x25c   : > { %v7759_v11 = vpop.f32.mrf.mxu0  ;;  %v3486_v43 = vpop.f32.mrf.mxu1  ;;  %3677 = vmatmul.mubr.bf16.gmra.mxu1 %v6523_v60  ;;  %6010 = vmatmul.mubr.msk.bf16.gmra.mxu0 %vm2506_vm0, %v6527_v32  ;;  %v6535_v60 = vld [vmem:[%s6669_s5 + $0x82c] ss:$20 sps:$4 sm:$0xff]  }
 0x25d   : > { %v7762_v12 = vadd.f32 %v3486_v43, %v2942_v18  ;;  %3684 = vmatprep.mubr.bf16.mxu1 %v6530_v57  ;;  %6013 = vmatprep.mubr.msk.bf16.mxu0 %vm2506_vm0, %v6531_v35  ;;  %v2950_v35 = vadd.f32 %v7719_v13, %v7484_v16  ;;  %v2953_v16 = vadd.f32 %v7719_v13, %v7492_v15 }
 0x25e   : > { %v3071_v47 = vpop.f32.mrf.mxu0  ;;  %v3488_v36 = vpop.f32.mrf.mxu1 }
 0x25f   : > { %8927 = vst [vmem:[#allocation101_spill] sm:$0xff] %v7762_v12 }
 0x260   : > { %v7767_v27 = vpop.f32.mrf.mxu0  ;;  %v3489_v41 = vpop.f32.mrf.mxu1 }
 0x261   : > { %v7771_v2 = vadd.f32 %v3489_v41, %v2945_v9  ;;  %v7783_v9 = vpop.permute.xlu0 %4614 }
 0x262   : > { %v3074_v32 = vpop.f32.mrf.mxu0  ;;  %v3491_v18 = vpop.f32.mrf.mxu1 }
 0x263   : > { %8928 = vst [vmem:[#allocation102_spill] sm:$0xff] %v7771_v2  ;;  %v6533_v18 = vld [vmem:[%s6669_s5 + $0x828] ss:$20 sps:$4 sm:$0xff]   ;;  %v6537_v2 = vld [vmem:[%s6669_s5 + $0x678] ss:$20 sps:$4 sm:$0xff]  }
 0x264   : > { %v7777_v57 = vpop.f32.mrf.mxu0  ;;  %v3494_v23 = vpop.f32.mrf.mxu1  ;;  %3685 = vmatmul.mubr.bf16.gmra.mxu1 %v6528_v30  ;;  %6014 = vmatmul.mubr.msk.bf16.gmra.mxu0 %vm2506_vm0, %v6532_v3  ;;  %v6540_v3 = vld [vmem:[%s6669_s5 + $0x854] ss:$20 sps:$4 sm:$0xff]  }
 0x265   : > { %8929 = vst [vmem:[#allocation103_spill] sm:$0xff] %v7777_v57  ;;  %v7780_v43 = vadd.f32 %v3494_v23, %v2950_v35  ;;  %3692 = vmatprep.mubr.bf16.mxu1 %v6535_v60  ;;  %6017 = vmatprep.mubr.msk.bf16.mxu0 %vm2506_vm0, %v6536_v49  ;;  %v6541_v35 = vld [vmem:[%s6669_s5 + $0x6a0] ss:$20 sps:$4 sm:$0xff]   ;;  %v7795_v49 = vpop.permute.xlu1 %4619 }
 0x266   : > { %v3079_v47 = vpop.f32.mrf.mxu0  ;;  %v3496_v36 = vpop.f32.mrf.mxu1  ;;  %v6555_v57 = vld [vmem:[%s6669_s5 + $0x8cc] ss:$20 sps:$4 sm:$0xff]  }
 0x267   : > { %8930 = vst [vmem:[#allocation104_spill] sm:$0xff] %v7780_v43  ;;  %v2958_v47 = vadd.f32 %v7719_v13, %v7502_v58  ;;  %v2961_v58 = vadd.f32 %v7719_v13, %v7510_v33  ;;  %v6538_v43 = vld [vmem:[%s6669_s5 + $0x850] ss:$20 sps:$4 sm:$0xff]   ;;  %v2966_v33 = vadd.f32 %v7719_v13, %v7520_v26  ;;  %v2969_v26 = vadd.f32 %v7719_v13, %v7528_v48 }
 0x268   : > { %v7787_v41 = vpop.f32.mrf.mxu0  ;;  %v3497_v32 = vpop.f32.mrf.mxu1 }
 0x269   : > { %8931 = vst [vmem:[#allocation105_spill] sm:$0xff] %v7787_v41  ;;  %v7791_v30 = vadd.f32 %v3497_v32, %v2953_v16  ;;  %v7802_v16 = vpop.permute.xlu0 %4624  ;;  %v6545_v41 = vld [vmem:[%s6669_s5 + $0x87c] ss:$20 sps:$4 sm:$0xff]  }
 0x26a   : > { %v3082_v23 = vpop.f32.mrf.mxu0  ;;  %v3499_v60 = vpop.f32.mrf.mxu1 }
 0x26b   : > { %8932 = vst [vmem:[#allocation106_spill] sm:$0xff] %v7791_v30 }
 0x26c   : > { %v7799_v36 = vpop.f32.mrf.mxu0  ;;  %v3502_v15 = vpop.f32.mrf.mxu1  ;;  %3693 = vmatmul.mubr.bf16.gmra.mxu1 %v6533_v18  ;;  %6018 = vmatmul.mubr.msk.bf16.gmra.mxu0 %vm2506_vm0, %v6537_v2  ;;  %v6542_v18 = vld [vmem:[%s6669_s5 + $0x6c8] ss:$20 sps:$4 sm:$0xff]  }
 0x26d   : > { %8933 = vst [vmem:[#allocation107_spill] sm:$0xff] %v7799_v36  ;;  %v7804_v32 = vadd.f32 %v3502_v15, %v2958_v47  ;;  %3700 = vmatprep.mubr.bf16.mxu1 %v6540_v3  ;;  %6021 = vmatprep.mubr.msk.bf16.mxu0 %vm2506_vm0, %v6541_v35  ;;  %v7813_v36 = vpop.permute.xlu1 %4629  ;;  %v6546_v47 = vld [vmem:[%s6669_s5 + $0x6f0] ss:$20 sps:$4 sm:$0xff]   ;;  %v7819_v35 = vpop.permute.xlu0 %4634 }
 0x26e   : > { %v3087_v23 = vpop.f32.mrf.mxu0  ;;  %v3504_v60 = vpop.f32.mrf.mxu1 }
 0x26f   : > { %8934 = vst [vmem:[#allocation108_spill] sm:$0xff] %v7804_v32 }
 0x270   : > { %v7809_v30 = vpop.f32.mrf.mxu0  ;;  %v3505_v12 = vpop.f32.mrf.mxu1 }
 0x271   : > { %8935 = vst [vmem:[#allocation109_spill] sm:$0xff] %v7809_v30  ;;  %v7815_v2 = vadd.f32 %v3505_v12, %v2961_v58  ;;  %v7837_v30 = vpop.permute.xlu0 %4644 }
 0x272   : > { %v3090_v15 = vpop.f32.mrf.mxu0  ;;  %v3507_v3 = vpop.f32.mrf.mxu1 }
 0x273   : > { %8936 = vst [vmem:[#allocation110_spill] sm:$0xff] %v7815_v2  ;;  %v7829_v3 = vpop.permute.xlu1 %4639 }
 0x274   : > { %v7823_v23 = vpop.f32.mrf.mxu0  ;;  %v3510_v60 = vpop.f32.mrf.mxu1  ;;  %3701 = vmatmul.mubr.bf16.gmra.mxu1 %v6538_v43  ;;  %6022 = vmatmul.mubr.msk.bf16.gmra.mxu0 %vm2506_vm0, %v6542_v18  ;;  %v6547_v43 = vld [vmem:[%s6669_s5 + $0x718] ss:$20 sps:$4 sm:$0xff]  }
 0x275   : > { %8937 = vst [vmem:[#allocation111_spill] sm:$0xff] %v7823_v23  ;;  %v7826_v12 = vadd.f32 %v3510_v60, %v2966_v33  ;;  %3708 = vmatprep.mubr.bf16.mxu1 %v6545_v41  ;;  %6025 = vmatprep.mubr.msk.bf16.mxu0 %vm2506_vm0, %v6546_v47  ;;  %v6543_v23 = vld [vmem:[%s6669_s5 + $0x878] ss:$20 sps:$4 sm:$0xff]   ;;  %v6551_v41 = vld [vmem:[%s6669_s5 + $0x740] ss:$20 sps:$4 sm:$0xff]  }
 0x276   : > { %v3095_v58 = vpop.f32.mrf.mxu0  ;;  %v3512_v15 = vpop.f32.mrf.mxu1  ;;  %v6550_v33 = vld [vmem:[%s6669_s5 + $0x8a4] ss:$20 sps:$4 sm:$0xff]  }
 0x277   : > { %8938 = vst [vmem:[#allocation112_spill] sm:$0xff] %v7826_v12  ;;  %v2974_v58 = vadd.f32 %v7719_v13, %v7538_v62  ;;  %v7848_v12 = vpop.permute.xlu1 %4649  ;;  %v2977_v62 = vadd.f32 %v7719_v13, %v7546_v50 }
 0x278   : > { %v7833_v2 = vpop.f32.mrf.mxu0  ;;  %v3513_v32 = vpop.f32.mrf.mxu1 }
 0x279   : > { %8939 = vst [vmem:[#allocation113_spill] sm:$0xff] %v7833_v2  ;;  %v7839_v18 = vadd.f32 %v3513_v32, %v2969_v26  ;;  %v6552_v2 = vld [vmem:[%s6669_s5 + $0x768] ss:$20 sps:$4 sm:$0xff]  }
 0x27a   : > { %v3098_v60 = vpop.f32.mrf.mxu0  ;;  %v3515_v47 = vpop.f32.mrf.mxu1 }
 0x27b   : > { %8940 = vst [vmem:[#allocation114_spill] sm:$0xff] %v7839_v18  ;;  %v7853_v47 = vpop.permute.xlu0 %4654 }
 0x27c   : > { %v7845_v15 = vpop.f32.mrf.mxu0  ;;  %v3518_v48 = vpop.f32.mrf.mxu1  ;;  %3709 = vmatmul.mubr.bf16.gmra.mxu1 %v6543_v23  ;;  %6026 = vmatmul.mubr.msk.bf16.gmra.mxu0 %vm2506_vm0, %v6547_v43 }
 0x27d   : > { %8941 = vst [vmem:[#allocation115_spill] sm:$0xff] %v7845_v15  ;;  %v7850_v32 = vadd.f32 %v3518_v48, %v2974_v58  ;;  %3716 = vmatprep.mubr.bf16.mxu1 %v6550_v33  ;;  %6029 = vmatprep.mubr.msk.bf16.mxu0 %vm2506_vm0, %v6551_v41  ;;  %v6548_v15 = vld [vmem:[%s6669_s5 + $0x8a0] ss:$20 sps:$4 sm:$0xff]   ;;  %v6556_v58 = vld [vmem:[%s6669_s5 + $0x790] ss:$20 sps:$4 sm:$0xff]   ;;  %v7865_v41 = vpop.permute.xlu1 %4659 }
 0x27e   : > { %v3103_v26 = vpop.f32.mrf.mxu0  ;;  %v3520_v60 = vpop.f32.mrf.mxu1 }
 0x27f   : > { %8942 = vst [vmem:[#allocation116_spill] sm:$0xff] %v7850_v32  ;;  %v2982_v26 = vadd.f32 %v7719_v13, %v7556_v42  ;;  %v2985_v42 = vadd.f32 %v7719_v13, %v7564_v17  ;;  %v6553_v32 = vld [vmem:[%s6669_s5 + $0x8c8] ss:$20 sps:$4 sm:$0xff]  }
 0x280   : > { %v7857_v18 = vpop.f32.mrf.mxu0  ;;  %v3521_v23 = vpop.f32.mrf.mxu1 }
 0x281   : > { %8943 = vst [vmem:[#allocation117_spill] sm:$0xff] %v7857_v18  ;;  %v7861_v43 = vadd.f32 %v3521_v23, %v2977_v62  ;;  %v7872_v62 = vpop.permute.xlu0 %4664  ;;  %v7883_v18 = vpop.permute.xlu1 %4669 }
 0x282   : > { %v3106_v48 = vpop.f32.mrf.mxu0  ;;  %v3523_v33 = vpop.f32.mrf.mxu1 }
 0x283   : > { %8944 = vst [vmem:[#allocation118_spill] sm:$0xff] %v7861_v43 }
 0x284   : > { %v7869_v60 = vpop.f32.mrf.mxu0  ;;  %v3526_v50 = vpop.f32.mrf.mxu1  ;;  %3717 = vmatmul.mubr.bf16.gmra.mxu1 %v6548_v15  ;;  %6030 = vmatmul.mubr.msk.bf16.gmra.mxu0 %vm2506_vm0, %v6552_v2  ;;  %v6557_v15 = vld [vmem:[%s6669_s5 + $0x7b8] ss:$20 sps:$4 sm:$0xff]  }
 0x285   : > { %8945 = vst [vmem:[#allocation119_spill] sm:$0xff] %v7869_v60  ;;  %v7874_v23 = vadd.f32 %v3526_v50, %v2982_v26  ;;  %3724 = vmatprep.mubr.bf16.mxu1 %v6555_v57  ;;  %6033 = vmatprep.mubr.msk.bf16.mxu0 %vm2506_vm0, %v6556_v58  ;;  %v6560_v26 = vld [vmem:[%s6669_s5 + $0x8f4] ss:$20 sps:$4 sm:$0xff]   ;;  %v7889_v58 = vpop.permute.xlu0 %4674 }
 0x286   : > { %v3111_v48 = vpop.f32.mrf.mxu0  ;;  %v3528_v33 = vpop.f32.mrf.mxu1  ;;  %v6561_v50 = vld [vmem:[%s6669_s5 + $0x7e0] ss:$20 sps:$4 sm:$0xff]  }
 0x287   : > { %8946 = vst [vmem:[#allocation120_spill] sm:$0xff] %v7874_v23  ;;  %v2990_v48 = vadd.f32 %v7719_v13, %v7574_v10 }
 0x288   : > { %v7879_v43 = vpop.f32.mrf.mxu0  ;;  %v3529_v60 = vpop.f32.mrf.mxu1 }
 0x289   : > { %8947 = vst [vmem:[#allocation121_spill] sm:$0xff] %v7879_v43  ;;  %v7885_v2 = vadd.f32 %v3529_v60, %v2985_v42 }
 0x28a   : > { %v3114_v57 = vpop.f32.mrf.mxu0  ;;  %v3531_v23 = vpop.f32.mrf.mxu1 }
 0x28b   : > { %8948 = vst [vmem:[#allocation122_spill] sm:$0xff] %v7885_v2  ;;  %v7905_v23 = vpop.permute.xlu1 %4679  ;;  %v6558_v57 = vld [vmem:[%s6669_s5 + $0x8f0] ss:$20 sps:$4 sm:$0xff]  }
 0x28c   : > { %v3534_v17 = vpop.f32.mrf.mxu1  ;;  %3725 = vmatmul.mubr.bf16.gmra.mxu1 %v6553_v32  ;;  %v5939_v33 = vpop.f32.mrf.mxu0  ;;  %6034 = vmatmul.mubr.msk.bf16.gmra.mxu0 %vm2506_vm0, %v6557_v15 }
 0x28d   : > { %v7894_v43 = vadd.f32 %v3534_v17, %v2990_v48  ;;  %v3832_v60 = vadd.f32 %v5939_v33, %v7315_v6  ;;  %3732 = vmatprep.mubr.bf16.mxu1 %v6560_v26  ;;  %6037 = vmatprep.mubr.msk.bf16.mxu0 %vm2506_vm0, %v6561_v50  ;;  %v2993_v6 = vadd.f32 %v7719_v13, %v7582_v55  ;;  %v6562_v48 = vld [vmem:[%s6669_s5 + $0x808] ss:$20 sps:$4 sm:$0xff]   ;;  %v7913_v17 = vpop.permute.xlu0 %4684 }
 0x28e   : > { %v3536_v10 = vpop.f32.mrf.mxu1  ;;  %v3823_v32 = vpop.f32.mrf.mxu0 }
 0x28f   : > { %8949 = vst [vmem:[#allocation123_spill] sm:$0xff] %v7894_v43  ;;  %v5104_v42 = vadd.f32 %v7084_v4, %v3832_v60  ;;  %v3824_v15 = vadd.f32 %v3823_v32, %v7291_v22  ;;  %v6565_v43 = vld [vmem:[%s6669_s5 + $0x91c] ss:$20 sps:$4 sm:$0xff]   ;;  %v2998_v22 = vadd.f32 %v7719_v13, %v7592_v46 }
 0x290   : > { %v3537_v26 = vpop.f32.mrf.mxu1  ;;  %v5940_v50 = vpop.f32.mrf.mxu0  ;;  %v6566_v4 = vld [vmem:[%s6669_s5 + $0x830] ss:$20 sps:$4 sm:$0xff]  }
 0x291   : > { %5233 = vst.msk [vmem:[%s7903_s9 + $0x10] sm:$0xff] %vm5230_vm1, %v5104_v42  ;;  %v5102_v33 = vadd.f32 %v7086_v5, %v3824_v15  ;;  %v7918_v10 = vadd.f32 %v3537_v26, %v2993_v6  ;;  %v3835_v55 = vadd.f32 %v5940_v50, %v7327_v1  ;;  %v7930_v1 = vpop.permute.xlu1 %4689  ;;  %v7939_v26 = vpop.permute.xlu0 %4694  ;;  %v3001_v50 = vadd.f32 %v7719_v13, %v7600_v45 }
 0x292   : > { %v3539_v60 = vpop.f32.mrf.mxu1  ;;  %v3826_v2 = vpop.f32.mrf.mxu0 }
 0x293   : > { %5231 = vst.msk [vmem:[%s7903_s9] sm:$0xff] %vm5230_vm1, %v5102_v33  ;;  %v5105_v32 = vadd.f32 %v7095_v24, %v3835_v55  ;;  %v3827_v42 = vadd.f32 %v3826_v2, %v7305_v61  ;;  %v6567_v33 = vld [vmem:[%s6669_s5 + $0x858] ss:$20 sps:$4 sm:$0xff]  }
 0x294   : > { %v3542_v5 = vpop.f32.mrf.mxu1  ;;  %3733 = vmatmul.mubr.bf16.gmra.mxu1 %v6558_v57  ;;  %v5943_v6 = vpop.f32.mrf.mxu0  ;;  %6038 = vmatmul.mubr.msk.bf16.gmra.mxu0 %vm2506_vm0, %v6562_v48  ;;  %v6563_v48 = vld [vmem:[%s6669_s5 + $0x918] ss:$20 sps:$4 sm:$0xff]  }
 0x295   : > { %5234 = vst.msk [vmem:[%s7903_s9 + $0x18] sm:$0xff] %vm5230_vm1, %v5105_v32  ;;  %v5103_v46 = vadd.f32 %v7097_v25, %v3827_v42  ;;  %v7935_v15 = vadd.f32 %v3542_v5, %v2998_v22  ;;  %v3848_v24 = vadd.f32 %v5943_v6, %v7351_v28  ;;  %3740 = vmatprep.mubr.bf16.mxu1 %v6565_v43  ;;  %v6570_v60 = vld [vmem:[%s6669_s5 + $0x944] ss:$20 sps:$4 sm:$0xff]   ;;  %v6571_v22 = vld [vmem:[%s6669_s5 + $0x880] ss:$20 sps:$4 sm:$0xff]   ;;  %v7957_v42 = vpop.permute.xlu1 %4699 }
 0x296   : > { %6041 = vmatprep.mubr.msk.bf16.mxu0 %vm2506_vm0, %v6566_v4  ;;  %v3544_v61 = vpop.f32.mrf.mxu1  ;;  %v3839_v2 = vpop.f32.mrf.mxu0  ;;  %v8950_v6 = vld [vmem:[#allocation57_spill] sm:$0xff] }
 0x297   : > { %5232 = vst.msk [vmem:[%s7903_s9 + $0x8] sm:$0xff] %vm5230_vm1, %v5103_v46  ;;  %v5108_v25 = vadd.f32 %v7130_v20, %v3848_v24  ;;  %v3840_v57 = vadd.f32 %v3839_v2, %v7335_v21  ;;  %v3006_v21 = vadd.f32 %v7719_v13, %v7610_v14  ;;  %v8951_v61 = vld [vmem:[#allocation19_spill] sm:$0xff] }
 0x298   : > { %v3545_v28 = vpop.f32.mrf.mxu1  ;;  %v5944_v43 = vpop.f32.mrf.mxu0 }
 0x299   : > { %5237 = vst.msk [vmem:[%s7903_s9 + $0x30] sm:$0xff] %vm5230_vm1, %v5108_v25  ;;  %v5106_v55 = vadd.f32 %v7116_v52, %v3840_v57  ;;  %v7952_v4 = vadd.f32 %v3545_v28, %v3001_v50  ;;  %v3851_v45 = vadd.f32 %v5944_v43, %v7359_v56  ;;  %v7966_v56 = vpop.permute.xlu0 %4704  ;;  %v3009_v28 = vadd.f32 %v7719_v13, %v7618_v59  ;;  %v8954_v43 = vld [vmem:[#allocation27_spill] sm:$0xff]  ;;  %v8958_v59 = vld [vmem:[#allocation61_spill] sm:$0xff] }
 0x29a   : > { %v3547_v32 = vpop.f32.mrf.mxu1  ;;  %v3842_v20 = vpop.f32.mrf.mxu0 }
 0x29b   : > { %5235 = vst.msk [vmem:[%s7903_s9 + $0x20] sm:$0xff] %vm5230_vm1, %v5106_v55  ;;  %v5109_v5 = vadd.f32 %v7128_v19, %v3851_v45  ;;  %v3843_v52 = vadd.f32 %v3842_v20, %v8950_v6  ;;  %v8953_v19 = vld [vmem:[#allocation60_spill] sm:$0xff] }
 0x29c   : > { %v3550_v46 = vpop.f32.mrf.mxu1  ;;  %3741 = vmatmul.mubr.bf16.gmra.mxu1 %v6563_v48  ;;  %v5947_v24 = vpop.f32.mrf.mxu0  ;;  %6042 = vmatmul.mubr.msk.bf16.gmra.mxu0 %vm2506_vm0, %v6567_v33  ;;  %v8955_v33 = vld [vmem:[#allocation58_spill] sm:$0xff] }
 0x29d   : > { %5238 = vst.msk [vmem:[%s7903_s9 + $0x38] sm:$0xff] %vm5230_vm1, %v5109_v5  ;;  %v5107_v14 = vadd.f32 %v8951_v61, %v3843_v52  ;;  %v7971_v2 = vadd.f32 %v3550_v46, %v3006_v21  ;;  %v3864_v50 = vadd.f32 %v5947_v24, %v8953_v19  ;;  %3748 = vmatprep.mubr.bf16.mxu1 %v6570_v60  ;;  %v6568_v20 = vld [vmem:[%s6669_s5 + $0x940] ss:$20 sps:$4 sm:$0xff]   ;;  %v6572_v60 = vld [vmem:[%s6669_s5 + $0x8a8] ss:$20 sps:$4 sm:$0xff]   ;;  %v7983_v21 = vpop.permute.xlu1 %4709  ;;  %v7993_v19 = vpop.permute.xlu0 %4714 }
 0x29e   : > { %6045 = vmatprep.mubr.msk.bf16.mxu0 %vm2506_vm0, %v6571_v22  ;;  %v3552_v25 = vpop.f32.mrf.mxu1  ;;  %v3855_v57 = vpop.f32.mrf.mxu0  ;;  %v8956_v22 = vld [vmem:[#allocation24_spill] sm:$0xff]  ;;  %v6575_v46 = vld [vmem:[%s6669_s5 + $0x96c] ss:$20 sps:$4 sm:$0xff]  }
 0x29f   : > { %8952 = vst [vmem:[#allocation57_spill] sm:$0xff] %v7971_v2  ;;  %5236 = vst.msk [vmem:[%s7903_s9 + $0x28] sm:$0xff] %vm5230_vm1, %v5107_v14  ;;  %v5112_v48 = vadd.f32 %v8954_v43, %v3864_v50  ;;  %v3856_v55 = vadd.f32 %v3855_v57, %v8955_v33  ;;  %v6576_v24 = vld [vmem:[%s6669_s5 + $0x8d0] ss:$20 sps:$4 sm:$0xff]   ;;  %v3014_v50 = vadd.f32 %v7719_v13, %v7628_v31  ;;  %v8960_v43 = vld [vmem:[#allocation59_spill] sm:$0xff] }
 0x2a0   : > { %v3553_v45 = vpop.f32.mrf.mxu1  ;;  %v5948_v32 = vpop.f32.mrf.mxu0  ;;  %v8959_v25 = vld [vmem:[#allocation26_spill] sm:$0xff] }
 0x2a1   : > { %5241 = vst.msk [vmem:[%s7903_s9 + $0x50] sm:$0xff] %vm5230_vm1, %v5112_v48  ;;  %v5110_v5 = vadd.f32 %v8956_v22, %v3856_v55  ;;  %v7988_v6 = vadd.f32 %v3553_v45, %v3009_v28  ;;  %v3867_v52 = vadd.f32 %v5948_v32, %v8958_v59  ;;  %v8961_v55 = vld [vmem:[#allocation23_spill] sm:$0xff]  ;;  %v8962_v59 = vld [vmem:[#allocation34_spill] sm:$0xff] }
 0x2a2   : > { %v3555_v61 = vpop.f32.mrf.mxu1  ;;  %v3858_v14 = vpop.f32.mrf.mxu0 }
 0x2a3   : > { %8957 = vst [vmem:[#allocation19_spill] sm:$0xff] %v7988_v6  ;;  %5239 = vst.msk [vmem:[%s7903_s9 + $0x40] sm:$0xff] %vm5230_vm1, %v5110_v5  ;;  %v5113_v57 = vadd.f32 %v8959_v25, %v3867_v52  ;;  %v3859_v48 = vadd.f32 %v3858_v14, %v8960_v43  ;;  %v8009_v5 = vpop.permute.xlu1 %4719  ;;  %v8963_v61 = vld [vmem:[#allocation62_spill] sm:$0xff]  ;;  %v8019_v25 = vpop.permute.xlu0 %4724 }
 0x2a4   : > { %v3558_v28 = vpop.f32.mrf.mxu1  ;;  %3749 = vmatmul.mubr.bf16.gmra.mxu1 %v6568_v20  ;;  %v5951_v33 = vpop.f32.mrf.mxu0  ;;  %6046 = vmatmul.mubr.msk.bf16.gmra.mxu0 %vm2506_vm0, %v6572_v60  ;;  %v3017_v60 = vadd.f32 %v7719_v13, %v7636_v63  ;;  %v8966_v63 = vld [vmem:[#allocation64_spill] sm:$0xff]  ;;  %v8978_v6 = vld [vmem:[#allocation66_spill] sm:$0xff] }
 0x2a5   : > { %5242 = vst.msk [vmem:[%s7903_s9 + $0x58] sm:$0xff] %vm5230_vm1, %v5113_v57  ;;  %v5111_v45 = vadd.f32 %v8961_v55, %v3859_v48  ;;  %v8005_v32 = vadd.f32 %v3558_v28, %v3014_v50  ;;  %v3880_v31 = vadd.f32 %v5951_v33, %v7415_v51  ;;  %3756 = vmatprep.mubr.bf16.mxu1 %v6575_v46  ;;  %v6573_v50 = vld [vmem:[%s6669_s5 + $0x968] ss:$20 sps:$4 sm:$0xff]   ;;  %v6581_v55 = vld [vmem:[%s6669_s5 + $0x920] ss:$20 sps:$4 sm:$0xff]  }
 0x2a6   : > { %6049 = vmatprep.mubr.msk.bf16.mxu0 %vm2506_vm0, %v6576_v24  ;;  %v3560_v22 = vpop.f32.mrf.mxu1  ;;  %v3871_v20 = vpop.f32.mrf.mxu0  ;;  %v6577_v24 = vld [vmem:[%s6669_s5 + $0x8f8] ss:$20 sps:$4 sm:$0xff]   ;;  %v6580_v33 = vld [vmem:[%s6669_s5 + $0x994] ss:$20 sps:$4 sm:$0xff]  }
 0x2a7   : > { %5240 = vst.msk [vmem:[%s7903_s9 + $0x48] sm:$0xff] %vm5230_vm1, %v5111_v45  ;;  %v5116_v52 = vadd.f32 %v8962_v59, %v3880_v31  ;;  %v3872_v14 = vadd.f32 %v3871_v20, %v8963_v61  ;;  %v8964_v57 = vld [vmem:[#allocation31_spill] sm:$0xff]  ;;  %v3022_v22 = vadd.f32 %v7719_v13, %v7646_v29  ;;  %v8967_v20 = vld [vmem:[#allocation33_spill] sm:$0xff] }
 0x2a8   : > { %v3561_v51 = vpop.f32.mrf.mxu1  ;;  %v5952_v46 = vpop.f32.mrf.mxu0  ;;  %v8968_v61 = vld [vmem:[#allocation63_spill] sm:$0xff] }
 0x2a9   : > { %5245 = vst.msk [vmem:[%s7903_s9 + $0x70] sm:$0xff] %vm5230_vm1, %v5116_v52  ;;  %v5114_v43 = vadd.f32 %v8964_v57, %v3872_v14  ;;  %v8024_v48 = vadd.f32 %v3561_v51, %v3017_v60  ;;  %v3883_v28 = vadd.f32 %v5952_v46, %v8966_v63  ;;  %v8036_v51 = vpop.permute.xlu1 %4729  ;;  %v8969_v46 = vld [vmem:[#allocation30_spill] sm:$0xff] }
 0x2aa   : > { %v3563_v45 = vpop.f32.mrf.mxu1  ;;  %v3874_v31 = vpop.f32.mrf.mxu0 }
 0x2ab   : > { %8965 = vst [vmem:[#allocation60_spill] sm:$0xff] %v8024_v48  ;;  %5243 = vst.msk [vmem:[%s7903_s9 + $0x60] sm:$0xff] %vm5230_vm1, %v5114_v43  ;;  %v5117_v59 = vadd.f32 %v8967_v20, %v3883_v28  ;;  %v3875_v52 = vadd.f32 %v3874_v31, %v8968_v61  ;;  %v8971_v43 = vld [vmem:[#allocation67_spill] sm:$0xff]  ;;  %v8045_v28 = vpop.permute.xlu0 %4734  ;;  %v3025_v45 = vadd.f32 %v7719_v13, %v7654_v34  ;;  %v8972_v31 = vld [vmem:[#allocation41_spill] sm:$0xff] }
 0x2ac   : > { %v3566_v14 = vpop.f32.mrf.mxu1  ;;  %3757 = vmatmul.mubr.bf16.gmra.mxu1 %v6573_v50  ;;  %v5955_v60 = vpop.f32.mrf.mxu0  ;;  %6050 = vmatmul.mubr.msk.bf16.gmra.mxu0 %vm2506_vm0, %v6577_v24  ;;  %v8988_v48 = vld [vmem:[#allocation70_spill] sm:$0xff] }
 0x2ad   : > { %5246 = vst.msk [vmem:[%s7903_s9 + $0x78] sm:$0xff] %vm5230_vm1, %v5117_v59  ;;  %v5115_v29 = vadd.f32 %v8969_v46, %v3875_v52  ;;  %v8041_v57 = vadd.f32 %v3566_v14, %v3022_v22  ;;  %v3896_v63 = vadd.f32 %v5955_v60, %v8971_v43  ;;  %3764 = vmatprep.mubr.bf16.mxu1 %v6580_v33  ;;  %v8973_v22 = vld [vmem:[#allocation65_spill] sm:$0xff]  ;;  %v6578_v52 = vld [vmem:[%s6669_s5 + $0x990] ss:$20 sps:$4 sm:$0xff]  }
 0x2ae   : > { %6053 = vmatprep.mubr.msk.bf16.mxu0 %vm2506_vm0, %v6581_v55  ;;  %v3568_v50 = vpop.f32.mrf.mxu1  ;;  %v3887_v24 = vpop.f32.mrf.mxu0  ;;  %v6582_v55 = vld [vmem:[%s6669_s5 + $0x948] ss:$20 sps:$4 sm:$0xff]   ;;  %v8974_v14 = vld [vmem:[#allocation38_spill] sm:$0xff]  ;;  %v8976_v43 = vld [vmem:[#allocation68_spill] sm:$0xff] }
 0x2af   : > { %8970 = vst [vmem:[#allocation27_spill] sm:$0xff] %v8041_v57  ;;  %5244 = vst.msk [vmem:[%s7903_s9 + $0x68] sm:$0xff] %vm5230_vm1, %v5115_v29  ;;  %v5120_v20 = vadd.f32 %v8972_v31, %v3896_v63  ;;  %v3888_v59 = vadd.f32 %v3887_v24, %v8973_v22  ;;  %v6585_v50 = vld [vmem:[%s6669_s5 + $0x9bc] ss:$20 sps:$4 sm:$0xff]   ;;  %v8063_v31 = vpop.permute.xlu1 %4739  ;;  %v3030_v24 = vadd.f32 %v7719_v13, %v7664_v38 }
 0x2b0   : > { %v3569_v61 = vpop.f32.mrf.mxu1  ;;  %v5956_v33 = vpop.f32.mrf.mxu0  ;;  %v6586_v29 = vld [vmem:[%s6669_s5 + $0x970] ss:$20 sps:$4 sm:$0xff]  }
 0x2b1   : > { %5249 = vst.msk [vmem:[%s7903_s9 + $0x90] sm:$0xff] %vm5230_vm1, %v5120_v20  ;;  %v5118_v60 = vadd.f32 %v8974_v14, %v3888_v59  ;;  %v8058_v46 = vadd.f32 %v3569_v61, %v3025_v45  ;;  %v3899_v34 = vadd.f32 %v5956_v33, %v8976_v43  ;;  %v8977_v22 = vld [vmem:[#allocation40_spill] sm:$0xff]  ;;  %v8979_v33 = vld [vmem:[#allocation37_spill] sm:$0xff] }
 0x2b2   : > { %v3571_v57 = vpop.f32.mrf.mxu1  ;;  %v3890_v63 = vpop.f32.mrf.mxu0 }
 0x2b3   : > { %8975 = vst [vmem:[#allocation58_spill] sm:$0xff] %v8058_v46  ;;  %5247 = vst.msk [vmem:[%s7903_s9 + $0x80] sm:$0xff] %vm5230_vm1, %v5118_v60  ;;  %v5121_v20 = vadd.f32 %v8977_v22, %v3899_v34  ;;  %v3891_v45 = vadd.f32 %v3890_v63, %v8978_v6  ;;  %v8072_v57 = vpop.permute.xlu0 %4744  ;;  %v8981_v60 = vld [vmem:[#allocation71_spill] sm:$0xff]  ;;  %v8982_v34 = vld [vmem:[#allocation48_spill] sm:$0xff]  ;;  %v3038_v46 = vadd.f32 %v7719_v13, %v7682_v7 }
 0x2b4   : > { %v3574_v59 = vpop.f32.mrf.mxu1  ;;  %3765 = vmatmul.mubr.bf16.gmra.mxu1 %v6578_v52  ;;  %v5959_v61 = vpop.f32.mrf.mxu0  ;;  %6054 = vmatmul.mubr.msk.bf16.gmra.mxu0 %vm2506_vm0, %v6582_v55  ;;  %v3033_v55 = vadd.f32 %v7719_v13, %v7672_v54  ;;  %v8983_v22 = vld [vmem:[#allocation69_spill] sm:$0xff]  ;;  %v8986_v54 = vld [vmem:[#allocation72_spill] sm:$0xff]  ;;  %v8991_v7 = vld [vmem:[#allocation75_spill] sm:$0xff] }
 0x2b5   : > { %5250 = vst.msk [vmem:[%s7903_s9 + $0x98] sm:$0xff] %vm5230_vm1, %v5121_v20  ;;  %v5119_v38 = vadd.f32 %v8979_v33, %v3891_v45  ;;  %v8077_v14 = vadd.f32 %v3574_v59, %v3030_v24  ;;  %v3912_v43 = vadd.f32 %v5959_v61, %v8981_v60  ;;  %3772 = vmatprep.mubr.bf16.mxu1 %v6585_v50  ;;  %v6583_v59 = vld [vmem:[%s6669_s5 + $0x9b8] ss:$20 sps:$4 sm:$0xff]   ;;  %v8089_v61 = vpop.permute.xlu1 %4749 }
 0x2b6   : > { %6057 = vmatprep.mubr.msk.bf16.mxu0 %vm2506_vm0, %v6586_v29  ;;  %v3576_v6 = vpop.f32.mrf.mxu1  ;;  %v3903_v52 = vpop.f32.mrf.mxu0  ;;  %v6587_v50 = vld [vmem:[%s6669_s5 + $0x998] ss:$20 sps:$4 sm:$0xff]  }
 0x2b7   : > { %8980 = vst [vmem:[#allocation24_spill] sm:$0xff] %v8077_v14  ;;  %5248 = vst.msk [vmem:[%s7903_s9 + $0x88] sm:$0xff] %vm5230_vm1, %v5119_v38  ;;  %v5124_v63 = vadd.f32 %v8982_v34, %v3912_v43  ;;  %v3904_v20 = vadd.f32 %v3903_v52, %v8983_v22  ;;  %v8984_v29 = vld [vmem:[#allocation45_spill] sm:$0xff]  ;;  %v6591_v43 = vld [vmem:[%s6669_s5 + $0x9c0] ss:$20 sps:$4 sm:$0xff]   ;;  %v8099_v22 = vpop.permute.xlu0 %4754 }
 0x2b8   : > { %v3577_v24 = vpop.f32.mrf.mxu1  ;;  %v5960_v45 = vpop.f32.mrf.mxu0  ;;  %v6590_v6 = vld [vmem:[%s6669_s5 + $0x9e4] ss:$20 sps:$4 sm:$0xff]   ;;  %v8987_v14 = vld [vmem:[#allocation47_spill] sm:$0xff] }
 0x2b9   : > { %5253 = vst.msk [vmem:[%s7903_s9 + $0xb0] sm:$0xff] %vm5230_vm1, %v5124_v63  ;;  %v5122_v33 = vadd.f32 %v8984_v29, %v3904_v20  ;;  %v8094_v60 = vadd.f32 %v3577_v24, %v3033_v55  ;;  %v3915_v38 = vadd.f32 %v5960_v45, %v8986_v54  ;;  %v8989_v45 = vld [vmem:[#allocation44_spill] sm:$0xff] }
 0x2ba   : > { %v3579_v34 = vpop.f32.mrf.mxu1  ;;  %v3906_v52 = vpop.f32.mrf.mxu0 }
 0x2bb   : > { %8985 = vst [vmem:[#allocation61_spill] sm:$0xff] %v8094_v60  ;;  %5251 = vst.msk [vmem:[%s7903_s9 + $0xa0] sm:$0xff] %vm5230_vm1, %v5122_v33  ;;  %v5125_v63 = vadd.f32 %v8987_v14, %v3915_v38  ;;  %v3907_v20 = vadd.f32 %v3906_v52, %v8988_v48  ;;  %v8992_v38 = vld [vmem:[#allocation54_spill] sm:$0xff] }
 0x2bc   : > { %v3582_v55 = vpop.f32.mrf.mxu1  ;;  %3773 = vmatmul.mubr.bf16.gmra.mxu1 %v6583_v59  ;;  %v5963_v24 = vpop.f32.mrf.mxu0  ;;  %6058 = vmatmul.mubr.msk.bf16.gmra.mxu0 %vm2506_vm0, %v6587_v50  ;;  %v3041_v50 = vadd.f32 %v7719_v13, %v7690_v37  ;;  %v8995_v37 = vld [vmem:[#allocation76_spill] sm:$0xff] }
 0x2bd   : > { %5254 = vst.msk [vmem:[%s7903_s9 + $0xb8] sm:$0xff] %vm5230_vm1, %v5125_v63  ;;  %v5123_v29 = vadd.f32 %v8989_v45, %v3907_v20  ;;  %v8111_v54 = vadd.f32 %v3582_v55, %v3038_v46  ;;  %v3928_v33 = vadd.f32 %v5963_v24, %v8991_v7  ;;  %3780 = vmatprep.mubr.bf16.mxu1 %v6590_v6  ;;  %v8115_v59 = vpop.permute.xlu1 %4759  ;;  %v8993_v46 = vld [vmem:[#allocation73_spill] sm:$0xff]  ;;  %v6588_v55 = vld [vmem:[%s6669_s5 + $0x9e0] ss:$20 sps:$4 sm:$0xff]   ;;  %v8125_v24 = vpop.permute.xlu0 %4764 }
 0x2be   : > { %6061 = vmatprep.mubr.msk.bf16.mxu0 %vm2506_vm0, %v6591_v43  ;;  %v3584_v48 = vpop.f32.mrf.mxu1  ;;  %v3919_v14 = vpop.f32.mrf.mxu0  ;;  %v6592_v6 = vld [vmem:[%s6669_s5 + $0x9e8] ss:$20 sps:$4 sm:$0xff]   ;;  %v8994_v43 = vld [vmem:[#allocation52_spill] sm:$0xff] }
 0x2bf   : > { %8990 = vst [vmem:[#allocation26_spill] sm:$0xff] %v8111_v54  ;;  %5252 = vst.msk [vmem:[%s7903_s9 + $0xa8] sm:$0xff] %vm5230_vm1, %v5123_v29  ;;  %v5128_v34 = vadd.f32 %v8992_v38, %v3928_v33  ;;  %v3920_v52 = vadd.f32 %v3919_v14, %v8993_v46  ;;  %v3046_v33 = vadd.f32 %v7719_v13, %v7700_v40  ;;  %v8996_v14 = vld [vmem:[#allocation53_spill] sm:$0xff]  ;;  %v8997_v46 = vld [vmem:[#allocation74_spill] sm:$0xff] }
 0x2c0   : > { %v3585_v63 = vpop.f32.mrf.mxu1  ;;  %v5964_v20 = vpop.f32.mrf.mxu0 }
 0x2c1   : > { %5257 = vst.msk [vmem:[%s7903_s9 + $0xd0] sm:$0xff] %vm5230_vm1, %v5128_v34  ;;  %v5126_v45 = vadd.f32 %v8994_v43, %v3920_v52  ;;  %v8130_v7 = vadd.f32 %v3585_v63, %v3041_v50  ;;  %v3931_v48 = vadd.f32 %v5964_v20, %v8995_v37  ;;  %v8140_v50 = vpop.permute.xlu1 %4769  ;;  %v8998_v52 = vld [vmem:[#allocation51_spill] sm:$0xff] }
 0x2c2   : > { %v3587_v29 = vpop.f32.mrf.mxu1  ;;  %v3922_v54 = vpop.f32.mrf.mxu0  ;;  %v8999_v20 = vld [vmem:[#allocation79_spill] sm:$0xff] }
 0x2c3   : > { %5255 = vst.msk [vmem:[%s7903_s9 + $0xc0] sm:$0xff] %vm5230_vm1, %v5126_v45  ;;  %v5129_v38 = vadd.f32 %v8996_v14, %v3931_v48  ;;  %v3923_v60 = vadd.f32 %v3922_v54, %v8997_v46  ;;  %v8148_v54 = vpop.permute.xlu0 %4774  ;;  %v9000_v48 = vld [vmem:[#allocation77_spill] sm:$0xff]  ;;  %v9002_v46 = vld [vmem:[#allocation80_spill] sm:$0xff] }
 0x2c4   : > { %v3590_v2 = vpop.f32.mrf.mxu1  ;;  %3781 = vmatmul.mubr.bf16.gmra.mxu1 %v6588_v55  ;;  %v5967_v34 = vpop.f32.mrf.mxu0  ;;  %6062 = vmatmul.mubr.msk.bf16.gmra.mxu0 %vm2506_vm0, %v6592_v6  ;;  %v3049_v55 = vadd.f32 %v7719_v13, %v7708_v53 }
 0x2c5   : > { %5258 = vst.msk [vmem:[%s7903_s9 + $0xd8] sm:$0xff] %vm5230_vm1, %v5129_v38  ;;  %v5127_v63 = vadd.f32 %v8998_v52, %v3923_v60  ;;  %v8145_v40 = vadd.f32 %v3590_v2, %v3046_v33  ;;  %v3944_v43 = vadd.f32 %v5967_v34, %v8999_v20  ;;  %v9001_v60 = vld [vmem:[#allocation56_spill] sm:$0xff]  ;;  %v8162_v53 = vpop.permute.xlu1 %4779 }
 0x2c6   : > { %v3592_v45 = vpop.f32.mrf.mxu1  ;;  %v3935_v37 = vpop.f32.mrf.mxu0 }
 0x2c7   : > { %5256 = vst.msk [vmem:[%s7903_s9 + $0xc8] sm:$0xff] %vm5230_vm1, %v5127_v63  ;;  %v5132_v6 = vadd.f32 %v7783_v9, %v3944_v43  ;;  %v3936_v29 = vadd.f32 %v3935_v37, %v9000_v48  ;;  %v3054_v9 = vadd.f32 %v7719_v13, %v7723_v39  ;;  %v9003_v43 = vld [vmem:[#allocation78_spill] sm:$0xff]  ;;  %v9004_v48 = vld [vmem:[#allocation55_spill] sm:$0xff] }
 0x2c8   : > { %v3593_v14 = vpop.f32.mrf.mxu1  ;;  %v5968_v2 = vpop.f32.mrf.mxu0 }
 0x2c9   : > { %5261 = vst.msk [vmem:[%s7903_s9 + $0xf0] sm:$0xff] %vm5230_vm1, %v5132_v6  ;;  %v5130_v33 = vadd.f32 %v9001_v60, %v3936_v29  ;;  %v8159_v38 = vadd.f32 %v3593_v14, %v3049_v55  ;;  %v3947_v34 = vadd.f32 %v5968_v2, %v9002_v46  ;;  %v8170_v6 = vpop.permute.xlu0 %4784  ;;  %v9005_v2 = vld [vmem:[#allocation83_spill] sm:$0xff] }
 0x2ca   : > { %v3595_v52 = vpop.f32.mrf.mxu1  ;;  %v3938_v20 = vpop.f32.mrf.mxu0 }
 0x2cb   : > { %5259 = vst.msk [vmem:[%s7903_s9 + $0xe0] sm:$0xff] %vm5230_vm1, %v5130_v33  ;;  %v5133_v63 = vadd.f32 %v7795_v49, %v3947_v34  ;;  %v3939_v45 = vadd.f32 %v3938_v20, %v9003_v43  ;;  %v3057_v49 = vadd.f32 %v7719_v13, %v7731_v8  ;;  %v9006_v34 = vld [vmem:[#allocation81_spill] sm:$0xff]  ;;  %v8184_v43 = vpop.permute.xlu1 %4789 }
 0x2cc   : > { %v3598_v37 = vpop.f32.mrf.mxu1  ;;  %v5971_v55 = vpop.f32.mrf.mxu0 }
 0x2cd   : > { %5262 = vst.msk [vmem:[%s7903_s9 + $0xf8] sm:$0xff] %vm5230_vm1, %v5133_v63  ;;  %v5131_v29 = vadd.f32 %v9004_v48, %v3939_v45  ;;  %v8175_v14 = vadd.f32 %v3598_v37, %v3054_v9  ;;  %v3960_v60 = vadd.f32 %v5971_v55, %v9005_v2  ;;  %v9007_v37 = vld [vmem:[#allocation84_spill] sm:$0xff] }
 0x2ce   : > { %v3600_v39 = vpop.f32.mrf.mxu1  ;;  %v3951_v46 = vpop.f32.mrf.mxu0 }
 0x2cf   : > { %5260 = vst.msk [vmem:[%s7903_s9 + $0xe8] sm:$0xff] %vm5230_vm1, %v5131_v29  ;;  %v5136_v33 = vadd.f32 %v7819_v35, %v3960_v60  ;;  %v3952_v52 = vadd.f32 %v3951_v46, %v9006_v34  ;;  %v8192_v29 = vpop.permute.xlu0 %4794  ;;  %v3062_v35 = vadd.f32 %v7719_v13, %v7741_v0  ;;  %v9008_v60 = vld [vmem:[#allocation82_spill] sm:$0xff]  ;;  %v9009_v34 = vld [vmem:[#allocation87_spill] sm:$0xff]  ;;  %v8206_v0 = vpop.permute.xlu1 %4799 }
 0x2d0   : > { %v3601_v20 = vpop.f32.mrf.mxu1  ;;  %v5972_v63 = vpop.f32.mrf.mxu0 }
 0x2d1   : > { %5265 = vst.msk [vmem:[%s7903_s9 + $0x110] sm:$0xff] %vm5230_vm1, %v5136_v33  ;;  %v5134_v9 = vadd.f32 %v7802_v16, %v3952_v52  ;;  %v8189_v45 = vadd.f32 %v3601_v20, %v3057_v49  ;;  %v3963_v55 = vadd.f32 %v5972_v63, %v9007_v37  ;;  %v9010_v37 = vld [vmem:[#allocation85_spill] sm:$0xff] }
 0x2d2   : > { %v3603_v8 = vpop.f32.mrf.mxu1  ;;  %v3954_v48 = vpop.f32.mrf.mxu0 }
 0x2d3   : > { %5263 = vst.msk [vmem:[%s7903_s9 + $0x100] sm:$0xff] %vm5230_vm1, %v5134_v9  ;;  %v5137_v2 = vadd.f32 %v7829_v3, %v3963_v55  ;;  %v3955_v39 = vadd.f32 %v3954_v48, %v9008_v60  ;;  %v3065_v3 = vadd.f32 %v7719_v13, %v7749_v44  ;;  %v8214_v48 = vpop.permute.xlu0 %4804  ;;  %v9011_v60 = vld [vmem:[#allocation88_spill] sm:$0xff] }
 0x2d4   : > { %v3606_v46 = vpop.f32.mrf.mxu1  ;;  %v5975_v16 = vpop.f32.mrf.mxu0 }
 0x2d5   : > { %5266 = vst.msk [vmem:[%s7903_s9 + $0x118] sm:$0xff] %vm5230_vm1, %v5137_v2  ;;  %v5135_v49 = vadd.f32 %v7813_v36, %v3955_v39  ;;  %v8203_v33 = vadd.f32 %v3606_v46, %v3062_v35  ;;  %v3976_v52 = vadd.f32 %v5975_v16, %v9009_v34 }
 0x2d6   : > { %v3608_v20 = vpop.f32.mrf.mxu1  ;;  %v3967_v63 = vpop.f32.mrf.mxu0 }
 0x2d7   : > { %5264 = vst.msk [vmem:[%s7903_s9 + $0x108] sm:$0xff] %vm5230_vm1, %v5135_v49  ;;  %v5140_v9 = vadd.f32 %v7853_v47, %v3976_v52  ;;  %v3968_v55 = vadd.f32 %v3967_v63, %v9010_v37  ;;  %v3070_v47 = vadd.f32 %v7719_v13, %v7759_v11  ;;  %v9012_v49 = vld [vmem:[#allocation86_spill] sm:$0xff] }
 0x2d8   : > { %v3609_v8 = vpop.f32.mrf.mxu1  ;;  %v5976_v36 = vpop.f32.mrf.mxu0 }
 0x2d9   : > { %5269 = vst.msk [vmem:[%s7903_s9 + $0x130] sm:$0xff] %vm5230_vm1, %v5140_v9  ;;  %v5138_v35 = vadd.f32 %v7837_v30, %v3968_v55  ;;  %v8219_v2 = vadd.f32 %v3609_v8, %v3065_v3  ;;  %v3979_v39 = vadd.f32 %v5976_v36, %v9011_v60  ;;  %v8228_v30 = vpop.permute.xlu1 %4809  ;;  %v9013_v9 = vld [vmem:[#allocation91_spill] sm:$0xff]  ;;  %v8236_v8 = vpop.permute.xlu0 %4814 }
 0x2da   : > { %v3611_v44 = vpop.f32.mrf.mxu1  ;;  %v3970_v46 = vpop.f32.mrf.mxu0 }
 0x2db   : > { %5267 = vst.msk [vmem:[%s7903_s9 + $0x120] sm:$0xff] %vm5230_vm1, %v5138_v35  ;;  %v5141_v16 = vadd.f32 %v7865_v41, %v3979_v39  ;;  %v3971_v34 = vadd.f32 %v3970_v46, %v9012_v49  ;;  %v3073_v41 = vadd.f32 %v7719_v13, %v7767_v27  ;;  %v9014_v35 = vld [vmem:[#allocation89_spill] sm:$0xff]  ;;  %v8255_v27 = vld [vmem:[%s8825_s2] ss:$0 sm:$0xff] }
 0x2dc   : > { %v3614_v52 = vpop.f32.mrf.mxu1  ;;  %v5979_v20 = vpop.f32.mrf.mxu0 }
 0x2dd   : > { %5270 = vst.msk [vmem:[%s7903_s9 + $0x138] sm:$0xff] %vm5230_vm1, %v5141_v16  ;;  %v5139_v63 = vadd.f32 %v7848_v12, %v3971_v34  ;;  %v8233_v3 = vadd.f32 %v3614_v52, %v3070_v47  ;;  %v3992_v37 = vadd.f32 %v5979_v20, %v9013_v9  ;;  %v9015_v47 = vld [vmem:[#allocation92_spill] sm:$0xff]  ;;  %v8250_v13 = vpop.permute.xlu1 %4819  ;;  %v9017_v20 = vld [vmem:[#allocation90_spill] sm:$0xff] }
 0x2de   : > { %v3616_v11 = vpop.f32.mrf.mxu1  ;;  %v3983_v55 = vpop.f32.mrf.mxu0 }
 0x2df   : > { %5268 = vst.msk [vmem:[%s7903_s9 + $0x128] sm:$0xff] %vm5230_vm1, %v5139_v63  ;;  %v5144_v36 = vadd.f32 %v7889_v58, %v3992_v37  ;;  %v3984_v60 = vadd.f32 %v3983_v55, %v9014_v35  ;;  %v9016_v58 = vld [vmem:[#allocation103_spill] sm:$0xff]  ;;  %v8263_v11 = vpop.permute.xlu0 %4824 }
 0x2e0   : > { %v3617_v39 = vpop.f32.mrf.mxu1  ;;  %v5980_v12 = vpop.f32.mrf.mxu0  ;;  %v3078_v52 = vadd.f32 %v8255_v27, %v9016_v58 }
 0x2e1   : > { %5273 = vst.msk [vmem:[%s7903_s9 + $0x150] sm:$0xff] %vm5230_vm1, %v5144_v36  ;;  %v5142_v44 = vadd.f32 %v7872_v62, %v3984_v60  ;;  %v8247_v46 = vadd.f32 %v3617_v39, %v3073_v41  ;;  %v3995_v16 = vadd.f32 %v5980_v12, %v9015_v47  ;;  %v9018_v36 = vld [vmem:[#allocation95_spill] sm:$0xff]  ;;  %v9019_v12 = vld [vmem:[#allocation105_spill] sm:$0xff] }
 0x2e2   : > { %v3619_v49 = vpop.f32.mrf.mxu1  ;;  %v3986_v34 = vpop.f32.mrf.mxu0  ;;  %v9020_v47 = vld [vmem:[#allocation93_spill] sm:$0xff] }
 0x2e3   : > { %5271 = vst.msk [vmem:[%s7903_s9 + $0x140] sm:$0xff] %vm5230_vm1, %v5142_v44  ;;  %v5145_v62 = vadd.f32 %v7905_v23, %v3995_v16  ;;  %v3987_v63 = vadd.f32 %v3986_v34, %v9017_v20  ;;  %v3081_v23 = vadd.f32 %v8255_v27, %v9019_v12 }
 0x2e4   : > { %v3622_v9 = vpop.f32.mrf.mxu1  ;;  %v5983_v37 = vpop.f32.mrf.mxu0 }
 0x2e5   : > { %5274 = vst.msk [vmem:[%s7903_s9 + $0x158] sm:$0xff] %vm5230_vm1, %v5145_v62  ;;  %v5143_v55 = vadd.f32 %v7883_v18, %v3987_v63  ;;  %v8268_v41 = vadd.f32 %v3622_v9, %v3078_v52  ;;  %v4008_v35 = vadd.f32 %v5983_v37, %v9018_v36  ;;  %v8277_v18 = vpop.permute.xlu1 %4829  ;;  %v9021_v62 = vld [vmem:[#allocation96_spill] sm:$0xff]  ;;  %v8285_v37 = vpop.permute.xlu0 %4834 }
 0x2e6   : > { %v3624_v60 = vpop.f32.mrf.mxu1  ;;  %v3999_v39 = vpop.f32.mrf.mxu0 }
 0x2e7   : > { %5272 = vst.msk [vmem:[%s7903_s9 + $0x148] sm:$0xff] %vm5230_vm1, %v5143_v55  ;;  %v5148_v44 = vadd.f32 %v7939_v26, %v4008_v35  ;;  %v4000_v16 = vadd.f32 %v3999_v39, %v9020_v47  ;;  %v9022_v26 = vld [vmem:[#allocation107_spill] sm:$0xff]  ;;  %v9023_v35 = vld [vmem:[#allocation94_spill] sm:$0xff] }
 0x2e8   : > { %v3625_v49 = vpop.f32.mrf.mxu1  ;;  %v5984_v34 = vpop.f32.mrf.mxu0  ;;  %v3086_v55 = vadd.f32 %v8255_v27, %v9022_v26 }
 0x2e9   : > { %5277 = vst.msk [vmem:[%s7903_s9 + $0x170] sm:$0xff] %vm5230_vm1, %v5148_v44  ;;  %v5146_v58 = vadd.f32 %v7913_v17, %v4000_v16  ;;  %v8282_v52 = vadd.f32 %v3625_v49, %v3081_v23  ;;  %v4011_v20 = vadd.f32 %v5984_v34, %v9021_v62  ;;  %v9024_v44 = vld [vmem:[#allocation99_spill] sm:$0xff]  ;;  %v8299_v34 = vpop.permute.xlu1 %4839  ;;  %v8307_v26 = vpop.permute.xlu0 %4844 }
 0x2ea   : > { %v3627_v63 = vpop.f32.mrf.mxu1  ;;  %v4002_v9 = vpop.f32.mrf.mxu0 }
 0x2eb   : > { %5275 = vst.msk [vmem:[%s7903_s9 + $0x160] sm:$0xff] %vm5230_vm1, %v5146_v58  ;;  %v5149_v36 = vadd.f32 %v7957_v42, %v4011_v20  ;;  %v4003_v60 = vadd.f32 %v4002_v9, %v9023_v35  ;;  %v9025_v58 = vld [vmem:[#allocation109_spill] sm:$0xff]  ;;  %v9027_v35 = vld [vmem:[#allocation100_spill] sm:$0xff] }
 0x2ec   : > { %v3630_v39 = vpop.f32.mrf.mxu1  ;;  %v5987_v17 = vpop.f32.mrf.mxu0  ;;  %v3089_v42 = vadd.f32 %v8255_v27, %v9025_v58  ;;  %v9026_v20 = vld [vmem:[#allocation97_spill] sm:$0xff] }
 0x2ed   : > { %5278 = vst.msk [vmem:[%s7903_s9 + $0x178] sm:$0xff] %vm5230_vm1, %v5149_v36  ;;  %v5147_v12 = vadd.f32 %v7930_v1, %v4003_v60  ;;  %v8296_v23 = vadd.f32 %v3630_v39, %v3086_v55  ;;  %v4024_v47 = vadd.f32 %v5987_v17, %v9024_v44 }
 0x2ee   : > { %v3632_v16 = vpop.f32.mrf.mxu1  ;;  %v4015_v49 = vpop.f32.mrf.mxu0 }
 0x2ef   : > { %5276 = vst.msk [vmem:[%s7903_s9 + $0x168] sm:$0xff] %vm5230_vm1, %v5147_v12  ;;  %v5152_v62 = vadd.f32 %v7993_v19, %v4024_v47  ;;  %v4016_v63 = vadd.f32 %v4015_v49, %v9026_v20  ;;  %v9028_v12 = vld [vmem:[#allocation111_spill] sm:$0xff]  ;;  %v9029_v47 = vld [vmem:[#allocation98_spill] sm:$0xff]  ;;  %v9030_v20 = vld [vmem:[#allocation104_spill] sm:$0xff] }
 0x2f0   : > { %v3633_v9 = vpop.f32.mrf.mxu1  ;;  %v5988_v1 = vpop.f32.mrf.mxu0  ;;  %v3094_v19 = vadd.f32 %v8255_v27, %v9028_v12 }
 0x2f1   : > { %5281 = vst.msk [vmem:[%s7903_s9 + $0x190] sm:$0xff] %vm5230_vm1, %v5152_v62  ;;  %v5150_v55 = vadd.f32 %v7966_v56, %v4016_v63  ;;  %v8312_v36 = vadd.f32 %v3633_v9, %v3089_v42  ;;  %v4027_v60 = vadd.f32 %v5988_v1, %v9027_v35  ;;  %v8321_v56 = vpop.permute.xlu1 %4849 }
 0x2f2   : > { %v3635_v39 = vpop.f32.mrf.mxu1  ;;  %v4018_v17 = vpop.f32.mrf.mxu0 }
 0x2f3   : > { %5279 = vst.msk [vmem:[%s7903_s9 + $0x180] sm:$0xff] %vm5230_vm1, %v5150_v55  ;;  %v5153_v44 = vadd.f32 %v8009_v5, %v4027_v60  ;;  %v4019_v16 = vadd.f32 %v4018_v17, %v9029_v47  ;;  %v8329_v55 = vpop.permute.xlu0 %4854  ;;  %v9031_v5 = vld [vmem:[#allocation113_spill] sm:$0xff]  ;;  %v9033_v47 = vld [vmem:[#allocation106_spill] sm:$0xff] }
 0x2f4   : > { %v3638_v49 = vpop.f32.mrf.mxu1  ;;  %v5991_v58 = vpop.f32.mrf.mxu0  ;;  %v3097_v35 = vadd.f32 %v8255_v27, %v9031_v5  ;;  %v9032_v39 = vld [vmem:[#allocation101_spill] sm:$0xff] }
 0x2f5   : > { %5282 = vst.msk [vmem:[%s7903_s9 + $0x198] sm:$0xff] %vm5230_vm1, %v5153_v44  ;;  %v5151_v42 = vadd.f32 %v7983_v21, %v4019_v16  ;;  %v8326_v62 = vadd.f32 %v3638_v49, %v3094_v19  ;;  %v4040_v63 = vadd.f32 %v5991_v58, %v9030_v20  ;;  %v8343_v20 = vpop.permute.xlu1 %4859 }
 0x2f6   : > { %v3640_v9 = vpop.f32.mrf.mxu1  ;;  %v4031_v1 = vpop.f32.mrf.mxu0 }
 0x2f7   : > { %5280 = vst.msk [vmem:[%s7903_s9 + $0x188] sm:$0xff] %vm5230_vm1, %v5151_v42  ;;  %v5156_v60 = vadd.f32 %v8045_v28, %v4040_v63  ;;  %v4032_v17 = vadd.f32 %v4031_v1, %v9032_v39  ;;  %v9034_v42 = vld [vmem:[#allocation115_spill] sm:$0xff]  ;;  %v9035_v9 = vld [vmem:[#allocation102_spill] sm:$0xff] }
 0x2f8   : > { %v3641_v12 = vpop.f32.mrf.mxu1  ;;  %v5992_v21 = vpop.f32.mrf.mxu0  ;;  %v3102_v28 = vadd.f32 %v8255_v27, %v9034_v42 }
 0x2f9   : > { %5285 = vst.msk [vmem:[%s7903_s9 + $0x1b0] sm:$0xff] %vm5230_vm1, %v5156_v60  ;;  %v5154_v19 = vadd.f32 %v8019_v25, %v4032_v17  ;;  %v8340_v44 = vadd.f32 %v3641_v12, %v3097_v35  ;;  %v4043_v16 = vadd.f32 %v5992_v21, %v9033_v47  ;;  %v8351_v35 = vpop.permute.xlu0 %4864  ;;  %v9036_v17 = vld [vmem:[#allocation112_spill] sm:$0xff]  ;;  %v9037_v47 = vld [vmem:[#allocation117_spill] sm:$0xff] }
 0x2fa   : > { %v3643_v49 = vpop.f32.mrf.mxu1  ;;  %v4034_v58 = vpop.f32.mrf.mxu0 }
 0x2fb   : > { %5283 = vst.msk [vmem:[%s7903_s9 + $0x1a0] sm:$0xff] %vm5230_vm1, %v5154_v19  ;;  %v5157_v63 = vadd.f32 %v8063_v31, %v4043_v16  ;;  %v4035_v1 = vadd.f32 %v4034_v58, %v9035_v9  ;;  %v3105_v31 = vadd.f32 %v8255_v27, %v9037_v47  ;;  %v9038_v49 = vld [vmem:[#allocation108_spill] sm:$0xff] }
 0x2fc   : > { %v3646_v5 = vpop.f32.mrf.mxu1  ;;  %v5995_v25 = vpop.f32.mrf.mxu0 }
 0x2fd   : > { %5286 = vst.msk [vmem:[%s7903_s9 + $0x1b8] sm:$0xff] %vm5230_vm1, %v5157_v63  ;;  %v5155_v60 = vadd.f32 %v8036_v51, %v4035_v1  ;;  %v8356_v39 = vadd.f32 %v3646_v5, %v3102_v28  ;;  %v4056_v12 = vadd.f32 %v5995_v25, %v9036_v17  ;;  %v8365_v51 = vpop.permute.xlu1 %4869  ;;  %v9039_v1 = vld [vmem:[#allocation114_spill] sm:$0xff]  ;;  %v8373_v17 = vpop.permute.xlu0 %4874 }
 0x2fe   : > { %v3648_v21 = vpop.f32.mrf.mxu1  ;;  %v4047_v19 = vpop.f32.mrf.mxu0 }
 0x2ff   : > { %5284 = vst.msk [vmem:[%s7903_s9 + $0x1a8] sm:$0xff] %vm5230_vm1, %v5155_v60  ;;  %v5160_v16 = vadd.f32 %v8099_v22, %v4056_v12  ;;  %v4048_v58 = vadd.f32 %v4047_v19, %v9038_v49  ;;  %v9040_v12 = vld [vmem:[#allocation110_spill] sm:$0xff] }
 0x300   : > { %v3649_v42 = vpop.f32.mrf.mxu1  ;;  %v5996_v63 = vpop.f32.mrf.mxu0 }
 0x301   : > { %5289 = vst.msk [vmem:[%s7903_s9 + $0x1d0] sm:$0xff] %vm5230_vm1, %v5160_v16  ;;  %v5158_v28 = vadd.f32 %v8072_v57, %v4048_v58  ;;  %v8370_v9 = vadd.f32 %v3649_v42, %v3105_v31  ;;  %v4059_v5 = vadd.f32 %v5996_v63, %v9039_v1  ;;  %v9041_v31 = vld [vmem:[#allocation120_spill] sm:$0xff]  ;;  %v8385_v42 = vpop.permute.xlu1 %4879 }
 0x302   : > { %v3651_v25 = vpop.f32.mrf.mxu1  ;;  %v4050_v60 = vpop.f32.mrf.mxu0  ;;  %v9042_v63 = vld [vmem:[#allocation116_spill] sm:$0xff] }
 0x303   : > { %5287 = vst.msk [vmem:[%s7903_s9 + $0x1c0] sm:$0xff] %vm5230_vm1, %v5158_v28  ;;  %v5161_v22 = vadd.f32 %v8115_v59, %v4059_v5  ;;  %v4051_v21 = vadd.f32 %v4050_v60, %v9040_v12  ;;  %v8393_v25 = vpop.permute.xlu0 %4884  ;;  %v9043_v60 = vld [vmem:[#allocation122_spill] sm:$0xff] }
 0x304   : > { %v8379_v19 = vpop.f32.mrf.mxu1  ;;  %v5999_v47 = vpop.f32.mrf.mxu0 }
 0x305   : > { %5290 = vst.msk [vmem:[%s7903_s9 + $0x1d8] sm:$0xff] %vm5230_vm1, %v5161_v22  ;;  %v5159_v57 = vadd.f32 %v8089_v61, %v4051_v21  ;;  %v4072_v16 = vadd.f32 %v5999_v47, %v9041_v31  ;;  %v9044_v47 = vld [vmem:[#allocation2_spill] sm:$0xff] }
 0x306   : > { %v3656_v49 = vpop.f32.mrf.mxu1  ;;  %v4063_v58 = vpop.f32.mrf.mxu0  ;;  %v9045_v31 = vld [vmem:[#allocation118_spill] sm:$0xff] }
 0x307   : > { %5288 = vst.msk [vmem:[%s7903_s9 + $0x1c8] sm:$0xff] %vm5230_vm1, %v5159_v57  ;;  %v5164_v59 = vadd.f32 %v8148_v54, %v4072_v16  ;;  %v4064_v28 = vadd.f32 %v4063_v58, %v9042_v63  ;;  %v3118_v54 = vadd.f32 %v8255_v27, %v9044_v47 }
 0x308   : > { %v8391_v1 = vpop.f32.mrf.mxu1  ;;  %v6000_v5 = vpop.f32.mrf.mxu0 }
 0x309   : > { %5293 = vst.msk [vmem:[%s7903_s9 + $0x1f0] sm:$0xff] %vm5230_vm1, %v5164_v59  ;;  %v5162_v61 = vadd.f32 %v8125_v24, %v4064_v28  ;;  %v4075_v22 = vadd.f32 %v6000_v5, %v9043_v60  ;;  %v8405_v59 = vpop.permute.xlu1 %4889  ;;  %v9046_v60 = vld [vmem:[#allocation3_spill] sm:$0xff] }
 0x30a   : > { %v3659_v12 = vpop.f32.mrf.mxu1  ;;  %v4066_v21 = vpop.f32.mrf.mxu0 }
 0x30b   : > { %5291 = vst.msk [vmem:[%s7903_s9 + $0x1e0] sm:$0xff] %vm5230_vm1, %v5162_v61  ;;  %v5165_v57 = vadd.f32 %v8162_v53, %v4075_v22  ;;  %v4067_v16 = vadd.f32 %v4066_v21, %v9045_v31  ;;  %v3121_v53 = vadd.f32 %v8255_v27, %v9046_v60  ;;  %v8415_v22 = vpop.permute.xlu0 %4894  ;;  %v9047_v21 = vld [vmem:[#allocation123_spill] sm:$0xff] }
 0x30c   : > { %v3662_v49 = vpop.f32.mrf.mxu1  ;;  %v6003_v58 = vpop.f32.mrf.mxu0 }
 0x30d   : > { %5294 = vst.msk [vmem:[%s7903_s9 + $0x1f8] sm:$0xff] %vm5230_vm1, %v5165_v57  ;;  %v5163_v24 = vadd.f32 %v8140_v50, %v4067_v16  ;;  %v8410_v63 = vadd.f32 %v3662_v49, %v3118_v54  ;;  %v4088_v28 = vadd.f32 %v6003_v58, %v7935_v15  ;;  %v8427_v58 = vpop.permute.xlu1 %4899 }
 0x30e   : > { %v3664_v5 = vpop.f32.mrf.mxu1  ;;  %v4079_v61 = vpop.f32.mrf.mxu0 }
 0x30f   : > { %5292 = vst.msk [vmem:[%s7903_s9 + $0x1e8] sm:$0xff] %vm5230_vm1, %v5163_v24  ;;  %v5168_v12 = vadd.f32 %v8192_v29, %v4088_v28  ;;  %v4080_v47 = vadd.f32 %v4079_v61, %v9047_v21 }
 0x310   : > { %v3665_v50 = vpop.f32.mrf.mxu1  ;;  %v6004_v54 = vpop.f32.mrf.mxu0 }
 0x311   : > { %5297 = vst.msk [vmem:[%s7903_s9 + $0x210] sm:$0xff] %vm5230_vm1, %v5168_v12  ;;  %v5166_v15 = vadd.f32 %v8170_v6, %v4080_v47  ;;  %v8424_v57 = vadd.f32 %v3665_v50, %v3121_v53  ;;  %v4091_v31 = vadd.f32 %v6004_v54, %v7952_v4  ;;  %v8435_v6 = vpop.permute.xlu0 %4904  ;;  %v9048_v12 = vld [vmem:[#allocation57_spill] sm:$0xff]  ;;  %v8447_v50 = vpop.permute.xlu1 %4909  ;;  %v9049_v54 = vld [vmem:[#allocation60_spill] sm:$0xff] }
 0x312   : > { %v3667_v16 = vpop.f32.mrf.mxu1  ;;  %v4082_v49 = vpop.f32.mrf.mxu0 }
 0x313   : > { %5295 = vst.msk [vmem:[%s7903_s9 + $0x200] sm:$0xff] %vm5230_vm1, %v5166_v15  ;;  %v5169_v29 = vadd.f32 %v8206_v0, %v4091_v31  ;;  %v4083_v24 = vadd.f32 %v4082_v49, %v7918_v10  ;;  %v9050_v49 = vld [vmem:[#allocation19_spill] sm:$0xff] }
 0x314   : > { %v8433_v28 = vpop.f32.mrf.mxu1  ;;  %v6007_v5 = vpop.f32.mrf.mxu0 }
 0x315   : > { %5298 = vst.msk [vmem:[%s7903_s9 + $0x218] sm:$0xff] %vm5230_vm1, %v5169_v29  ;;  %v5167_v4 = vadd.f32 %v8184_v43, %v4083_v24  ;;  %v4104_v61 = vadd.f32 %v6007_v5, %v8005_v32  ;;  %v8453_v16 = vpop.permute.xlu0 %4914 }
 0x316   : > { %v3672_v60 = vpop.f32.mrf.mxu1  ;;  %v4095_v53 = vpop.f32.mrf.mxu0 }
 0x317   : > { %5296 = vst.msk [vmem:[%s7903_s9 + $0x208] sm:$0xff] %vm5230_vm1, %v5167_v4  ;;  %v5172_v0 = vadd.f32 %v8236_v8, %v4104_v61  ;;  %v4096_v10 = vadd.f32 %v4095_v53, %v9048_v12  ;;  %v9051_v4 = vld [vmem:[#allocation24_spill] sm:$0xff]  ;;  %v9052_v12 = vld [vmem:[#allocation27_spill] sm:$0xff] }
 0x318   : > { %v8445_v21 = vpop.f32.mrf.mxu1  ;;  %v6008_v47 = vpop.f32.mrf.mxu0 }
 0x319   : > { %5301 = vst.msk [vmem:[%s7903_s9 + $0x230] sm:$0xff] %vm5230_vm1, %v5172_v0  ;;  %v5170_v43 = vadd.f32 %v8214_v48, %v4096_v10  ;;  %v4107_v32 = vadd.f32 %v6008_v47, %v9049_v54  ;;  %v8465_v0 = vpop.permute.xlu1 %4919  ;;  %v8473_v54 = vpop.permute.xlu0 %4924 }
 0x31a   : > { %v3675_v15 = vpop.f32.mrf.mxu1  ;;  %v4098_v31 = vpop.f32.mrf.mxu0 }
 0x31b   : > { %5299 = vst.msk [vmem:[%s7903_s9 + $0x220] sm:$0xff] %vm5230_vm1, %v5170_v43  ;;  %v5173_v8 = vadd.f32 %v8250_v13, %v4107_v32  ;;  %v4099_v29 = vadd.f32 %v4098_v31, %v9050_v49  ;;  %v9053_v32 = vld [vmem:[#allocation61_spill] sm:$0xff]  ;;  %v9054_v49 = vld [vmem:[#allocation58_spill] sm:$0xff] }
 0x31c   : > { %v8459_v24 = vpop.f32.mrf.mxu1  ;;  %v6011_v5 = vpop.f32.mrf.mxu0 }
 0x31d   : > { %5302 = vst.msk [vmem:[%s7903_s9 + $0x238] sm:$0xff] %vm5230_vm1, %v5173_v8  ;;  %v5171_v48 = vadd.f32 %v8228_v30, %v4099_v29  ;;  %v4120_v61 = vadd.f32 %v6011_v5, %v9051_v4  ;;  %v8485_v4 = vpop.permute.xlu1 %4929 }
 0x31e   : > { %v3680_v60 = vpop.f32.mrf.mxu1  ;;  %v4111_v53 = vpop.f32.mrf.mxu0 }
 0x31f   : > { %5300 = vst.msk [vmem:[%s7903_s9 + $0x228] sm:$0xff] %vm5230_vm1, %v5171_v48  ;;  %v5176_v13 = vadd.f32 %v8285_v37, %v4120_v61  ;;  %v4112_v10 = vadd.f32 %v4111_v53, %v9052_v12  ;;  %v9055_v12 = vld [vmem:[#allocation26_spill] sm:$0xff] }
 0x320   : > { %v8471_v47 = vpop.f32.mrf.mxu1  ;;  %v6012_v43 = vpop.f32.mrf.mxu0 }
 0x321   : > { %5305 = vst.msk [vmem:[%s7903_s9 + $0x250] sm:$0xff] %vm5230_vm1, %v5176_v13  ;;  %v5174_v30 = vadd.f32 %v8263_v11, %v4112_v10  ;;  %v4123_v15 = vadd.f32 %v6012_v43, %v9053_v32  ;;  %v8491_v13 = vpop.permute.xlu0 %4934 }
 0x322   : > { %v3683_v31 = vpop.f32.mrf.mxu1  ;;  %v4114_v8 = vpop.f32.mrf.mxu0 }
 0x323   : > { %5303 = vst.msk [vmem:[%s7903_s9 + $0x240] sm:$0xff] %vm5230_vm1, %v5174_v30  ;;  %v5177_v37 = vadd.f32 %v8299_v34, %v4123_v15  ;;  %v4115_v29 = vadd.f32 %v4114_v8, %v9054_v49  ;;  %v8503_v31 = vpop.permute.xlu1 %4939 }
 0x324   : > { %v8483_v5 = vpop.f32.mrf.mxu1  ;;  %v6015_v48 = vpop.f32.mrf.mxu0 }
 0x325   : > { %5306 = vst.msk [vmem:[%s7903_s9 + $0x258] sm:$0xff] %vm5230_vm1, %v5177_v37  ;;  %v5175_v11 = vadd.f32 %v8277_v18, %v4115_v29  ;;  %v4136_v61 = vadd.f32 %v6015_v48, %v8145_v40  ;;  %v8511_v29 = vpop.permute.xlu0 %4944 }
 0x326   : > { %v3688_v60 = vpop.f32.mrf.mxu1  ;;  %v4127_v53 = vpop.f32.mrf.mxu0 }
 0x327   : > { %5304 = vst.msk [vmem:[%s7903_s9 + $0x248] sm:$0xff] %vm5230_vm1, %v5175_v11  ;;  %v5180_v34 = vadd.f32 %v8329_v55, %v4136_v61  ;;  %v4128_v10 = vadd.f32 %v4127_v53, %v9055_v12  ;;  %v8523_v53 = vpop.permute.xlu1 %4949 }
 0x328   : > { %v8497_v43 = vpop.f32.mrf.mxu1  ;;  %v6016_v30 = vpop.f32.mrf.mxu0 }
 0x329   : > { %5309 = vst.msk [vmem:[%s7903_s9 + $0x270] sm:$0xff] %vm5230_vm1, %v5180_v34  ;;  %v5178_v18 = vadd.f32 %v8307_v26, %v4128_v10  ;;  %v4139_v40 = vadd.f32 %v6016_v30, %v8159_v38  ;;  %v8529_v10 = vpop.permute.xlu0 %4954 }
 0x32a   : > { %v3691_v32 = vpop.f32.mrf.mxu1  ;;  %v4130_v15 = vpop.f32.mrf.mxu0 }
 0x32b   : > { %5307 = vst.msk [vmem:[%s7903_s9 + $0x260] sm:$0xff] %vm5230_vm1, %v5178_v18  ;;  %v5181_v55 = vadd.f32 %v8343_v20, %v4139_v40  ;;  %v4131_v8 = vadd.f32 %v4130_v15, %v8130_v7  ;;  %v8541_v15 = vpop.permute.xlu1 %4959 }
 0x32c   : > { %v8509_v37 = vpop.f32.mrf.mxu1  ;;  %v6019_v49 = vpop.f32.mrf.mxu0 }
 0x32d   : > { %5310 = vst.msk [vmem:[%s7903_s9 + $0x278] sm:$0xff] %vm5230_vm1, %v5181_v55  ;;  %v5179_v38 = vadd.f32 %v8321_v56, %v4131_v8  ;;  %v4152_v26 = vadd.f32 %v6019_v49, %v8203_v33  ;;  %v8549_v49 = vpop.permute.xlu0 %4964 }
 0x32e   : > { %v3696_v48 = vpop.f32.mrf.mxu1  ;;  %v4143_v11 = vpop.f32.mrf.mxu0 }
 0x32f   : > { %5308 = vst.msk [vmem:[%s7903_s9 + $0x268] sm:$0xff] %vm5230_vm1, %v5179_v38  ;;  %v5184_v20 = vadd.f32 %v8373_v17, %v4152_v26  ;;  %v4144_v7 = vadd.f32 %v4143_v11, %v8175_v14 }
 0x330   : > { %v8521_v61 = vpop.f32.mrf.mxu1  ;;  %v6020_v60 = vpop.f32.mrf.mxu0 }
 0x331   : > { %5313 = vst.msk [vmem:[%s7903_s9 + $0x290] sm:$0xff] %vm5230_vm1, %v5184_v20  ;;  %v5182_v56 = vadd.f32 %v8351_v35, %v4144_v7  ;;  %v4155_v33 = vadd.f32 %v6020_v60, %v8219_v2  ;;  %v8561_v20 = vpop.permute.xlu1 %4969 }
 0x332   : > { %v3699_v34 = vpop.f32.mrf.mxu1  ;;  %v4146_v12 = vpop.f32.mrf.mxu0 }
 0x333   : > { %5311 = vst.msk [vmem:[%s7903_s9 + $0x280] sm:$0xff] %vm5230_vm1, %v5182_v56  ;;  %v5185_v14 = vadd.f32 %v8385_v42, %v4155_v33  ;;  %v4147_v17 = vadd.f32 %v4146_v12, %v8189_v45  ;;  %v8567_v56 = vpop.permute.xlu0 %4974  ;;  %v9056_v12 = vld [vmem:[#allocation119_spill] sm:$0xff] }
 0x334   : > { %v8535_v30 = vpop.f32.mrf.mxu1  ;;  %v6023_v18 = vpop.f32.mrf.mxu0 }
 0x335   : > { %5314 = vst.msk [vmem:[%s7903_s9 + $0x298] sm:$0xff] %vm5230_vm1, %v5185_v14  ;;  %v5183_v35 = vadd.f32 %v8365_v51, %v4147_v17  ;;  %v4168_v2 = vadd.f32 %v6023_v18, %v8268_v41 }
 0x336   : > { %v3704_v40 = vpop.f32.mrf.mxu1  ;;  %v4159_v32 = vpop.f32.mrf.mxu0 }
 0x337   : > { %5312 = vst.msk [vmem:[%s7903_s9 + $0x288] sm:$0xff] %vm5230_vm1, %v5183_v35  ;;  %v5188_v42 = vadd.f32 %v8415_v22, %v4168_v2  ;;  %v4160_v45 = vadd.f32 %v4159_v32, %v8233_v3  ;;  %v8581_v35 = vpop.permute.xlu1 %4979 }
 0x338   : > { %v8547_v55 = vpop.f32.mrf.mxu1  ;;  %v6024_v8 = vpop.f32.mrf.mxu0 }
 0x339   : > { %5317 = vst.msk [vmem:[%s7903_s9 + $0x2b0] sm:$0xff] %vm5230_vm1, %v5188_v42  ;;  %v5186_v41 = vadd.f32 %v8393_v25, %v4160_v45  ;;  %v4171_v51 = vadd.f32 %v6024_v8, %v8282_v52 }
 0x33a   : > { %v3707_v38 = vpop.f32.mrf.mxu1  ;;  %v4162_v26 = vpop.f32.mrf.mxu0 }
 0x33b   : > { %5315 = vst.msk [vmem:[%s7903_s9 + $0x2a0] sm:$0xff] %vm5230_vm1, %v5186_v41  ;;  %v5189_v22 = vadd.f32 %v8427_v58, %v4171_v51  ;;  %v4163_v3 = vadd.f32 %v4162_v26, %v8247_v46 }
 0x33c   : > { %v8559_v48 = vpop.f32.mrf.mxu1  ;;  %v6027_v11 = vpop.f32.mrf.mxu0 }
 0x33d   : > { %5318 = vst.msk [vmem:[%s7903_s9 + $0x2b8] sm:$0xff] %vm5230_vm1, %v5189_v22  ;;  %v5187_v25 = vadd.f32 %v8405_v59, %v4163_v3  ;;  %v4184_v52 = vadd.f32 %v6027_v11, %v8326_v62  ;;  %v3110_v59 = vadd.f32 %v8255_v27, %v9056_v12  ;;  %v9058_v22 = vld [vmem:[#allocation4_spill] sm:$0xff] }
 0x33e   : > { %v3712_v7 = vpop.f32.mrf.mxu1  ;;  %v4175_v60 = vpop.f32.mrf.mxu0  ;;  %v3126_v3 = vadd.f32 %v8255_v27, %v9058_v22 }
 0x33f   : > { %5316 = vst.msk [vmem:[%s7903_s9 + $0x2a8] sm:$0xff] %vm5230_vm1, %v5187_v25  ;;  %v5192_v46 = vadd.f32 %v8453_v16, %v4184_v52  ;;  %v4176_v58 = vadd.f32 %v4175_v60, %v8296_v23  ;;  %v3655_v23 = vadd.f32 %v8379_v19, %v3110_v59 }
 0x340   : > { %v8573_v33 = vpop.f32.mrf.mxu1  ;;  %v6028_v34 = vpop.f32.mrf.mxu0 }
 0x341   : > { %5321 = vst.msk [vmem:[%s7903_s9 + $0x2d0] sm:$0xff] %vm5230_vm1, %v5192_v46  ;;  %v5190_v62 = vadd.f32 %v8435_v6, %v4176_v58  ;;  %v4187_v14 = vadd.f32 %v6028_v34, %v8340_v44  ;;  %v8590_v6 = vpop.permute.xlu0 %4984  ;;  %v9057_v44 = vld [vmem:[#allocation121_spill] sm:$0xff] }
 0x342   : > { %v3715_v17 = vpop.f32.mrf.mxu1  ;;  %v4178_v18 = vpop.f32.mrf.mxu0  ;;  %v3113_v42 = vadd.f32 %v8255_v27, %v9057_v44  ;;  %v9059_v34 = vld [vmem:[#allocation5_spill] sm:$0xff] }
 0x343   : > { %5319 = vst.msk [vmem:[%s7903_s9 + $0x2c0] sm:$0xff] %vm5230_vm1, %v5190_v62  ;;  %v5193_v16 = vadd.f32 %v8465_v0, %v4187_v14  ;;  %v4179_v2 = vadd.f32 %v4178_v18, %v8312_v36 }
 0x344   : > { %v8588_v40 = vpop.f32.mrf.mxu1  ;;  %v6031_v32 = vpop.f32.mrf.mxu0  ;;  %v3658_v0 = vadd.f32 %v8391_v1, %v3113_v42 }
 0x345   : > { %5322 = vst.msk [vmem:[%s7903_s9 + $0x2d8] sm:$0xff] %vm5230_vm1, %v5193_v16  ;;  %v5191_v45 = vadd.f32 %v8447_v50, %v4179_v2  ;;  %v4200_v19 = vadd.f32 %v6031_v32, %v3655_v23  ;;  %v8606_v50 = vpop.permute.xlu1 %4989  ;;  %v9060_v16 = vld [vmem:[#allocation8_spill] sm:$0xff] }
 0x346   : > { %v3720_v8 = vpop.f32.mrf.mxu1  ;;  %v4191_v41 = vpop.f32.mrf.mxu0 }
 0x347   : > { %5320 = vst.msk [vmem:[%s7903_s9 + $0x2c8] sm:$0xff] %vm5230_vm1, %v5191_v45  ;;  %v5196_v36 = vadd.f32 %v8491_v13, %v4200_v19  ;;  %v4192_v51 = vadd.f32 %v4191_v41, %v8356_v39  ;;  %v8611_v13 = vpop.permute.xlu0 %4994  ;;  %v3671_v39 = vadd.f32 %v8433_v28, %v3126_v3  ;;  %v9061_v45 = vld [vmem:[#allocation6_spill] sm:$0xff] }
 0x348   : > { %v8602_v38 = vpop.f32.mrf.mxu1  ;;  %v6032_v26 = vpop.f32.mrf.mxu0 }
 0x349   : > { %5325 = vst.msk [vmem:[%s7903_s9 + $0x2f0] sm:$0xff] %vm5230_vm1, %v5196_v36  ;;  %v5194_v11 = vadd.f32 %v8473_v54, %v4192_v51  ;;  %v4203_v1 = vadd.f32 %v6032_v26, %v3658_v0  ;;  %v3129_v54 = vadd.f32 %v8255_v27, %v9059_v34  ;;  %v8625_v14 = vpop.permute.xlu1 %4999  ;;  %v9062_v36 = vld [vmem:[#allocation9_spill] sm:$0xff] }
 0x34a   : > { %v3723_v25 = vpop.f32.mrf.mxu1  ;;  %v4194_v52 = vpop.f32.mrf.mxu0 }
 0x34b   : > { %5323 = vst.msk [vmem:[%s7903_s9 + $0x2e0] sm:$0xff] %vm5230_vm1, %v5194_v11  ;;  %v5197_v7 = vadd.f32 %v8503_v31, %v4203_v1  ;;  %v4195_v60 = vadd.f32 %v4194_v52, %v8370_v9  ;;  %v3674_v31 = vadd.f32 %v8445_v21, %v3129_v54  ;;  %v8636_v2 = vpop.permute.xlu0 %5004  ;;  %v9063_v11 = vld [vmem:[#allocation7_spill] sm:$0xff] }
 0x34c   : > { %v8618_v46 = vpop.f32.mrf.mxu1  ;;  %v6035_v58 = vpop.f32.mrf.mxu0 }
 0x34d   : > { %5326 = vst.msk [vmem:[%s7903_s9 + $0x2f8] sm:$0xff] %vm5230_vm1, %v5197_v7  ;;  %v5195_v12 = vadd.f32 %v8485_v4, %v4195_v60  ;;  %v4216_v59 = vadd.f32 %v6035_v58, %v3671_v39  ;;  %v3142_v4 = vadd.f32 %v8255_v27, %v9060_v16  ;;  %v8652_v51 = vpop.permute.xlu1 %5009 }
 0x34e   : > { %v3728_v62 = vpop.f32.mrf.mxu1  ;;  %v4207_v28 = vpop.f32.mrf.mxu0 }
 0x34f   : > { %5324 = vst.msk [vmem:[%s7903_s9 + $0x2e8] sm:$0xff] %vm5230_vm1, %v5195_v12  ;;  %v5200_v9 = vadd.f32 %v8529_v10, %v4216_v59  ;;  %v4208_v17 = vadd.f32 %v4207_v28, %v8410_v63  ;;  %v3134_v10 = vadd.f32 %v8255_v27, %v9061_v45  ;;  %v3687_v63 = vadd.f32 %v8483_v5, %v3142_v4  ;;  %v8660_v1 = vpop.permute.xlu0 %5014  ;;  %v9065_v59 = vld [vmem:[#allocation10_spill] sm:$0xff] }
 0x350   : > { %v8632_v18 = vpop.f32.mrf.mxu1  ;;  %v6036_v23 = vpop.f32.mrf.mxu0 }
 0x351   : > { %5329 = vst.msk [vmem:[%s7903_s9 + $0x310] sm:$0xff] %vm5230_vm1, %v5200_v9  ;;  %v5198_v32 = vadd.f32 %v8511_v29, %v4208_v17  ;;  %v4219_v21 = vadd.f32 %v6036_v23, %v3674_v31  ;;  %v3145_v29 = vadd.f32 %v8255_v27, %v9062_v36  ;;  %v3679_v26 = vadd.f32 %v8459_v24, %v3134_v10  ;;  %v8676_v62 = vpop.permute.xlu1 %5019 }
 0x352   : > { %v3731_v44 = vpop.f32.mrf.mxu1  ;;  %v4210_v42 = vpop.f32.mrf.mxu0 }
 0x353   : > { %5327 = vst.msk [vmem:[%s7903_s9 + $0x300] sm:$0xff] %vm5230_vm1, %v5198_v32  ;;  %v5201_v19 = vadd.f32 %v8541_v15, %v4219_v21  ;;  %v4211_v8 = vadd.f32 %v4210_v42, %v8424_v57  ;;  %v3137_v57 = vadd.f32 %v8255_v27, %v9063_v11  ;;  %v3690_v25 = vadd.f32 %v8497_v43, %v3145_v29  ;;  %v8686_v16 = vpop.permute.xlu0 %5024 }
 0x354   : > { %v8648_v41 = vpop.f32.mrf.mxu1  ;;  %v6039_v0 = vpop.f32.mrf.mxu0 }
 0x355   : > { %5330 = vst.msk [vmem:[%s7903_s9 + $0x318] sm:$0xff] %vm5230_vm1, %v5201_v19  ;;  %v5199_v5 = vadd.f32 %v8523_v53, %v4211_v8  ;;  %v4232_v22 = vadd.f32 %v6039_v0, %v3687_v63  ;;  %v9064_v53 = vld [vmem:[#allocation12_spill] sm:$0xff]  ;;  %v3682_v58 = vadd.f32 %v8471_v47, %v3137_v57  ;;  %v8702_v0 = vpop.permute.xlu1 %5029 }
 0x356   : > { %v3736_v3 = vpop.f32.mrf.mxu1  ;;  %v4223_v15 = vpop.f32.mrf.mxu0  ;;  %v3158_v60 = vadd.f32 %v8255_v27, %v9064_v53  ;;  %v9068_v8 = vld [vmem:[#allocation16_spill] sm:$0xff] }
 0x357   : > { %5328 = vst.msk [vmem:[%s7903_s9 + $0x308] sm:$0xff] %vm5230_vm1, %v5199_v5  ;;  %v5204_v24 = vadd.f32 %v8567_v56, %v4232_v22  ;;  %v4224_v52 = vadd.f32 %v4223_v15, %v3679_v26  ;;  %v3150_v56 = vadd.f32 %v8255_v27, %v9065_v59  ;;  %v5035_v3 = vpop.permute.xlu0 %5034 }
 0x358   : > { %v8666_v39 = vpop.f32.mrf.mxu1  ;;  %v6040_v7 = vpop.f32.mrf.mxu0  ;;  %v3703_v28 = vadd.f32 %v8535_v30, %v3158_v60 }
 0x359   : > { %5333 = vst.msk [vmem:[%s7903_s9 + $0x330] sm:$0xff] %vm5230_vm1, %v5204_v24  ;;  %v5202_v34 = vadd.f32 %v8549_v49, %v4224_v52  ;;  %v4235_v43 = vadd.f32 %v6040_v7, %v3690_v25  ;;  %v9066_v49 = vld [vmem:[#allocation13_spill] sm:$0xff]  ;;  %v3695_v4 = vadd.f32 %v8509_v37, %v3150_v56 }
 0x35a   : > { %v3739_v54 = vpop.f32.mrf.mxu1  ;;  %v4226_v12 = vpop.f32.mrf.mxu0  ;;  %v3161_v23 = vadd.f32 %v8255_v27, %v9066_v49  ;;  %v9070_v24 = vld [vmem:[#allocation17_spill] sm:$0xff] }
 0x35b   : > { %5331 = vst.msk [vmem:[%s7903_s9 + $0x320] sm:$0xff] %vm5230_vm1, %v5202_v34  ;;  %v5205_v47 = vadd.f32 %v8581_v35, %v4235_v43  ;;  %v4227_v31 = vadd.f32 %v4226_v12, %v3682_v58  ;;  %v9067_v35 = vld [vmem:[#allocation11_spill] sm:$0xff]  ;;  %v9072_v56 = vld [vmem:[#allocation21_spill] sm:$0xff] }
 0x35c   : > { %v8682_v9 = vpop.f32.mrf.mxu1  ;;  %v6043_v17 = vpop.f32.mrf.mxu0  ;;  %v3153_v42 = vadd.f32 %v8255_v27, %v9067_v35  ;;  %v3706_v45 = vadd.f32 %v8547_v55, %v3161_v23  ;;  %v9071_v58 = vld [vmem:[#allocation15_spill] sm:$0xff]  ;;  %v9073_v23 = vld [vmem:[#allocation18_spill] sm:$0xff] }
 0x35d   : > { %5334 = vst.msk [vmem:[%s7903_s9 + $0x338] sm:$0xff] %vm5230_vm1, %v5205_v47  ;;  %v5203_v30 = vadd.f32 %v8561_v20, %v4227_v31  ;;  %v4248_v32 = vadd.f32 %v6043_v17, %v3703_v28  ;;  %v3174_v20 = vadd.f32 %v8255_v27, %v9068_v8  ;;  %v3169_v34 = vadd.f32 %v8255_v27, %v9071_v58  ;;  %v8728_v28 = vpop.permute.xlu0 %5044 }
 0x35e   : > { %v3744_v21 = vpop.f32.mrf.mxu1  ;;  %v4239_v44 = vpop.f32.mrf.mxu0  ;;  %v3698_v36 = vadd.f32 %v8521_v61, %v3153_v42 }
 0x35f   : > { %5332 = vst.msk [vmem:[%s7903_s9 + $0x328] sm:$0xff] %vm5230_vm1, %v5203_v30  ;;  %v5208_v10 = vadd.f32 %v8611_v13, %v4248_v32  ;;  %v4240_v63 = vadd.f32 %v4239_v44, %v3695_v4  ;;  %v9069_v13 = vld [vmem:[#allocation14_spill] sm:$0xff]  ;;  %v3719_v15 = vadd.f32 %v8588_v40, %v3174_v20  ;;  %v3714_v47 = vadd.f32 %v8573_v33, %v3169_v34 }
 0x360   : > { %v8698_v37 = vpop.f32.mrf.mxu1  ;;  %v6044_v19 = vpop.f32.mrf.mxu0  ;;  %v3166_v22 = vadd.f32 %v8255_v27, %v9069_v13  ;;  %v9074_v44 = vld [vmem:[#allocation22_spill] sm:$0xff] }
 0x361   : > { %5337 = vst.msk [vmem:[%s7903_s9 + $0x350] sm:$0xff] %vm5230_vm1, %v5208_v10  ;;  %v5206_v55 = vadd.f32 %v8590_v6, %v4240_v63  ;;  %v4251_v29 = vadd.f32 %v6044_v19, %v3706_v45  ;;  %v3177_v6 = vadd.f32 %v8255_v27, %v9070_v24  ;;  %v5055_v8 = vpop.permute.xlu0 %5054 }
 0x362   : > { %v3747_v26 = vpop.f32.mrf.mxu1  ;;  %v4242_v5 = vpop.f32.mrf.mxu0  ;;  %v3711_v52 = vadd.f32 %v8559_v48, %v3166_v22 }
 0x363   : > { %5335 = vst.msk [vmem:[%s7903_s9 + $0x340] sm:$0xff] %vm5230_vm1, %v5206_v55  ;;  %v5209_v11 = vadd.f32 %v8625_v14, %v4251_v29  ;;  %v4243_v61 = vadd.f32 %v4242_v5, %v3698_v36  ;;  %v5040_v14 = vpop.permute.xlu1 %5039  ;;  %v3722_v43 = vadd.f32 %v8602_v38, %v3177_v6  ;;  %v9076_v26 = vld [vmem:[#allocation29_spill] sm:$0xff] }
 0x364   : > { %v3750_v57 = vpop.f32.mrf.mxu1  ;;  %v6047_v25 = vpop.f32.mrf.mxu0 }
 0x365   : > { %5338 = vst.msk [vmem:[%s7903_s9 + $0x358] sm:$0xff] %vm5230_vm1, %v5209_v11  ;;  %v5207_v7 = vadd.f32 %v8606_v50, %v4243_v61  ;;  %v4264_v53 = vadd.f32 %v6047_v25, %v3719_v15  ;;  %v3190_v50 = vadd.f32 %v8255_v27, %v9072_v56  ;;  %v9077_v11 = vld [vmem:[#allocation25_spill] sm:$0xff] }
 0x366   : > { %v3752_v40 = vpop.f32.mrf.mxu1  ;;  %v4255_v60 = vpop.f32.mrf.mxu0 }
 0x367   : > { %5336 = vst.msk [vmem:[%s7903_s9 + $0x348] sm:$0xff] %vm5230_vm1, %v5207_v7  ;;  %v5212_v54 = vadd.f32 %v8660_v1, %v4264_v53  ;;  %v4256_v48 = vadd.f32 %v4255_v60, %v3711_v52  ;;  %v3182_v1 = vadd.f32 %v8255_v27, %v9073_v23  ;;  %v3735_v4 = vadd.f32 %v8648_v41, %v3190_v50  ;;  %v8744_v35 = vpop.permute.xlu1 %5049  ;;  %v9078_v7 = vld [vmem:[#allocation32_spill] sm:$0xff]  ;;  %v5065_v40 = vpop.permute.xlu0 %5064  ;;  %v9081_v23 = vld [vmem:[#allocation35_spill] sm:$0xff] }
 0x368   : > { %v3753_v12 = vpop.f32.mrf.mxu1  ;;  %v6048_v59 = vpop.f32.mrf.mxu0  ;;  %v3209_v53 = vadd.f32 %v8255_v27, %v9078_v7 }
 0x369   : > { %5341 = vst.msk [vmem:[%s7903_s9 + $0x370] sm:$0xff] %vm5230_vm1, %v5212_v54  ;;  %v5210_v38 = vadd.f32 %v8636_v2, %v4256_v48  ;;  %v4267_v31 = vadd.f32 %v6048_v59, %v3722_v43  ;;  %v3193_v2 = vadd.f32 %v8255_v27, %v9074_v44  ;;  %v3727_v42 = vadd.f32 %v8618_v46, %v3182_v1  ;;  %v9079_v43 = vld [vmem:[#allocation28_spill] sm:$0xff] }
 0x36a   : > { %v3755_v17 = vpop.f32.mrf.mxu1  ;;  %v4258_v49 = vpop.f32.mrf.mxu0  ;;  %v3754_v54 = vadd.f32 %v3753_v12, %v3209_v53  ;;  %v3214_v1 = vadd.f32 %v8255_v27, %v9081_v23 }
 0x36b   : > { %5339 = vst.msk [vmem:[%s7903_s9 + $0x360] sm:$0xff] %vm5230_vm1, %v5210_v38  ;;  %v5213_v30 = vadd.f32 %v8676_v62, %v4267_v31  ;;  %v4259_v32 = vadd.f32 %v4258_v49, %v3714_v47  ;;  %v9075_v62 = vld [vmem:[#allocation20_spill] sm:$0xff]  ;;  %v3738_v20 = vadd.f32 %v8666_v39, %v3193_v2  ;;  %v5060_v61 = vpop.permute.xlu1 %5059  ;;  %v9082_v2 = vld [vmem:[#allocation42_spill] sm:$0xff] }
 0x36c   : > { %v8740_v33 = vpop.f32.mrf.mxu1  ;;  %v6051_v21 = vpop.f32.mrf.mxu0  ;;  %v3185_v19 = vadd.f32 %v8255_v27, %v9075_v62  ;;  %v6595_v62 = vld [vmem:[%s8825_s2] ss:$0 sm:$0xff] }
 0x36d   : > { %5342 = vst.msk [vmem:[%s7903_s9 + $0x378] sm:$0xff] %vm5230_vm1, %v5213_v30  ;;  %v5211_v41 = vadd.f32 %v8652_v51, %v4259_v32  ;;  %v4280_v45 = vadd.f32 %v6051_v21, %v3735_v4  ;;  %v3206_v51 = vadd.f32 %v8255_v27, %v9076_v26  ;;  %v5075_v4 = vpop.permute.xlu0 %5074 }
 0x36e   : > { %v3760_v10 = vpop.f32.mrf.mxu1  ;;  %v4271_v63 = vpop.f32.mrf.mxu0  ;;  %v3730_v5 = vadd.f32 %v8632_v18, %v3185_v19  ;;  %v9083_v19 = vld [vmem:[#allocation36_spill] sm:$0xff] }
 0x36f   : > { %5340 = vst.msk [vmem:[%s7903_s9 + $0x368] sm:$0xff] %vm5230_vm1, %v5211_v41  ;;  %v5216_v36 = vadd.f32 %v5035_v3, %v4280_v45  ;;  %v4272_v55 = vadd.f32 %v4271_v63, %v3727_v42  ;;  %v3198_v3 = vadd.f32 %v8255_v27, %v9077_v11  ;;  %v3751_v25 = vadd.f32 %v3750_v57, %v3206_v51  ;;  %v5070_v38 = vpop.permute.xlu1 %5069  ;;  %v9085_v11 = vld [vmem:[#allocation49_spill] sm:$0xff] }
 0x370   : > { %v8755_v46 = vpop.f32.mrf.mxu1  ;;  %v6052_v29 = vpop.f32.mrf.mxu0  ;;  %v3225_v42 = vadd.f32 %v8255_v27, %v9082_v2 }
 0x371   : > { %5345 = vst.msk [vmem:[%s7903_s9 + $0x390] sm:$0xff] %vm5230_vm1, %v5216_v36  ;;  %v5214_v13 = vadd.f32 %v8686_v16, %v4272_v55  ;;  %v4283_v22 = vadd.f32 %v6052_v29, %v3738_v20  ;;  %v3743_v16 = vadd.f32 %v8682_v9, %v3198_v3  ;;  %v9080_v9 = vld [vmem:[#allocation39_spill] sm:$0xff]  ;;  %v5085_v26 = vpop.permute.xlu0 %5084  ;;  %v3238_v3 = vadd.f32 %v6595_v62, %v9085_v11 }
 0x372   : > { %v3763_v39 = vpop.f32.mrf.mxu1  ;;  %v4274_v15 = vpop.f32.mrf.mxu0  ;;  %v3222_v47 = vadd.f32 %v8255_v27, %v9080_v9 }
 0x373   : > { %5343 = vst.msk [vmem:[%s7903_s9 + $0x380] sm:$0xff] %vm5230_vm1, %v5214_v13  ;;  %v5217_v24 = vadd.f32 %v5040_v14, %v4283_v22  ;;  %v4275_v6 = vadd.f32 %v4274_v15, %v3730_v5  ;;  %v3201_v14 = vadd.f32 %v8255_v27, %v9079_v43  ;;  %v5080_v20 = vpop.permute.xlu1 %5079  ;;  %v9084_v39 = vld [vmem:[#allocation43_spill] sm:$0xff] }
 0x374   : > { %v3766_v52 = vpop.f32.mrf.mxu1  ;;  %v6055_v18 = vpop.f32.mrf.mxu0  ;;  %v3230_v15 = vadd.f32 %v6595_v62, %v9084_v39 }
 0x375   : > { %5346 = vst.msk [vmem:[%s7903_s9 + $0x398] sm:$0xff] %vm5230_vm1, %v5217_v24  ;;  %v5215_v60 = vadd.f32 %v8702_v0, %v4275_v6  ;;  %v4296_v58 = vadd.f32 %v6055_v18, %v3751_v25  ;;  %v3746_v0 = vadd.f32 %v8698_v37, %v3201_v14  ;;  %v3767_v30 = vadd.f32 %v3766_v52, %v3222_v47 }
 0x376   : > { %v3768_v57 = vpop.f32.mrf.mxu1  ;;  %v4287_v34 = vpop.f32.mrf.mxu0 }
 0x377   : > { %5344 = vst.msk [vmem:[%s7903_s9 + $0x388] sm:$0xff] %vm5230_vm1, %v5215_v60  ;;  %v5220_v48 = vadd.f32 %v5055_v8, %v4296_v58  ;;  %v4288_v59 = vadd.f32 %v4287_v34, %v3743_v16  ;;  %v3217_v8 = vadd.f32 %v6595_v62, %v9083_v19  ;;  %v5090_v52 = vpop.permute.xlu1 %5089  ;;  %v9086_v16 = vld [vmem:[#allocation46_spill] sm:$0xff]  ;;  %v5095_v34 = vpop.permute.xlu0 %5094 }
 0x378   : > { %v3769_v56 = vpop.f32.mrf.mxu1  ;;  %v6056_v50 = vpop.f32.mrf.mxu0  ;;  %v3233_v60 = vadd.f32 %v6595_v62, %v9086_v16  ;;  %v9087_v58 = vld [vmem:[#allocation50_spill] sm:$0xff] }
 0x379   : > { %5349 = vst.msk [vmem:[%s7903_s9 + $0x3b0] sm:$0xff] %vm5230_vm1, %v5220_v48  ;;  %v5218_v31 = vadd.f32 %v8728_v28, %v4288_v59  ;;  %v4299_v17 = vadd.f32 %v6056_v50, %v3754_v54  ;;  %v3759_v28 = vadd.f32 %v8740_v33, %v3214_v1  ;;  %v3770_v36 = vadd.f32 %v3769_v56, %v3225_v42 }
 0x37a   : > { %v3771_v12 = vpop.f32.mrf.mxu1  ;;  %v4290_v49 = vpop.f32.mrf.mxu0  ;;  %v3241_v57 = vadd.f32 %v6595_v62, %v9087_v58 }
 0x37b   : > { %5347 = vst.msk [vmem:[%s7903_s9 + $0x3a0] sm:$0xff] %vm5230_vm1, %v5218_v31  ;;  %v5221_v32 = vadd.f32 %v5060_v61, %v4299_v17  ;;  %v4291_v21 = vadd.f32 %v4290_v49, %v3746_v0  ;;  %v5100_v17 = vpop.permute.xlu1 %5099 }
 0x37c   : > { %v3774_v44 = vpop.f32.mrf.mxu1  ;;  %v6059_v37 = vpop.f32.mrf.mxu0 }
 0x37d   : > { %5350 = vst.msk [vmem:[%s7903_s9 + $0x3b8] sm:$0xff] %vm5230_vm1, %v5221_v32  ;;  %v5219_v41 = vadd.f32 %v8744_v35, %v4291_v21  ;;  %v4312_v45 = vadd.f32 %v6059_v37, %v3767_v30  ;;  %v3762_v35 = vadd.f32 %v8755_v46, %v3217_v8  ;;  %v3775_v18 = vadd.f32 %v3774_v44, %v3230_v15 }
 0x37e   : > { %v3776_v10 = vpop.f32.mrf.mxu1  ;;  %v4303_v63 = vpop.f32.mrf.mxu0 }
 0x37f   : > { %5348 = vst.msk [vmem:[%s7903_s9 + $0x3a8] sm:$0xff] %vm5230_vm1, %v5219_v41  ;;  %v5224_v27 = vadd.f32 %v5075_v4, %v4312_v45  ;;  %v4304_v33 = vadd.f32 %v4303_v63, %v3759_v28 }
 0x380   : > { %v3777_v55 = vpop.f32.mrf.mxu1  ;;  %v6060_v29 = vpop.f32.mrf.mxu0 }
 0x381   : > { %5353 = vst.msk [vmem:[%s7903_s9 + $0x3d0] sm:$0xff] %vm5230_vm1, %v5224_v27  ;;  %v5222_v51 = vadd.f32 %v5065_v40, %v4304_v33  ;;  %v4315_v5 = vadd.f32 %v6060_v29, %v3770_v36  ;;  %v3778_v59 = vadd.f32 %v3777_v55, %v3233_v60 }
 0x382   : > { %v3779_v13 = vpop.f32.mrf.mxu1  ;;  %v4306_v22 = vpop.f32.mrf.mxu0 }
 0x383   : > { %5351 = vst.msk [vmem:[%s7903_s9 + $0x3c0] sm:$0xff] %vm5230_vm1, %v5222_v51  ;;  %v5225_v61 = vadd.f32 %v5080_v20, %v4315_v5  ;;  %v4307_v25 = vadd.f32 %v4306_v22, %v3762_v35 }
 0x384   : > { %v3782_v24 = vpop.f32.mrf.mxu1  ;;  %v6063_v6 = vpop.f32.mrf.mxu0 }
 0x385   : > { %5354 = vst.msk [vmem:[%s7903_s9 + $0x3d8] sm:$0xff] %vm5230_vm1, %v5225_v61  ;;  %v5223_v46 = vadd.f32 %v5070_v38, %v4307_v25  ;;  %v3783_v7 = vadd.f32 %v3782_v24, %v3238_v3 }
 0x386   : > { %v3784_v53 = vpop.f32.mrf.mxu1  ;;  %v4319_v40 = vpop.f32.mrf.mxu0 }
 0x387   : > { %5352 = vst.msk [vmem:[%s7903_s9 + $0x3c8] sm:$0xff] %vm5230_vm1, %v5223_v46  ;;  %v4328_v43 = vadd.f32 %v6063_v6, %v3783_v7  ;;  %v4320_v14 = vadd.f32 %v4319_v40, %v3775_v18 }
 0x388   : > { %v3785_v54 = vpop.f32.mrf.mxu1  ;;  %v6064_v48 = vpop.f32.mrf.mxu0 }
 0x389   : > { %v5228_v56 = vadd.f32 %v5095_v34, %v4328_v43  ;;  %v5226_v50 = vadd.f32 %v5085_v26, %v4320_v14  ;;  %v3786_v9 = vadd.f32 %v3785_v54, %v3241_v57 }
 0x38a   : > { %v3787_v47 = vpop.f32.mrf.mxu1  ;;  %v4322_v38 = vpop.f32.mrf.mxu0 }
 0x38b   : > { %5357 = vst.msk [vmem:[%s7903_s9 + $0x3f0] sm:$0xff] %vm5230_vm1, %v5228_v56  ;;  %5355 = vst.msk [vmem:[%s7903_s9 + $0x3e0] sm:$0xff] %vm5230_vm1, %v5226_v50  ;;  %v4331_v0 = vadd.f32 %v6064_v48, %v3786_v9  ;;  %v4323_v31 = vadd.f32 %v4322_v38, %v3778_v59 }
 0x38d   : > { %v5229_v12 = vadd.f32 %v5100_v17, %v4331_v0  ;;  %v5227_v49 = vadd.f32 %v5090_v52, %v4323_v31 }
 0x38f   : > { %5358 = vst.msk [vmem:[%s7903_s9 + $0x3f8] sm:$0xff] %vm5230_vm1, %v5229_v12  ;;  %5356 = vst.msk [vmem:[%s7903_s9 + $0x3e8] sm:$0xff] %vm5230_vm1, %v5227_v49 }
 0x390 PF: > { %s14_s15 = sadd.s32 1, %s6602_s15  }
 0x391   : > { %p11_p4 = scmp.ge.s32.totalorder %s14_s15, 4  }
 0x393   :  { %13 = sbr.rel (!%p11_p4) target bundleno = 1 (0x1), region = 69 }

</bundles_post_ra>
